<compile_context>
chip_gen: v5e
topology: v5e:2x2
jax: 0.10.0
libtpu: 0.0.40
codegen_flags: <defaults>
</compile_context>

<pallas_src>
import jax
import jax.numpy as jnp
from jax import lax
from jax.experimental import pallas as pl
from jax.experimental.pallas import tpu as pltpu


# ----------------------------------------------------------------------------
# Fused Pallas kernel: all branches + projection for one batch item.
# ----------------------------------------------------------------------------
def _make_fused_aspp_kernel(H, W, K, rates, pad):
    n_rates = len(rates)
    HW = H * W
    ctr = (K - 1) // 2

    def kernel(xp_ref, w0_ref, wr_ref, wp_ref, wproj_ref, b_ref, o_ref,
               col_ref, acc_ref):
        Cin = xp_ref.shape[-1]

        # Center (un-padded) window of the input, flattened to (H*W, Cin).
        xc = xp_ref[0, pad:pad + H, pad:pad + W, :].reshape(HW, Cin)

        # ---- branch 0: 1x1 conv (BN folded) + ReLU, projected on the fly.
        y0 = jnp.maximum(
            jnp.dot(xc, w0_ref[...], preferred_element_type=jnp.float32)
            + b_ref[0:1, :], 0.0)
        acc_ref[...] = jnp.dot(y0, wproj_ref[0],
                               preferred_element_type=jnp.float32)

        # ---- dilated 3x3 branches: im2col -> ONE fat MXU matmul per branch.
        for i, d in enumerate(rates):
            for kh in range(K):
                for kw in range(K):
                    sh = pad + d * (kh - ctr)
                    sw = pad + d * (kw - ctr)
                    t = kh * K + kw
                    col_ref[:, t * Cin:(t + 1) * Cin] = (
                        xp_ref[0, sh:sh + H, sw:sw + W, :].reshape(HW, Cin))
            yi = jnp.maximum(
                jnp.dot(col_ref[...], wr_ref[i],
                        preferred_element_type=jnp.float32)
                + b_ref[1 + i:2 + i, :], 0.0)
            acc_ref[...] = acc_ref[...] + jnp.dot(
                yi, wproj_ref[1 + i], preferred_element_type=jnp.float32)

        # ---- pooling branch: global mean -> 1x1 conv -> ReLU.  Its projected
        # contribution is a constant (1, Cout) row (bilinear upsample of a 1x1
        # map with align_corners=False == broadcast), so it is folded into the
        # final bias instead of materializing an (H, W, Cout) tensor.
        pooled = jnp.sum(xc, axis=0, keepdims=True) * (1.0 / float(HW))
        v = jnp.maximum(
            jnp.dot(pooled, wp_ref[...], preferred_element_type=jnp.float32)
            + b_ref[1 + n_rates:2 + n_rates, :], 0.0)
        const_row = (jnp.dot(v, wproj_ref[1 + n_rates],
                             preferred_element_type=jnp.float32)
                     + b_ref[2 + n_rates:3 + n_rates, :])

        # ---- projection bias + ReLU; lane-dense (H*W, Cout) store.
        # TODO(synk): nn.Dropout(0.5) is identity in eval mode; train-mode
        # dropout not implemented.
        o_ref[0] = jnp.maximum(acc_ref[...] + const_row, 0.0).astype(o_ref.dtype)

    return kernel


# ----------------------------------------------------------------------------
# Wrapper: fold BN, pad once, single pallas_call.
# ----------------------------------------------------------------------------
def aspp_forward(x, params):
    B, H, W, Cin = x.shape
    rates = params["rates"]
    n_rates = len(rates)
    K = 3
    Cout = params["b0_w"].shape[-1]
    nb = n_rates + 2                      # 1x1 branch + dilated branches + pool
    HW = H * W

    # Single pad with the maximum dilation (pad = rate for a 3x3 conv).
    P = max(rates)
    xpad = jnp.pad(x, ((0, 0), (P, P), (P, P), (0, 0)))
    Hp, Wp = H + 2 * P, W + 2 * P

    # Fold eval-mode BN scale into the conv weights; keep per-branch biases.
    s0, b0 = params["b0_bn"]
    w0 = params["b0_w"].reshape(Cin, Cout) * s0.reshape(1, Cout)
    wr, br = [], []
    for i in range(n_rates):
        s, b = params[f"r{i}_bn"]
        wr.append(params[f"r{i}_w"].reshape(K * K * Cin, Cout) * s.reshape(1, Cout))
        br.append(b.reshape(Cout))
    wr = jnp.stack(wr)                                        # (n_rates, 9*Cin, Cout)
    sp, bp = params["pool_bn"]
    wpool = params["pool_w"] * sp.reshape(1, Cout)            # (Cin, Cout)
    sj, bj = params["proj_bn"]
    wproj = (params["proj_w"].reshape(nb * Cout, Cout)
             * sj.reshape(1, Cout)).reshape(nb, Cout, Cout)   # (nb, Cout, Cout)
    b_all = jnp.stack([b0.reshape(Cout)] + br
                      + [bp.reshape(Cout), bj.reshape(Cout)])  # (nb+1, Cout)

    # Cost estimate so XLA schedules the (single) custom call sensibly.
    flops = B * (2 * HW * Cin * Cout
                 + n_rates * 2 * HW * (K * K * Cin) * Cout
                 + (n_rates + 1) * 2 * HW * Cout * Cout
                 + 2 * Cin * Cout + 2 * Cout * Cout)
    bytes_accessed = 4 * (xpad.size + w0.size + wr.size + wpool.size
                          + wproj.size + b_all.size + B * HW * Cout)

    kernel = _make_fused_aspp_kernel(H, W, K, rates, P)
    out = pl.pallas_call(
        kernel,
        out_shape=jax.ShapeDtypeStruct((B, HW, Cout), x.dtype),
        grid=(B,),
        in_specs=[
            pl.BlockSpec((1, Hp, Wp, Cin), lambda b: (b, 0, 0, 0)),
            pl.BlockSpec((Cin, Cout), lambda b: (0, 0)),
            pl.BlockSpec((n_rates, K * K * Cin, Cout), lambda b: (0, 0, 0)),
            pl.BlockSpec((Cin, Cout), lambda b: (0, 0)),
            pl.BlockSpec((nb, Cout, Cout), lambda b: (0, 0, 0)),
            pl.BlockSpec((nb + 1, Cout), lambda b: (0, 0)),
        ],
        out_specs=pl.BlockSpec((1, HW, Cout), lambda b: (b, 0, 0)),
        scratch_shapes=[
            pltpu.VMEM((HW, K * K * Cin), jnp.float32),   # im2col buffer
            pltpu.VMEM((HW, Cout), jnp.float32),          # projection accumulator
        ],
        compiler_params=pltpu.CompilerParams(
            dimension_semantics=("parallel",),            # B split across v7x TCs
            vmem_limit_bytes=32 * 1024 * 1024),
        cost_estimate=pl.CostEstimate(flops=int(flops), transcendentals=0,
                                      bytes_accessed=int(bytes_accessed)),
    )(xpad, w0, wr, wpool, wproj, b_all)
    return out.reshape(B, H, W, Cout)                      # free metadata reshape


# ----------------------------------------------------------------------------
# Parameter init (deterministic; eval-mode BN expressed as scale/bias).
# ----------------------------------------------------------------------------
def _bn_fold(key, c, eps=1e-5):
    k1, k2, k3, k4 = jax.random.split(key, 4)
    gamma = 1.0 + 0.1 * jax.random.normal(k1, (c,), jnp.float32)
    beta = 0.1 * jax.random.normal(k2, (c,), jnp.float32)
    mean = 0.05 * jax.random.normal(k3, (c,), jnp.float32)
    var = 1.0 + 0.1 * jnp.abs(jax.random.normal(k4, (c,), jnp.float32))
    scale = gamma / jnp.sqrt(var + eps)
    bias = beta - mean * scale
    return scale.reshape(1, c), bias.reshape(1, c)


def init_aspp_params(key, in_channels, atrous_rates, out_channels):
    n_keys = 2 * (2 + len(atrous_rates)) + 2
    keys = iter(jax.random.split(key, n_keys))
    p = {"rates": tuple(atrous_rates)}
    p["b0_w"] = 0.1 * jax.random.normal(next(keys), (1, 1, in_channels, out_channels), jnp.float32)
    p["b0_bn"] = _bn_fold(next(keys), out_channels)
    for i, _ in enumerate(atrous_rates):
        p[f"r{i}_w"] = 0.1 * jax.random.normal(next(keys), (3, 3, in_channels, out_channels), jnp.float32)
        p[f"r{i}_bn"] = _bn_fold(next(keys), out_channels)
    p["pool_w"] = 0.1 * jax.random.normal(next(keys), (in_channels, out_channels), jnp.float32)
    p["pool_bn"] = _bn_fold(next(keys), out_channels)
    cat_c = (2 + len(atrous_rates)) * out_channels
    kw, kb = jax.random.split(jax.random.fold_in(key, 12345))
    p["proj_w"] = 0.1 * jax.random.normal(kw, (1, 1, cat_c, out_channels), jnp.float32)
    p["proj_bn"] = _bn_fold(kb, out_channels)
    return p


# ----------------------------------------------------------------------------
# Pure-JAX reference (un-fused, un-folded) for validation.
# ----------------------------------------------------------------------------
def _ref_conv_bn_relu(x, w_hwio, scale, bias, dilation=1):
    K = w_hwio.shape[0]
    pad = dilation * (K - 1) // 2
    y = lax.conv_general_dilated(
        x, w_hwio, window_strides=(1, 1),
        padding=[(pad, pad), (pad, pad)], rhs_dilation=(dilation, dilation),
        dimension_numbers=("NHWC", "HWIO", "NHWC"))
    return jnp.maximum(y * scale.reshape(1, 1, 1, -1) + bias.reshape(1, 1, 1, -1), 0.0)


def aspp_reference(x, params):
    branches = [_ref_conv_bn_relu(x, params["b0_w"], *params["b0_bn"])]
    for i, rate in enumerate(params["rates"]):
        branches.append(_ref_conv_bn_relu(x, params[f"r{i}_w"], *params[f"r{i}_bn"],
                                          dilation=rate))
    pooled = jnp.mean(x, axis=(1, 2), keepdims=True)
    y = jnp.einsum("bhwc,cd->bhwd", pooled, params["pool_w"])
    s, b = params["pool_bn"]
    y = jnp.maximum(y * s.reshape(1, 1, 1, -1) + b.reshape(1, 1, 1, -1), 0.0)
    branches.append(jnp.broadcast_to(y, x.shape[:3] + (params["pool_w"].shape[-1],)))
    cat = jnp.concatenate(branches, axis=-1)
    return _ref_conv_bn_relu(cat, params["proj_w"], *params["proj_bn"])


# ----------------------------------------------------------------------------
if __name__ == "__main__":
    B, Cin, H, W = 2, 32, 16, 16
    rates = (1, 2, 3)
    Cout = 128            # small stand-in for the module default 256; lane-aligned

    key = jax.random.PRNGKey(0)
    kx, kp = jax.random.split(key)
    x = jax.random.normal(kx, (B, H, W, Cin), jnp.float32)   # NHWC
    params = init_aspp_params(kp, Cin, rates, Cout)

    out = jax.block_until_ready(aspp_forward(x, params))
    ref = aspp_reference(x, params)

    assert out.shape == (B, H, W, Cout), out.shape
    max_err = float(jnp.abs(out - ref).max())
    assert jnp.allclose(out, ref, atol=5e-4, rtol=5e-4), max_err
    print("KERNEL_OK")
</pallas_src>

<mosaic_0001>
module attributes {stable_mosaic.version = 11 : i64} {
  func.func @kernel(%arg0: i32, %arg1: memref<1x22x22x32xf32, #tpu.memory_space<vmem>>, %arg2: memref<32x128xf32, #tpu.memory_space<vmem>>, %arg3: memref<3x288x128xf32, #tpu.memory_space<vmem>>, %arg4: memref<32x128xf32, #tpu.memory_space<vmem>>, %arg5: memref<5x128x128xf32, #tpu.memory_space<vmem>>, %arg6: memref<6x128xf32, #tpu.memory_space<vmem>>, %arg7: memref<1x256x128xf32, #tpu.memory_space<vmem>>, %arg8: memref<256x288xf32, #tpu.memory_space<vmem>>, %arg9: memref<256x128xf32, #tpu.memory_space<vmem>>) attributes {dimension_semantics = [#tpu.dimension_semantics<parallel>], iteration_bounds = array<i64: 2>, scalar_prefetch = 0 : i64, scratch_operands = 2 : i64, tpu.core_type = #tpu.core_type<tc>, window_params = [{transform_indices = @transform_0, window_bounds = array<i64: 1, 22, 22, 32>}, {pipeline_mode = #tpu.pipeline_mode<synchronous>, transform_indices = @transform_1, window_bounds = array<i64: 32, 128>}, {pipeline_mode = #tpu.pipeline_mode<synchronous>, transform_indices = @transform_2, window_bounds = array<i64: 3, 288, 128>}, {pipeline_mode = #tpu.pipeline_mode<synchronous>, transform_indices = @transform_3, window_bounds = array<i64: 32, 128>}, {pipeline_mode = #tpu.pipeline_mode<synchronous>, transform_indices = @transform_4, window_bounds = array<i64: 5, 128, 128>}, {pipeline_mode = #tpu.pipeline_mode<synchronous>, transform_indices = @transform_5, window_bounds = array<i64: 6, 128>}, {transform_indices = @transform_6, window_bounds = array<i64: 1, 256, 128>}]} {
    %c0 = arith.constant 0 : index
    %c3 = arith.constant 3 : index
    %c3_0 = arith.constant 3 : index
    %c0_1 = arith.constant 0 : index
    %0 = vector.load %arg1[%c0, %c3, %c3_0, %c0_1] : memref<1x22x22x32xf32, #tpu.memory_space<vmem>>, vector<1x16x16x32xf32>
    %1 = vector.shape_cast %0 : vector<1x16x16x32xf32> to vector<16x16x32xf32>
    %2 = vector.shape_cast %1 : vector<16x16x32xf32> to vector<256x32xf32>
    %c0_2 = arith.constant 0 : index
    %c0_3 = arith.constant 0 : index
    %3 = vector.load %arg2[%c0_2, %c0_3] : memref<32x128xf32, #tpu.memory_space<vmem>>, vector<32x128xf32>
    %cst = arith.constant dense<0.000000e+00> : vector<256x128xf32>
    %4 = tpu.matmul %2, %3, %cst {dimension_numbers = #tpu.dot_dimension_numbers<[1], [0], [0], [1], [0, 0, 1, 1], [], []>} : vector<256x32xf32>, vector<32x128xf32>, vector<256x128xf32> -> vector<256x128xf32>
    %c0_4 = arith.constant 0 : index
    %c0_5 = arith.constant 0 : index
    %5 = vector.load %arg6[%c0_4, %c0_5] : memref<6x128xf32, #tpu.memory_space<vmem>>, vector<1x128xf32>
    %6 = vector.broadcast %5 : vector<1x128xf32> to vector<256x128xf32>
    %7 = arith.addf %4, %6 : vector<256x128xf32>
    %cst_6 = arith.constant 0.000000e+00 : f32
    %8 = vector.broadcast %cst_6 : f32 to vector<256x128xf32>
    %9 = arith.maximumf %7, %8 : vector<256x128xf32>
    %c0_7 = arith.constant 0 : index
    %c0_8 = arith.constant 0 : index
    %c0_9 = arith.constant 0 : index
    %10 = vector.load %arg5[%c0_7, %c0_8, %c0_9] : memref<5x128x128xf32, #tpu.memory_space<vmem>>, vector<1x128x128xf32>
    %11 = vector.shape_cast %10 : vector<1x128x128xf32> to vector<128x128xf32>
    %cst_10 = arith.constant dense<0.000000e+00> : vector<256x128xf32>
    %12 = tpu.matmul %9, %11, %cst_10 {dimension_numbers = #tpu.dot_dimension_numbers<[1], [0], [0], [1], [0, 0, 1, 1], [], []>} : vector<256x128xf32>, vector<128x128xf32>, vector<256x128xf32> -> vector<256x128xf32>
    %c0_11 = arith.constant 0 : index
    %c0_12 = arith.constant 0 : index
    %13 = vector.load %arg9[%c0_11, %c0_12] : memref<256x128xf32, #tpu.memory_space<vmem>>, vector<256x128xf32>
    tpu.vector_store %arg9[%c0_11, %c0_12], %12 {strides = array<i32>} : memref<256x128xf32, #tpu.memory_space<vmem>>, vector<256x128xf32>,
    %c0_13 = arith.constant 0 : index
    %c2 = arith.constant 2 : index
    %c2_14 = arith.constant 2 : index
    %c0_15 = arith.constant 0 : index
    %14 = vector.load %arg1[%c0_13, %c2, %c2_14, %c0_15] : memref<1x22x22x32xf32, #tpu.memory_space<vmem>>, vector<1x16x16x32xf32>
    %15 = vector.shape_cast %14 : vector<1x16x16x32xf32> to vector<16x16x32xf32>
    %16 = vector.shape_cast %15 : vector<16x16x32xf32> to vector<256x32xf32>
    %c0_16 = arith.constant 0 : index
    %c0_17 = arith.constant 0 : index
    %17 = vector.load %arg8[%c0_16, %c0_17] : memref<256x288xf32, #tpu.memory_space<vmem>>, vector<256x32xf32>
    tpu.vector_store %arg8[%c0_16, %c0_17], %16 {strides = array<i32>} : memref<256x288xf32, #tpu.memory_space<vmem>>, vector<256x32xf32>,
    %c0_18 = arith.constant 0 : index
    %c2_19 = arith.constant 2 : index
    %c3_20 = arith.constant 3 : index
    %c0_21 = arith.constant 0 : index
    %18 = vector.load %arg1[%c0_18, %c2_19, %c3_20, %c0_21] : memref<1x22x22x32xf32, #tpu.memory_space<vmem>>, vector<1x16x16x32xf32>
    %19 = vector.shape_cast %18 : vector<1x16x16x32xf32> to vector<16x16x32xf32>
    %20 = vector.shape_cast %19 : vector<16x16x32xf32> to vector<256x32xf32>
    %c0_22 = arith.constant 0 : index
    %c32 = arith.constant 32 : index
    %21 = vector.load %arg8[%c0_22, %c32] : memref<256x288xf32, #tpu.memory_space<vmem>>, vector<256x32xf32>
    tpu.vector_store %arg8[%c0_22, %c32], %20 {strides = array<i32>} : memref<256x288xf32, #tpu.memory_space<vmem>>, vector<256x32xf32>,
    %c0_23 = arith.constant 0 : index
    %c2_24 = arith.constant 2 : index
    %c4 = arith.constant 4 : index
    %c0_25 = arith.constant 0 : index
    %22 = vector.load %arg1[%c0_23, %c2_24, %c4, %c0_25] : memref<1x22x22x32xf32, #tpu.memory_space<vmem>>, vector<1x16x16x32xf32>
    %23 = vector.shape_cast %22 : vector<1x16x16x32xf32> to vector<16x16x32xf32>
    %24 = vector.shape_cast %23 : vector<16x16x32xf32> to vector<256x32xf32>
    %c0_26 = arith.constant 0 : index
    %c64 = arith.constant 64 : index
    %25 = vector.load %arg8[%c0_26, %c64] : memref<256x288xf32, #tpu.memory_space<vmem>>, vector<256x32xf32>
    tpu.vector_store %arg8[%c0_26, %c64], %24 {strides = array<i32>} : memref<256x288xf32, #tpu.memory_space<vmem>>, vector<256x32xf32>,
    %c0_27 = arith.constant 0 : index
    %c3_28 = arith.constant 3 : index
    %c2_29 = arith.constant 2 : index
    %c0_30 = arith.constant 0 : index
    %26 = vector.load %arg1[%c0_27, %c3_28, %c2_29, %c0_30] : memref<1x22x22x32xf32, #tpu.memory_space<vmem>>, vector<1x16x16x32xf32>
    %27 = vector.shape_cast %26 : vector<1x16x16x32xf32> to vector<16x16x32xf32>
    %28 = vector.shape_cast %27 : vector<16x16x32xf32> to vector<256x32xf32>
    %c0_31 = arith.constant 0 : index
    %c96 = arith.constant 96 : index
    %29 = vector.load %arg8[%c0_31, %c96] : memref<256x288xf32, #tpu.memory_space<vmem>>, vector<256x32xf32>
    tpu.vector_store %arg8[%c0_31, %c96], %28 {strides = array<i32>} : memref<256x288xf32, #tpu.memory_space<vmem>>, vector<256x32xf32>,
    %c0_32 = arith.constant 0 : index
    %c3_33 = arith.constant 3 : index
    %c3_34 = arith.constant 3 : index
    %c0_35 = arith.constant 0 : index
    %30 = vector.load %arg1[%c0_32, %c3_33, %c3_34, %c0_35] : memref<1x22x22x32xf32, #tpu.memory_space<vmem>>, vector<1x16x16x32xf32>
    %31 = vector.shape_cast %30 : vector<1x16x16x32xf32> to vector<16x16x32xf32>
    %32 = vector.shape_cast %31 : vector<16x16x32xf32> to vector<256x32xf32>
    %c0_36 = arith.constant 0 : index
    %c128 = arith.constant 128 : index
    %33 = vector.load %arg8[%c0_36, %c128] : memref<256x288xf32, #tpu.memory_space<vmem>>, vector<256x32xf32>
    tpu.vector_store %arg8[%c0_36, %c128], %32 {strides = array<i32>} : memref<256x288xf32, #tpu.memory_space<vmem>>, vector<256x32xf32>,
    %c0_37 = arith.constant 0 : index
    %c3_38 = arith.constant 3 : index
    %c4_39 = arith.constant 4 : index
    %c0_40 = arith.constant 0 : index
    %34 = vector.load %arg1[%c0_37, %c3_38, %c4_39, %c0_40] : memref<1x22x22x32xf32, #tpu.memory_space<vmem>>, vector<1x16x16x32xf32>
    %35 = vector.shape_cast %34 : vector<1x16x16x32xf32> to vector<16x16x32xf32>
    %36 = vector.shape_cast %35 : vector<16x16x32xf32> to vector<256x32xf32>
    %c0_41 = arith.constant 0 : index
    %c160 = arith.constant 160 : index
    %37 = vector.load %arg8[%c0_41, %c160] : memref<256x288xf32, #tpu.memory_space<vmem>>, vector<256x32xf32>
    tpu.vector_store %arg8[%c0_41, %c160], %36 {strides = array<i32>} : memref<256x288xf32, #tpu.memory_space<vmem>>, vector<256x32xf32>,
    %c0_42 = arith.constant 0 : index
    %c4_43 = arith.constant 4 : index
    %c2_44 = arith.constant 2 : index
    %c0_45 = arith.constant 0 : index
    %38 = vector.load %arg1[%c0_42, %c4_43, %c2_44, %c0_45] : memref<1x22x22x32xf32, #tpu.memory_space<vmem>>, vector<1x16x16x32xf32>
    %39 = vector.shape_cast %38 : vector<1x16x16x32xf32> to vector<16x16x32xf32>
    %40 = vector.shape_cast %39 : vector<16x16x32xf32> to vector<256x32xf32>
    %c0_46 = arith.constant 0 : index
    %c192 = arith.constant 192 : index
    %41 = vector.load %arg8[%c0_46, %c192] : memref<256x288xf32, #tpu.memory_space<vmem>>, vector<256x32xf32>
    tpu.vector_store %arg8[%c0_46, %c192], %40 {strides = array<i32>} : memref<256x288xf32, #tpu.memory_space<vmem>>, vector<256x32xf32>,
    %c0_47 = arith.constant 0 : index
    %c4_48 = arith.constant 4 : index
    %c3_49 = arith.constant 3 : index
    %c0_50 = arith.constant 0 : index
    %42 = vector.load %arg1[%c0_47, %c4_48, %c3_49, %c0_50] : memref<1x22x22x32xf32, #tpu.memory_space<vmem>>, vector<1x16x16x32xf32>
    %43 = vector.shape_cast %42 : vector<1x16x16x32xf32> to vector<16x16x32xf32>
    %44 = vector.shape_cast %43 : vector<16x16x32xf32> to vector<256x32xf32>
    %c0_51 = arith.constant 0 : index
    %c224 = arith.constant 224 : index
    %45 = vector.load %arg8[%c0_51, %c224] : memref<256x288xf32, #tpu.memory_space<vmem>>, vector<256x32xf32>
    tpu.vector_store %arg8[%c0_51, %c224], %44 {strides = array<i32>} : memref<256x288xf32, #tpu.memory_space<vmem>>, vector<256x32xf32>,
    %c0_52 = arith.constant 0 : index
    %c4_53 = arith.constant 4 : index
    %c4_54 = arith.constant 4 : index
    %c0_55 = arith.constant 0 : index
    %46 = vector.load %arg1[%c0_52, %c4_53, %c4_54, %c0_55] : memref<1x22x22x32xf32, #tpu.memory_space<vmem>>, vector<1x16x16x32xf32>
    %47 = vector.shape_cast %46 : vector<1x16x16x32xf32> to vector<16x16x32xf32>
    %48 = vector.shape_cast %47 : vector<16x16x32xf32> to vector<256x32xf32>
    %c0_56 = arith.constant 0 : index
    %c256 = arith.constant 256 : index
    %49 = vector.load %arg8[%c0_56, %c256] : memref<256x288xf32, #tpu.memory_space<vmem>>, vector<256x32xf32>
    tpu.vector_store %arg8[%c0_56, %c256], %48 {strides = array<i32>} : memref<256x288xf32, #tpu.memory_space<vmem>>, vector<256x32xf32>,
    %c0_57 = arith.constant 0 : index
    %c0_58 = arith.constant 0 : index
    %50 = vector.load %arg8[%c0_57, %c0_58] : memref<256x288xf32, #tpu.memory_space<vmem>>, vector<256x288xf32>
    %c0_59 = arith.constant 0 : index
    %c0_60 = arith.constant 0 : index
    %c0_61 = arith.constant 0 : index
    %51 = vector.load %arg3[%c0_59, %c0_60, %c0_61] : memref<3x288x128xf32, #tpu.memory_space<vmem>>, vector<1x288x128xf32>
    %52 = vector.shape_cast %51 : vector<1x288x128xf32> to vector<288x128xf32>
    %cst_62 = arith.constant dense<0.000000e+00> : vector<256x128xf32>
    %53 = tpu.matmul %50, %52, %cst_62 {dimension_numbers = #tpu.dot_dimension_numbers<[1], [0], [0], [1], [0, 0, 1, 1], [], []>} : vector<256x288xf32>, vector<288x128xf32>, vector<256x128xf32> -> vector<256x128xf32>
    %c1 = arith.constant 1 : index
    %c0_63 = arith.constant 0 : index
    %54 = vector.load %arg6[%c1, %c0_63] : memref<6x128xf32, #tpu.memory_space<vmem>>, vector<1x128xf32>
    %55 = vector.broadcast %54 : vector<1x128xf32> to vector<256x128xf32>
    %56 = arith.addf %53, %55 : vector<256x128xf32>
    %cst_64 = arith.constant 0.000000e+00 : f32
    %57 = vector.broadcast %cst_64 : f32 to vector<256x128xf32>
    %58 = arith.maximumf %56, %57 : vector<256x128xf32>
    %c0_65 = arith.constant 0 : index
    %c0_66 = arith.constant 0 : index
    %59 = vector.load %arg9[%c0_65, %c0_66] : memref<256x128xf32, #tpu.memory_space<vmem>>, vector<256x128xf32>
    %c1_67 = arith.constant 1 : index
    %c0_68 = arith.constant 0 : index
    %c0_69 = arith.constant 0 : index
    %60 = vector.load %arg5[%c1_67, %c0_68, %c0_69] : memref<5x128x128xf32, #tpu.memory_space<vmem>>, vector<1x128x128xf32>
    %61 = vector.shape_cast %60 : vector<1x128x128xf32> to vector<128x128xf32>
    %cst_70 = arith.constant dense<0.000000e+00> : vector<256x128xf32>
    %62 = tpu.matmul %58, %61, %cst_70 {dimension_numbers = #tpu.dot_dimension_numbers<[1], [0], [0], [1], [0, 0, 1, 1], [], []>} : vector<256x128xf32>, vector<128x128xf32>, vector<256x128xf32> -> vector<256x128xf32>
    %63 = arith.addf %59, %62 : vector<256x128xf32>
    %c0_71 = arith.constant 0 : index
    %c0_72 = arith.constant 0 : index
    %64 = vector.load %arg9[%c0_71, %c0_72] : memref<256x128xf32, #tpu.memory_space<vmem>>, vector<256x128xf32>
    tpu.vector_store %arg9[%c0_71, %c0_72], %63 {strides = array<i32>} : memref<256x128xf32, #tpu.memory_space<vmem>>, vector<256x128xf32>,
    %c0_73 = arith.constant 0 : index
    %c1_74 = arith.constant 1 : index
    %c1_75 = arith.constant 1 : index
    %c0_76 = arith.constant 0 : index
    %65 = vector.load %arg1[%c0_73, %c1_74, %c1_75, %c0_76] : memref<1x22x22x32xf32, #tpu.memory_space<vmem>>, vector<1x16x16x32xf32>
    %66 = vector.shape_cast %65 : vector<1x16x16x32xf32> to vector<16x16x32xf32>
    %67 = vector.shape_cast %66 : vector<16x16x32xf32> to vector<256x32xf32>
    %c0_77 = arith.constant 0 : index
    %c0_78 = arith.constant 0 : index
    %68 = vector.load %arg8[%c0_77, %c0_78] : memref<256x288xf32, #tpu.memory_space<vmem>>, vector<256x32xf32>
    tpu.vector_store %arg8[%c0_77, %c0_78], %67 {strides = array<i32>} : memref<256x288xf32, #tpu.memory_space<vmem>>, vector<256x32xf32>,
    %c0_79 = arith.constant 0 : index
    %c1_80 = arith.constant 1 : index
    %c3_81 = arith.constant 3 : index
    %c0_82 = arith.constant 0 : index
    %69 = vector.load %arg1[%c0_79, %c1_80, %c3_81, %c0_82] : memref<1x22x22x32xf32, #tpu.memory_space<vmem>>, vector<1x16x16x32xf32>
    %70 = vector.shape_cast %69 : vector<1x16x16x32xf32> to vector<16x16x32xf32>
    %71 = vector.shape_cast %70 : vector<16x16x32xf32> to vector<256x32xf32>
    %c0_83 = arith.constant 0 : index
    %c32_84 = arith.constant 32 : index
    %72 = vector.load %arg8[%c0_83, %c32_84] : memref<256x288xf32, #tpu.memory_space<vmem>>, vector<256x32xf32>
    tpu.vector_store %arg8[%c0_83, %c32_84], %71 {strides = array<i32>} : memref<256x288xf32, #tpu.memory_space<vmem>>, vector<256x32xf32>,
    %c0_85 = arith.constant 0 : index
    %c1_86 = arith.constant 1 : index
    %c5 = arith.constant 5 : index
    %c0_87 = arith.constant 0 : index
    %73 = vector.load %arg1[%c0_85, %c1_86, %c5, %c0_87] : memref<1x22x22x32xf32, #tpu.memory_space<vmem>>, vector<1x16x16x32xf32>
    %74 = vector.shape_cast %73 : vector<1x16x16x32xf32> to vector<16x16x32xf32>
    %75 = vector.shape_cast %74 : vector<16x16x32xf32> to vector<256x32xf32>
    %c0_88 = arith.constant 0 : index
    %c64_89 = arith.constant 64 : index
    %76 = vector.load %arg8[%c0_88, %c64_89] : memref<256x288xf32, #tpu.memory_space<vmem>>, vector<256x32xf32>
    tpu.vector_store %arg8[%c0_88, %c64_89], %75 {strides = array<i32>} : memref<256x288xf32, #tpu.memory_space<vmem>>, vector<256x32xf32>,
    %c0_90 = arith.constant 0 : index
    %c3_91 = arith.constant 3 : index
    %c1_92 = arith.constant 1 : index
    %c0_93 = arith.constant 0 : index
    %77 = vector.load %arg1[%c0_90, %c3_91, %c1_92, %c0_93] : memref<1x22x22x32xf32, #tpu.memory_space<vmem>>, vector<1x16x16x32xf32>
    %78 = vector.shape_cast %77 : vector<1x16x16x32xf32> to vector<16x16x32xf32>
    %79 = vector.shape_cast %78 : vector<16x16x32xf32> to vector<256x32xf32>
    %c0_94 = arith.constant 0 : index
    %c96_95 = arith.constant 96 : index
    %80 = vector.load %arg8[%c0_94, %c96_95] : memref<256x288xf32, #tpu.memory_space<vmem>>, vector<256x32xf32>
    tpu.vector_store %arg8[%c0_94, %c96_95], %79 {strides = array<i32>} : memref<256x288xf32, #tpu.memory_space<vmem>>, vector<256x32xf32>,
    %c0_96 = arith.constant 0 : index
    %c3_97 = arith.constant 3 : index
    %c3_98 = arith.constant 3 : index
    %c0_99 = arith.constant 0 : index
    %81 = vector.load %arg1[%c0_96, %c3_97, %c3_98, %c0_99] : memref<1x22x22x32xf32, #tpu.memory_space<vmem>>, vector<1x16x16x32xf32>
    %82 = vector.shape_cast %81 : vector<1x16x16x32xf32> to vector<16x16x32xf32>
    %83 = vector.shape_cast %82 : vector<16x16x32xf32> to vector<256x32xf32>
    %c0_100 = arith.constant 0 : index
    %c128_101 = arith.constant 128 : index
    %84 = vector.load %arg8[%c0_100, %c128_101] : memref<256x288xf32, #tpu.memory_space<vmem>>, vector<256x32xf32>
    tpu.vector_store %arg8[%c0_100, %c128_101], %83 {strides = array<i32>} : memref<256x288xf32, #tpu.memory_space<vmem>>, vector<256x32xf32>,
    %c0_102 = arith.constant 0 : index
    %c3_103 = arith.constant 3 : index
    %c5_104 = arith.constant 5 : index
    %c0_105 = arith.constant 0 : index
    %85 = vector.load %arg1[%c0_102, %c3_103, %c5_104, %c0_105] : memref<1x22x22x32xf32, #tpu.memory_space<vmem>>, vector<1x16x16x32xf32>
    %86 = vector.shape_cast %85 : vector<1x16x16x32xf32> to vector<16x16x32xf32>
    %87 = vector.shape_cast %86 : vector<16x16x32xf32> to vector<256x32xf32>
    %c0_106 = arith.constant 0 : index
    %c160_107 = arith.constant 160 : index
    %88 = vector.load %arg8[%c0_106, %c160_107] : memref<256x288xf32, #tpu.memory_space<vmem>>, vector<256x32xf32>
    tpu.vector_store %arg8[%c0_106, %c160_107], %87 {strides = array<i32>} : memref<256x288xf32, #tpu.memory_space<vmem>>, vector<256x32xf32>,
    %c0_108 = arith.constant 0 : index
    %c5_109 = arith.constant 5 : index
    %c1_110 = arith.constant 1 : index
    %c0_111 = arith.constant 0 : index
    %89 = vector.load %arg1[%c0_108, %c5_109, %c1_110, %c0_111] : memref<1x22x22x32xf32, #tpu.memory_space<vmem>>, vector<1x16x16x32xf32>
    %90 = vector.shape_cast %89 : vector<1x16x16x32xf32> to vector<16x16x32xf32>
    %91 = vector.shape_cast %90 : vector<16x16x32xf32> to vector<256x32xf32>
    %c0_112 = arith.constant 0 : index
    %c192_113 = arith.constant 192 : index
    %92 = vector.load %arg8[%c0_112, %c192_113] : memref<256x288xf32, #tpu.memory_space<vmem>>, vector<256x32xf32>
    tpu.vector_store %arg8[%c0_112, %c192_113], %91 {strides = array<i32>} : memref<256x288xf32, #tpu.memory_space<vmem>>, vector<256x32xf32>,
    %c0_114 = arith.constant 0 : index
    %c5_115 = arith.constant 5 : index
    %c3_116 = arith.constant 3 : index
    %c0_117 = arith.constant 0 : index
    %93 = vector.load %arg1[%c0_114, %c5_115, %c3_116, %c0_117] : memref<1x22x22x32xf32, #tpu.memory_space<vmem>>, vector<1x16x16x32xf32>
    %94 = vector.shape_cast %93 : vector<1x16x16x32xf32> to vector<16x16x32xf32>
    %95 = vector.shape_cast %94 : vector<16x16x32xf32> to vector<256x32xf32>
    %c0_118 = arith.constant 0 : index
    %c224_119 = arith.constant 224 : index
    %96 = vector.load %arg8[%c0_118, %c224_119] : memref<256x288xf32, #tpu.memory_space<vmem>>, vector<256x32xf32>
    tpu.vector_store %arg8[%c0_118, %c224_119], %95 {strides = array<i32>} : memref<256x288xf32, #tpu.memory_space<vmem>>, vector<256x32xf32>,
    %c0_120 = arith.constant 0 : index
    %c5_121 = arith.constant 5 : index
    %c5_122 = arith.constant 5 : index
    %c0_123 = arith.constant 0 : index
    %97 = vector.load %arg1[%c0_120, %c5_121, %c5_122, %c0_123] : memref<1x22x22x32xf32, #tpu.memory_space<vmem>>, vector<1x16x16x32xf32>
    %98 = vector.shape_cast %97 : vector<1x16x16x32xf32> to vector<16x16x32xf32>
    %99 = vector.shape_cast %98 : vector<16x16x32xf32> to vector<256x32xf32>
    %c0_124 = arith.constant 0 : index
    %c256_125 = arith.constant 256 : index
    %100 = vector.load %arg8[%c0_124, %c256_125] : memref<256x288xf32, #tpu.memory_space<vmem>>, vector<256x32xf32>
    tpu.vector_store %arg8[%c0_124, %c256_125], %99 {strides = array<i32>} : memref<256x288xf32, #tpu.memory_space<vmem>>, vector<256x32xf32>,
    %c0_126 = arith.constant 0 : index
    %c0_127 = arith.constant 0 : index
    %101 = vector.load %arg8[%c0_126, %c0_127] : memref<256x288xf32, #tpu.memory_space<vmem>>, vector<256x288xf32>
    %c1_128 = arith.constant 1 : index
    %c0_129 = arith.constant 0 : index
    %c0_130 = arith.constant 0 : index
    %102 = vector.load %arg3[%c1_128, %c0_129, %c0_130] : memref<3x288x128xf32, #tpu.memory_space<vmem>>, vector<1x288x128xf32>
    %103 = vector.shape_cast %102 : vector<1x288x128xf32> to vector<288x128xf32>
    %cst_131 = arith.constant dense<0.000000e+00> : vector<256x128xf32>
    %104 = tpu.matmul %101, %103, %cst_131 {dimension_numbers = #tpu.dot_dimension_numbers<[1], [0], [0], [1], [0, 0, 1, 1], [], []>} : vector<256x288xf32>, vector<288x128xf32>, vector<256x128xf32> -> vector<256x128xf32>
    %c2_132 = arith.constant 2 : index
    %c0_133 = arith.constant 0 : index
    %105 = vector.load %arg6[%c2_132, %c0_133] : memref<6x128xf32, #tpu.memory_space<vmem>>, vector<1x128xf32>
    %106 = vector.broadcast %105 : vector<1x128xf32> to vector<256x128xf32>
    %107 = arith.addf %104, %106 : vector<256x128xf32>
    %cst_134 = arith.constant 0.000000e+00 : f32
    %108 = vector.broadcast %cst_134 : f32 to vector<256x128xf32>
    %109 = arith.maximumf %107, %108 : vector<256x128xf32>
    %c0_135 = arith.constant 0 : index
    %c0_136 = arith.constant 0 : index
    %110 = vector.load %arg9[%c0_135, %c0_136] : memref<256x128xf32, #tpu.memory_space<vmem>>, vector<256x128xf32>
    %c2_137 = arith.constant 2 : index
    %c0_138 = arith.constant 0 : index
    %c0_139 = arith.constant 0 : index
    %111 = vector.load %arg5[%c2_137, %c0_138, %c0_139] : memref<5x128x128xf32, #tpu.memory_space<vmem>>, vector<1x128x128xf32>
    %112 = vector.shape_cast %111 : vector<1x128x128xf32> to vector<128x128xf32>
    %cst_140 = arith.constant dense<0.000000e+00> : vector<256x128xf32>
    %113 = tpu.matmul %109, %112, %cst_140 {dimension_numbers = #tpu.dot_dimension_numbers<[1], [0], [0], [1], [0, 0, 1, 1], [], []>} : vector<256x128xf32>, vector<128x128xf32>, vector<256x128xf32> -> vector<256x128xf32>
    %114 = arith.addf %110, %113 : vector<256x128xf32>
    %c0_141 = arith.constant 0 : index
    %c0_142 = arith.constant 0 : index
    %115 = vector.load %arg9[%c0_141, %c0_142] : memref<256x128xf32, #tpu.memory_space<vmem>>, vector<256x128xf32>
    tpu.vector_store %arg9[%c0_141, %c0_142], %114 {strides = array<i32>} : memref<256x128xf32, #tpu.memory_space<vmem>>, vector<256x128xf32>,
    %c0_143 = arith.constant 0 : index
    %c0_144 = arith.constant 0 : index
    %c0_145 = arith.constant 0 : index
    %c0_146 = arith.constant 0 : index
    %116 = vector.load %arg1[%c0_143, %c0_144, %c0_145, %c0_146] : memref<1x22x22x32xf32, #tpu.memory_space<vmem>>, vector<1x16x16x32xf32>
    %117 = vector.shape_cast %116 : vector<1x16x16x32xf32> to vector<16x16x32xf32>
    %118 = vector.shape_cast %117 : vector<16x16x32xf32> to vector<256x32xf32>
    %c0_147 = arith.constant 0 : index
    %c0_148 = arith.constant 0 : index
    %119 = vector.load %arg8[%c0_147, %c0_148] : memref<256x288xf32, #tpu.memory_space<vmem>>, vector<256x32xf32>
    tpu.vector_store %arg8[%c0_147, %c0_148], %118 {strides = array<i32>} : memref<256x288xf32, #tpu.memory_space<vmem>>, vector<256x32xf32>,
    %c0_149 = arith.constant 0 : index
    %c0_150 = arith.constant 0 : index
    %c3_151 = arith.constant 3 : index
    %c0_152 = arith.constant 0 : index
    %120 = vector.load %arg1[%c0_149, %c0_150, %c3_151, %c0_152] : memref<1x22x22x32xf32, #tpu.memory_space<vmem>>, vector<1x16x16x32xf32>
    %121 = vector.shape_cast %120 : vector<1x16x16x32xf32> to vector<16x16x32xf32>
    %122 = vector.shape_cast %121 : vector<16x16x32xf32> to vector<256x32xf32>
    %c0_153 = arith.constant 0 : index
    %c32_154 = arith.constant 32 : index
    %123 = vector.load %arg8[%c0_153, %c32_154] : memref<256x288xf32, #tpu.memory_space<vmem>>, vector<256x32xf32>
    tpu.vector_store %arg8[%c0_153, %c32_154], %122 {strides = array<i32>} : memref<256x288xf32, #tpu.memory_space<vmem>>, vector<256x32xf32>,
    %c0_155 = arith.constant 0 : index
    %c0_156 = arith.constant 0 : index
    %c6 = arith.constant 6 : index
    %c0_157 = arith.constant 0 : index
    %124 = vector.load %arg1[%c0_155, %c0_156, %c6, %c0_157] : memref<1x22x22x32xf32, #tpu.memory_space<vmem>>, vector<1x16x16x32xf32>
    %125 = vector.shape_cast %124 : vector<1x16x16x32xf32> to vector<16x16x32xf32>
    %126 = vector.shape_cast %125 : vector<16x16x32xf32> to vector<256x32xf32>
    %c0_158 = arith.constant 0 : index
    %c64_159 = arith.constant 64 : index
    %127 = vector.load %arg8[%c0_158, %c64_159] : memref<256x288xf32, #tpu.memory_space<vmem>>, vector<256x32xf32>
    tpu.vector_store %arg8[%c0_158, %c64_159], %126 {strides = array<i32>} : memref<256x288xf32, #tpu.memory_space<vmem>>, vector<256x32xf32>,
    %c0_160 = arith.constant 0 : index
    %c3_161 = arith.constant 3 : index
    %c0_162 = arith.constant 0 : index
    %c0_163 = arith.constant 0 : index
    %128 = vector.load %arg1[%c0_160, %c3_161, %c0_162, %c0_163] : memref<1x22x22x32xf32, #tpu.memory_space<vmem>>, vector<1x16x16x32xf32>
    %129 = vector.shape_cast %128 : vector<1x16x16x32xf32> to vector<16x16x32xf32>
    %130 = vector.shape_cast %129 : vector<16x16x32xf32> to vector<256x32xf32>
    %c0_164 = arith.constant 0 : index
    %c96_165 = arith.constant 96 : index
    %131 = vector.load %arg8[%c0_164, %c96_165] : memref<256x288xf32, #tpu.memory_space<vmem>>, vector<256x32xf32>
    tpu.vector_store %arg8[%c0_164, %c96_165], %130 {strides = array<i32>} : memref<256x288xf32, #tpu.memory_space<vmem>>, vector<256x32xf32>,
    %c0_166 = arith.constant 0 : index
    %c3_167 = arith.constant 3 : index
    %c3_168 = arith.constant 3 : index
    %c0_169 = arith.constant 0 : index
    %132 = vector.load %arg1[%c0_166, %c3_167, %c3_168, %c0_169] : memref<1x22x22x32xf32, #tpu.memory_space<vmem>>, vector<1x16x16x32xf32>
    %133 = vector.shape_cast %132 : vector<1x16x16x32xf32> to vector<16x16x32xf32>
    %134 = vector.shape_cast %133 : vector<16x16x32xf32> to vector<256x32xf32>
    %c0_170 = arith.constant 0 : index
    %c128_171 = arith.constant 128 : index
    %135 = vector.load %arg8[%c0_170, %c128_171] : memref<256x288xf32, #tpu.memory_space<vmem>>, vector<256x32xf32>
    tpu.vector_store %arg8[%c0_170, %c128_171], %134 {strides = array<i32>} : memref<256x288xf32, #tpu.memory_space<vmem>>, vector<256x32xf32>,
    %c0_172 = arith.constant 0 : index
    %c3_173 = arith.constant 3 : index
    %c6_174 = arith.constant 6 : index
    %c0_175 = arith.constant 0 : index
    %136 = vector.load %arg1[%c0_172, %c3_173, %c6_174, %c0_175] : memref<1x22x22x32xf32, #tpu.memory_space<vmem>>, vector<1x16x16x32xf32>
    %137 = vector.shape_cast %136 : vector<1x16x16x32xf32> to vector<16x16x32xf32>
    %138 = vector.shape_cast %137 : vector<16x16x32xf32> to vector<256x32xf32>
    %c0_176 = arith.constant 0 : index
    %c160_177 = arith.constant 160 : index
    %139 = vector.load %arg8[%c0_176, %c160_177] : memref<256x288xf32, #tpu.memory_space<vmem>>, vector<256x32xf32>
    tpu.vector_store %arg8[%c0_176, %c160_177], %138 {strides = array<i32>} : memref<256x288xf32, #tpu.memory_space<vmem>>, vector<256x32xf32>,
    %c0_178 = arith.constant 0 : index
    %c6_179 = arith.constant 6 : index
    %c0_180 = arith.constant 0 : index
    %c0_181 = arith.constant 0 : index
    %140 = vector.load %arg1[%c0_178, %c6_179, %c0_180, %c0_181] : memref<1x22x22x32xf32, #tpu.memory_space<vmem>>, vector<1x16x16x32xf32>
    %141 = vector.shape_cast %140 : vector<1x16x16x32xf32> to vector<16x16x32xf32>
    %142 = vector.shape_cast %141 : vector<16x16x32xf32> to vector<256x32xf32>
    %c0_182 = arith.constant 0 : index
    %c192_183 = arith.constant 192 : index
    %143 = vector.load %arg8[%c0_182, %c192_183] : memref<256x288xf32, #tpu.memory_space<vmem>>, vector<256x32xf32>
    tpu.vector_store %arg8[%c0_182, %c192_183], %142 {strides = array<i32>} : memref<256x288xf32, #tpu.memory_space<vmem>>, vector<256x32xf32>,
    %c0_184 = arith.constant 0 : index
    %c6_185 = arith.constant 6 : index
    %c3_186 = arith.constant 3 : index
    %c0_187 = arith.constant 0 : index
    %144 = vector.load %arg1[%c0_184, %c6_185, %c3_186, %c0_187] : memref<1x22x22x32xf32, #tpu.memory_space<vmem>>, vector<1x16x16x32xf32>
    %145 = vector.shape_cast %144 : vector<1x16x16x32xf32> to vector<16x16x32xf32>
    %146 = vector.shape_cast %145 : vector<16x16x32xf32> to vector<256x32xf32>
    %c0_188 = arith.constant 0 : index
    %c224_189 = arith.constant 224 : index
    %147 = vector.load %arg8[%c0_188, %c224_189] : memref<256x288xf32, #tpu.memory_space<vmem>>, vector<256x32xf32>
    tpu.vector_store %arg8[%c0_188, %c224_189], %146 {strides = array<i32>} : memref<256x288xf32, #tpu.memory_space<vmem>>, vector<256x32xf32>,
    %c0_190 = arith.constant 0 : index
    %c6_191 = arith.constant 6 : index
    %c6_192 = arith.constant 6 : index
    %c0_193 = arith.constant 0 : index
    %148 = vector.load %arg1[%c0_190, %c6_191, %c6_192, %c0_193] : memref<1x22x22x32xf32, #tpu.memory_space<vmem>>, vector<1x16x16x32xf32>
    %149 = vector.shape_cast %148 : vector<1x16x16x32xf32> to vector<16x16x32xf32>
    %150 = vector.shape_cast %149 : vector<16x16x32xf32> to vector<256x32xf32>
    %c0_194 = arith.constant 0 : index
    %c256_195 = arith.constant 256 : index
    %151 = vector.load %arg8[%c0_194, %c256_195] : memref<256x288xf32, #tpu.memory_space<vmem>>, vector<256x32xf32>
    tpu.vector_store %arg8[%c0_194, %c256_195], %150 {strides = array<i32>} : memref<256x288xf32, #tpu.memory_space<vmem>>, vector<256x32xf32>,
    %c0_196 = arith.constant 0 : index
    %c0_197 = arith.constant 0 : index
    %152 = vector.load %arg8[%c0_196, %c0_197] : memref<256x288xf32, #tpu.memory_space<vmem>>, vector<256x288xf32>
    %c2_198 = arith.constant 2 : index
    %c0_199 = arith.constant 0 : index
    %c0_200 = arith.constant 0 : index
    %153 = vector.load %arg3[%c2_198, %c0_199, %c0_200] : memref<3x288x128xf32, #tpu.memory_space<vmem>>, vector<1x288x128xf32>
    %154 = vector.shape_cast %153 : vector<1x288x128xf32> to vector<288x128xf32>
    %cst_201 = arith.constant dense<0.000000e+00> : vector<256x128xf32>
    %155 = tpu.matmul %152, %154, %cst_201 {dimension_numbers = #tpu.dot_dimension_numbers<[1], [0], [0], [1], [0, 0, 1, 1], [], []>} : vector<256x288xf32>, vector<288x128xf32>, vector<256x128xf32> -> vector<256x128xf32>
    %c3_202 = arith.constant 3 : index
    %c0_203 = arith.constant 0 : index
    %156 = vector.load %arg6[%c3_202, %c0_203] : memref<6x128xf32, #tpu.memory_space<vmem>>, vector<1x128xf32>
    %157 = vector.broadcast %156 : vector<1x128xf32> to vector<256x128xf32>
    %158 = arith.addf %155, %157 : vector<256x128xf32>
    %cst_204 = arith.constant 0.000000e+00 : f32
    %159 = vector.broadcast %cst_204 : f32 to vector<256x128xf32>
    %160 = arith.maximumf %158, %159 : vector<256x128xf32>
    %c0_205 = arith.constant 0 : index
    %c0_206 = arith.constant 0 : index
    %161 = vector.load %arg9[%c0_205, %c0_206] : memref<256x128xf32, #tpu.memory_space<vmem>>, vector<256x128xf32>
    %c3_207 = arith.constant 3 : index
    %c0_208 = arith.constant 0 : index
    %c0_209 = arith.constant 0 : index
    %162 = vector.load %arg5[%c3_207, %c0_208, %c0_209] : memref<5x128x128xf32, #tpu.memory_space<vmem>>, vector<1x128x128xf32>
    %163 = vector.shape_cast %162 : vector<1x128x128xf32> to vector<128x128xf32>
    %cst_210 = arith.constant dense<0.000000e+00> : vector<256x128xf32>
    %164 = tpu.matmul %160, %163, %cst_210 {dimension_numbers = #tpu.dot_dimension_numbers<[1], [0], [0], [1], [0, 0, 1, 1], [], []>} : vector<256x128xf32>, vector<128x128xf32>, vector<256x128xf32> -> vector<256x128xf32>
    %165 = arith.addf %161, %164 : vector<256x128xf32>
    %c0_211 = arith.constant 0 : index
    %c0_212 = arith.constant 0 : index
    %166 = vector.load %arg9[%c0_211, %c0_212] : memref<256x128xf32, #tpu.memory_space<vmem>>, vector<256x128xf32>
    tpu.vector_store %arg9[%c0_211, %c0_212], %165 {strides = array<i32>} : memref<256x128xf32, #tpu.memory_space<vmem>>, vector<256x128xf32>,
    %cst_213 = arith.constant dense<0.000000e+00> : vector<32xf32>
    %167 = vector.multi_reduction <add>, %2, %cst_213 [0] : vector<256x32xf32> to vector<32xf32>
    %168 = vector.shape_cast %167 : vector<32xf32> to vector<1x32xf32>
    %cst_214 = arith.constant 3.906250e-03 : f32
    %169 = vector.broadcast %cst_214 : f32 to vector<1x32xf32>
    %170 = arith.mulf %168, %169 : vector<1x32xf32>
    %c0_215 = arith.constant 0 : index
    %c0_216 = arith.constant 0 : index
    %171 = vector.load %arg4[%c0_215, %c0_216] : memref<32x128xf32, #tpu.memory_space<vmem>>, vector<32x128xf32>
    %cst_217 = arith.constant dense<0.000000e+00> : vector<1x128xf32>
    %172 = tpu.matmul %170, %171, %cst_217 {dimension_numbers = #tpu.dot_dimension_numbers<[1], [0], [0], [1], [0, 0, 1, 1], [], []>} : vector<1x32xf32>, vector<32x128xf32>, vector<1x128xf32> -> vector<1x128xf32>
    %c4_218 = arith.constant 4 : index
    %c0_219 = arith.constant 0 : index
    %173 = vector.load %arg6[%c4_218, %c0_219] : memref<6x128xf32, #tpu.memory_space<vmem>>, vector<1x128xf32>
    %174 = arith.addf %172, %173 : vector<1x128xf32>
    %cst_220 = arith.constant 0.000000e+00 : f32
    %175 = vector.broadcast %cst_220 : f32 to vector<1x128xf32>
    %176 = arith.maximumf %174, %175 : vector<1x128xf32>
    %c4_221 = arith.constant 4 : index
    %c0_222 = arith.constant 0 : index
    %c0_223 = arith.constant 0 : index
    %177 = vector.load %arg5[%c4_221, %c0_222, %c0_223] : memref<5x128x128xf32, #tpu.memory_space<vmem>>, vector<1x128x128xf32>
    %178 = vector.shape_cast %177 : vector<1x128x128xf32> to vector<128x128xf32>
    %cst_224 = arith.constant dense<0.000000e+00> : vector<1x128xf32>
    %179 = tpu.matmul %176, %178, %cst_224 {dimension_numbers = #tpu.dot_dimension_numbers<[1], [0], [0], [1], [0, 0, 1, 1], [], []>} : vector<1x128xf32>, vector<128x128xf32>, vector<1x128xf32> -> vector<1x128xf32>
    %c5_225 = arith.constant 5 : index
    %c0_226 = arith.constant 0 : index
    %180 = vector.load %arg6[%c5_225, %c0_226] : memref<6x128xf32, #tpu.memory_space<vmem>>, vector<1x128xf32>
    %181 = arith.addf %179, %180 : vector<1x128xf32>
    %c0_227 = arith.constant 0 : index
    %c0_228 = arith.constant 0 : index
    %182 = vector.load %arg9[%c0_227, %c0_228] : memref<256x128xf32, #tpu.memory_space<vmem>>, vector<256x128xf32>
    %183 = vector.broadcast %181 : vector<1x128xf32> to vector<256x128xf32>
    %184 = arith.addf %182, %183 : vector<256x128xf32>
    %cst_229 = arith.constant 0.000000e+00 : f32
    %185 = vector.broadcast %cst_229 : f32 to vector<256x128xf32>
    %186 = arith.maximumf %184, %185 : vector<256x128xf32>
    %c0_230 = arith.constant 0 : index
    %c0_231 = arith.constant 0 : index
    %c0_232 = arith.constant 0 : index
    %187 = vector.load %arg7[%c0_230, %c0_231, %c0_232] : memref<1x256x128xf32, #tpu.memory_space<vmem>>, vector<1x256x128xf32>
    %188 = vector.shape_cast %187 : vector<1x256x128xf32> to vector<256x128xf32>
    %189 = vector.shape_cast %186 : vector<256x128xf32> to vector<1x256x128xf32>
    tpu.vector_store %arg7[%c0_230, %c0_231, %c0_232], %189 {strides = array<i32>} : memref<1x256x128xf32, #tpu.memory_space<vmem>>, vector<1x256x128xf32>,
    return
  }
  func.func @transform_0(%arg0: i32) -> (i32, i32, i32, i32) {
    %c0_i32 = arith.constant 0 : i32
    %c0_i32_0 = arith.constant 0 : i32
    %c0_i32_1 = arith.constant 0 : i32
    %c0_i32_2 = arith.constant 0 : i32
    return %arg0, %c0_i32, %c0_i32_0, %c0_i32_1 : i32, i32, i32, i32
  }
  func.func @transform_1(%arg0: i32) -> (i32, i32) {
    %c0_i32 = arith.constant 0 : i32
    %c0_i32_0 = arith.constant 0 : i32
    %c0_i32_1 = arith.constant 0 : i32
    return %c0_i32, %c0_i32_0 : i32, i32
  }
  func.func @transform_2(%arg0: i32) -> (i32, i32, i32) {
    %c0_i32 = arith.constant 0 : i32
    %c0_i32_0 = arith.constant 0 : i32
    %c0_i32_1 = arith.constant 0 : i32
    %c0_i32_2 = arith.constant 0 : i32
    return %c0_i32, %c0_i32_0, %c0_i32_1 : i32, i32, i32
  }
  func.func @transform_3(%arg0: i32) -> (i32, i32) {
    %c0_i32 = arith.constant 0 : i32
    %c0_i32_0 = arith.constant 0 : i32
    %c0_i32_1 = arith.constant 0 : i32
    return %c0_i32, %c0_i32_0 : i32, i32
  }
  func.func @transform_4(%arg0: i32) -> (i32, i32, i32) {
    %c0_i32 = arith.constant 0 : i32
    %c0_i32_0 = arith.constant 0 : i32
    %c0_i32_1 = arith.constant 0 : i32
    %c0_i32_2 = arith.constant 0 : i32
    return %c0_i32, %c0_i32_0, %c0_i32_1 : i32, i32, i32
  }
  func.func @transform_5(%arg0: i32) -> (i32, i32) {
    %c0_i32 = arith.constant 0 : i32
    %c0_i32_0 = arith.constant 0 : i32
    %c0_i32_1 = arith.constant 0 : i32
    return %c0_i32, %c0_i32_0 : i32, i32
  }
  func.func @transform_6(%arg0: i32) -> (i32, i32, i32) {
    %c0_i32 = arith.constant 0 : i32
    %c0_i32_0 = arith.constant 0 : i32
    %c0_i32_1 = arith.constant 0 : i32
    return %arg0, %c0_i32, %c0_i32_0 : i32, i32, i32
  }
}

</mosaic_0001>

<bundles_post_ra>
// kernel: tpu_custom_call.1
= control target key start
LH: loop header
LB: loop body
LE: loop exit
PB: predicated region body
PF: predicated region fallthrough
CT: control target
= control target key end

     0   :  { %11 = vsyncpa [#allocation5], 0  ;;  %s13863_s0 = inlined_call_operand.vmem [shape: f32[2,22,22,32], index: 0, kind: input, shape index: {}]   ;;  %s13864_s1 = inlined_call_operand.vmem [shape: f32[32,128], index: 1, kind: input, shape index: {}]   ;;  %s13865_s2 = inlined_call_operand.vmem [shape: f32[3,288,128], index: 2, kind: input, shape index: {}]   ;;  %s13866_s3 = inlined_call_operand.vmem [shape: f32[32,128], index: 3, kind: input, shape index: {}]   ;;  %s13867_s4 = inlined_call_operand.vmem [shape: f32[5,128,128], index: 4, kind: input, shape index: {}]   ;;  %s13868_s5 = inlined_call_operand.vmem [shape: f32[6,128], index: 5, kind: input, shape index: {}]   ;;  %s13869_s6 = inlined_call_operand.hbm [shape: f32[2,256,128], index: 6, kind: output, shape index: {}]  }
   0x1   :  { %13 = vsyncpa [#allocation5 + $0x1], 0  ;;  %s8813_s21 = smov 0   ;;  %s8815_s22 = smov 0  }
   0x2   :  { %s8817_s23 = smov 0   ;;  %s8819_s24 = smov 0  }
   0x3 LB: > { %s8834_s25 = sadd.s32 4294967295, %s8771_s24   ;;  %s7559_s26 = sadd.s32 4294967294, %s8771_s24   ;;  %s8771_s24 = sphi %s8819_s24, %s14090_s24   ;;  %s8767_s23 = sphi %s8817_s23, %s14089_s23   ;;  %s8763_s22 = sphi %s8815_s22, %s14088_s22   ;;  %s8759_s21 = sphi %s8813_s21, %s14087_s21  }
   0x4   : > { %s8838_s27 = sadd.s32 1, %s8771_s24   ;;  %s157_s28 = sadd.s32 1, %s8767_s23 }
   0x5   : > { %s154_s29 = ssub.s32 %s8771_s24, %s8838_s27  ;;  %p167_p0 = scmp.ne.s32.totalorder %s8767_s23, %s8763_s22 }
   0x6   : > { %p155_p1 = scmp.eq.s32.totalorder %s154_s29, 0  ;;  %p168_p2 = scmp.eq.s32.totalorder %s8834_s25, 1 }
   0x7   : > { %p173_p3 = scmp.ne.s32.totalorder %s8763_s22, %s8759_s21  ;;  %p174_p4 = scmp.eq.s32.totalorder %s7559_s26, 1 }
   0x8   : > { %s8849_s30 = scalar_select %p155_p1, %s8767_s23, %s157_s28  }
   0x9   : > { %p8851_p5 = por %p168_p2, %p167_p0  ;;  %p8855_p6 = por %p174_p4, %p173_p3 }
   0xa   : > { %p7562_p7 = scmp.ge.s32.totalorder %s8771_s24, 1  ;;  %p215_p8 = scmp.lt.s32.totalorder %s8771_s24, 3 }
   0xc   : > { %p216_p9 = pnand %p7562_p7, %p215_p8 }
   0xe   : > { %219 = sbr.rel (%p216_p9) target bundleno = 1985 (0x7c1), region = 44 }
  0x13   : > { %v286_v0 = vld [vmem:[%s13864_s1 + $0x18] sm:$0xff]  ;;  %v285_v1 = vld [vmem:[%s13864_s1 + $0x10] sm:$0xff]  ;;  %p245_p10 = scmp.lt.s32.totalorder %s8834_s25, 1  ;;  %v284_v2 = vld [vmem:[%s13864_s1 + $0x8] sm:$0xff]  ;;  %vm289_vm0 = vcmask 261120   ;;  %s8773_s28 = smov 32  }
  0x14   : > { %398 = vmatpush.msra.mxu0 %v286_v0  ;;  %8636 = vmatpush.msra.mxu3 %v286_v0  ;;  %v283_v3 = vld [vmem:[%s13864_s1] sm:$0xff]  ;;  %s8774_s29 = smov 64   ;;  %vm917_vm1 = vcmask 523520   ;;  %s8775_s9 = smov 96   ;;  %vm1110_vm2 = vcmask 785920   ;;  %vm1303_vm3 = vcmask 1048320  }
  0x15   : > { %s246_s15 = scalar_select %p245_p10, %s8834_s25, 1 }
  0x16   : > { %399 = vmatpush.msra.mxu0 %v285_v1  ;;  %8637 = vmatpush.msra.mxu3 %v285_v1  ;;  %s242_s17 = sand.u32 1, %s8763_s22   ;;  %s8635_s20 = sshll.u32 %s8834_s25, 8 }
  0x17   : > { %s8656_s18 = smul.u32 528, %s246_s15  ;;  %s7493_s11 = scalar_lea.hbm %s13869_s6, %s8635_s20 }
  0x18   : > { %400 = vmatpush.msra.mxu0 %v284_v2  ;;  %8638 = vmatpush.msra.mxu3 %v284_v2  ;;  %s8729_s15 = scalar_lea.hbm %s13869_s6, 512 }
  0x19   : > { %s8878_s26 = scalar_lea.vmem %s13863_s0, %s8656_s18  ;;  %s7563_s18 = sshll.u32 %s242_s17, 8 }
  0x1a   : > { %401 = vmatpush.msra.mxu0 %v283_v3  ;;  %v7663_v4 = vld [vmem:[%s8878_s26 + $0x4b] sm:$0xff]  ;;  %v7661_v5 = vld [vmem:[%s8878_s26 + $0x33] sm:$0xff]  ;;  %8639 = vmatpush.msra.mxu3 %v283_v3  ;;  %v7567_v10 = vld [vmem:[%s8878_s26 + $0x63] sm:$0xff]  ;;  %s13715_s19 = scalar_lea.vmem [#allocation4], %s7563_s18 }
  0x1b   : > { %v7664_v6 = vld [vmem:[%s8878_s26 + $0x53] sm:$0xff]  ;;  %825 = vrot.lane.b32.xlu1 %v7663_v4, %s8773_s28  ;;  %821 = vrot.lane.b32.xlu0 %v7661_v5, %s8773_s28  ;;  %v7215_v7 = vsel %vm289_vm0, %v7663_v4, 0.0  ;;  %v7218_v11 = vsel %vm289_vm0, %v7567_v10, 0.0  ;;  %v7568_v12 = vld [vmem:[%s8878_s26 + $0x6b] sm:$0xff]  ;;  %s7494_s12 = sshll.u32 %s13715_s19, 4  ;;  %s7495_s12 = int_to_ptr.vmem [resolvable:$true] %s7494_s12 }
  0x1c   : > { %v7216_v8 = vsel %vm289_vm0, %v7664_v6, 0.0  ;;  %7597 = vmatmul.msk.f32.vlgmr.msra.gmra.mxu0 %vm289_vm0, %v7663_v4  ;;  %829 = vrot.lane.b32.xlu2 %v7567_v10, %s8773_s28  ;;  %v7667_v13 = vld [vmem:[%s8878_s26 + $0x7b] sm:$0xff]  ;;  %v7220_v15 = vsel %vm289_vm0, %v7568_v12, 0.0  ;;  %v7668_v20 = vld [vmem:[%s8878_s26 + $0x83] sm:$0xff]  ;;  %v7669_v23 = vld [vmem:[%s8878_s26 + $0x93] sm:$0xff] }
  0x1d   : > { %v7217_v9 = vadd.f32 %v7216_v8, %v7215_v7  ;;  %v7222_v16 = vsel %vm289_vm0, %v7667_v13, 0.0  ;;  %v7662_v17 = vld [vmem:[%s8878_s26 + $0x3b] sm:$0xff]  ;;  %v7224_v21 = vsel %vm289_vm0, %v7668_v20, 0.0  ;;  %v7226_v24 = vsel %vm289_vm0, %v7669_v23, 0.0  ;;  %v7671_v26 = vld [vmem:[%s8878_s26 + $0xab] sm:$0xff]  ;;  %v7672_v28 = vld [vmem:[%s8878_s26 + $0xb3] sm:$0xff] }
  0x1e   : > { %v7670_v27 = vld [vmem:[%s8878_s26 + $0x9b] sm:$0xff]  ;;  %v8917_v31 = vld [vmem:[%s8878_s26 + $0xcb] sm:$0xff]  ;;  %v7673_v32 = vld [vmem:[%s8878_s26 + $0xc3] sm:$0xff]  ;;  %v7230_v34 = vsel %vm289_vm0, %v7671_v26, 0.0  ;;  %v7232_v39 = vsel %vm289_vm0, %v7672_v28, 0.0 }
  0x1f   : > { %v7219_v14 = vadd.f32 %v7218_v11, %v7217_v9  ;;  %v7228_v29 = vsel %vm289_vm0, %v7670_v27, 0.0  ;;  %v8921_v33 = vld [vmem:[%s8878_s26 + $0xdb] sm:$0xff]  ;;  %v8931_v36 = vld [vmem:[%s8878_s26 + $0xf3] sm:$0xff]  ;;  %v8934_v37 = vld [vmem:[%s8878_s26 + $0xe3] sm:$0xff]  ;;  %v7234_v45 = vsel %vm289_vm0, %v7673_v32, 0.0  ;;  %v7236_v49 = vsel %vm289_vm0, %v8917_v31, 0.0 }
  0x20   : > { %v8937_v38 = vld [vmem:[%s8878_s26 + $0xfb] sm:$0xff]  ;;  %v8946_v40 = vld [vmem:[%s8878_s26 + $0x123] sm:$0xff]  ;;  %v8953_v42 = vld [vmem:[%s8878_s26 + $0x113] sm:$0xff]  ;;  %v7238_v54 = vsel %vm289_vm0, %v8921_v33, 0.0 }
  0x21   : > { %v7221_v18 = vadd.f32 %v7220_v15, %v7219_v14  ;;  %7615 = vmatmul.msk.f32.vlgmr.msra.gmra.mxu3 %vm289_vm0, %v8946_v40  ;;  %v8956_v43 = vld [vmem:[%s8878_s26 + $0x10b] sm:$0xff]  ;;  %v8972_v47 = vld [vmem:[%s8878_s26 + $0x13b] sm:$0xff]  ;;  %v8975_v48 = vld [vmem:[%s8878_s26 + $0x143] sm:$0xff] }
  0x22   : > { %v8964_v44 = vld [vmem:[%s8878_s26 + $0x12b] sm:$0xff]  ;;  %v8989_v51 = vld [vmem:[%s8878_s26 + $0x15b] sm:$0xff]  ;;  %v8992_v52 = vld [vmem:[%s8878_s26 + $0x153] sm:$0xff] }
  0x23   : > { %v7223_v19 = vadd.f32 %v7222_v16, %v7221_v18  ;;  %827 = vrot.lane.b32.xlu1 %v7664_v6, %s8773_s28  ;;  %823 = vrot.lane.b32.xlu0 %v7662_v17, %s8773_s28  ;;  %v8995_v53 = vld [vmem:[%s8878_s26 + $0x16b] sm:$0xff]  ;;  %v9011_v56 = vld [vmem:[%s8878_s26 + $0x183] sm:$0xff] }
  0x24   : > { %7598 = vmatmul.msk.f32.gmra.mxu0 %vm289_vm0, %v7664_v6  ;;  %831 = vrot.lane.b32.xlu2 %v7568_v12, %s8773_s28  ;;  %v9014_v57 = vld [vmem:[%s8878_s26 + $0x173] sm:$0xff]  ;;  %v9017_v58 = vld [vmem:[%s8878_s26 + $0x18b] sm:$0xff]  ;;  %v9029_v59 = vld [vmem:[%s8878_s26 + $0x1a3] sm:$0xff] }
  0x25   : > { %v7225_v22 = vadd.f32 %v7224_v21, %v7223_v19  ;;  %v9032_v60 = vld [vmem:[%s8878_s26 + $0x19b] sm:$0xff]  ;;  %v9042_v62 = vld [vmem:[%s8878_s26 + $0x4a] sm:$0xff]  ;;  %v7629_v63 = vld [vmem:[%s8878_s26 + $0x32] sm:$0xff] }
  0x26   : > { %v7693_v61 = vld [vmem:[%s8878_s26 + $0x34] sm:$0xff]  ;;  %727 = vst.msk [vmem:[#allocation2 + $0x30] sm:$0xff] %vm289_vm0, %v9042_v62  ;;  %v9051_v0 = vld [vmem:[%s8878_s26 + $0x62] sm:$0xff]  ;;  %v9054_v1 = vld [vmem:[%s8878_s26 + $0x4c] sm:$0xff] }
  0x27   : > { %v7227_v25 = vadd.f32 %v7226_v24, %v7225_v22  ;;  %725 = vst.msk [vmem:[#allocation2] sm:$0xff] %vm289_vm0, %v7629_v63  ;;  %v7694_v2 = vld [vmem:[%s8878_s26 + $0x3c] sm:$0xff]  ;;  %v9060_v3 = vld [vmem:[%s8878_s26 + $0x54] sm:$0xff]  ;;  %v9079_v7 = vld [vmem:[%s8878_s26 + $0x6a] sm:$0xff] }
  0x28   : > { %729 = vst.msk [vmem:[#allocation2 + $0x60] sm:$0xff] %vm289_vm0, %v9051_v0  ;;  %v9070_v4 = vld [vmem:[%s8878_s26 + $0x52] sm:$0xff]  ;;  %v7630_v5 = vld [vmem:[%s8878_s26 + $0x3a] sm:$0xff]  ;;  %v9085_v9 = vld [vmem:[%s8878_s26 + $0x64] sm:$0xff] }
  0x29   : > { %v7229_v30 = vadd.f32 %v7228_v29, %v7227_v25  ;;  %7616 = vmatmul.msk.f32.gmra.mxu3 %vm289_vm0, %v8964_v44  ;;  %728 = vst.msk [vmem:[#allocation2 + $0x48] sm:$0xff] %vm289_vm0, %v9070_v4  ;;  %v9082_v8 = vld [vmem:[%s8878_s26 + $0x6c] sm:$0xff]  ;;  %v9102_v11 = vld [vmem:[%s8878_s26 + $0x82] sm:$0xff]  ;;  %v9117_v15 = vld [vmem:[%s8878_s26 + $0x94] sm:$0xff] }
  0x2a   : > { %726 = vst.msk [vmem:[#allocation2 + $0x18] sm:$0xff] %vm289_vm0, %v7630_v5  ;;  %v9114_v14 = vld [vmem:[%s8878_s26 + $0x92] sm:$0xff]  ;;  %v9120_v16 = vld [vmem:[%s8878_s26 + $0x84] sm:$0xff]  ;;  %v9126_v17 = vld [vmem:[%s8878_s26 + $0x9c] sm:$0xff] }
  0x2b   : > { %835 = vrot.lane.b32.xlu1 %v7668_v20, %s8773_s28  ;;  %833 = vrot.lane.b32.xlu0 %v7667_v13, %s8773_s28  ;;  %v7231_v35 = vadd.f32 %v7230_v34, %v7229_v30  ;;  %730 = vst.msk [vmem:[#allocation2 + $0x78] sm:$0xff] %vm289_vm0, %v9079_v7  ;;  %v9137_v18 = vld [vmem:[%s8878_s26 + $0xaa] sm:$0xff]  ;;  %v9140_v19 = vld [vmem:[%s8878_s26 + $0x9a] sm:$0xff] }
  0x2c   : > { %7599 = vmatmul.msk.f32.gmra.mxu0 %vm289_vm0, %v7567_v10  ;;  %837 = vrot.lane.b32.xlu2 %v7669_v23, %s8773_s28  ;;  %v9091_v10 = vld [vmem:[%s8878_s26 + $0x7c] sm:$0xff]  ;;  %732 = vst.msk [vmem:[#allocation2 + $0xa8] sm:$0xff] %vm289_vm0, %v9102_v11  ;;  %v9149_v21 = vld [vmem:[%s8878_s26 + $0xb2] sm:$0xff]  ;;  %v9159_v24 = vld [vmem:[%s8878_s26 + $0xc4] sm:$0xff] }
  0x2d   : > { %v7233_v41 = vadd.f32 %v7232_v39, %v7231_v35  ;;  %733 = vst.msk [vmem:[#allocation2 + $0xc0] sm:$0xff] %vm289_vm0, %v9114_v14  ;;  %v9152_v22 = vld [vmem:[%s8878_s26 + $0xb4] sm:$0xff]  ;;  %v9176_v29 = vld [vmem:[%s8878_s26 + $0xc2] sm:$0xff] }
  0x2e   : > { %735 = vst.msk [vmem:[#allocation2 + $0xf0] sm:$0xff] %vm289_vm0, %v9137_v18  ;;  %v9179_v30 = vld [vmem:[%s8878_s26 + $0xdc] sm:$0xff]  ;;  %v9209_v39 = vld [vmem:[%s8878_s26 + $0xf2] sm:$0xff] }
  0x2f   : > { %v7235_v46 = vadd.f32 %v7234_v45, %v7233_v41  ;;  %734 = vst.msk [vmem:[#allocation2 + $0xd8] sm:$0xff] %vm289_vm0, %v9140_v19  ;;  %v9213_v45 = vld [vmem:[%s8878_s26 + $0xe2] sm:$0xff]  ;;  %v9248_v5 = vld [vmem:[%s8878_s26 + $0x112] sm:$0xff] }
  0x30   : > { %736 = vst.msk [vmem:[#allocation2 + $0x108] sm:$0xff] %vm289_vm0, %v9149_v21 }
  0x31   : > { %v7237_v50 = vadd.f32 %v7236_v49, %v7235_v46  ;;  %7617 = vmatmul.msk.f32.gmra.mxu3 %vm289_vm0, %v8972_v47  ;;  %737 = vst.msk [vmem:[#allocation2 + $0x120] sm:$0xff] %vm289_vm0, %v9176_v29  ;;  %v9216_v46 = vld [vmem:[%s8878_s26 + $0xfc] sm:$0xff]  ;;  %v9219_v49 = vld [vmem:[%s8878_s26 + $0xf4] sm:$0xff] }
  0x32   : > { %13885 = vst [vmem:[#allocation7_spill] sm:$0xff] %v9216_v46 }
  0x33   : > { %841 = vrot.lane.b32.xlu1 %v7671_v26, %s8773_s28  ;;  %839 = vrot.lane.b32.xlu0 %v7670_v27, %s8773_s28  ;;  %v9006_v55 = vadd.f32 %v7238_v54, %v7237_v50  ;;  %v9223_v50 = vld [vmem:[%s8878_s26 + $0xfa] sm:$0xff]  ;;  %741 = vst.msk [vmem:[#allocation2 + $0x180] sm:$0xff] %vm289_vm0, %v9209_v39 }
  0x34   : > { %7600 = vmatmul.msk.f32.gmra.mxu0 %vm289_vm0, %v7568_v12  ;;  %843 = vrot.lane.b32.xlu2 %v7672_v28, %s8773_s28  ;;  %v9105_v12 = vld [vmem:[%s8878_s26 + $0x7a] sm:$0xff]  ;;  %740 = vst.msk [vmem:[#allocation2 + $0x168] sm:$0xff] %vm289_vm0, %v9213_v45 }
  0x35   : > { %731 = vst.msk [vmem:[#allocation2 + $0x90] sm:$0xff] %vm289_vm0, %v9105_v12 }
  0x36   : > { %742 = vst.msk [vmem:[#allocation2 + $0x198] sm:$0xff] %vm289_vm0, %v9223_v50 }
  0x37   : > { %744 = vst.msk [vmem:[#allocation2 + $0x1c8] sm:$0xff] %vm289_vm0, %v9248_v5 }
  0x39   : > { %7618 = vmatmul.msk.f32.gmra.mxu3 %vm289_vm0, %v8975_v48 }
  0x3b   : > { %847 = vrot.lane.b32.xlu1 %v8917_v31, %s8773_s28  ;;  %845 = vrot.lane.b32.xlu0 %v7673_v32, %s8773_s28 }
  0x3c   : > { %7601 = vmatmul.msk.f32.gmra.mxu0 %vm289_vm0, %v7667_v13  ;;  %849 = vrot.lane.b32.xlu2 %v8921_v33, %s8773_s28 }
  0x41   : > { %7619 = vmatmul.msk.f32.gmra.mxu3 %vm289_vm0, %v8992_v52 }
  0x43   : > { %853 = vrot.lane.b32.xlu1 %v8931_v36, %s8773_s28  ;;  %851 = vrot.lane.b32.xlu0 %v8934_v37, %s8773_s28 }
  0x44   : > { %7602 = vmatmul.msk.f32.gmra.mxu0 %vm289_vm0, %v7668_v20  ;;  %855 = vrot.lane.b32.xlu2 %v8937_v38, %s8773_s28 }
  0x49   : > { %7620 = vmatmul.msk.f32.gmra.mxu3 %vm289_vm0, %v8989_v51 }
  0x4b   : > { %859 = vrot.lane.b32.xlu1 %v8953_v42, %s8773_s28  ;;  %857 = vrot.lane.b32.xlu0 %v8956_v43, %s8773_s28 }
  0x4c   : > { %7603 = vmatmul.msk.f32.gmra.mxu0 %vm289_vm0, %v7669_v23  ;;  %861 = vrot.lane.b32.xlu2 %v8946_v40, %s8773_s28  ;;  %v7703_v23 = vld [vmem:[%s8878_s26 + $0xac] sm:$0xff] }
  0x51   : > { %7621 = vmatmul.msk.f32.gmra.mxu3 %vm289_vm0, %v8995_v53 }
  0x53   : > { %865 = vrot.lane.b32.xlu1 %v8972_v47, %s8773_s28  ;;  %863 = vrot.lane.b32.xlu0 %v8964_v44, %s8773_s28 }
  0x54   : > { %7604 = vmatmul.msk.f32.gmra.mxu0 %vm289_vm0, %v7670_v27  ;;  %867 = vrot.lane.b32.xlu2 %v8975_v48, %s8773_s28  ;;  %v9172_v27 = vld [vmem:[%s8878_s26 + $0xca] sm:$0xff] }
  0x55   : > { %738 = vst.msk [vmem:[#allocation2 + $0x138] sm:$0xff] %vm289_vm0, %v9172_v27 }
  0x59   : > { %7622 = vmatmul.msk.f32.gmra.mxu3 %vm289_vm0, %v9014_v57 }
  0x5b   : > { %871 = vrot.lane.b32.xlu1 %v8989_v51, %s8773_s28  ;;  %869 = vrot.lane.b32.xlu0 %v8992_v52, %s8773_s28 }
  0x5c   : > { %7605 = vmatmul.msk.f32.gmra.mxu0 %vm289_vm0, %v7671_v26  ;;  %873 = vrot.lane.b32.xlu2 %v8995_v53, %s8773_s28 }
  0x61   : > { %7623 = vmatmul.msk.f32.gmra.mxu3 %vm289_vm0, %v9011_v56 }
  0x63   : > { %877 = vrot.lane.b32.xlu1 %v9011_v56, %s8773_s28  ;;  %875 = vrot.lane.b32.xlu0 %v9014_v57, %s8773_s28 }
  0x64   : > { %7606 = vmatmul.msk.f32.gmra.mxu0 %vm289_vm0, %v7672_v28  ;;  %879 = vrot.lane.b32.xlu2 %v9017_v58, %s8773_s28 }
  0x69   : > { %7624 = vmatmul.msk.f32.gmra.mxu3 %vm289_vm0, %v9017_v58 }
  0x6b   : > { %883 = vrot.lane.b32.xlu1 %v9029_v59, %s8773_s28  ;;  %881 = vrot.lane.b32.xlu0 %v9032_v60, %s8773_s28 }
  0x6c   : > { %7607 = vmatmul.msk.f32.gmra.mxu0 %vm289_vm0, %v7673_v32  ;;  %1014 = vrot.lane.b32.xlu2 %v7693_v61, %s8774_s29  ;;  %v9186_v32 = vld [vmem:[%s8878_s26 + $0xda] sm:$0xff]  ;;  %v9230_v61 = vld [vmem:[%s8878_s26 + $0x10c] sm:$0xff] }
  0x6d   : > { %739 = vst.msk [vmem:[#allocation2 + $0x150] sm:$0xff] %vm289_vm0, %v9186_v32 }
  0x6e   : > { %13887 = vst [vmem:[#allocation9_spill] sm:$0xff] %v9230_v61 }
  0x71   : > { %7625 = vmatmul.msk.f32.gmra.mxu3 %vm289_vm0, %v9032_v60 }
  0x73   : > { %1018 = vrot.lane.b32.xlu1 %v9054_v1, %s8774_s29  ;;  %1016 = vrot.lane.b32.xlu0 %v7694_v2, %s8774_s29 }
  0x74   : > { %7608 = vmatmul.msk.f32.gmra.mxu0 %vm289_vm0, %v8917_v31  ;;  %1020 = vrot.lane.b32.xlu2 %v9060_v3, %s8774_s29  ;;  %v9182_v31 = vld [vmem:[%s8878_s26 + $0xcc] sm:$0xff] }
  0x76   : > { %v830_v6 = vpop.permute.xlu2 %829 }
  0x77   : > { %922 = vst.msk [vmem:[#allocation2 + $0x60] sm:$0xff] %vm917_vm1, %v830_v6 }
  0x79   : > { %7626 = vmatmul.msk.f32.gmra.mxu3 %vm289_vm0, %v9029_v59 }
  0x7b   : > { %1024 = vrot.lane.b32.xlu1 %v9082_v8, %s8774_s29  ;;  %1022 = vrot.lane.b32.xlu0 %v9085_v9, %s8774_s29 }
  0x7c   : > { %7609 = vmatmul.msk.f32.gmra.mxu0 %vm289_vm0, %v8921_v33  ;;  %1026 = vrot.lane.b32.xlu2 %v9091_v10, %s8774_s29  ;;  %v9191_v33 = vld [vmem:[%s8878_s26 + $0xe4] sm:$0xff] }
  0x7e   : > { %v832_v13 = vpop.permute.xlu2 %831 }
  0x7f   : > { %923 = vst.msk [vmem:[#allocation2 + $0x78] sm:$0xff] %vm917_vm1, %v832_v13  ;;  %v9252_v13 = vld [vmem:[%s8878_s26 + $0x10a] sm:$0xff] }
  0x80   : > { %743 = vst.msk [vmem:[#allocation2 + $0x1b0] sm:$0xff] %vm289_vm0, %v9252_v13 }
  0x83   : > { %1030 = vrot.lane.b32.xlu1 %v9117_v15, %s8774_s29  ;;  %1028 = vrot.lane.b32.xlu0 %v9120_v16, %s8774_s29 }
  0x84   : > { %7610 = vmatmul.msk.f32.gmra.mxu0 %vm289_vm0, %v8934_v37  ;;  %1032 = vrot.lane.b32.xlu2 %v9126_v17, %s8774_s29 }
  0x86   : > { %v838_v20 = vpop.permute.xlu2 %837 }
  0x87   : > { %926 = vst.msk [vmem:[#allocation2 + $0xc0] sm:$0xff] %vm917_vm1, %v838_v20  ;;  %v9255_v20 = vld [vmem:[%s8878_s26 + $0x124] sm:$0xff] }
  0x88   : > { %13888 = vst [vmem:[#allocation10_spill] sm:$0xff] %v9255_v20 }
  0x8b   : > { %1036 = vrot.lane.b32.xlu1 %v9152_v22, %s8774_s29  ;;  %1034 = vrot.lane.b32.xlu0 %v7703_v23, %s8774_s29  ;;  %v9258_v23 = vld [vmem:[%s8878_s26 + $0x114] sm:$0xff] }
  0x8c   : > { %7611 = vmatmul.msk.f32.gmra.mxu0 %vm289_vm0, %v8931_v36  ;;  %1038 = vrot.lane.b32.xlu2 %v9159_v24, %s8774_s29  ;;  %13889 = vst [vmem:[#allocation11_spill] sm:$0xff] %v9258_v23 }
  0x8d   : > { %v826_v25 = vpop.permute.xlu1 %825  ;;  %v822_v26 = vpop.permute.xlu0 %821 }
  0x8e   : > { %920 = vst.msk [vmem:[#allocation2 + $0x30] sm:$0xff] %vm917_vm1, %v826_v25  ;;  %v844_v28 = vpop.permute.xlu2 %843  ;;  %v9262_v25 = vld [vmem:[%s8878_s26 + $0x122] sm:$0xff] }
  0x8f   : > { %918 = vst.msk [vmem:[#allocation2] sm:$0xff] %vm917_vm1, %v822_v26  ;;  %v7240_v26 = vsel %vm289_vm0, %v8934_v37, 0.0 }
  0x90   : > { %929 = vst.msk [vmem:[#allocation2 + $0x108] sm:$0xff] %vm917_vm1, %v844_v28  ;;  %v7241_v37 = vadd.f32 %v7240_v26, %v9006_v55  ;;  %v9294_v55 = vld [vmem:[%s8878_s26 + $0x12a] sm:$0xff] }
  0x91   : > { %745 = vst.msk [vmem:[#allocation2 + $0x1e0] sm:$0xff] %vm289_vm0, %v9262_v25 }
  0x92   : > { %746 = vst.msk [vmem:[#allocation2 + $0x1f8] sm:$0xff] %vm289_vm0, %v9294_v55 }
  0x93   : > { %1042 = vrot.lane.b32.xlu1 %v9179_v30, %s8774_s29  ;;  %1040 = vrot.lane.b32.xlu0 %v9182_v31, %s8774_s29 }
  0x94   : > { %7612 = vmatmul.msk.f32.gmra.mxu0 %vm289_vm0, %v8937_v38  ;;  %1044 = vrot.lane.b32.xlu2 %v9191_v33, %s8774_s29 }
  0x95   : > { %v828_v34 = vpop.permute.xlu1 %827  ;;  %v824_v35 = vpop.permute.xlu0 %823 }
  0x96   : > { %921 = vst.msk [vmem:[#allocation2 + $0x48] sm:$0xff] %vm917_vm1, %v828_v34  ;;  %v850_v41 = vpop.permute.xlu2 %849  ;;  %v9271_v34 = vld [vmem:[%s8878_s26 + $0x12c] sm:$0xff] }
  0x97   : > { %919 = vst.msk [vmem:[#allocation2 + $0x18] sm:$0xff] %vm917_vm1, %v824_v35  ;;  %v7242_v35 = vsel %vm289_vm0, %v8931_v36, 0.0  ;;  %v9304_v36 = vld [vmem:[%s8878_s26 + $0x142] sm:$0xff] }
  0x98   : > { %932 = vst.msk [vmem:[#allocation2 + $0x150] sm:$0xff] %vm917_vm1, %v850_v41  ;;  %v7243_v26 = vadd.f32 %v7242_v35, %v7241_v37  ;;  %v7246_v37 = vsel %vm289_vm0, %v8956_v43, 0.0 }
  0x99   : > { %v9225_v54 = vpop.f32.mrf.mxu0  ;;  %13891 = vst [vmem:[#allocation13_spill] sm:$0xff] %v9271_v34 }
  0x9a   : > { %13886 = vst [vmem:[#allocation8_spill] sm:$0xff] %v9225_v54  ;;  %v9300_v54 = vld [vmem:[%s8878_s26 + $0x13c] sm:$0xff] }
  0x9b   : > { %1048 = vrot.lane.b32.xlu1 %v9216_v46, %s8774_s29  ;;  %1046 = vrot.lane.b32.xlu0 %v9219_v49, %s8774_s29  ;;  %13893 = vst [vmem:[#allocation15_spill] sm:$0xff] %v9300_v54 }
  0x9c   : > { %7613 = vmatmul.msk.f32.gmra.mxu0 %vm289_vm0, %v8956_v43  ;;  %1050 = vrot.lane.b32.xlu2 %v9230_v61, %s8774_s29  ;;  %748 = vst.msk [vmem:[#allocation2 + $0x228] sm:$0xff] %vm289_vm0, %v9304_v36  ;;  %v9343_v43 = vld [vmem:[%s8878_s26 + $0x16a] sm:$0xff] }
  0x9d   : > { %v836_v63 = vpop.permute.xlu1 %835  ;;  %v834_v2 = vpop.permute.xlu0 %833  ;;  %751 = vst.msk [vmem:[#allocation2 + $0x270] sm:$0xff] %vm289_vm0, %v9343_v43  ;;  %v9414_v61 = vld [vmem:[%s8878_s26 + $0x1a4] sm:$0xff] }
  0x9e   : > { %925 = vst.msk [vmem:[#allocation2 + $0xa8] sm:$0xff] %vm917_vm1, %v836_v63  ;;  %v856_v6 = vpop.permute.xlu2 %855 }
  0x9f   : > { %924 = vst.msk [vmem:[#allocation2 + $0x90] sm:$0xff] %vm917_vm1, %v834_v2  ;;  %v9290_v2 = vld [vmem:[%s8878_s26 + $0x13a] sm:$0xff] }
  0xa0   : > { %935 = vst.msk [vmem:[#allocation2 + $0x198] sm:$0xff] %vm917_vm1, %v856_v6 }
  0xa1   : > { %v9266_v28 = vpop.f32.mrf.mxu0  ;;  %747 = vst.msk [vmem:[#allocation2 + $0x210] sm:$0xff] %vm289_vm0, %v9290_v2 }
  0xa2   : > { %13890 = vst [vmem:[#allocation12_spill] sm:$0xff] %v9266_v28  ;;  %v9297_v28 = vld [vmem:[%s8878_s26 + $0x144] sm:$0xff] }
  0xa3   : > { %1054 = vrot.lane.b32.xlu1 %v9255_v20, %s8774_s29  ;;  %1052 = vrot.lane.b32.xlu0 %v9258_v23, %s8774_s29  ;;  %13892 = vst [vmem:[#allocation14_spill] sm:$0xff] %v9297_v28 }
  0xa4   : > { %7614 = vmatmul.msk.f32.gmra.mxu0 %vm289_vm0, %v8953_v42  ;;  %1056 = vrot.lane.b32.xlu2 %v9271_v34, %s8774_s29 }
  0xa5   : > { %v842_v41 = vpop.permute.xlu1 %841  ;;  %v840_v63 = vpop.permute.xlu0 %839 }
  0xa6   : > { %928 = vst.msk [vmem:[#allocation2 + $0xf0] sm:$0xff] %vm917_vm1, %v842_v41  ;;  %v862_v6 = vpop.permute.xlu2 %861  ;;  %v7244_v41 = vsel %vm289_vm0, %v8937_v38, 0.0 }
  0xa7   : > { %927 = vst.msk [vmem:[#allocation2 + $0xd8] sm:$0xff] %vm917_vm1, %v840_v63  ;;  %v9313_v63 = vld [vmem:[%s8878_s26 + $0x154] sm:$0xff]  ;;  %v7245_v38 = vadd.f32 %v7244_v41, %v7243_v26  ;;  %v9336_v26 = vld [vmem:[%s8878_s26 + $0x16c] sm:$0xff]  ;;  %v9339_v41 = vld [vmem:[%s8878_s26 + $0x15c] sm:$0xff] }
  0xa8   : > { %938 = vst.msk [vmem:[#allocation2 + $0x1e0] sm:$0xff] %vm917_vm1, %v862_v6 }
  0xa9   : > { %v9308_v20 = vpop.f32.mrf.mxu0  ;;  %13895 = vst [vmem:[#allocation17_spill] sm:$0xff] %v9313_v63  ;;  %v7247_v34 = vadd.f32 %v7246_v37, %v7245_v38 }
  0xaa   : > { %13894 = vst [vmem:[#allocation16_spill] sm:$0xff] %v9308_v20  ;;  %v9329_v20 = vld [vmem:[%s8878_s26 + $0x15a] sm:$0xff] }
  0xab   : > { %1060 = vrot.lane.b32.xlu1 %v9297_v28, %s8774_s29  ;;  %1058 = vrot.lane.b32.xlu0 %v9300_v54, %s8774_s29  ;;  %v9333_v54 = vld [vmem:[%s8878_s26 + $0x152] sm:$0xff]  ;;  %13896 = vst [vmem:[#allocation18_spill] sm:$0xff] %v9336_v26 }
  0xac   : > { %1062 = vrot.lane.b32.xlu2 %v9313_v63, %s8774_s29  ;;  %13897 = vst [vmem:[#allocation19_spill] sm:$0xff] %v9339_v41 }
  0xad   : > { %v848_v35 = vpop.permute.xlu1 %847  ;;  %v846_v6 = vpop.permute.xlu0 %845  ;;  %750 = vst.msk [vmem:[#allocation2 + $0x258] sm:$0xff] %vm289_vm0, %v9329_v20 }
  0xae   : > { %931 = vst.msk [vmem:[#allocation2 + $0x138] sm:$0xff] %vm917_vm1, %v848_v35  ;;  %v868_v28 = vpop.permute.xlu2 %867  ;;  %v7248_v35 = vsel %vm289_vm0, %v8953_v42, 0.0 }
  0xaf   : > { %930 = vst.msk [vmem:[#allocation2 + $0x120] sm:$0xff] %vm917_vm1, %v846_v6  ;;  %v9352_v6 = vld [vmem:[%s8878_s26 + $0x174] sm:$0xff]  ;;  %v7249_v42 = vadd.f32 %v7248_v35, %v7247_v34  ;;  %v9375_v34 = vld [vmem:[%s8878_s26 + $0x18c] sm:$0xff]  ;;  %v9378_v35 = vld [vmem:[%s8878_s26 + $0x184] sm:$0xff] }
  0xb0   : > { %941 = vst.msk [vmem:[#allocation2 + $0x228] sm:$0xff] %vm917_vm1, %v868_v28  ;;  %v7250_v28 = vsel %vm289_vm0, %v8946_v40, 0.0  ;;  %v9382_v40 = vld [vmem:[%s8878_s26 + $0x18a] sm:$0xff] }
  0xb1   : > { %v9347_v63 = vpop.f32.mrf.mxu0  ;;  %13899 = vst [vmem:[#allocation21_spill] sm:$0xff] %v9352_v6  ;;  %v7251_v23 = vadd.f32 %v7250_v28, %v7249_v42 }
  0xb2   : > { %13898 = vst [vmem:[#allocation20_spill] sm:$0xff] %v9347_v63  ;;  %v9368_v63 = vld [vmem:[%s8878_s26 + $0x182] sm:$0xff] }
  0xb3   : > { %749 = vst.msk [vmem:[#allocation2 + $0x240] sm:$0xff] %vm289_vm0, %v9333_v54  ;;  %1066 = vrot.lane.b32.xlu1 %v9336_v26, %s8774_s29  ;;  %1064 = vrot.lane.b32.xlu0 %v9339_v41, %s8774_s29  ;;  %v9372_v41 = vld [vmem:[%s8878_s26 + $0x172] sm:$0xff] }
  0xb4   : > { %1068 = vrot.lane.b32.xlu2 %v9352_v6, %s8774_s29  ;;  %13900 = vst [vmem:[#allocation22_spill] sm:$0xff] %v9375_v34 }
  0xb5   : > { %v854_v38 = vpop.permute.xlu1 %853  ;;  %v852_v37 = vpop.permute.xlu0 %851  ;;  %13901 = vst [vmem:[#allocation23_spill] sm:$0xff] %v9378_v35 }
  0xb6   : > { %934 = vst.msk [vmem:[#allocation2 + $0x180] sm:$0xff] %vm917_vm1, %v854_v38  ;;  %v874_v26 = vpop.permute.xlu2 %873  ;;  %v7252_v38 = vsel %vm289_vm0, %v8964_v44, 0.0 }
  0xb7   : > { %933 = vst.msk [vmem:[#allocation2 + $0x168] sm:$0xff] %vm917_vm1, %v852_v37  ;;  %v9391_v37 = vld [vmem:[%s8878_s26 + $0x19c] sm:$0xff]  ;;  %v7253_v44 = vadd.f32 %v7252_v38, %v7251_v23 }
  0xb8   : > { %944 = vst.msk [vmem:[#allocation2 + $0x270] sm:$0xff] %vm917_vm1, %v874_v26  ;;  %v7254_v26 = vsel %vm289_vm0, %v8972_v47, 0.0  ;;  %v7256_v47 = vsel %vm289_vm0, %v8975_v48, 0.0  ;;  %v7258_v48 = vsel %vm289_vm0, %v8992_v52, 0.0 }
  0xb9   : > { %v9386_v6 = vpop.f32.mrf.mxu0  ;;  %753 = vst.msk [vmem:[#allocation2 + $0x2a0] sm:$0xff] %vm289_vm0, %v9368_v63  ;;  %v7255_v46 = vadd.f32 %v7254_v26, %v7253_v44 }
  0xba   : > { %13902 = vst [vmem:[#allocation24_spill] sm:$0xff] %v9386_v6  ;;  %v9407_v6 = vld [vmem:[%s8878_s26 + $0x1a2] sm:$0xff] }
  0xbb   : > { %752 = vst.msk [vmem:[#allocation2 + $0x288] sm:$0xff] %vm289_vm0, %v9372_v41  ;;  %1072 = vrot.lane.b32.xlu1 %v9375_v34, %s8774_s29  ;;  %1070 = vrot.lane.b32.xlu0 %v9378_v35, %s8774_s29  ;;  %v9411_v35 = vld [vmem:[%s8878_s26 + $0x19a] sm:$0xff]  ;;  %v7257_v38 = vadd.f32 %v7256_v47, %v7255_v46  ;;  %v7260_v46 = vsel %vm289_vm0, %v8989_v51, 0.0  ;;  %v7262_v47 = vsel %vm289_vm0, %v8995_v53, 0.0 }
  0xbc   : > { %754 = vst.msk [vmem:[#allocation2 + $0x2b8] sm:$0xff] %vm289_vm0, %v9382_v40  ;;  %1074 = vrot.lane.b32.xlu2 %v9391_v37, %s8774_s29 }
  0xbd   : > { %v860_v42 = vpop.permute.xlu1 %859  ;;  %v858_v28 = vpop.permute.xlu0 %857  ;;  %756 = vst.msk [vmem:[#allocation2 + $0x2e8] sm:$0xff] %vm289_vm0, %v9407_v6 }
  0xbe   : > { %937 = vst.msk [vmem:[#allocation2 + $0x1c8] sm:$0xff] %vm917_vm1, %v860_v42  ;;  %v880_v34 = vpop.permute.xlu2 %879  ;;  %v7259_v42 = vadd.f32 %v7258_v48, %v7257_v38 }
  0xbf   : > { %936 = vst.msk [vmem:[#allocation2 + $0x1b0] sm:$0xff] %vm917_vm1, %v858_v28 }
  0xc0   : > { %947 = vst.msk [vmem:[#allocation2 + $0x2b8] sm:$0xff] %vm917_vm1, %v880_v34  ;;  %v7261_v52 = vadd.f32 %v7260_v46, %v7259_v42  ;;  %v7270_v42 = vsel %vm289_vm0, %v9032_v60, 0.0  ;;  %v7272_v46 = vsel %vm289_vm0, %v9029_v59, 0.0 }
  0xc1   : > { %v9419_v23 = vpop.f32.mrf.mxu0  ;;  %755 = vst.msk [vmem:[#allocation2 + $0x2d0] sm:$0xff] %vm289_vm0, %v9411_v35 }
  0xc2   : > { %v7263_v38 = vadd.f32 %v7262_v47, %v7261_v52  ;;  %v544_v52 = vld [vmem:[%s13867_s4 + $0x68] sm:$0xff] }
  0xc3   : > { %1207 = vrot.lane.b32.xlu1 %v9042_v62, %s8775_s9  ;;  %1076 = vrot.lane.b32.xlu0 %v9414_v61, %s8774_s29 }
  0xc4   : > { %1209 = vrot.lane.b32.xlu2 %v9070_v4, %s8775_s9 }
  0xc5   : > { %v866_v34 = vpop.permute.xlu1 %865  ;;  %v864_v44 = vpop.permute.xlu0 %863 }
  0xc6   : > { %940 = vst.msk [vmem:[#allocation2 + $0x210] sm:$0xff] %vm917_vm1, %v866_v34  ;;  %v1015_v26 = vpop.permute.xlu2 %1014 }
  0xc7   : > { %939 = vst.msk [vmem:[#allocation2 + $0x1f8] sm:$0xff] %vm917_vm1, %v864_v44  ;;  %v7266_v44 = vsel %vm289_vm0, %v9011_v56, 0.0 }
  0xc8   : > { %1111 = vst.msk [vmem:[#allocation2] sm:$0xff] %vm1110_vm2, %v1015_v26 }
  0xc9   : > { %v9436_v62 = vpop.f32.mrf.mxu0 }
  0xcb   : > { %1213 = vrot.lane.b32.xlu1 %v9079_v7, %s8775_s9  ;;  %1211 = vrot.lane.b32.xlu0 %v9051_v0, %s8775_s9  ;;  %v7264_v0 = vsel %vm289_vm0, %v9014_v57, 0.0 }
  0xcc   : > { %1215 = vrot.lane.b32.xlu2 %v9105_v12, %s8775_s9  ;;  %v7265_v53 = vadd.f32 %v7264_v0, %v7263_v38  ;;  %v541_v0 = vld [vmem:[%s13867_s4 + $0x50] sm:$0xff] }
  0xcd   : > { %v872_v4 = vpop.permute.xlu1 %871  ;;  %v870_v28 = vpop.permute.xlu0 %869 }
  0xce   : > { %943 = vst.msk [vmem:[#allocation2 + $0x258] sm:$0xff] %vm917_vm1, %v872_v4  ;;  %v1021_v51 = vpop.permute.xlu2 %1020  ;;  %v7267_v48 = vadd.f32 %v7266_v44, %v7265_v53  ;;  %v543_v4 = vld [vmem:[%s13867_s4 + $0x60] sm:$0xff] }
  0xcf   : > { %942 = vst.msk [vmem:[#allocation2 + $0x240] sm:$0xff] %vm917_vm1, %v870_v28 }
  0xd0   : > { %1114 = vst.msk [vmem:[#allocation2 + $0x48] sm:$0xff] %vm1110_vm2, %v1021_v51  ;;  %v7595_v51 = vld [vmem:[%s8878_s26 + $0x1b3] sm:$0xff] }
  0xd1   : > { %v9451_v7 = vpop.f32.mrf.mxu0  ;;  %7627 = vmatmul.msk.f32.gmra.mxu3 %vm289_vm0, %v7595_v51  ;;  %v7274_v38 = vsel %vm289_vm0, %v7595_v51, 0.0 }
  0xd3   : > { %1219 = vrot.lane.b32.xlu1 %v9114_v14, %s8775_s9  ;;  %1217 = vrot.lane.b32.xlu0 %v9102_v11, %s8775_s9  ;;  %v7268_v11 = vsel %vm289_vm0, %v9017_v58, 0.0  ;;  %v546_v58 = vld [vmem:[%s13867_s4 + $0x78] sm:$0xff] }
  0xd4   : > { %1221 = vrot.lane.b32.xlu2 %v9140_v19, %s8775_s9  ;;  %v7269_v56 = vadd.f32 %v7268_v11, %v7267_v48  ;;  %8640 = vmatpush.msra.mxu2 %v546_v58  ;;  %v7596_v48 = vld [vmem:[%s8878_s26 + $0x1bb] sm:$0xff] }
  0xd5   : > { %v878_v12 = vpop.permute.xlu1 %877  ;;  %v876_v34 = vpop.permute.xlu0 %875  ;;  %547 = vmatpush.msra.mxu1 %v546_v58  ;;  %v7276_v11 = vsel %vm289_vm0, %v7596_v48, 0.0 }
  0xd6   : > { %946 = vst.msk [vmem:[#allocation2 + $0x2a0] sm:$0xff] %vm917_vm1, %v878_v12  ;;  %v1027_v57 = vpop.permute.xlu2 %1026  ;;  %v540_v12 = vld [vmem:[%s13867_s4 + $0x48] sm:$0xff] }
  0xd7   : > { %945 = vst.msk [vmem:[#allocation2 + $0x288] sm:$0xff] %vm917_vm1, %v876_v34  ;;  %v539_v34 = vld [vmem:[%s13867_s4 + $0x40] sm:$0xff] }
  0xd8   : > { %1117 = vst.msk [vmem:[#allocation2 + $0x90] sm:$0xff] %vm1110_vm2, %v1027_v57 }
  0xd9   : > { %v9466_v14 = vpop.f32.mrf.mxu0  ;;  %7628 = vmatmul.msk.f32.gmra.mxu3 %vm289_vm0, %v7596_v48 }
  0xdb   : > { %1225 = vrot.lane.b32.xlu1 %v9149_v21, %s8775_s9  ;;  %1223 = vrot.lane.b32.xlu0 %v9137_v18, %s8775_s9  ;;  %v7271_v18 = vadd.f32 %v7270_v42, %v7269_v56  ;;  %v535_v42 = vld [vmem:[%s13867_s4 + $0x20] sm:$0xff] }
  0xdc   : > { %1227 = vrot.lane.b32.xlu2 %v9176_v29, %s8775_s9  ;;  %v545_v29 = vld [vmem:[%s13867_s4 + $0x70] sm:$0xff] }
  0xdd   : > { %v884_v19 = vpop.permute.xlu1 %883  ;;  %v882_v26 = vpop.permute.xlu0 %881  ;;  %8641 = vmatpush.msra.mxu2 %v545_v29  ;;  %548 = vmatpush.msra.mxu1 %v545_v29  ;;  %v7273_v28 = vadd.f32 %v7272_v46, %v7271_v18  ;;  %v533_v18 = vld [vmem:[%s13867_s4 + $0x10] sm:$0xff]  ;;  %v532_v29 = vld [vmem:[%s13867_s4 + $0x8] sm:$0xff]  ;;  %v531_v46 = vld [vmem:[%s13867_s4] sm:$0xff] }
  0xde   : > { %949 = vst.msk [vmem:[#allocation2 + $0x2e8] sm:$0xff] %vm917_vm1, %v884_v19  ;;  %v1033_v21 = vpop.permute.xlu2 %1032 }
  0xdf   : > { %948 = vst.msk [vmem:[#allocation2 + $0x2d0] sm:$0xff] %vm917_vm1, %v882_v26  ;;  %8642 = vmatpush.msra.mxu2 %v544_v52  ;;  %549 = vmatpush.msra.mxu1 %v544_v52  ;;  %v536_v26 = vld [vmem:[%s13867_s4 + $0x28] sm:$0xff] }
  0xe0   : > { %1120 = vst.msk [vmem:[#allocation2 + $0xd8] sm:$0xff] %vm1110_vm2, %v1033_v21 }
  0xe1   : > { %v9487_v60 = vpop.f32.mrf.mxu0  ;;  %8643 = vmatpush.msra.mxu2 %v543_v4  ;;  %550 = vmatpush.msra.mxu1 %v543_v4 }
  0xe3   : > { %1231 = vrot.lane.b32.xlu1 %v9186_v32, %s8775_s9  ;;  %1229 = vrot.lane.b32.xlu0 %v9172_v27, %s8775_s9  ;;  %v542_v27 = vld [vmem:[%s13867_s4 + $0x58] sm:$0xff] }
  0xe4   : > { %1233 = vrot.lane.b32.xlu2 %v9213_v45, %s8775_s9  ;;  %v7275_v45 = vadd.f32 %v7274_v38, %v7273_v28  ;;  %8644 = vmatpush.msra.mxu2 %v542_v27 }
  0xe5   : > { %v1019_v59 = vpop.permute.xlu1 %1018  ;;  %v1017_v47 = vpop.permute.xlu0 %1016  ;;  %551 = vmatpush.msra.mxu1 %v542_v27  ;;  %v9605_v27 = vld [vmem:[%s8878_s26 + $0x1b2] sm:$0xff] }
  0xe6   : > { %1113 = vst.msk [vmem:[#allocation2 + $0x30] sm:$0xff] %vm1110_vm2, %v1019_v59  ;;  %v1039_v32 = vpop.permute.xlu2 %1038  ;;  %8645 = vmatpush.msra.mxu2 %v541_v0  ;;  %v9538_v56 = vadd.f32 %v7276_v11, %v7275_v45  ;;  %v9622_v45 = vld [vmem:[%s13868_s5] ss:$0 sm:$0xff] }
  0xe7   : > { %1112 = vst.msk [vmem:[#allocation2 + $0x18] sm:$0xff] %vm1110_vm2, %v1017_v47  ;;  %552 = vmatpush.msra.mxu1 %v541_v0  ;;  %v457_v47 = vpop.f32.mrf.mxu3 }
  0xe8   : > { %1123 = vst.msk [vmem:[#allocation2 + $0x120] sm:$0xff] %vm1110_vm2, %v1039_v32  ;;  %8646 = vmatpush.msra.mxu2 %v540_v12 }
  0xe9   : > { %v9515_v53 = vpop.f32.mrf.mxu0  ;;  %553 = vmatpush.msra.mxu1 %v540_v12 }
  0xea   : > { %8647 = vmatpush.msra.mxu2 %v539_v34 }
  0xeb   : > { %1237 = vrot.lane.b32.xlu1 %v9223_v50, %s8775_s9  ;;  %1235 = vrot.lane.b32.xlu0 %v9209_v39, %s8775_s9  ;;  %v538_v39 = vld [vmem:[%s13867_s4 + $0x38] sm:$0xff] }
  0xec   : > { %1239 = vrot.lane.b32.xlu2 %v9252_v13, %s8775_s9  ;;  %8648 = vmatpush.msra.mxu2 %v538_v39  ;;  %v537_v13 = vld [vmem:[%s13867_s4 + $0x30] sm:$0xff] }
  0xed   : > { %v1025_v44 = vpop.permute.xlu1 %1024  ;;  %v1023_v57 = vpop.permute.xlu0 %1022  ;;  %554 = vmatpush.msra.mxu1 %v539_v34 }
  0xee   : > { %1116 = vst.msk [vmem:[#allocation2 + $0x78] sm:$0xff] %vm1110_vm2, %v1025_v44  ;;  %v1045_v50 = vpop.permute.xlu2 %1044  ;;  %8649 = vmatpush.msra.mxu2 %v537_v13 }
  0xef   : > { %1115 = vst.msk [vmem:[#allocation2 + $0x60] sm:$0xff] %vm1110_vm2, %v1023_v57  ;;  %555 = vmatpush.msra.mxu1 %v538_v39  ;;  %v460_v38 = vpop.f32.mrf.mxu3 }
  0xf0   : > { %1126 = vst.msk [vmem:[#allocation2 + $0x168] sm:$0xff] %vm1110_vm2, %v1045_v50  ;;  %8650 = vmatpush.msra.mxu2 %v536_v26 }
  0xf1   : > { %v9543_v19 = vpop.f32.mrf.mxu0  ;;  %556 = vmatpush.msra.mxu1 %v537_v13  ;;  %v458_v13 = vadd.f32 %v9622_v45, %v457_v47  ;;  %v13905_v47 = vld [vmem:[#allocation11_spill] sm:$0xff] }
  0xf2   : > { %8651 = vmatpush.msra.mxu2 %v535_v42 }
  0xf3   : > { %1243 = vrot.lane.b32.xlu1 %v9262_v25, %s8775_s9  ;;  %1241 = vrot.lane.b32.xlu0 %v9248_v5, %s8775_s9  ;;  %v534_v25 = vld [vmem:[%s13867_s4 + $0x18] sm:$0xff] }
  0xf4   : > { %1245 = vrot.lane.b32.xlu2 %v9294_v55, %s8775_s9  ;;  %8652 = vmatpush.msra.mxu2 %v534_v25 }
  0xf5   : > { %v1031_v58 = vpop.permute.xlu1 %1030  ;;  %v1029_v21 = vpop.permute.xlu0 %1028  ;;  %557 = vmatpush.msra.mxu1 %v536_v26 }
  0xf6   : > { %1119 = vst.msk [vmem:[#allocation2 + $0xc0] sm:$0xff] %vm1110_vm2, %v1031_v58  ;;  %v1051_v5 = vpop.permute.xlu2 %1050  ;;  %8653 = vmatpush.msra.mxu2 %v533_v18  ;;  %v7797_v58 = vld [vmem:[%s8878_s26 + $0xac] sm:$0xff] }
  0xf7   : > { %1118 = vst.msk [vmem:[#allocation2 + $0xa8] sm:$0xff] %vm1110_vm2, %v1029_v21  ;;  %558 = vmatpush.msra.mxu1 %v535_v42  ;;  %v463_v44 = vpop.f32.mrf.mxu3  ;;  %v461_v21 = vadd.f32 %v9622_v45, %v460_v38  ;;  %v13906_v38 = vld [vmem:[#allocation13_spill] sm:$0xff] }
  0xf8   : > { %1129 = vst.msk [vmem:[#allocation2 + $0x1b0] sm:$0xff] %vm1110_vm2, %v1051_v5  ;;  %8654 = vmatpush.msra.mxu2 %v532_v29 }
  0xf9   : > { %v9566_v55 = vpop.f32.mrf.mxu0  ;;  %559 = vmatpush.msra.mxu1 %v534_v25 }
  0xfa   : > { %8655 = vmatpush.msra.mxu2 %v531_v46 }
  0xfb   : > { %1249 = vrot.lane.b32.xlu1 %v9304_v36, %s8775_s9  ;;  %1247 = vrot.lane.b32.xlu0 %v9290_v2, %s8775_s9 }
  0xfc   : > { %1251 = vrot.lane.b32.xlu2 %v9333_v54, %s8775_s9  ;;  %560 = vmatpush.msra.mxu1 %v533_v18  ;;  %v518_v18 = vmax.f32 %v461_v21, 0.0 }
  0xfd   : > { %v1037_v52 = vpop.permute.xlu1 %1036  ;;  %v1035_v4 = vpop.permute.xlu0 %1034 }
  0xfe   : > { %1122 = vst.msk [vmem:[#allocation2 + $0x108] sm:$0xff] %vm1110_vm2, %v1037_v52  ;;  %v1057_v36 = vpop.permute.xlu2 %1056  ;;  %561 = vmatpush.msra.mxu1 %v532_v29  ;;  %v464_v29 = vadd.f32 %v9622_v45, %v463_v44 }
  0xff   : > { %1121 = vst.msk [vmem:[#allocation2 + $0xf0] sm:$0xff] %vm1110_vm2, %v1035_v4  ;;  %v466_v26 = vpop.f32.mrf.mxu3 }
 0x100   : > { %1132 = vst.msk [vmem:[#allocation2 + $0x1f8] sm:$0xff] %vm1110_vm2, %v1057_v36  ;;  %562 = vmatpush.msra.mxu1 %v531_v46  ;;  %v519_v52 = vmax.f32 %v464_v29, 0.0  ;;  %v467_v4 = vadd.f32 %v9622_v45, %v466_v26 }
 0x101   : > { %v9583_v2 = vpop.f32.mrf.mxu0 }
 0x103   : > { %1255 = vrot.lane.b32.xlu1 %v9343_v43, %s8775_s9  ;;  %1253 = vrot.lane.b32.xlu0 %v9329_v20, %s8775_s9 }
 0x104   : > { %1257 = vrot.lane.b32.xlu2 %v9372_v41, %s8775_s9 }
 0x105   : > { %v1043_v54 = vpop.permute.xlu1 %1042  ;;  %v1041_v28 = vpop.permute.xlu0 %1040 }
 0x106   : > { %1125 = vst.msk [vmem:[#allocation2 + $0x150] sm:$0xff] %vm1110_vm2, %v1043_v54  ;;  %v1063_v59 = vpop.permute.xlu2 %1062  ;;  %v520_v54 = vmax.f32 %v467_v4, 0.0 }
 0x107   : > { %1124 = vst.msk [vmem:[#allocation2 + $0x138] sm:$0xff] %vm1110_vm2, %v1041_v28  ;;  %v469_v5 = vpop.f32.mrf.mxu3 }
 0x108   : > { %1135 = vst.msk [vmem:[#allocation2 + $0x240] sm:$0xff] %vm1110_vm2, %v1063_v59 }
 0x109   : > { %v9594_v51 = vpop.f32.mrf.mxu0 }
 0x10b   : > { %1261 = vrot.lane.b32.xlu1 %v9382_v40, %s8775_s9  ;;  %1259 = vrot.lane.b32.xlu0 %v9368_v63, %s8775_s9  ;;  %v9611_v40 = vld [vmem:[%s8878_s26 + $0x1ba] sm:$0xff] }
 0x10c   : > { %1263 = vrot.lane.b32.xlu2 %v9411_v35, %s8775_s9 }
 0x10d   : > { %v1049_v20 = vpop.permute.xlu1 %1048  ;;  %v1047_v43 = vpop.permute.xlu0 %1046 }
 0x10e   : > { %1128 = vst.msk [vmem:[#allocation2 + $0x198] sm:$0xff] %vm1110_vm2, %v1049_v20  ;;  %v1069_v41 = vpop.permute.xlu2 %1068  ;;  %v470_v20 = vadd.f32 %v9622_v45, %v469_v5 }
 0x10f   : > { %1127 = vst.msk [vmem:[#allocation2 + $0x180] sm:$0xff] %vm1110_vm2, %v1047_v43 }
 0x110   : > { %1138 = vst.msk [vmem:[#allocation2 + $0x288] sm:$0xff] %vm1110_vm2, %v1069_v41  ;;  %v521_v41 = vmax.f32 %v470_v20, 0.0 }
 0x111   : > { %v9608_v32 = vpop.f32.mrf.mxu0 }
 0x113   : > { %1267 = vrot.lane.b32.xlu1 %v9605_v27, %s8775_s9  ;;  %1265 = vrot.lane.b32.xlu0 %v9407_v6, %s8775_s9 }
 0x114   : > { %1269 = vrot.lane.b32.xlu2 %v9611_v40, %s8775_s9 }
 0x115   : > { %v1055_v63 = vpop.permute.xlu1 %1054  ;;  %v1053_v35 = vpop.permute.xlu0 %1052 }
 0x116   : > { %1131 = vst.msk [vmem:[#allocation2 + $0x1e0] sm:$0xff] %vm1110_vm2, %v1055_v63  ;;  %v1075_v0 = vpop.permute.xlu2 %1074  ;;  %v13907_v63 = vld [vmem:[#allocation10_spill] sm:$0xff] }
 0x117   : > { %1130 = vst.msk [vmem:[#allocation2 + $0x1c8] sm:$0xff] %vm1110_vm2, %v1053_v35 }
 0x118   : > { %1141 = vst.msk [vmem:[#allocation2 + $0x2d0] sm:$0xff] %vm1110_vm2, %v1075_v0 }
 0x119   : > { %v451_v12 = vpop.f32.mrf.mxu0 }
 0x11a   : > { %v452_v6 = vadd.f32 %v9622_v45, %v451_v12  ;;  %v13908_v12 = vld [vmem:[#allocation15_spill] sm:$0xff] }
 0x11b   : > { %1466 = vrot.lane.b32.xlu1 %v9060_v3, %s8773_s28  ;;  %1464 = vrot.lane.b32.xlu0 %v9054_v1, %s8773_s28 }
 0x11c   : > { %v515_v34 = vmax.f32 %v452_v6, 0.0  ;;  %1468 = vrot.lane.b32.xlu2 %v9085_v9, %s8773_s28 }
 0x11d   : > { %v1061_v57 = vpop.permute.xlu1 %1060  ;;  %v1059_v48 = vpop.permute.xlu0 %1058 }
 0x11e   : > { %1134 = vst.msk [vmem:[#allocation2 + $0x228] sm:$0xff] %vm1110_vm2, %v1061_v57  ;;  %611 = vmatmul.f32.vlgmr.msra.gmra.mxu2 %v515_v34  ;;  %v1210_v39 = vpop.permute.xlu2 %1209 }
 0x11f   : > { %1133 = vst.msk [vmem:[#allocation2 + $0x210] sm:$0xff] %vm1110_vm2, %v1059_v48  ;;  %v13909_v48 = vld [vmem:[#allocation17_spill] sm:$0xff] }
 0x120   : > { %1305 = vst.msk [vmem:[#allocation2 + $0x18] sm:$0xff] %vm1303_vm3, %v1210_v39  ;;  %v13910_v39 = vld [vmem:[#allocation14_spill] sm:$0xff] }
 0x121   : > { %v454_v3 = vpop.f32.mrf.mxu0 }
 0x122   : > { %v455_v1 = vadd.f32 %v9622_v45, %v454_v3 }
 0x123   : > { %1472 = vrot.lane.b32.xlu1 %v9091_v10, %s8773_s28  ;;  %1470 = vrot.lane.b32.xlu0 %v9082_v8, %s8773_s28  ;;  %v517_v10 = vmax.f32 %v458_v13, 0.0 }
 0x124   : > { %v516_v9 = vmax.f32 %v455_v1, 0.0  ;;  %1474 = vrot.lane.b32.xlu2 %v9120_v16, %s8773_s28 }
 0x125   : > { %v1067_v50 = vpop.permute.xlu1 %1066  ;;  %v1065_v11 = vpop.permute.xlu0 %1064 }
 0x126   : > { %1137 = vst.msk [vmem:[#allocation2 + $0x270] sm:$0xff] %vm1110_vm2, %v1067_v50  ;;  %614 = vmatmul.f32.gmra.mxu2 %v516_v9  ;;  %v1216_v42 = vpop.permute.xlu2 %1215  ;;  %v13911_v9 = vld [vmem:[#allocation19_spill] sm:$0xff] }
 0x127   : > { %1136 = vst.msk [vmem:[#allocation2 + $0x258] sm:$0xff] %vm1110_vm2, %v1065_v11 }
 0x128   : > { %1308 = vst.msk [vmem:[#allocation2 + $0x60] sm:$0xff] %vm1303_vm3, %v1216_v42  ;;  %v13912_v42 = vld [vmem:[#allocation21_spill] sm:$0xff] }
 0x12b   : > { %1478 = vrot.lane.b32.xlu1 %v9126_v17, %s8773_s28  ;;  %1476 = vrot.lane.b32.xlu0 %v9117_v15, %s8773_s28 }
 0x12c   : > { %1480 = vrot.lane.b32.xlu2 %v7797_v58, %s8773_s28 }
 0x12d   : > { %v1073_v8 = vpop.permute.xlu1 %1072  ;;  %v1071_v16 = vpop.permute.xlu0 %1070 }
 0x12e   : > { %1140 = vst.msk [vmem:[#allocation2 + $0x2b8] sm:$0xff] %vm1110_vm2, %v1073_v8  ;;  %617 = vmatmul.f32.gmra.mxu2 %v517_v10  ;;  %v1222_v25 = vpop.permute.xlu2 %1221  ;;  %v13913_v10 = vld [vmem:[#allocation18_spill] sm:$0xff] }
 0x12f   : > { %1139 = vst.msk [vmem:[#allocation2 + $0x2a0] sm:$0xff] %vm1110_vm2, %v1071_v16  ;;  %v13914_v16 = vld [vmem:[#allocation23_spill] sm:$0xff] }
 0x130   : > { %1311 = vst.msk [vmem:[#allocation2 + $0xa8] sm:$0xff] %vm1303_vm3, %v1222_v25  ;;  %v2152_v25 = vld [vmem:[%s13865_s2 + $0x78] sm:$0xff] }
 0x131   : > { %2271 = vmatpush.msrb.mxu2 %v2152_v25  ;;  %v9823_v25 = vld [vmem:[%s8878_s26 + $0x9b] sm:$0xff] }
 0x132   : > { %1375 = vst.msk [vmem:[#allocation2 + $0xb0] sm:$0xff] %vm289_vm0, %v9823_v25 }
 0x133   : > { %1484 = vrot.lane.b32.xlu1 %v9159_v24, %s8773_s28  ;;  %1482 = vrot.lane.b32.xlu0 %v9152_v22, %s8773_s28  ;;  %v472_v24 = vpop.f32.mrf.mxu3 }
 0x134   : > { %1486 = vrot.lane.b32.xlu2 %v9182_v31, %s8773_s28  ;;  %v473_v6 = vadd.f32 %v9622_v45, %v472_v24 }
 0x135   : > { %v1208_v15 = vpop.permute.xlu1 %1207  ;;  %v1077_v17 = vpop.permute.xlu0 %1076 }
 0x136   : > { %1304 = vst.msk [vmem:[#allocation2] sm:$0xff] %vm1303_vm3, %v1208_v15  ;;  %620 = vmatmul.f32.gmra.mxu2 %v518_v18  ;;  %v1228_v46 = vpop.permute.xlu2 %1227  ;;  %v522_v57 = vmax.f32 %v473_v6, 0.0  ;;  %v2151_v18 = vld [vmem:[%s13865_s2 + $0x70] sm:$0xff]  ;;  %v2150_v15 = vld [vmem:[%s13865_s2 + $0x68] sm:$0xff]  ;;  %v2144_v6 = vld [vmem:[%s13865_s2 + $0x38] sm:$0xff] }
 0x137   : > { %1142 = vst.msk [vmem:[#allocation2 + $0x2e8] sm:$0xff] %vm1110_vm2, %v1077_v17  ;;  %2272 = vmatpush.msrb.mxu2 %v2151_v18 }
 0x138   : > { %1314 = vst.msk [vmem:[#allocation2 + $0xf0] sm:$0xff] %vm1303_vm3, %v1228_v46  ;;  %v13915_v46 = vld [vmem:[#allocation22_spill] sm:$0xff] }
 0x139   : > { %2273 = vmatpush.msrb.mxu2 %v2150_v15 }
 0x13b   : > { %1490 = vrot.lane.b32.xlu1 %v9191_v33, %s8773_s28  ;;  %1488 = vrot.lane.b32.xlu0 %v9179_v30, %s8773_s28  ;;  %v13903_v33 = vld [vmem:[#allocation9_spill] sm:$0xff]  ;;  %v13904_v30 = vld [vmem:[#allocation7_spill] sm:$0xff]  ;;  %v475_v28 = vpop.f32.mrf.mxu3 }
 0x13c   : > { %1492 = vrot.lane.b32.xlu2 %v9219_v49, %s8773_s28  ;;  %v476_v50 = vadd.f32 %v9622_v45, %v475_v28 }
 0x13d   : > { %v1214_v22 = vpop.permute.xlu1 %1213  ;;  %v1212_v31 = vpop.permute.xlu0 %1211 }
 0x13e   : > { %1307 = vst.msk [vmem:[#allocation2 + $0x48] sm:$0xff] %vm1303_vm3, %v1214_v22  ;;  %623 = vmatmul.f32.gmra.mxu2 %v519_v52  ;;  %v1234_v36 = vpop.permute.xlu2 %1233  ;;  %v523_v26 = vmax.f32 %v476_v50, 0.0  ;;  %v2149_v52 = vld [vmem:[%s13865_s2 + $0x60] sm:$0xff]  ;;  %v9800_v50 = vld [vmem:[%s8878_s26 + $0x6b] sm:$0xff] }
 0x13f   : > { %1306 = vst.msk [vmem:[#allocation2 + $0x30] sm:$0xff] %vm1303_vm3, %v1212_v31  ;;  %2274 = vmatpush.msrb.mxu2 %v2149_v52  ;;  %v9838_v52 = vld [vmem:[%s8878_s26 + $0xab] sm:$0xff] }
 0x140   : > { %1317 = vst.msk [vmem:[#allocation2 + $0x138] sm:$0xff] %vm1303_vm3, %v1234_v36  ;;  %v7820_v36 = vld [vmem:[%s8878_s26 + $0x1bc] sm:$0xff] }
 0x141   : > { %1371 = vst.msk [vmem:[#allocation2 + $0x50] sm:$0xff] %vm289_vm0, %v9800_v50 }
 0x142   : > { %1376 = vst.msk [vmem:[#allocation2 + $0xc8] sm:$0xff] %vm289_vm0, %v9838_v52 }
 0x143   : > { %1496 = vrot.lane.b32.xlu1 %v13903_v33, %s8773_s28  ;;  %1494 = vrot.lane.b32.xlu0 %v13904_v30, %s8773_s28  ;;  %v478_v34 = vpop.f32.mrf.mxu3  ;;  %v7821_v30 = vld [vmem:[%s8878_s26 + $0x62] sm:$0xff] }
 0x144   : > { %1498 = vrot.lane.b32.xlu2 %v13905_v47, %s8773_s28  ;;  %v479_v21 = vadd.f32 %v9622_v45, %v478_v34 }
 0x145   : > { %v1220_v59 = vpop.permute.xlu1 %1219  ;;  %v1218_v49 = vpop.permute.xlu0 %1217 }
 0x146   : > { %1310 = vst.msk [vmem:[#allocation2 + $0x90] sm:$0xff] %vm1303_vm3, %v1220_v59  ;;  %626 = vmatmul.f32.gmra.mxu2 %v520_v54  ;;  %v1240_v43 = vpop.permute.xlu2 %1239  ;;  %v524_v17 = vmax.f32 %v479_v21, 0.0  ;;  %v7819_v54 = vld [vmem:[%s8878_s26 + $0x1b4] sm:$0xff]  ;;  %v2146_v59 = vld [vmem:[%s13865_s2 + $0x48] sm:$0xff] }
 0x147   : > { %1309 = vst.msk [vmem:[#allocation2 + $0x78] sm:$0xff] %vm1303_vm3, %v1218_v49  ;;  %v9755_v49 = vld [vmem:[%s8878_s26 + $0x53] sm:$0xff] }
 0x148   : > { %1320 = vst.msk [vmem:[#allocation2 + $0x180] sm:$0xff] %vm1303_vm3, %v1240_v43  ;;  %v2140_v21 = vld [vmem:[%s13865_s2 + $0x18] sm:$0xff] }
 0x149   : > { %1369 = vst.msk [vmem:[#allocation2 + $0x20] sm:$0xff] %vm289_vm0, %v9755_v49 }
 0x14b   : > { %1502 = vrot.lane.b32.xlu1 %v13906_v38, %s8773_s28  ;;  %1500 = vrot.lane.b32.xlu0 %v13907_v63, %s8773_s28  ;;  %v481_v13 = vpop.f32.mrf.mxu3  ;;  %v9766_v38 = vld [vmem:[%s8878_s26 + $0x4b] sm:$0xff] }
 0x14c   : > { %1504 = vrot.lane.b32.xlu2 %v13908_v12, %s8773_s28  ;;  %v482_v31 = vadd.f32 %v9622_v45, %v481_v13  ;;  %v7822_v12 = vld [vmem:[%s8878_s26 + $0x6a] sm:$0xff]  ;;  %1368 = vst.msk [vmem:[#allocation2 + $0x8] sm:$0xff] %vm289_vm0, %v9766_v38 }
 0x14d   : > { %v1226_v35 = vpop.permute.xlu1 %1225  ;;  %v1224_v0 = vpop.permute.xlu0 %1223 }
 0x14e   : > { %1313 = vst.msk [vmem:[#allocation2 + $0xd8] sm:$0xff] %vm1303_vm3, %v1226_v35  ;;  %629 = vmatmul.f32.gmra.mxu2 %v521_v41  ;;  %v1246_v44 = vpop.permute.xlu2 %1245  ;;  %v525_v33 = vmax.f32 %v482_v31, 0.0  ;;  %v2145_v41 = vld [vmem:[%s13865_s2 + $0x40] sm:$0xff] }
 0x14f   : > { %1312 = vst.msk [vmem:[#allocation2 + $0xc0] sm:$0xff] %vm1303_vm3, %v1224_v0  ;;  %v9770_v35 = vld [vmem:[%s8878_s26 + $0x63] sm:$0xff]  ;;  %v7823_v0 = vld [vmem:[%s8878_s26 + $0x7a] sm:$0xff] }
 0x150   : > { %1323 = vst.msk [vmem:[#allocation2 + $0x1c8] sm:$0xff] %vm1303_vm3, %v1246_v44  ;;  %v7824_v44 = vld [vmem:[%s8878_s26 + $0x82] sm:$0xff] }
 0x151   : > { %1370 = vst.msk [vmem:[#allocation2 + $0x38] sm:$0xff] %vm289_vm0, %v9770_v35 }
 0x153   : > { %1508 = vrot.lane.b32.xlu1 %v13909_v48, %s8773_s28  ;;  %1506 = vrot.lane.b32.xlu0 %v13910_v39, %s8773_s28  ;;  %v484_v29 = vpop.f32.mrf.mxu3  ;;  %v9789_v48 = vld [vmem:[%s8878_s26 + $0x7b] sm:$0xff] }
 0x154   : > { %1510 = vrot.lane.b32.xlu2 %v13911_v9, %s8773_s28  ;;  %v485_v43 = vadd.f32 %v9622_v45, %v484_v29  ;;  %1372 = vst.msk [vmem:[#allocation2 + $0x68] sm:$0xff] %vm289_vm0, %v9789_v48  ;;  %v2142_v9 = vld [vmem:[%s13865_s2 + $0x28] sm:$0xff]  ;;  %v9834_v29 = vld [vmem:[%s8878_s26 + $0x93] sm:$0xff] }
 0x155   : > { %v1232_v3 = vpop.permute.xlu1 %1231  ;;  %v1230_v1 = vpop.permute.xlu0 %1229  ;;  %1374 = vst.msk [vmem:[#allocation2 + $0x98] sm:$0xff] %vm289_vm0, %v9834_v29 }
 0x156   : > { %1316 = vst.msk [vmem:[#allocation2 + $0x120] sm:$0xff] %vm1303_vm3, %v1232_v3  ;;  %632 = vmatmul.f32.gmra.mxu2 %v522_v57  ;;  %v1252_v11 = vpop.permute.xlu2 %1251  ;;  %v526_v34 = vmax.f32 %v485_v43, 0.0  ;;  %v2143_v57 = vld [vmem:[%s13865_s2 + $0x30] sm:$0xff]  ;;  %v7832_v43 = vld [vmem:[%s8878_s26 + $0xe2] sm:$0xff] }
 0x157   : > { %1315 = vst.msk [vmem:[#allocation2 + $0x108] sm:$0xff] %vm1303_vm3, %v1230_v1 }
 0x158   : > { %1326 = vst.msk [vmem:[#allocation2 + $0x210] sm:$0xff] %vm1303_vm3, %v1252_v11 }
 0x15b   : > { %1514 = vrot.lane.b32.xlu1 %v13912_v42, %s8773_s28  ;;  %1512 = vrot.lane.b32.xlu0 %v13913_v10, %s8773_s28  ;;  %v487_v28 = vpop.f32.mrf.mxu3  ;;  %v7826_v42 = vld [vmem:[%s8878_s26 + $0x9a] sm:$0xff]  ;;  %v7825_v10 = vld [vmem:[%s8878_s26 + $0x92] sm:$0xff] }
 0x15c   : > { %1516 = vrot.lane.b32.xlu2 %v13914_v16, %s8773_s28  ;;  %v488_v1 = vadd.f32 %v9622_v45, %v487_v28  ;;  %v7827_v16 = vld [vmem:[%s8878_s26 + $0xaa] sm:$0xff] }
 0x15d   : > { %v1238_v58 = vpop.permute.xlu1 %1237  ;;  %v1236_v8 = vpop.permute.xlu0 %1235 }
 0x15e   : > { %1319 = vst.msk [vmem:[#allocation2 + $0x168] sm:$0xff] %vm1303_vm3, %v1238_v58  ;;  %635 = vmatmul.f32.gmra.mxu2 %v523_v26  ;;  %v1258_v5 = vpop.permute.xlu2 %1257  ;;  %v9804_v26 = vld [vmem:[%s8878_s26 + $0x83] sm:$0xff] }
 0x15f   : > { %1318 = vst.msk [vmem:[#allocation2 + $0x150] sm:$0xff] %vm1303_vm3, %v1236_v8  ;;  %v2141_v58 = vld [vmem:[%s13865_s2 + $0x20] sm:$0xff]  ;;  %v527_v8 = vmax.f32 %v488_v1, 0.0  ;;  %v9894_v1 = vld [vmem:[%s8878_s26 + $0xf3] sm:$0xff] }
 0x160   : > { %1329 = vst.msk [vmem:[#allocation2 + $0x258] sm:$0xff] %vm1303_vm3, %v1258_v5 }
 0x161   : > { %1373 = vst.msk [vmem:[#allocation2 + $0x80] sm:$0xff] %vm289_vm0, %v9804_v26 }
 0x162   : > { %1382 = vst.msk [vmem:[#allocation2 + $0x158] sm:$0xff] %vm289_vm0, %v9894_v1 }
 0x163   : > { %1520 = vrot.lane.b32.xlu1 %v9391_v37, %s8773_s28  ;;  %1518 = vrot.lane.b32.xlu0 %v13915_v46, %s8773_s28  ;;  %v2148_v37 = vld [vmem:[%s13865_s2 + $0x58] sm:$0xff]  ;;  %v490_v11 = vpop.f32.mrf.mxu3 }
 0x164   : > { %1522 = vrot.lane.b32.xlu2 %v9414_v61, %s8773_s28  ;;  %2275 = vmatpush.msrb.mxu2 %v2148_v37  ;;  %v2147_v61 = vld [vmem:[%s13865_s2 + $0x50] sm:$0xff]  ;;  %v491_v15 = vadd.f32 %v9622_v45, %v490_v11  ;;  %v2138_v37 = vld [vmem:[%s13865_s2 + $0x8] sm:$0xff]  ;;  %v7834_v11 = vld [vmem:[%s8878_s26 + $0xfa] sm:$0xff] }
 0x165   : > { %v1244_v24 = vpop.permute.xlu1 %1243  ;;  %v1242_v22 = vpop.permute.xlu0 %1241 }
 0x166   : > { %1322 = vst.msk [vmem:[#allocation2 + $0x1b0] sm:$0xff] %vm1303_vm3, %v1244_v24  ;;  %638 = vmatmul.f32.gmra.mxu2 %v524_v17  ;;  %v1264_v4 = vpop.permute.xlu2 %1263  ;;  %v2139_v17 = vld [vmem:[%s13865_s2 + $0x10] sm:$0xff]  ;;  %v7829_v24 = vld [vmem:[%s8878_s26 + $0xc2] sm:$0xff] }
 0x167   : > { %1321 = vst.msk [vmem:[#allocation2 + $0x198] sm:$0xff] %vm1303_vm3, %v1242_v22  ;;  %2276 = vmatpush.msrb.mxu2 %v2147_v61  ;;  %v7828_v22 = vld [vmem:[%s8878_s26 + $0xb2] sm:$0xff]  ;;  %v9857_v61 = vld [vmem:[%s8878_s26 + $0xc3] sm:$0xff] }
 0x168   : > { %1332 = vst.msk [vmem:[#allocation2 + $0x2a0] sm:$0xff] %vm1303_vm3, %v1264_v4  ;;  %v528_v4 = vmax.f32 %v491_v15, 0.0  ;;  %v7839_v15 = vld [vmem:[%s8878_s26 + $0x13a] sm:$0xff] }
 0x169   : > { %2277 = vmatpush.msrb.mxu2 %v2146_v59  ;;  %1378 = vst.msk [vmem:[#allocation2 + $0xf8] sm:$0xff] %vm289_vm0, %v9857_v61  ;;  %v9865_v59 = vld [vmem:[%s8878_s26 + $0xb3] sm:$0xff] }
 0x16a   : > { %1377 = vst.msk [vmem:[#allocation2 + $0xe0] sm:$0xff] %vm289_vm0, %v9865_v59 }
 0x16b   : > { %1526 = vrot.lane.b32.xlu1 %v7820_v36, %s8773_s28  ;;  %1524 = vrot.lane.b32.xlu0 %v7819_v54, %s8773_s28  ;;  %v493_v31 = vpop.f32.mrf.mxu3  ;;  %v7830_v36 = vld [vmem:[%s8878_s26 + $0xca] sm:$0xff]  ;;  %v2137_v54 = vld [vmem:[%s13865_s2] sm:$0xff] }
 0x16c   : > { %1657 = vrot.lane.b32.xlu2 %v7821_v30, %s8774_s29  ;;  %2278 = vmatpush.msrb.mxu2 %v2145_v41  ;;  %v494_v28 = vadd.f32 %v9622_v45, %v493_v31  ;;  %v7831_v41 = vld [vmem:[%s8878_s26 + $0xda] sm:$0xff]  ;;  %v9938_v31 = vld [vmem:[%s8878_s26 + $0x123] sm:$0xff] }
 0x16d   : > { %v1250_v47 = vpop.permute.xlu1 %1249  ;;  %v1248_v20 = vpop.permute.xlu0 %1247  ;;  %1386 = vst.msk [vmem:[#allocation2 + $0x1b8] sm:$0xff] %vm289_vm0, %v9938_v31 }
 0x16e   : > { %1325 = vst.msk [vmem:[#allocation2 + $0x1f8] sm:$0xff] %vm1303_vm3, %v1250_v47  ;;  %641 = vmatmul.f32.gmra.mxu2 %v525_v33  ;;  %v1270_v63 = vpop.permute.xlu2 %1269 }
 0x16f   : > { %1324 = vst.msk [vmem:[#allocation2 + $0x1e0] sm:$0xff] %vm1303_vm3, %v1248_v20  ;;  %2279 = vmatpush.msrb.mxu2 %v2144_v6  ;;  %v9869_v20 = vld [vmem:[%s8878_s26 + $0xcb] sm:$0xff]  ;;  %v9882_v6 = vld [vmem:[%s8878_s26 + $0xe3] sm:$0xff] }
 0x170   : > { %1335 = vst.msk [vmem:[#allocation2 + $0x2e8] sm:$0xff] %vm1303_vm3, %v1270_v63  ;;  %v529_v63 = vmax.f32 %v494_v28, 0.0 }
 0x171   : > { %2280 = vmatpush.msrb.mxu2 %v2143_v57  ;;  %1379 = vst.msk [vmem:[#allocation2 + $0x110] sm:$0xff] %vm289_vm0, %v9869_v20 }
 0x172   : > { %1381 = vst.msk [vmem:[#allocation2 + $0x140] sm:$0xff] %vm289_vm0, %v9882_v6 }
 0x173   : > { %1661 = vrot.lane.b32.xlu1 %v7823_v0, %s8774_s29  ;;  %1659 = vrot.lane.b32.xlu0 %v7822_v12, %s8774_s29  ;;  %v7833_v0 = vld [vmem:[%s8878_s26 + $0xf2] sm:$0xff]  ;;  %v496_v12 = vpop.f32.mrf.mxu3 }
 0x174   : > { %1663 = vrot.lane.b32.xlu2 %v7824_v44, %s8774_s29  ;;  %2281 = vmatpush.msrb.mxu2 %v2142_v9  ;;  %v497_v57 = vadd.f32 %v9622_v45, %v496_v12  ;;  %v7835_v9 = vld [vmem:[%s8878_s26 + $0x10a] sm:$0xff]  ;;  %v7844_v12 = vld [vmem:[%s8878_s26 + $0x172] sm:$0xff] }
 0x175   : > { %v1256_v39 = vpop.permute.xlu1 %1255  ;;  %v1254_v3 = vpop.permute.xlu0 %1253  ;;  %v9907_v45 = vld [vmem:[%s8878_s26 + $0x10b] sm:$0xff] }
 0x176   : > { %1328 = vst.msk [vmem:[#allocation2 + $0x240] sm:$0xff] %vm1303_vm3, %v1256_v39  ;;  %644 = vmatmul.f32.gmra.mxu2 %v526_v34  ;;  %v1469_v13 = vpop.permute.xlu2 %1468  ;;  %v9890_v39 = vld [vmem:[%s8878_s26 + $0xdb] sm:$0xff] }
 0x177   : > { %1327 = vst.msk [vmem:[#allocation2 + $0x228] sm:$0xff] %vm1303_vm3, %v1254_v3  ;;  %2282 = vmatpush.msrb.mxu2 %v2141_v58 }
 0x178   : > { %1562 = vst.msk [vmem:[#allocation2 + $0x38] sm:$0xff] %vm917_vm1, %v1469_v13  ;;  %v530_v13 = vmax.f32 %v497_v57, 0.0  ;;  %v9979_v57 = vld [vmem:[%s8878_s26 + $0x173] sm:$0xff] }
 0x179   : > { %2283 = vmatpush.msrb.mxu2 %v2140_v21  ;;  %1380 = vst.msk [vmem:[#allocation2 + $0x128] sm:$0xff] %vm289_vm0, %v9890_v39  ;;  %v9918_v21 = vld [vmem:[%s8878_s26 + $0x113] sm:$0xff] }
 0x17a   : > { %1384 = vst.msk [vmem:[#allocation2 + $0x188] sm:$0xff] %vm289_vm0, %v9907_v45 }
 0x17b   : > { %1667 = vrot.lane.b32.xlu1 %v7826_v42, %s8774_s29  ;;  %1665 = vrot.lane.b32.xlu0 %v7825_v10, %s8774_s29  ;;  %v7836_v42 = vld [vmem:[%s8878_s26 + $0x112] sm:$0xff]  ;;  %1385 = vst.msk [vmem:[#allocation2 + $0x1a0] sm:$0xff] %vm289_vm0, %v9918_v21 }
 0x17c   : > { %1669 = vrot.lane.b32.xlu2 %v7827_v16, %s8774_s29  ;;  %2284 = vmatpush.msrb.mxu2 %v2139_v17  ;;  %v9931_v17 = vld [vmem:[%s8878_s26 + $0x12b] sm:$0xff]  ;;  %1393 = vst.msk [vmem:[#allocation2 + $0x260] sm:$0xff] %vm289_vm0, %v9979_v57 }
 0x17d   : > { %v1262_v5 = vpop.permute.xlu1 %1261  ;;  %v1260_v18 = vpop.permute.xlu0 %1259  ;;  %1387 = vst.msk [vmem:[#allocation2 + $0x1d0] sm:$0xff] %vm289_vm0, %v9931_v17 }
 0x17e   : > { %1331 = vst.msk [vmem:[#allocation2 + $0x288] sm:$0xff] %vm1303_vm3, %v1262_v5  ;;  %647 = vmatmul.f32.gmra.mxu2 %v527_v8  ;;  %v1475_v46 = vpop.permute.xlu2 %1474  ;;  %v9914_v8 = vld [vmem:[%s8878_s26 + $0xfb] sm:$0xff]  ;;  %v7838_v5 = vld [vmem:[%s8878_s26 + $0x12a] sm:$0xff] }
 0x17f   : > { %1330 = vst.msk [vmem:[#allocation2 + $0x270] sm:$0xff] %vm1303_vm3, %v1260_v18  ;;  %2285 = vmatpush.msrb.mxu2 %v2138_v37  ;;  %v7837_v18 = vld [vmem:[%s8878_s26 + $0x122] sm:$0xff] }
 0x180   : > { %1565 = vst.msk [vmem:[#allocation2 + $0x80] sm:$0xff] %vm917_vm1, %v1475_v46 }
 0x181   : > { %2286 = vmatpush.msrb.mxu2 %v2137_v54  ;;  %1383 = vst.msk [vmem:[#allocation2 + $0x170] sm:$0xff] %vm289_vm0, %v9914_v8  ;;  %v7840_v54 = vld [vmem:[%s8878_s26 + $0x142] sm:$0xff] }
 0x183   : > { %1673 = vrot.lane.b32.xlu1 %v7829_v24, %s8774_s29  ;;  %1671 = vrot.lane.b32.xlu0 %v7828_v22, %s8774_s29  ;;  %v2041_v22 = vld [vmem:[#allocation2] sm:$0xff] }
 0x184   : > { %1675 = vrot.lane.b32.xlu2 %v7830_v36, %s8774_s29  ;;  %v7841_v36 = vld [vmem:[%s8878_s26 + $0x152] sm:$0xff] }
 0x185   : > { %v1268_v33 = vpop.permute.xlu1 %1267  ;;  %v1266_v30 = vpop.permute.xlu0 %1265 }
 0x186   : > { %1334 = vst.msk [vmem:[#allocation2 + $0x2d0] sm:$0xff] %vm1303_vm3, %v1268_v33  ;;  %650 = vmatmul.f32.gmra.mxu2 %v528_v4  ;;  %v1481_v47 = vpop.permute.xlu2 %1480  ;;  %v9942_v4 = vld [vmem:[%s8878_s26 + $0x13b] sm:$0xff] }
 0x187   : > { %1333 = vst.msk [vmem:[#allocation2 + $0x2b8] sm:$0xff] %vm1303_vm3, %v1266_v30  ;;  %v7842_v33 = vld [vmem:[%s8878_s26 + $0x15a] sm:$0xff] }
 0x188   : > { %1568 = vst.msk [vmem:[#allocation2 + $0xc8] sm:$0xff] %vm917_vm1, %v1481_v47  ;;  %v9955_v30 = vld [vmem:[%s8878_s26 + $0x153] sm:$0xff] }
 0x189   : > { %1388 = vst.msk [vmem:[#allocation2 + $0x1e8] sm:$0xff] %vm289_vm0, %v9942_v4 }
 0x18a   : > { %1390 = vst.msk [vmem:[#allocation2 + $0x218] sm:$0xff] %vm289_vm0, %v9955_v30 }
 0x18b   : > { %1679 = vrot.lane.b32.xlu1 %v7832_v43, %s8774_s29  ;;  %1677 = vrot.lane.b32.xlu0 %v7831_v41, %s8774_s29  ;;  %v2044_v43 = vld [vmem:[#allocation2 + $0x18] sm:$0xff]  ;;  %v9962_v41 = vld [vmem:[%s8878_s26 + $0x143] sm:$0xff] }
 0x18c   : > { %1681 = vrot.lane.b32.xlu2 %v7833_v0, %s8774_s29  ;;  %v9966_v0 = vld [vmem:[%s8878_s26 + $0x15b] sm:$0xff]  ;;  %1389 = vst.msk [vmem:[#allocation2 + $0x200] sm:$0xff] %vm289_vm0, %v9962_v41 }
 0x18d   : > { %v1467_v34 = vpop.permute.xlu1 %1466  ;;  %v1465_v44 = vpop.permute.xlu0 %1464  ;;  %1391 = vst.msk [vmem:[#allocation2 + $0x230] sm:$0xff] %vm289_vm0, %v9966_v0 }
 0x18e   : > { %1561 = vst.msk [vmem:[#allocation2 + $0x20] sm:$0xff] %vm917_vm1, %v1467_v34  ;;  %653 = vmatmul.f32.gmra.mxu2 %v529_v63  ;;  %v1487_v3 = vpop.permute.xlu2 %1486  ;;  %v7843_v34 = vld [vmem:[%s8878_s26 + $0x16a] sm:$0xff] }
 0x18f   : > { %1560 = vst.msk [vmem:[#allocation2 + $0x8] sm:$0xff] %vm917_vm1, %v1465_v44  ;;  %v7845_v44 = vld [vmem:[%s8878_s26 + $0x182] sm:$0xff] }
 0x190   : > { %1571 = vst.msk [vmem:[#allocation2 + $0x110] sm:$0xff] %vm917_vm1, %v1487_v3 }
 0x193   : > { %1685 = vrot.lane.b32.xlu1 %v7835_v9, %s8774_s29  ;;  %1683 = vrot.lane.b32.xlu0 %v7834_v11, %s8774_s29  ;;  %v2047_v11 = vld [vmem:[#allocation2 + $0x30] sm:$0xff] }
 0x194   : > { %1687 = vrot.lane.b32.xlu2 %v7836_v42, %s8774_s29 }
 0x195   : > { %v1473_v10 = vpop.permute.xlu1 %1472  ;;  %v1471_v58 = vpop.permute.xlu0 %1470 }
 0x196   : > { %1564 = vst.msk [vmem:[#allocation2 + $0x68] sm:$0xff] %vm917_vm1, %v1473_v10  ;;  %656 = vmatmul.f32.gmra.mxu2 %v530_v13  ;;  %v1493_v16 = vpop.permute.xlu2 %1492  ;;  %v9986_v13 = vld [vmem:[%s8878_s26 + $0x16b] sm:$0xff]  ;;  %v9990_v10 = vld [vmem:[%s8878_s26 + $0x183] sm:$0xff] }
 0x197   : > { %1563 = vst.msk [vmem:[#allocation2 + $0x50] sm:$0xff] %vm917_vm1, %v1471_v58 }
 0x198   : > { %1574 = vst.msk [vmem:[#allocation2 + $0x158] sm:$0xff] %vm917_vm1, %v1493_v16  ;;  %v7847_v16 = vld [vmem:[%s8878_s26 + $0x19a] sm:$0xff] }
 0x199   : > { %1392 = vst.msk [vmem:[#allocation2 + $0x248] sm:$0xff] %vm289_vm0, %v9986_v13 }
 0x19a   : > { %1394 = vst.msk [vmem:[#allocation2 + $0x278] sm:$0xff] %vm289_vm0, %v9990_v10 }
 0x19b   : > { %1691 = vrot.lane.b32.xlu1 %v7838_v5, %s8774_s29  ;;  %1689 = vrot.lane.b32.xlu0 %v7837_v18, %s8774_s29  ;;  %v7846_v5 = vld [vmem:[%s8878_s26 + $0x18a] sm:$0xff]  ;;  %v7848_v18 = vld [vmem:[%s8878_s26 + $0x1a2] sm:$0xff] }
 0x19c   : > { %1693 = vrot.lane.b32.xlu2 %v7839_v15, %s8774_s29  ;;  %v10005_v15 = vld [vmem:[%s8878_s26 + $0x19b] sm:$0xff] }
 0x19d   : > { %v1479_v46 = vpop.permute.xlu1 %1478  ;;  %v1477_v24 = vpop.permute.xlu0 %1476  ;;  %1396 = vst.msk [vmem:[#allocation2 + $0x2a8] sm:$0xff] %vm289_vm0, %v10005_v15 }
 0x19e   : > { %1567 = vst.msk [vmem:[#allocation2 + $0xb0] sm:$0xff] %vm917_vm1, %v1479_v46  ;;  %2287 = vmatmul.f32.vlgmr.msrb.gmra.mxu2 %v2041_v22  ;;  %v1499_v37 = vpop.permute.xlu2 %1498  ;;  %v2050_v22 = vld [vmem:[#allocation2 + $0x48] sm:$0xff] }
 0x19f   : > { %1566 = vst.msk [vmem:[#allocation2 + $0x98] sm:$0xff] %vm917_vm1, %v1477_v24 }
 0x1a0   : > { %1577 = vst.msk [vmem:[#allocation2 + $0x1a0] sm:$0xff] %vm917_vm1, %v1499_v37  ;;  %v10012_v37 = vld [vmem:[%s8878_s26 + $0x18b] sm:$0xff] }
 0x1a1   : > { %v9992_v58 = vpop.f32.mrf.mxu2  ;;  %1395 = vst.msk [vmem:[#allocation2 + $0x290] sm:$0xff] %vm289_vm0, %v10012_v37 }
 0x1a2   : > { %13916 = vst [vmem:[#allocation9_spill] sm:$0xff] %v9992_v58 }
 0x1a3   : > { %1697 = vrot.lane.b32.xlu1 %v7841_v36, %s8774_s29  ;;  %1695 = vrot.lane.b32.xlu0 %v7840_v54, %s8774_s29  ;;  %v10016_v54 = vld [vmem:[%s8878_s26 + $0x1a3] sm:$0xff] }
 0x1a4   : > { %1699 = vrot.lane.b32.xlu2 %v7842_v33, %s8774_s29  ;;  %1397 = vst.msk [vmem:[#allocation2 + $0x2c0] sm:$0xff] %vm289_vm0, %v10016_v54 }
 0x1a5   : > { %v1485_v28 = vpop.permute.xlu1 %1484  ;;  %v1483_v47 = vpop.permute.xlu0 %1482 }
 0x1a6   : > { %1570 = vst.msk [vmem:[#allocation2 + $0xf8] sm:$0xff] %vm917_vm1, %v1485_v28  ;;  %2290 = vmatmul.f32.gmra.mxu2 %v2044_v43  ;;  %v1505_v63 = vpop.permute.xlu2 %1504  ;;  %v7851_v28 = vld [vmem:[%s8878_s26 + $0x1ca] sm:$0xff] }
 0x1a7   : > { %1569 = vst.msk [vmem:[#allocation2 + $0xe0] sm:$0xff] %vm917_vm1, %v1483_v47  ;;  %v10031_v47 = vld [vmem:[%s8878_s26 + $0x1bb] sm:$0xff] }
 0x1a8   : > { %1580 = vst.msk [vmem:[#allocation2 + $0x1e8] sm:$0xff] %vm917_vm1, %v1505_v63 }
 0x1a9   : > { %v10021_v33 = vpop.f32.mrf.mxu2  ;;  %1399 = vst.msk [vmem:[#allocation2 + $0x2f0] sm:$0xff] %vm289_vm0, %v10031_v47 }
 0x1aa   : > { %13917 = vst [vmem:[#allocation7_spill] sm:$0xff] %v10021_v33 }
 0x1ab   : > { %1703 = vrot.lane.b32.xlu1 %v7844_v12, %s8774_s29  ;;  %1701 = vrot.lane.b32.xlu0 %v7843_v34, %s8774_s29  ;;  %v2053_v12 = vld [vmem:[#allocation2 + $0x60] sm:$0xff]  ;;  %v10038_v34 = vld [vmem:[%s8878_s26 + $0x1b3] sm:$0xff] }
 0x1ac   : > { %1705 = vrot.lane.b32.xlu2 %v7845_v44, %s8774_s29  ;;  %v7852_v44 = vld [vmem:[%s8878_s26 + $0x1d2] sm:$0xff]  ;;  %1398 = vst.msk [vmem:[#allocation2 + $0x2d8] sm:$0xff] %vm289_vm0, %v10038_v34 }
 0x1ad   : > { %v1491_v3 = vpop.permute.xlu1 %1490  ;;  %v1489_v9 = vpop.permute.xlu0 %1488 }
 0x1ae   : > { %1573 = vst.msk [vmem:[#allocation2 + $0x140] sm:$0xff] %vm917_vm1, %v1491_v3  ;;  %2293 = vmatmul.f32.gmra.mxu2 %v2047_v11  ;;  %v1511_v42 = vpop.permute.xlu2 %1510  ;;  %v2056_v11 = vld [vmem:[#allocation2 + $0x78] sm:$0xff] }
 0x1af   : > { %1572 = vst.msk [vmem:[#allocation2 + $0x128] sm:$0xff] %vm917_vm1, %v1489_v9 }
 0x1b0   : > { %1583 = vst.msk [vmem:[#allocation2 + $0x230] sm:$0xff] %vm917_vm1, %v1511_v42 }
 0x1b3   : > { %1709 = vrot.lane.b32.xlu1 %v7847_v16, %s8774_s29  ;;  %1707 = vrot.lane.b32.xlu0 %v7846_v5, %s8774_s29 }
 0x1b4   : > { %1711 = vrot.lane.b32.xlu2 %v7848_v18, %s8774_s29  ;;  %v2059_v18 = vld [vmem:[#allocation2 + $0x90] sm:$0xff] }
 0x1b5   : > { %v1497_v46 = vpop.permute.xlu1 %1496  ;;  %v1495_v24 = vpop.permute.xlu0 %1494 }
 0x1b6   : > { %1576 = vst.msk [vmem:[#allocation2 + $0x188] sm:$0xff] %vm917_vm1, %v1497_v46  ;;  %2296 = vmatmul.f32.gmra.mxu2 %v2050_v22  ;;  %v1517_v36 = vpop.permute.xlu2 %1516 }
 0x1b7   : > { %1575 = vst.msk [vmem:[#allocation2 + $0x170] sm:$0xff] %vm917_vm1, %v1495_v24 }
 0x1b8   : > { %1586 = vst.msk [vmem:[#allocation2 + $0x278] sm:$0xff] %vm917_vm1, %v1517_v36 }
 0x1bb   : > { %1715 = vrot.lane.b32.xlu1 %v9611_v40, %s8774_s29  ;;  %1713 = vrot.lane.b32.xlu0 %v9605_v27, %s8774_s29  ;;  %v10048_v27 = vpop.f32.mrf.mxu2 }
 0x1bc   : > { %1717 = vrot.lane.b32.xlu2 %v7851_v28, %s8774_s29  ;;  %13918 = vst [vmem:[#allocation11_spill] sm:$0xff] %v10048_v27  ;;  %v2062_v28 = vld [vmem:[#allocation2 + $0xa8] sm:$0xff]  ;;  %v5300_v27 = vld [vmem:[%s8878_s26 + $0x1e] sm:$0xff] }
 0x1bd   : > { %v1503_v43 = vpop.permute.xlu1 %1502  ;;  %v1501_v63 = vpop.permute.xlu0 %1500 }
 0x1be   : > { %1579 = vst.msk [vmem:[#allocation2 + $0x1d0] sm:$0xff] %vm917_vm1, %v1503_v43  ;;  %2299 = vmatmul.f32.gmra.mxu2 %v2053_v12  ;;  %v1523_v40 = vpop.permute.xlu2 %1522 }
 0x1bf   : > { %1578 = vst.msk [vmem:[#allocation2 + $0x1b8] sm:$0xff] %vm917_vm1, %v1501_v63 }
 0x1c0   : > { %1589 = vst.msk [vmem:[#allocation2 + $0x2c0] sm:$0xff] %vm917_vm1, %v1523_v40 }
 0x1c3   : > { %1849 = vrot.lane.b32.xlu1 %v9770_v35, %s8775_s9  ;;  %1719 = vrot.lane.b32.xlu0 %v7852_v44, %s8774_s29  ;;  %v10061_v46 = vpop.f32.mrf.mxu2  ;;  %v2065_v44 = vld [vmem:[#allocation2 + $0xc0] sm:$0xff] }
 0x1c4   : > { %1851 = vrot.lane.b32.xlu2 %v9800_v50, %s8775_s9  ;;  %13919 = vst [vmem:[#allocation13_spill] sm:$0xff] %v10061_v46 }
 0x1c5   : > { %v1509_v3 = vpop.permute.xlu1 %1508  ;;  %v1507_v9 = vpop.permute.xlu0 %1506 }
 0x1c6   : > { %1582 = vst.msk [vmem:[#allocation2 + $0x218] sm:$0xff] %vm917_vm1, %v1509_v3  ;;  %2302 = vmatmul.f32.gmra.mxu2 %v2056_v11  ;;  %v1658_v42 = vpop.permute.xlu2 %1657 }
 0x1c7   : > { %1581 = vst.msk [vmem:[#allocation2 + $0x200] sm:$0xff] %vm917_vm1, %v1507_v9 }
 0x1c8   : > { %1753 = vst.msk [vmem:[#allocation2 + $0x8] sm:$0xff] %vm1110_vm2, %v1658_v42 }
 0x1cb   : > { %1855 = vrot.lane.b32.xlu1 %v9804_v26, %s8775_s9  ;;  %1853 = vrot.lane.b32.xlu0 %v9789_v48, %s8775_s9  ;;  %v10074_v63 = vpop.f32.mrf.mxu2 }
 0x1cc   : > { %1857 = vrot.lane.b32.xlu2 %v9834_v29, %s8775_s9  ;;  %13920 = vst [vmem:[#allocation10_spill] sm:$0xff] %v10074_v63  ;;  %v8338_v63 = vld [vmem:[%s8878_s26 + $0x50] sm:$0xff] }
 0x1cd   : > { %v1515_v16 = vpop.permute.xlu1 %1514  ;;  %v1513_v5 = vpop.permute.xlu0 %1512 }
 0x1ce   : > { %1585 = vst.msk [vmem:[#allocation2 + $0x260] sm:$0xff] %vm917_vm1, %v1515_v16  ;;  %2305 = vmatmul.f32.gmra.mxu2 %v2059_v18  ;;  %v1664_v24 = vpop.permute.xlu2 %1663  ;;  %v2068_v16 = vld [vmem:[#allocation2 + $0xd8] sm:$0xff] }
 0x1cf   : > { %1584 = vst.msk [vmem:[#allocation2 + $0x248] sm:$0xff] %vm917_vm1, %v1513_v5 }
 0x1d0   : > { %1756 = vst.msk [vmem:[#allocation2 + $0x50] sm:$0xff] %vm1110_vm2, %v1664_v24 }
 0x1d3   : > { %1861 = vrot.lane.b32.xlu1 %v9838_v52, %s8775_s9  ;;  %1859 = vrot.lane.b32.xlu0 %v9823_v25, %s8775_s9  ;;  %v10086_v9 = vpop.f32.mrf.mxu2 }
 0x1d4   : > { %1863 = vrot.lane.b32.xlu2 %v9865_v59, %s8775_s9  ;;  %13921 = vst [vmem:[#allocation15_spill] sm:$0xff] %v10086_v9  ;;  %v5299_v9 = vld [vmem:[%s8878_s26 + $0xe] sm:$0xff] }
 0x1d5   : > { %v1521_v22 = vpop.permute.xlu1 %1520  ;;  %v1519_v36 = vpop.permute.xlu0 %1518 }
 0x1d6   : > { %1588 = vst.msk [vmem:[#allocation2 + $0x2a8] sm:$0xff] %vm917_vm1, %v1521_v22  ;;  %2308 = vmatmul.f32.gmra.mxu2 %v2062_v28  ;;  %v1670_v43 = vpop.permute.xlu2 %1669 }
 0x1d7   : > { %1587 = vst.msk [vmem:[#allocation2 + $0x290] sm:$0xff] %vm917_vm1, %v1519_v36  ;;  %v2071_v36 = vld [vmem:[#allocation2 + $0xf0] sm:$0xff] }
 0x1d8   : > { %1759 = vst.msk [vmem:[#allocation2 + $0x98] sm:$0xff] %vm1110_vm2, %v1670_v43 }
 0x1db   : > { %1867 = vrot.lane.b32.xlu1 %v9869_v20, %s8775_s9  ;;  %1865 = vrot.lane.b32.xlu0 %v9857_v61, %s8775_s9  ;;  %v10101_v18 = vpop.f32.mrf.mxu2 }
 0x1dc   : > { %1869 = vrot.lane.b32.xlu2 %v9890_v39, %s8775_s9  ;;  %13922 = vst [vmem:[#allocation17_spill] sm:$0xff] %v10101_v18  ;;  %v5107_v18 = vld [vmem:[%s8878_s26 + $0xb] sm:$0xff] }
 0x1dd   : > { %v1527_v12 = vpop.permute.xlu1 %1526  ;;  %v1525_v40 = vpop.permute.xlu0 %1524 }
 0x1de   : > { %1591 = vst.msk [vmem:[#allocation2 + $0x2f0] sm:$0xff] %vm917_vm1, %v1527_v12  ;;  %2311 = vmatmul.f32.gmra.mxu2 %v2065_v44  ;;  %v1676_v3 = vpop.permute.xlu2 %1675 }
 0x1df   : > { %1590 = vst.msk [vmem:[#allocation2 + $0x2d8] sm:$0xff] %vm917_vm1, %v1525_v40  ;;  %v2074_v40 = vld [vmem:[#allocation2 + $0x108] sm:$0xff] }
 0x1e0   : > { %1762 = vst.msk [vmem:[#allocation2 + $0xe0] sm:$0xff] %vm1110_vm2, %v1676_v3 }
 0x1e3   : > { %1873 = vrot.lane.b32.xlu1 %v9894_v1, %s8775_s9  ;;  %1871 = vrot.lane.b32.xlu0 %v9882_v6, %s8775_s9  ;;  %v10114_v44 = vpop.f32.mrf.mxu2 }
 0x1e4   : > { %1875 = vrot.lane.b32.xlu2 %v9914_v8, %s8775_s9  ;;  %13923 = vst [vmem:[#allocation14_spill] sm:$0xff] %v10114_v44 }
 0x1e5   : > { %v1662_v11 = vpop.permute.xlu1 %1661  ;;  %v1660_v42 = vpop.permute.xlu0 %1659 }
 0x1e6   : > { %1755 = vst.msk [vmem:[#allocation2 + $0x38] sm:$0xff] %vm1110_vm2, %v1662_v11  ;;  %2314 = vmatmul.f32.gmra.mxu2 %v2068_v16  ;;  %v1682_v5 = vpop.permute.xlu2 %1681  ;;  %v2077_v16 = vld [vmem:[#allocation2 + $0x120] sm:$0xff] }
 0x1e7   : > { %1754 = vst.msk [vmem:[#allocation2 + $0x20] sm:$0xff] %vm1110_vm2, %v1660_v42 }
 0x1e8   : > { %1765 = vst.msk [vmem:[#allocation2 + $0x128] sm:$0xff] %vm1110_vm2, %v1682_v5 }
 0x1eb   : > { %1879 = vrot.lane.b32.xlu1 %v9918_v21, %s8775_s9  ;;  %1877 = vrot.lane.b32.xlu0 %v9907_v45, %s8775_s9 }
 0x1ec   : > { %1881 = vrot.lane.b32.xlu2 %v9938_v31, %s8775_s9 }
 0x1ed   : > { %v1668_v24 = vpop.permute.xlu1 %1667  ;;  %v1666_v22 = vpop.permute.xlu0 %1665 }
 0x1ee   : > { %1758 = vst.msk [vmem:[#allocation2 + $0x80] sm:$0xff] %vm1110_vm2, %v1668_v24  ;;  %2317 = vmatmul.f32.gmra.mxu2 %v2071_v36  ;;  %v1688_v28 = vpop.permute.xlu2 %1687  ;;  %v2168_v24 = vld [vmem:[%s13865_s2 + $0xf8] sm:$0xff]  ;;  %v2167_v36 = vld [vmem:[%s13865_s2 + $0xf0] sm:$0xff] }
 0x1ef   : > { %1757 = vst.msk [vmem:[#allocation2 + $0x68] sm:$0xff] %vm1110_vm2, %v1666_v22  ;;  %v10130_v22 = vpop.f32.mrf.mxu2  ;;  %2384 = vmatpush.msrb.mxu3 %v2168_v24  ;;  %v2162_v24 = vld [vmem:[%s13865_s2 + $0xc8] sm:$0xff] }
 0x1f0   : > { %1768 = vst.msk [vmem:[#allocation2 + $0x170] sm:$0xff] %vm1110_vm2, %v1688_v28  ;;  %v2166_v28 = vld [vmem:[%s13865_s2 + $0xe8] sm:$0xff] }
 0x1f1   : > { %13924 = vst [vmem:[#allocation19_spill] sm:$0xff] %v10130_v22  ;;  %2385 = vmatpush.msrb.mxu3 %v2167_v36  ;;  %v2161_v36 = vld [vmem:[%s13865_s2 + $0xc0] sm:$0xff] }
 0x1f3   : > { %1885 = vrot.lane.b32.xlu1 %v9942_v4, %s8775_s9  ;;  %1883 = vrot.lane.b32.xlu0 %v9931_v17, %s8775_s9 }
 0x1f4   : > { %1887 = vrot.lane.b32.xlu2 %v9962_v41, %s8775_s9  ;;  %2386 = vmatpush.msrb.mxu3 %v2166_v28 }
 0x1f5   : > { %v1674_v43 = vpop.permute.xlu1 %1673  ;;  %v1672_v12 = vpop.permute.xlu0 %1671 }
 0x1f6   : > { %1761 = vst.msk [vmem:[#allocation2 + $0xc8] sm:$0xff] %vm1110_vm2, %v1674_v43  ;;  %2320 = vmatmul.f32.gmra.mxu2 %v2074_v40  ;;  %v1694_v3 = vpop.permute.xlu2 %1693  ;;  %v2165_v43 = vld [vmem:[%s13865_s2 + $0xe0] sm:$0xff] }
 0x1f7   : > { %1760 = vst.msk [vmem:[#allocation2 + $0xb0] sm:$0xff] %vm1110_vm2, %v1672_v12  ;;  %2387 = vmatpush.msrb.mxu3 %v2165_v43 }
 0x1f8   : > { %1771 = vst.msk [vmem:[#allocation2 + $0x1b8] sm:$0xff] %vm1110_vm2, %v1694_v3  ;;  %v2080_v3 = vld [vmem:[#allocation2 + $0x138] sm:$0xff] }
 0x1fb   : > { %1891 = vrot.lane.b32.xlu1 %v9966_v0, %s8775_s9  ;;  %1889 = vrot.lane.b32.xlu0 %v9955_v30, %s8775_s9 }
 0x1fc   : > { %1893 = vrot.lane.b32.xlu2 %v9986_v13, %s8775_s9 }
 0x1fd   : > { %v1680_v11 = vpop.permute.xlu1 %1679  ;;  %v1678_v42 = vpop.permute.xlu0 %1677 }
 0x1fe   : > { %1764 = vst.msk [vmem:[#allocation2 + $0x110] sm:$0xff] %vm1110_vm2, %v1680_v11  ;;  %2323 = vmatmul.f32.gmra.mxu2 %v2077_v16  ;;  %v1700_v5 = vpop.permute.xlu2 %1699  ;;  %v2163_v16 = vld [vmem:[%s13865_s2 + $0xd0] sm:$0xff] }
 0x1ff   : > { %1763 = vst.msk [vmem:[#allocation2 + $0xf8] sm:$0xff] %vm1110_vm2, %v1678_v42  ;;  %v2164_v42 = vld [vmem:[%s13865_s2 + $0xd8] sm:$0xff] }
 0x200   : > { %1774 = vst.msk [vmem:[#allocation2 + $0x200] sm:$0xff] %vm1110_vm2, %v1700_v5  ;;  %2388 = vmatpush.msrb.mxu3 %v2164_v42  ;;  %v10157_v5 = vpop.f32.mrf.mxu2  ;;  %v2157_v42 = vld [vmem:[%s13865_s2 + $0xa0] sm:$0xff] }
 0x201   : > { %13925 = vst [vmem:[#allocation21_spill] sm:$0xff] %v10157_v5 }
 0x202   : > { %2389 = vmatpush.msrb.mxu3 %v2163_v16 }
 0x203   : > { %1897 = vrot.lane.b32.xlu1 %v9990_v10, %s8775_s9  ;;  %1895 = vrot.lane.b32.xlu0 %v9979_v57, %s8775_s9 }
 0x204   : > { %1899 = vrot.lane.b32.xlu2 %v10012_v37, %s8775_s9  ;;  %2390 = vmatpush.msrb.mxu3 %v2162_v24 }
 0x205   : > { %v1686_v12 = vpop.permute.xlu1 %1685  ;;  %v1684_v40 = vpop.permute.xlu0 %1683 }
 0x206   : > { %1767 = vst.msk [vmem:[#allocation2 + $0x158] sm:$0xff] %vm1110_vm2, %v1686_v12  ;;  %2326 = vmatmul.f32.gmra.mxu2 %v2080_v3  ;;  %v1706_v11 = vpop.permute.xlu2 %1705  ;;  %v2083_v12 = vld [vmem:[#allocation2 + $0x150] sm:$0xff]  ;;  %2391 = vmatpush.msrb.mxu3 %v2161_v36 }
 0x207   : > { %1766 = vst.msk [vmem:[#allocation2 + $0x140] sm:$0xff] %vm1110_vm2, %v1684_v40  ;;  %v7883_v40 = vld [vmem:[%s8878_s26 + $0x1cb] sm:$0xff] }
 0x208   : > { %1777 = vst.msk [vmem:[#allocation2 + $0x248] sm:$0xff] %vm1110_vm2, %v1706_v11  ;;  %v2159_v3 = vld [vmem:[%s13865_s2 + $0xb0] sm:$0xff]  ;;  %v2158_v11 = vld [vmem:[%s13865_s2 + $0xa8] sm:$0xff]  ;;  %v10191_v16 = vpop.f32.mrf.mxu2 }
 0x209   : > { %13926 = vst [vmem:[#allocation18_spill] sm:$0xff] %v10191_v16  ;;  %v7905_v16 = vld [vmem:[%s8878_s26 + $0x154] sm:$0xff] }
 0x20a   : > { %2029 = vst.msk [vmem:[#allocation2 + $0x1f0] sm:$0xff] %vm289_vm0, %v7905_v16 }
 0x20b   : > { %1903 = vrot.lane.b32.xlu1 %v10016_v54, %s8775_s9  ;;  %1901 = vrot.lane.b32.xlu0 %v10005_v15, %s8775_s9  ;;  %v2160_v15 = vld [vmem:[%s13865_s2 + $0xb8] sm:$0xff] }
 0x20c   : > { %1905 = vrot.lane.b32.xlu2 %v10038_v34, %s8775_s9  ;;  %2392 = vmatpush.msrb.mxu3 %v2160_v15  ;;  %v7884_v34 = vld [vmem:[%s8878_s26 + $0x1d3] sm:$0xff] }
 0x20d   : > { %v1692_v28 = vpop.permute.xlu1 %1691  ;;  %v1690_v43 = vpop.permute.xlu0 %1689  ;;  %v2155_v15 = vld [vmem:[%s13865_s2 + $0x90] sm:$0xff] }
 0x20e   : > { %1770 = vst.msk [vmem:[#allocation2 + $0x1a0] sm:$0xff] %vm1110_vm2, %v1692_v28  ;;  %2329 = vmatmul.f32.gmra.mxu2 %v2083_v12  ;;  %v1712_v54 = vpop.permute.xlu2 %1711  ;;  %2393 = vmatpush.msrb.mxu3 %v2159_v3  ;;  %v2086_v28 = vld [vmem:[#allocation2 + $0x168] sm:$0xff] }
 0x20f   : > { %1769 = vst.msk [vmem:[#allocation2 + $0x188] sm:$0xff] %vm1110_vm2, %v1690_v43  ;;  %v2156_v43 = vld [vmem:[%s13865_s2 + $0x98] sm:$0xff]  ;;  %v7998_v12 = vld [vmem:[%s8878_s26 + $0x23] sm:$0xff] }
 0x210   : > { %1780 = vst.msk [vmem:[#allocation2 + $0x290] sm:$0xff] %vm1110_vm2, %v1712_v54  ;;  %2394 = vmatpush.msrb.mxu3 %v2158_v11  ;;  %v7997_v54 = vld [vmem:[%s8878_s26 + $0x1b] sm:$0xff]  ;;  %v2154_v3 = vld [vmem:[%s13865_s2 + $0x88] sm:$0xff] }
 0x212   : > { %2395 = vmatpush.msrb.mxu3 %v2157_v42 }
 0x213   : > { %1909 = vrot.lane.b32.xlu1 %v7883_v40, %s8775_s9  ;;  %1907 = vrot.lane.b32.xlu0 %v10031_v47, %s8775_s9  ;;  %v7999_v40 = vld [vmem:[%s8878_s26 + $0x33] sm:$0xff] }
 0x214   : > { %1911 = vrot.lane.b32.xlu2 %v7884_v34, %s8775_s9  ;;  %2396 = vmatpush.msrb.mxu3 %v2156_v43  ;;  %v2153_v34 = vld [vmem:[%s13865_s2 + $0x80] sm:$0xff]  ;;  %v2172_v43 = vld [vmem:[%s13865_s2 + $0x118] sm:$0xff] }
 0x215   : > { %v1698_v24 = vpop.permute.xlu1 %1697  ;;  %v1696_v36 = vpop.permute.xlu0 %1695  ;;  %2509 = vmatpush.msrb.mxu0 %v2172_v43  ;;  %v7886_v43 = vld [vmem:[%s8878_s26 + $0x6c] sm:$0xff] }
 0x216   : > { %1773 = vst.msk [vmem:[#allocation2 + $0x1e8] sm:$0xff] %vm1110_vm2, %v1698_v24  ;;  %2332 = vmatmul.f32.gmra.mxu2 %v2086_v28  ;;  %v1718_v47 = vpop.permute.xlu2 %1717  ;;  %2397 = vmatpush.msrb.mxu3 %v2155_v15  ;;  %v2089_v24 = vld [vmem:[#allocation2 + $0x180] sm:$0xff]  ;;  %v2170_v15 = vld [vmem:[%s13865_s2 + $0x108] sm:$0xff] }
 0x217   : > { %1772 = vst.msk [vmem:[#allocation2 + $0x1d0] sm:$0xff] %vm1110_vm2, %v1696_v36  ;;  %v10215_v36 = vpop.f32.mrf.mxu2  ;;  %v7885_v28 = vld [vmem:[%s8878_s26 + $0x64] sm:$0xff] }
 0x218   : > { %1783 = vst.msk [vmem:[#allocation2 + $0x2d8] sm:$0xff] %vm1110_vm2, %v1718_v47  ;;  %2398 = vmatpush.msrb.mxu3 %v2154_v3  ;;  %v13928_v3 = vld [vmem:[#allocation8_spill] sm:$0xff] }
 0x219   : > { %13927 = vst [vmem:[#allocation23_spill] sm:$0xff] %v10215_v36  ;;  %v10820_v36 = vld [vmem:[%s8878_s26 + $0x18d] sm:$0xff] }
 0x21a   : > { %2399 = vmatpush.msrb.mxu3 %v2153_v34  ;;  %2009 = vst.msk [vmem:[#allocation2 + $0x10] sm:$0xff] %vm289_vm0, %v7885_v28  ;;  %v2092_v28 = vld [vmem:[#allocation2 + $0x198] sm:$0xff] }
 0x21b   : > { %2999 = vrot.lane.b32.xlu1 %v7998_v12, %s8773_s28  ;;  %2997 = vrot.lane.b32.xlu0 %v7997_v54, %s8773_s28  ;;  %v8000_v12 = vld [vmem:[%s8878_s26 + $0x3b] sm:$0xff]  ;;  %v2171_v54 = vld [vmem:[%s13865_s2 + $0x110] sm:$0xff]  ;;  %2010 = vst.msk [vmem:[#allocation2 + $0x28] sm:$0xff] %vm289_vm0, %v7886_v43 }
 0x21c   : > { %3001 = vrot.lane.b32.xlu2 %v7999_v40, %s8773_s28  ;;  %2510 = vmatpush.msrb.mxu0 %v2171_v54  ;;  %v10235_v40 = vld [vmem:[%s13868_s5] ss:$0 sm:$0xff] }
 0x21d   : > { %v1704_v11 = vpop.permute.xlu1 %1703  ;;  %v1702_v42 = vpop.permute.xlu0 %1701  ;;  %v404_v34 = vadd.f32 %v10235_v40, %v13928_v3 }
 0x21e   : > { %1776 = vst.msk [vmem:[#allocation2 + $0x230] sm:$0xff] %vm1110_vm2, %v1704_v11  ;;  %2335 = vmatmul.f32.gmra.mxu2 %v2089_v24  ;;  %v1852_v47 = vpop.permute.xlu2 %1851  ;;  %v2169_v11 = vld [vmem:[%s13865_s2 + $0x100] sm:$0xff]  ;;  %2511 = vmatpush.msrb.mxu0 %v2170_v15 }
 0x21f   : > { %1775 = vst.msk [vmem:[#allocation2 + $0x218] sm:$0xff] %vm1110_vm2, %v1702_v42  ;;  %v10254_v15 = vld [vmem:[%s8878_s26 + $0x7d] sm:$0xff] }
 0x220   : > { %1946 = vst.msk [vmem:[#allocation2 + $0x20] sm:$0xff] %vm1303_vm3, %v1852_v47  ;;  %2512 = vmatpush.msrb.mxu0 %v2169_v11  ;;  %v499_v47 = vmax.f32 %v404_v34, 0.0 }
 0x221   : > { %v2043_v54 = vld [vmem:[#allocation2 + $0x10] sm:$0xff] }
 0x222   : > { %7917 = vmatmul.msk.f32.vlgmr.msrb.gmra.mxu0 %vm289_vm0, %v2043_v54  ;;  %4182 = vst.msk [vmem:[#allocation2 + $0x10] sm:$0xff] %vm289_vm0, %v10254_v15  ;;  %563 = vmatmul.f32.vlgmr.msra.gmra.mxu1 %v499_v47  ;;  %v10273_v47 = vld [vmem:[%s8878_s26 + $0x85] sm:$0xff] }
 0x223   : > { %3005 = vrot.lane.b32.xlu1 %v9766_v38, %s8773_s28  ;;  %3003 = vrot.lane.b32.xlu0 %v8000_v12, %s8773_s28  ;;  %v10250_v12 = vpop.f32.mrf.mxu2 }
 0x224   : > { %3007 = vrot.lane.b32.xlu2 %v9755_v49, %s8773_s28  ;;  %13929 = vst [vmem:[#allocation22_spill] sm:$0xff] %v10250_v12  ;;  %v13930_v49 = vld [vmem:[#allocation12_spill] sm:$0xff] }
 0x225   : > { %v1710_v42 = vpop.permute.xlu1 %1709  ;;  %v1708_v24 = vpop.permute.xlu0 %1707  ;;  %v407_v3 = vadd.f32 %v10235_v40, %v13930_v49 }
 0x226   : > { %1779 = vst.msk [vmem:[#allocation2 + $0x278] sm:$0xff] %vm1110_vm2, %v1710_v42  ;;  %2338 = vmatmul.f32.gmra.mxu2 %v2092_v28  ;;  %v1858_v38 = vpop.permute.xlu2 %1857  ;;  %v2095_v42 = vld [vmem:[#allocation2 + $0x1b0] sm:$0xff] }
 0x227   : > { %1778 = vst.msk [vmem:[#allocation2 + $0x260] sm:$0xff] %vm1110_vm2, %v1708_v24  ;;  %v7887_v24 = vld [vmem:[%s8878_s26 + $0x7c] sm:$0xff] }
 0x228   : > { %1949 = vst.msk [vmem:[#allocation2 + $0x68] sm:$0xff] %vm1303_vm3, %v1858_v38  ;;  %v500_v38 = vmax.f32 %v407_v3, 0.0  ;;  %v2098_v3 = vld [vmem:[#allocation2 + $0x1c8] sm:$0xff] }
 0x229   : > { %2011 = vst.msk [vmem:[#allocation2 + $0x40] sm:$0xff] %vm289_vm0, %v7887_v24  ;;  %v10294_v24 = vld [vmem:[%s8878_s26 + $0x95] sm:$0xff] }
 0x22a   : > { %566 = vmatmul.f32.gmra.mxu1 %v500_v38 }
 0x22b   : > { %3011 = vrot.lane.b32.xlu1 %v9800_v50, %s8773_s28  ;;  %3009 = vrot.lane.b32.xlu0 %v9770_v35, %s8773_s28  ;;  %v2046_v50 = vld [vmem:[#allocation2 + $0x28] sm:$0xff]  ;;  %v10276_v35 = vpop.f32.mrf.mxu2 }
 0x22c   : > { %3013 = vrot.lane.b32.xlu2 %v9789_v48, %s8773_s28  ;;  %13931 = vst [vmem:[#allocation8_spill] sm:$0xff] %v10276_v35  ;;  %7918 = vmatmul.msk.f32.gmra.mxu0 %vm289_vm0, %v2046_v50  ;;  %v13932_v48 = vld [vmem:[#allocation16_spill] sm:$0xff] }
 0x22d   : > { %v1716_v34 = vpop.permute.xlu1 %1715  ;;  %v1714_v11 = vpop.permute.xlu0 %1713  ;;  %4183 = vst.msk [vmem:[#allocation2 + $0x28] sm:$0xff] %vm289_vm0, %v10273_v47  ;;  %v410_v43 = vadd.f32 %v10235_v40, %v13932_v48  ;;  %v2101_v48 = vld [vmem:[#allocation2 + $0x1e0] sm:$0xff] }
 0x22e   : > { %1782 = vst.msk [vmem:[#allocation2 + $0x2c0] sm:$0xff] %vm1110_vm2, %v1716_v34  ;;  %2341 = vmatmul.f32.gmra.mxu2 %v2095_v42  ;;  %v1864_v28 = vpop.permute.xlu2 %1863  ;;  %v7888_v42 = vld [vmem:[%s8878_s26 + $0x84] sm:$0xff] }
 0x22f   : > { %1781 = vst.msk [vmem:[#allocation2 + $0x2a8] sm:$0xff] %vm1110_vm2, %v1714_v11  ;;  %v501_v11 = vmax.f32 %v410_v43, 0.0 }
 0x230   : > { %1952 = vst.msk [vmem:[#allocation2 + $0xb0] sm:$0xff] %vm1303_vm3, %v1864_v28 }
 0x231   : > { %2012 = vst.msk [vmem:[#allocation2 + $0x58] sm:$0xff] %vm289_vm0, %v7888_v42 }
 0x232   : > { %569 = vmatmul.f32.gmra.mxu1 %v501_v11 }
 0x233   : > { %3017 = vrot.lane.b32.xlu1 %v9834_v29, %s8773_s28  ;;  %3015 = vrot.lane.b32.xlu0 %v9804_v26, %s8773_s28  ;;  %v2049_v29 = vld [vmem:[#allocation2 + $0x40] sm:$0xff]  ;;  %v13933_v26 = vld [vmem:[#allocation20_spill] sm:$0xff]  ;;  %v10306_v28 = vpop.f32.mrf.mxu2 }
 0x234   : > { %3019 = vrot.lane.b32.xlu2 %v9823_v25, %s8773_s28  ;;  %4184 = vst.msk [vmem:[#allocation2 + $0x40] sm:$0xff] %vm289_vm0, %v10294_v24  ;;  %7919 = vmatmul.msk.f32.gmra.mxu0 %vm289_vm0, %v2049_v29  ;;  %v413_v25 = vadd.f32 %v10235_v40, %v13933_v26  ;;  %v2104_v29 = vld [vmem:[#allocation2 + $0x1f8] sm:$0xff]  ;;  %v2045_v26 = vld [vmem:[#allocation2 + $0x20] sm:$0xff] }
 0x235   : > { %v1850_v54 = vpop.permute.xlu1 %1849  ;;  %v1720_v49 = vpop.permute.xlu0 %1719  ;;  %13934 = vst [vmem:[#allocation12_spill] sm:$0xff] %v10306_v28  ;;  %v10812_v28 = vld [vmem:[%s8878_s26 + $0x181] sm:$0xff] }
 0x236   : > { %1945 = vst.msk [vmem:[#allocation2 + $0x8] sm:$0xff] %vm1303_vm3, %v1850_v54  ;;  %2344 = vmatmul.f32.gmra.mxu2 %v2098_v3  ;;  %v1870_v34 = vpop.permute.xlu2 %1869  ;;  %v7889_v54 = vld [vmem:[%s8878_s26 + $0x94] sm:$0xff]  ;;  %v10315_v3 = vld [vmem:[%s8878_s26 + $0x9d] sm:$0xff] }
 0x237   : > { %1784 = vst.msk [vmem:[#allocation2 + $0x2f0] sm:$0xff] %vm1110_vm2, %v1720_v49  ;;  %v502_v49 = vmax.f32 %v413_v25, 0.0 }
 0x238   : > { %1955 = vst.msk [vmem:[#allocation2 + $0xf8] sm:$0xff] %vm1303_vm3, %v1870_v34 }
 0x239   : > { %2013 = vst.msk [vmem:[#allocation2 + $0x70] sm:$0xff] %vm289_vm0, %v7889_v54 }
 0x23a   : > { %572 = vmatmul.f32.gmra.mxu1 %v502_v49 }
 0x23b   : > { %3023 = vrot.lane.b32.xlu1 %v9865_v59, %s8773_s28  ;;  %3021 = vrot.lane.b32.xlu0 %v9838_v52, %s8773_s28  ;;  %v2052_v52 = vld [vmem:[#allocation2 + $0x58] sm:$0xff]  ;;  %v10329_v25 = vpop.f32.mrf.mxu2 }
 0x23c   : > { %3025 = vrot.lane.b32.xlu2 %v9857_v61, %s8773_s28  ;;  %7920 = vmatmul.msk.f32.gmra.mxu0 %vm289_vm0, %v2052_v52  ;;  %4185 = vst.msk [vmem:[#allocation2 + $0x58] sm:$0xff] %vm289_vm0, %v10315_v3  ;;  %v13935_v61 = vld [vmem:[#allocation24_spill] sm:$0xff] }
 0x23d   : > { %v1856_v38 = vpop.permute.xlu1 %1855  ;;  %v1854_v50 = vpop.permute.xlu0 %1853  ;;  %v2042_v43 = vld [vmem:[#allocation2 + $0x8] sm:$0xff]  ;;  %v416_v34 = vadd.f32 %v10235_v40, %v13935_v61  ;;  %13936 = vst [vmem:[#allocation16_spill] sm:$0xff] %v10329_v25 }
 0x23e   : > { %1948 = vst.msk [vmem:[#allocation2 + $0x50] sm:$0xff] %vm1303_vm3, %v1856_v38  ;;  %2347 = vmatmul.f32.gmra.mxu2 %v2101_v48  ;;  %2400 = vmatmul.f32.vlgmr.msrb.gmra.mxu3 %v2042_v43  ;;  %v1876_v59 = vpop.permute.xlu2 %1875  ;;  %v10336_v48 = vld [vmem:[%s8878_s26 + $0xad] sm:$0xff] }
 0x23f   : > { %1947 = vst.msk [vmem:[#allocation2 + $0x38] sm:$0xff] %vm1303_vm3, %v1854_v50  ;;  %v503_v38 = vmax.f32 %v416_v34, 0.0  ;;  %v7890_v50 = vld [vmem:[%s8878_s26 + $0x9c] sm:$0xff]  ;;  %v7891_v52 = vld [vmem:[%s8878_s26 + $0xac] sm:$0xff] }
 0x240   : > { %1958 = vst.msk [vmem:[#allocation2 + $0x140] sm:$0xff] %vm1303_vm3, %v1876_v59  ;;  %v2107_v59 = vld [vmem:[#allocation2 + $0x210] sm:$0xff] }
 0x241   : > { %2014 = vst.msk [vmem:[#allocation2 + $0x88] sm:$0xff] %vm289_vm0, %v7890_v50  ;;  %v10357_v34 = vld [vmem:[%s8878_s26 + $0xb5] sm:$0xff]  ;;  %v425_v50 = vadd.f32 %v10235_v40, %v9451_v7 }
 0x242   : > { %575 = vmatmul.f32.gmra.mxu1 %v503_v38  ;;  %2015 = vst.msk [vmem:[#allocation2 + $0xa0] sm:$0xff] %vm289_vm0, %v7891_v52 }
 0x243   : > { %3029 = vrot.lane.b32.xlu1 %v9890_v39, %s8773_s28  ;;  %3027 = vrot.lane.b32.xlu0 %v9869_v20, %s8773_s28  ;;  %v2055_v20 = vld [vmem:[#allocation2 + $0x70] sm:$0xff]  ;;  %v10353_v61 = vpop.f32.mrf.mxu2 }
 0x244   : > { %3031 = vrot.lane.b32.xlu2 %v9882_v6, %s8773_s28  ;;  %4186 = vst.msk [vmem:[#allocation2 + $0x70] sm:$0xff] %vm289_vm0, %v10336_v48  ;;  %7921 = vmatmul.msk.f32.gmra.mxu0 %vm289_vm0, %v2055_v20  ;;  %v419_v6 = vadd.f32 %v10235_v40, %v9419_v23 }
 0x245   : > { %v1862_v11 = vpop.permute.xlu1 %1861  ;;  %v1860_v42 = vpop.permute.xlu0 %1859 }
 0x246   : > { %1951 = vst.msk [vmem:[#allocation2 + $0x98] sm:$0xff] %vm1303_vm3, %v1862_v11  ;;  %2350 = vmatmul.f32.gmra.mxu2 %v2104_v29  ;;  %2403 = vmatmul.f32.gmra.mxu3 %v2045_v26  ;;  %v1882_v39 = vpop.permute.xlu2 %1881  ;;  %v2048_v49 = vld [vmem:[#allocation2 + $0x38] sm:$0xff]  ;;  %v2110_v29 = vld [vmem:[#allocation2 + $0x228] sm:$0xff]  ;;  %v2051_v26 = vld [vmem:[#allocation2 + $0x50] sm:$0xff] }
 0x247   : > { %1950 = vst.msk [vmem:[#allocation2 + $0x80] sm:$0xff] %vm1303_vm3, %v1860_v42 }
 0x248   : > { %1961 = vst.msk [vmem:[#allocation2 + $0x188] sm:$0xff] %vm1303_vm3, %v1882_v39 }
 0x249   : > { %v2061_v38 = vld [vmem:[#allocation2 + $0xa0] sm:$0xff] }
 0x24b   : > { %3035 = vrot.lane.b32.xlu1 %v9914_v8, %s8773_s28  ;;  %3033 = vrot.lane.b32.xlu0 %v9894_v1, %s8773_s28  ;;  %v504_v8 = vmax.f32 %v419_v6, 0.0  ;;  %v2058_v1 = vld [vmem:[#allocation2 + $0x88] sm:$0xff] }
 0x24c   : > { %3037 = vrot.lane.b32.xlu2 %v9907_v45, %s8773_s28  ;;  %7922 = vmatmul.msk.f32.gmra.mxu0 %vm289_vm0, %v2058_v1  ;;  %4187 = vst.msk [vmem:[#allocation2 + $0x88] sm:$0xff] %vm289_vm0, %v10357_v34  ;;  %v422_v45 = vadd.f32 %v10235_v40, %v9436_v62  ;;  %v2116_v1 = vld [vmem:[#allocation2 + $0x258] sm:$0xff] }
 0x24d   : > { %v1868_v43 = vpop.permute.xlu1 %1867  ;;  %v1866_v54 = vpop.permute.xlu0 %1865  ;;  %578 = vmatmul.f32.gmra.mxu1 %v504_v8 }
 0x24e   : > { %1954 = vst.msk [vmem:[#allocation2 + $0xe0] sm:$0xff] %vm1303_vm3, %v1868_v43  ;;  %2353 = vmatmul.f32.gmra.mxu2 %v2107_v59  ;;  %2406 = vmatmul.f32.gmra.mxu3 %v2048_v49  ;;  %v1888_v23 = vpop.permute.xlu2 %1887  ;;  %v505_v39 = vmax.f32 %v422_v45, 0.0  ;;  %v2113_v43 = vld [vmem:[#allocation2 + $0x240] sm:$0xff] }
 0x24f   : > { %1953 = vst.msk [vmem:[#allocation2 + $0xc8] sm:$0xff] %vm1303_vm3, %v1866_v54  ;;  %v2054_v54 = vld [vmem:[#allocation2 + $0x68] sm:$0xff]  ;;  %v2057_v45 = vld [vmem:[#allocation2 + $0x80] sm:$0xff] }
 0x250   : > { %1964 = vst.msk [vmem:[#allocation2 + $0x1d0] sm:$0xff] %vm1303_vm3, %v1888_v23  ;;  %v7893_v59 = vld [vmem:[%s8878_s26 + $0xc4] sm:$0xff] }
 0x251   : > { %2017 = vst.msk [vmem:[#allocation2 + $0xd0] sm:$0xff] %vm289_vm0, %v7893_v59  ;;  %v10445_v59 = vld [vmem:[%s8878_s26 + $0xe5] sm:$0xff] }
 0x252   : > { %v2090_v25 = vld [vmem:[#allocation2 + $0x188] sm:$0xff] }
 0x253   : > { %3041 = vrot.lane.b32.xlu1 %v9938_v31, %s8773_s28  ;;  %3039 = vrot.lane.b32.xlu0 %v9918_v21, %s8773_s28  ;;  %v7892_v31 = vld [vmem:[%s8878_s26 + $0xb4] sm:$0xff]  ;;  %v10376_v21 = vld [vmem:[%s8878_s26 + $0xc5] sm:$0xff] }
 0x254   : > { %3043 = vrot.lane.b32.xlu2 %v9931_v17, %s8773_s28  ;;  %4188 = vst.msk [vmem:[#allocation2 + $0xa0] sm:$0xff] %vm289_vm0, %v10376_v21  ;;  %v10380_v17 = vpop.f32.mrf.mxu2  ;;  %7923 = vmatmul.msk.f32.gmra.mxu0 %vm289_vm0, %v2061_v38  ;;  %v2060_v38 = vld [vmem:[#allocation2 + $0x98] sm:$0xff] }
 0x255   : > { %v1874_v11 = vpop.permute.xlu1 %1873  ;;  %v1872_v42 = vpop.permute.xlu0 %1871  ;;  %581 = vmatmul.f32.gmra.mxu1 %v505_v39  ;;  %2016 = vst.msk [vmem:[#allocation2 + $0xb8] sm:$0xff] %vm289_vm0, %v7892_v31  ;;  %v2119_v31 = vld [vmem:[#allocation2 + $0x270] sm:$0xff] }
 0x256   : > { %1957 = vst.msk [vmem:[#allocation2 + $0x128] sm:$0xff] %vm1303_vm3, %v1874_v11  ;;  %2356 = vmatmul.f32.gmra.mxu2 %v2110_v29  ;;  %2409 = vmatmul.f32.gmra.mxu3 %v2051_v26  ;;  %v1894_v62 = vpop.permute.xlu2 %1893  ;;  %v431_v29 = vadd.f32 %v10235_v40, %v9487_v60  ;;  %v7966_v26 = vld [vmem:[%s8878_s26 + $0x21] sm:$0xff] }
 0x257   : > { %1956 = vst.msk [vmem:[#allocation2 + $0x110] sm:$0xff] %vm1303_vm3, %v1872_v42  ;;  %v10418_v42 = vld [vmem:[%s8878_s26 + $0xdd] sm:$0xff] }
 0x258   : > { %1967 = vst.msk [vmem:[#allocation2 + $0x218] sm:$0xff] %vm1303_vm3, %v1894_v62  ;;  %v2067_v11 = vld [vmem:[#allocation2 + $0xd0] sm:$0xff] }
 0x259   : > { %4190 = vst.msk [vmem:[#allocation2 + $0xd0] sm:$0xff] %vm289_vm0, %v10418_v42 }
 0x25a   : > { %2902 = vst.msk [vmem:[#allocation2 + $0x18] sm:$0xff] %vm289_vm0, %v7966_v26  ;;  %v7896_v26 = vld [vmem:[%s8878_s26 + $0xe4] sm:$0xff] }
 0x25b   : > { %3047 = vrot.lane.b32.xlu1 %v9962_v41, %s8773_s28  ;;  %3045 = vrot.lane.b32.xlu0 %v9942_v4, %s8773_s28  ;;  %v506_v41 = vmax.f32 %v425_v50, 0.0  ;;  %v10397_v4 = vld [vmem:[%s8878_s26 + $0xcd] sm:$0xff]  ;;  %v508_v50 = vmax.f32 %v431_v29, 0.0  ;;  %2020 = vst.msk [vmem:[#allocation2 + $0x118] sm:$0xff] %vm289_vm0, %v7896_v26  ;;  %v10539_v26 = vld [vmem:[%s8878_s26 + $0x99] sm:$0xff] }
 0x25c   : > { %3049 = vrot.lane.b32.xlu2 %v9955_v30, %s8773_s28  ;;  %v2064_v49 = vld [vmem:[#allocation2 + $0xb8] sm:$0xff]  ;;  %v428_v30 = vadd.f32 %v10235_v40, %v9466_v14  ;;  %v10409_v52 = vpop.f32.mrf.mxu2  ;;  %v8033_v29 = vld [vmem:[%s8878_s26 + $0x4d] sm:$0xff]  ;;  %2912 = vst.msk [vmem:[#allocation2 + $0x108] sm:$0xff] %vm289_vm0, %v10539_v26 }
 0x25d   : > { %v1880_v20 = vpop.permute.xlu1 %1879  ;;  %v1878_v6 = vpop.permute.xlu0 %1877  ;;  %584 = vmatmul.f32.gmra.mxu1 %v506_v41  ;;  %7924 = vmatmul.msk.f32.gmra.mxu0 %vm289_vm0, %v2064_v49  ;;  %4189 = vst.msk [vmem:[#allocation2 + $0xb8] sm:$0xff] %vm289_vm0, %v10397_v4  ;;  %v7895_v41 = vld [vmem:[%s8878_s26 + $0xdc] sm:$0xff]  ;;  %v434_v49 = vadd.f32 %v10235_v40, %v9515_v53 }
 0x25e   : > { %1960 = vst.msk [vmem:[#allocation2 + $0x170] sm:$0xff] %vm1303_vm3, %v1880_v20  ;;  %2359 = vmatmul.f32.gmra.mxu2 %v2113_v43  ;;  %2412 = vmatmul.f32.gmra.mxu3 %v2054_v54  ;;  %v1900_v7 = vpop.permute.xlu2 %1899  ;;  %v8031_v20 = vld [vmem:[%s8878_s26 + $0x35] sm:$0xff] }
 0x25f   : > { %1959 = vst.msk [vmem:[#allocation2 + $0x158] sm:$0xff] %vm1303_vm3, %v1878_v6  ;;  %v8030_v6 = vld [vmem:[%s8878_s26 + $0x25] sm:$0xff]  ;;  %v7967_v43 = vld [vmem:[%s8878_s26 + $0x31] sm:$0xff]  ;;  %v7968_v53 = vld [vmem:[%s8878_s26 + $0x39] sm:$0xff] }
 0x260   : > { %1970 = vst.msk [vmem:[#allocation2 + $0x260] sm:$0xff] %vm1303_vm3, %v1900_v7  ;;  %v8032_v7 = vld [vmem:[%s8878_s26 + $0x3d] sm:$0xff] }
 0x261   : > { %2903 = vst.msk [vmem:[#allocation2 + $0x30] sm:$0xff] %vm289_vm0, %v7967_v43 }
 0x262   : > { %2019 = vst.msk [vmem:[#allocation2 + $0x100] sm:$0xff] %vm289_vm0, %v7895_v41  ;;  %v8036_v41 = vld [vmem:[%s8878_s26 + $0x6d] sm:$0xff] }
 0x263   : > { %3053 = vrot.lane.b32.xlu1 %v9986_v13, %s8773_s28  ;;  %3051 = vrot.lane.b32.xlu0 %v9966_v0, %s8773_s28  ;;  %v507_v0 = vmax.f32 %v428_v30, 0.0  ;;  %v7894_v13 = vld [vmem:[%s8878_s26 + $0xcc] sm:$0xff]  ;;  %2904 = vst.msk [vmem:[#allocation2 + $0x48] sm:$0xff] %vm289_vm0, %v7968_v53 }
 0x264   : > { %3055 = vrot.lane.b32.xlu2 %v9979_v57, %s8773_s28  ;;  %v8029_v57 = vld [vmem:[%s8878_s26 + $0x1d] sm:$0xff]  ;;  %2018 = vst.msk [vmem:[#allocation2 + $0xe8] sm:$0xff] %vm289_vm0, %v7894_v13  ;;  %v10434_v60 = vpop.f32.mrf.mxu2  ;;  %v10458_v30 = vld [vmem:[%s8878_s26 + $0x49] sm:$0xff]  ;;  %v509_v13 = vmax.f32 %v434_v49, 0.0  ;;  %v10525_v53 = vld [vmem:[%s8878_s26 + $0x91] sm:$0xff] }
 0x265   : > { %v1886_v23 = vpop.permute.xlu1 %1885  ;;  %v1884_v8 = vpop.permute.xlu0 %1883  ;;  %587 = vmatmul.f32.gmra.mxu1 %v507_v0  ;;  %7925 = vmatmul.msk.f32.gmra.mxu0 %vm289_vm0, %v2067_v11  ;;  %2905 = vst.msk [vmem:[#allocation2 + $0x60] sm:$0xff] %vm289_vm0, %v10458_v30  ;;  %v10468_v0 = vld [vmem:[%s8878_s26 + $0x51] sm:$0xff] }
 0x266   : > { %1963 = vst.msk [vmem:[#allocation2 + $0x1b8] sm:$0xff] %vm1303_vm3, %v1886_v23  ;;  %2362 = vmatmul.f32.gmra.mxu2 %v2116_v1  ;;  %2415 = vmatmul.f32.gmra.mxu3 %v2057_v45  ;;  %v1906_v14 = vpop.permute.xlu2 %1905  ;;  %v2122_v1 = vld [vmem:[#allocation2 + $0x288] sm:$0xff]  ;;  %v2063_v45 = vld [vmem:[#allocation2 + $0xb0] sm:$0xff] }
 0x267   : > { %1962 = vst.msk [vmem:[#allocation2 + $0x1a0] sm:$0xff] %vm1303_vm3, %v1884_v8 }
 0x268   : > { %1973 = vst.msk [vmem:[#allocation2 + $0x2a8] sm:$0xff] %vm1303_vm3, %v1906_v14 }
 0x269   : > { %2906 = vst.msk [vmem:[#allocation2 + $0x78] sm:$0xff] %vm289_vm0, %v10468_v0 }
 0x26a   : > { %2911 = vst.msk [vmem:[#allocation2 + $0xf0] sm:$0xff] %vm289_vm0, %v10525_v53 }
 0x26b   : > { %3059 = vrot.lane.b32.xlu1 %v10012_v37, %s8773_s28  ;;  %3057 = vrot.lane.b32.xlu0 %v9990_v10, %s8773_s28  ;;  %v7965_v10 = vld [vmem:[%s8878_s26 + $0x19] sm:$0xff]  ;;  %v2070_v54 = vld [vmem:[#allocation2 + $0xe8] sm:$0xff] }
 0x26c   : > { %3189 = vrot.lane.b32.xlu2 %v8029_v57, %s8774_s29  ;;  %2901 = vst.msk [vmem:[#allocation2] sm:$0xff] %vm289_vm0, %v7965_v10  ;;  %v10470_v11 = vpop.f32.mrf.mxu2  ;;  %v8034_v57 = vld [vmem:[%s8878_s26 + $0x55] sm:$0xff] }
 0x26d   : > { %v1892_v62 = vpop.permute.xlu1 %1891  ;;  %v1890_v39 = vpop.permute.xlu0 %1889  ;;  %590 = vmatmul.f32.gmra.mxu1 %v508_v50  ;;  %7926 = vmatmul.msk.f32.gmra.mxu0 %vm289_vm0, %v2070_v54  ;;  %4191 = vst.msk [vmem:[#allocation2 + $0xe8] sm:$0xff] %vm289_vm0, %v10445_v59  ;;  %v10489_v10 = vld [vmem:[%s8878_s26 + $0xf5] sm:$0xff] }
 0x26e   : > { %1966 = vst.msk [vmem:[#allocation2 + $0x200] sm:$0xff] %vm1303_vm3, %v1892_v62  ;;  %2365 = vmatmul.f32.gmra.mxu2 %v2119_v31  ;;  %2418 = vmatmul.f32.gmra.mxu3 %v2060_v38  ;;  %v1912_v37 = vpop.permute.xlu2 %1911  ;;  %v8035_v62 = vld [vmem:[%s8878_s26 + $0x65] sm:$0xff]  ;;  %v10503_v54 = vld [vmem:[%s8878_s26 + $0x79] sm:$0xff] }
 0x26f   : > { %1965 = vst.msk [vmem:[#allocation2 + $0x1e8] sm:$0xff] %vm1303_vm3, %v1890_v39  ;;  %v437_v39 = vadd.f32 %v10235_v40, %v9543_v19  ;;  %v10485_v31 = vld [vmem:[%s8878_s26 + $0x69] sm:$0xff]  ;;  %v2073_v38 = vld [vmem:[#allocation2 + $0x100] sm:$0xff] }
 0x270   : > { %1976 = vst.msk [vmem:[#allocation2 + $0x2f0] sm:$0xff] %vm1303_vm3, %v1912_v37  ;;  %v2125_v19 = vld [vmem:[#allocation2 + $0x2a0] sm:$0xff] }
 0x271   : > { %2908 = vst.msk [vmem:[#allocation2 + $0xa8] sm:$0xff] %vm289_vm0, %v10485_v31 }
 0x272   : > { %4192 = vst.msk [vmem:[#allocation2 + $0x100] sm:$0xff] %vm289_vm0, %v10489_v10 }
 0x273   : > { %3193 = vrot.lane.b32.xlu1 %v8031_v20, %s8774_s29  ;;  %3191 = vrot.lane.b32.xlu0 %v8030_v6, %s8774_s29  ;;  %v2066_v20 = vld [vmem:[#allocation2 + $0xc8] sm:$0xff]  ;;  %2909 = vst.msk [vmem:[#allocation2 + $0xc0] sm:$0xff] %vm289_vm0, %v10503_v54 }
 0x274   : > { %3195 = vrot.lane.b32.xlu2 %v8032_v7, %s8774_s29  ;;  %v10499_v6 = vld [vmem:[%s8878_s26 + $0x61] sm:$0xff]  ;;  %v510_v7 = vmax.f32 %v437_v39, 0.0  ;;  %v10509_v49 = vpop.f32.mrf.mxu2  ;;  %v7964_v39 = vld [vmem:[%s13867_s4 + $0xf8] sm:$0xff] }
 0x275   : > { %v1898_v23 = vpop.permute.xlu1 %1897  ;;  %v1896_v8 = vpop.permute.xlu0 %1895  ;;  %593 = vmatmul.f32.gmra.mxu1 %v509_v13  ;;  %7927 = vmatmul.msk.f32.gmra.mxu0 %vm289_vm0, %v2073_v38  ;;  %2907 = vst.msk [vmem:[#allocation2 + $0x90] sm:$0xff] %vm289_vm0, %v10499_v6  ;;  %v7963_v38 = vld [vmem:[%s13867_s4 + $0xf0] sm:$0xff] }
 0x276   : > { %1969 = vst.msk [vmem:[#allocation2 + $0x248] sm:$0xff] %vm1303_vm3, %v1898_v23  ;;  %2368 = vmatmul.f32.gmra.mxu2 %v2122_v1  ;;  %2421 = vmatmul.f32.gmra.mxu3 %v2063_v45  ;;  %v3002_v14 = vpop.permute.xlu2 %3001  ;;  %v2076_v23 = vld [vmem:[#allocation2 + $0x118] sm:$0xff]  ;;  %v440_v45 = vadd.f32 %v10235_v40, %v9566_v55  ;;  %v2069_v55 = vld [vmem:[#allocation2 + $0xe0] sm:$0xff] }
 0x277   : > { %1968 = vst.msk [vmem:[#allocation2 + $0x230] sm:$0xff] %vm1303_vm3, %v1896_v8  ;;  %v10512_v8 = vld [vmem:[%s8878_s26 + $0xfd] sm:$0xff]  ;;  %v7897_v1 = vld [vmem:[%s8878_s26 + $0xf4] sm:$0xff]  ;;  %2691 = vmatpush.msrb.mxu1 %v7964_v39  ;;  %v2134_v39 = vld [vmem:[#allocation2 + $0x2e8] sm:$0xff] }
 0x278   : > { %3095 = vst.msk [vmem:[#allocation2 + $0x30] sm:$0xff] %vm917_vm1, %v3002_v14 }
 0x279   : > { %4193 = vst.msk [vmem:[#allocation2 + $0x118] sm:$0xff] %vm289_vm0, %v10512_v8  ;;  %2692 = vmatpush.msrb.mxu1 %v7963_v38  ;;  %v2075_v38 = vld [vmem:[#allocation2 + $0x110] sm:$0xff] }
 0x27a   : > { %2021 = vst.msk [vmem:[#allocation2 + $0x130] sm:$0xff] %vm289_vm0, %v7897_v1  ;;  %v10579_v1 = vld [vmem:[%s8878_s26 + $0xa9] sm:$0xff] }
 0x27b   : > { %3199 = vrot.lane.b32.xlu1 %v8034_v57, %s8774_s29  ;;  %3197 = vrot.lane.b32.xlu0 %v8033_v29, %s8774_s29  ;;  %v2128_v57 = vld [vmem:[#allocation2 + $0x2b8] sm:$0xff]  ;;  %2913 = vst.msk [vmem:[#allocation2 + $0x120] sm:$0xff] %vm289_vm0, %v10579_v1 }
 0x27c   : > { %3201 = vrot.lane.b32.xlu2 %v8035_v62, %s8774_s29  ;;  %v511_v62 = vmax.f32 %v440_v45, 0.0 }
 0x27d   : > { %v1904_v37 = vpop.permute.xlu1 %1903  ;;  %v1902_v50 = vpop.permute.xlu0 %1901  ;;  %596 = vmatmul.f32.gmra.mxu1 %v510_v7  ;;  %7928 = vmatmul.msk.f32.gmra.mxu0 %vm289_vm0, %v2076_v23 }
 0x27e   : > { %1972 = vst.msk [vmem:[#allocation2 + $0x290] sm:$0xff] %vm1303_vm3, %v1904_v37  ;;  %2371 = vmatmul.f32.gmra.mxu2 %v2125_v19  ;;  %2424 = vmatmul.f32.gmra.mxu3 %v2066_v20  ;;  %v3008_v43 = vpop.permute.xlu2 %3007  ;;  %v443_v37 = vadd.f32 %v10235_v40, %v9583_v2  ;;  %v10563_v19 = vld [vmem:[%s8878_s26 + $0x10d] sm:$0xff] }
 0x27f   : > { %1971 = vst.msk [vmem:[#allocation2 + $0x278] sm:$0xff] %vm1303_vm3, %v1902_v50  ;;  %v10560_v50 = vpop.f32.mrf.mxu2  ;;  %v7962_v2 = vld [vmem:[%s13867_s4 + $0xe8] sm:$0xff] }
 0x280   : > { %3098 = vst.msk [vmem:[#allocation2 + $0x78] sm:$0xff] %vm917_vm1, %v3008_v43  ;;  %2693 = vmatpush.msrb.mxu1 %v7962_v2  ;;  %v512_v45 = vmax.f32 %v443_v37, 0.0  ;;  %v7958_v37 = vld [vmem:[%s13867_s4 + $0xc8] sm:$0xff] }
 0x281   : > { %v2079_v20 = vld [vmem:[#allocation2 + $0x130] sm:$0xff] }
 0x282   : > { %4194 = vst.msk [vmem:[#allocation2 + $0x130] sm:$0xff] %vm289_vm0, %v10563_v19  ;;  %v7899_v2 = vld [vmem:[%s8878_s26 + $0x10c] sm:$0xff] }
 0x283   : > { %3205 = vrot.lane.b32.xlu1 %v10254_v15, %s8774_s29  ;;  %3203 = vrot.lane.b32.xlu0 %v8036_v41, %s8774_s29  ;;  %v10535_v15 = vld [vmem:[%s8878_s26 + $0x81] sm:$0xff]  ;;  %v2072_v41 = vld [vmem:[#allocation2 + $0xf8] sm:$0xff]  ;;  %2023 = vst.msk [vmem:[#allocation2 + $0x160] sm:$0xff] %vm289_vm0, %v7899_v2 }
 0x284   : > { %3207 = vrot.lane.b32.xlu2 %v10273_v47, %s8774_s29  ;;  %v7898_v47 = vld [vmem:[%s8878_s26 + $0xfc] sm:$0xff]  ;;  %2910 = vst.msk [vmem:[#allocation2 + $0xd8] sm:$0xff] %vm289_vm0, %v10535_v15 }
 0x285   : > { %v1910_v14 = vpop.permute.xlu1 %1909  ;;  %v1908_v13 = vpop.permute.xlu0 %1907  ;;  %599 = vmatmul.f32.gmra.mxu1 %v511_v62  ;;  %2022 = vst.msk [vmem:[#allocation2 + $0x148] sm:$0xff] %vm289_vm0, %v7898_v47  ;;  %7929 = vmatmul.msk.f32.gmra.mxu0 %vm289_vm0, %v2079_v20  ;;  %v7959_v62 = vld [vmem:[%s13867_s4 + $0xd0] sm:$0xff]  ;;  %v10612_v47 = vld [vmem:[%s8878_s26 + $0xd9] sm:$0xff] }
 0x286   : > { %1975 = vst.msk [vmem:[#allocation2 + $0x2d8] sm:$0xff] %vm1303_vm3, %v1910_v14  ;;  %2374 = vmatmul.f32.gmra.mxu2 %v2128_v57  ;;  %2427 = vmatmul.f32.gmra.mxu3 %v2069_v55  ;;  %v3014_v29 = vpop.permute.xlu2 %3013  ;;  %v10588_v14 = vld [vmem:[%s8878_s26 + $0xc1] sm:$0xff]  ;;  %v10596_v55 = vld [vmem:[%s8878_s26 + $0x115] sm:$0xff]  ;;  %v10626_v20 = vld [vmem:[%s8878_s26 + $0xc9] sm:$0xff] }
 0x287   : > { %1974 = vst.msk [vmem:[#allocation2 + $0x2c0] sm:$0xff] %vm1303_vm3, %v1908_v13  ;;  %v7960_v13 = vld [vmem:[%s13867_s4 + $0xd8] sm:$0xff] }
 0x288   : > { %3101 = vst.msk [vmem:[#allocation2 + $0xc0] sm:$0xff] %vm917_vm1, %v3014_v29  ;;  %v446_v29 = vadd.f32 %v10235_v40, %v9594_v51  ;;  %v7952_v2 = vld [vmem:[%s13867_s4 + $0x98] sm:$0xff] }
 0x289   : > { %2915 = vst.msk [vmem:[#allocation2 + $0x150] sm:$0xff] %vm289_vm0, %v10588_v14 }
 0x28a   : > { %2917 = vst.msk [vmem:[#allocation2 + $0x180] sm:$0xff] %vm289_vm0, %v10612_v47 }
 0x28b   : > { %3211 = vrot.lane.b32.xlu1 %v10315_v3, %s8774_s29  ;;  %3209 = vrot.lane.b32.xlu0 %v10294_v24, %s8774_s29  ;;  %v2131_v3 = vld [vmem:[#allocation2 + $0x2d0] sm:$0xff]  ;;  %2916 = vst.msk [vmem:[#allocation2 + $0x168] sm:$0xff] %vm289_vm0, %v10626_v20 }
 0x28c   : > { %3213 = vrot.lane.b32.xlu2 %v10336_v48, %s8774_s29  ;;  %v10575_v24 = vld [vmem:[%s8878_s26 + $0xb1] sm:$0xff]  ;;  %v7961_v48 = vld [vmem:[%s13867_s4 + $0xe0] sm:$0xff]  ;;  %v2082_v57 = vld [vmem:[#allocation2 + $0x148] sm:$0xff]  ;;  %2931 = vst.msk [vmem:[#allocation2 + $0x2d0] sm:$0xff] %vm289_vm0, %v10812_v28 }
 0x28d   : > { %v3000_v43 = vpop.permute.xlu1 %2999  ;;  %v2998_v7 = vpop.permute.xlu0 %2997  ;;  %2914 = vst.msk [vmem:[#allocation2 + $0x138] sm:$0xff] %vm289_vm0, %v10575_v24  ;;  %2694 = vmatpush.msrb.mxu1 %v7961_v48  ;;  %7930 = vmatmul.msk.f32.gmra.mxu0 %vm289_vm0, %v2082_v57  ;;  %v10651_v48 = vld [vmem:[%s8878_s26 + $0xf9] sm:$0xff]  ;;  %v7955_v57 = vld [vmem:[%s13867_s4 + $0xb0] sm:$0xff] }
 0x28e   : > { %3094 = vst.msk [vmem:[#allocation2 + $0x18] sm:$0xff] %vm917_vm1, %v3000_v43  ;;  %2377 = vmatmul.f32.gmra.mxu2 %v2131_v3  ;;  %2430 = vmatmul.f32.gmra.mxu3 %v2072_v41  ;;  %v3020_v23 = vpop.permute.xlu2 %3019  ;;  %v513_v43 = vmax.f32 %v446_v29, 0.0  ;;  %v7957_v3 = vld [vmem:[%s13867_s4 + $0xc0] sm:$0xff]  ;;  %v7900_v41 = vld [vmem:[%s8878_s26 + $0x114] sm:$0xff]  ;;  %v10673_v29 = vld [vmem:[%s8878_s26 + $0x109] sm:$0xff] }
 0x28f   : > { %3093 = vst.msk [vmem:[#allocation2] sm:$0xff] %vm917_vm1, %v2998_v7  ;;  %602 = vmatmul.f32.gmra.mxu1 %v512_v45  ;;  %v10632_v7 = vld [vmem:[%s8878_s26 + $0xe1] sm:$0xff]  ;;  %v449_v45 = vadd.f32 %v10235_v40, %v9608_v32  ;;  %v10665_v32 = vld [vmem:[%s8878_s26 + $0xf1] sm:$0xff] }
 0x290   : > { %3104 = vst.msk [vmem:[#allocation2 + $0x108] sm:$0xff] %vm917_vm1, %v3020_v23  ;;  %2695 = vmatpush.msrb.mxu1 %v7960_v13  ;;  %v7956_v23 = vld [vmem:[%s13867_s4 + $0xb8] sm:$0xff]  ;;  %v2078_v13 = vld [vmem:[#allocation2 + $0x128] sm:$0xff] }
 0x291   : > { %4195 = vst.msk [vmem:[#allocation2 + $0x148] sm:$0xff] %vm289_vm0, %v10596_v55 }
 0x292   : > { %2696 = vmatpush.msrb.mxu1 %v7959_v62  ;;  %2918 = vst.msk [vmem:[#allocation2 + $0x198] sm:$0xff] %vm289_vm0, %v10632_v7  ;;  %v8051_v62 = vld [vmem:[%s8878_s26 + $0x125] sm:$0xff] }
 0x293   : > { %3217 = vrot.lane.b32.xlu1 %v10376_v21, %s8774_s29  ;;  %3215 = vrot.lane.b32.xlu0 %v10357_v34, %s8774_s29  ;;  %v10619_v34 = vpop.f32.mrf.mxu2  ;;  %2024 = vst.msk [vmem:[#allocation2 + $0x178] sm:$0xff] %vm289_vm0, %v7900_v41 }
 0x294   : > { %3219 = vrot.lane.b32.xlu2 %v10397_v4, %s8774_s29  ;;  %2697 = vmatpush.msrb.mxu1 %v7958_v37  ;;  %2920 = vst.msk [vmem:[#allocation2 + $0x1c8] sm:$0xff] %vm289_vm0, %v10651_v48  ;;  %v8052_v37 = vld [vmem:[%s8878_s26 + $0x12d] sm:$0xff] }
 0x295   : > { %v3006_v51 = vpop.permute.xlu1 %3005  ;;  %v3004_v21 = vpop.permute.xlu0 %3003  ;;  %2919 = vst.msk [vmem:[#allocation2 + $0x1b0] sm:$0xff] %vm289_vm0, %v10665_v32 }
 0x296   : > { %3097 = vst.msk [vmem:[#allocation2 + $0x60] sm:$0xff] %vm917_vm1, %v3006_v51  ;;  %2380 = vmatmul.f32.gmra.mxu2 %v2134_v39  ;;  %2433 = vmatmul.f32.gmra.mxu3 %v2075_v38  ;;  %v3026_v4 = vpop.permute.xlu2 %3025  ;;  %v2085_v51 = vld [vmem:[#allocation2 + $0x160] sm:$0xff]  ;;  %v514_v39 = vmax.f32 %v449_v45, 0.0  ;;  %v7950_v45 = vld [vmem:[%s13867_s4 + $0x88] sm:$0xff] }
 0x297   : > { %3096 = vst.msk [vmem:[#allocation2 + $0x48] sm:$0xff] %vm917_vm1, %v3004_v21  ;;  %605 = vmatmul.f32.gmra.mxu1 %v513_v43  ;;  %v7953_v21 = vld [vmem:[%s13867_s4 + $0xa0] sm:$0xff]  ;;  %7931 = vmatmul.msk.f32.gmra.mxu0 %vm289_vm0, %v2085_v51 }
 0x298   : > { %3107 = vst.msk [vmem:[#allocation2 + $0x150] sm:$0xff] %vm917_vm1, %v3026_v4  ;;  %2698 = vmatpush.msrb.mxu1 %v7957_v3  ;;  %v7901_v38 = vld [vmem:[%s8878_s26 + $0x124] sm:$0xff] }
 0x299   : > { %4196 = vst.msk [vmem:[#allocation2 + $0x160] sm:$0xff] %vm289_vm0, %v8051_v62 }
 0x29a   : > { %2699 = vmatpush.msrb.mxu1 %v7956_v23  ;;  %v2088_v4 = vld [vmem:[#allocation2 + $0x178] sm:$0xff]  ;;  %2921 = vst.msk [vmem:[#allocation2 + $0x1e0] sm:$0xff] %vm289_vm0, %v10673_v29  ;;  %v10705_v23 = vld [vmem:[%s8878_s26 + $0x121] sm:$0xff] }
 0x29b   : > { %3223 = vrot.lane.b32.xlu1 %v10445_v59, %s8774_s29  ;;  %3221 = vrot.lane.b32.xlu0 %v10418_v42, %s8774_s29  ;;  %4197 = vst.msk [vmem:[#allocation2 + $0x178] sm:$0xff] %vm289_vm0, %v8052_v37 }
 0x29c   : > { %3225 = vrot.lane.b32.xlu2 %v10489_v10, %s8774_s29  ;;  %v7954_v10 = vld [vmem:[%s13867_s4 + $0xa8] sm:$0xff]  ;;  %2700 = vmatpush.msrb.mxu1 %v7955_v57  ;;  %2025 = vst.msk [vmem:[#allocation2 + $0x190] sm:$0xff] %vm289_vm0, %v7901_v38 }
 0x29d   : > { %v3012_v59 = vpop.permute.xlu1 %3011  ;;  %v3010_v42 = vpop.permute.xlu0 %3009  ;;  %2923 = vst.msk [vmem:[#allocation2 + $0x210] sm:$0xff] %vm289_vm0, %v10705_v23  ;;  %v7902_v57 = vld [vmem:[%s8878_s26 + $0x12c] sm:$0xff] }
 0x29e   : > { %3100 = vst.msk [vmem:[#allocation2 + $0xa8] sm:$0xff] %vm917_vm1, %v3012_v59  ;;  %2436 = vmatmul.f32.gmra.mxu3 %v2078_v13  ;;  %v3032_v40 = vpop.permute.xlu2 %3031  ;;  %2701 = vmatpush.msrb.mxu1 %v7954_v10  ;;  %v10712_v59 = vld [vmem:[%s8878_s26 + $0x111] sm:$0xff]  ;;  %v7949_v13 = vld [vmem:[%s13867_s4 + $0x80] sm:$0xff] }
 0x29f   : > { %3099 = vst.msk [vmem:[#allocation2 + $0x90] sm:$0xff] %vm917_vm1, %v3010_v42  ;;  %608 = vmatmul.f32.gmra.mxu1 %v514_v39  ;;  %v10702_v41 = vpop.f32.mrf.mxu0  ;;  %v10716_v42 = vld [vmem:[%s8878_s26 + $0x129] sm:$0xff]  ;;  %7932 = vmatmul.msk.f32.gmra.mxu0 %vm289_vm0, %v2088_v4  ;;  %v2084_v39 = vld [vmem:[#allocation2 + $0x158] sm:$0xff] }
 0x2a0   : > { %3110 = vst.msk [vmem:[#allocation2 + $0x198] sm:$0xff] %vm917_vm1, %v3032_v40  ;;  %2702 = vmatpush.msrb.mxu1 %v7953_v21  ;;  %v8053_v40 = vld [vmem:[%s8878_s26 + $0x13d] sm:$0xff] }
 0x2a1   : > { %2922 = vst.msk [vmem:[#allocation2 + $0x1f8] sm:$0xff] %vm289_vm0, %v10712_v59  ;;  %v10743_v4 = vld [vmem:[%s8878_s26 + $0x139] sm:$0xff] }
 0x2a2   : > { %2703 = vmatpush.msrb.mxu1 %v7952_v2  ;;  %2924 = vst.msk [vmem:[#allocation2 + $0x228] sm:$0xff] %vm289_vm0, %v10716_v42  ;;  %v8055_v2 = vld [vmem:[%s8878_s26 + $0x155] sm:$0xff] }
 0x2a3   : > { %3229 = vrot.lane.b32.xlu1 %v10563_v19, %s8774_s29  ;;  %3227 = vrot.lane.b32.xlu0 %v10512_v8, %s8774_s29  ;;  %v2081_v19 = vld [vmem:[#allocation2 + $0x140] sm:$0xff]  ;;  %v7951_v8 = vld [vmem:[%s13867_s4 + $0x90] sm:$0xff]  ;;  %2026 = vst.msk [vmem:[#allocation2 + $0x1a8] sm:$0xff] %vm289_vm0, %v7902_v57 }
 0x2a4   : > { %3231 = vrot.lane.b32.xlu2 %v10596_v55, %s8774_s29  ;;  %2704 = vmatpush.msrb.mxu1 %v7951_v8  ;;  %v2091_v10 = vld [vmem:[#allocation2 + $0x190] sm:$0xff]  ;;  %2925 = vst.msk [vmem:[#allocation2 + $0x240] sm:$0xff] %vm289_vm0, %v10743_v4 }
 0x2a5   : > { %v3018_v43 = vpop.permute.xlu1 %3017  ;;  %v3016_v3 = vpop.permute.xlu0 %3015  ;;  %4198 = vst.msk [vmem:[#allocation2 + $0x190] sm:$0xff] %vm289_vm0, %v8053_v40  ;;  %v2087_v57 = vld [vmem:[#allocation2 + $0x170] sm:$0xff] }
 0x2a6   : > { %3103 = vst.msk [vmem:[#allocation2 + $0xf0] sm:$0xff] %vm917_vm1, %v3018_v43  ;;  %2439 = vmatmul.f32.gmra.mxu3 %v2081_v19  ;;  %v3038_v55 = vpop.permute.xlu2 %3037  ;;  %2705 = vmatpush.msrb.mxu1 %v7950_v45  ;;  %v8054_v43 = vld [vmem:[%s8878_s26 + $0x145] sm:$0xff]  ;;  %v8056_v19 = vld [vmem:[%s8878_s26 + $0x15d] sm:$0xff] }
 0x2a7   : > { %3102 = vst.msk [vmem:[#allocation2 + $0xd8] sm:$0xff] %vm917_vm1, %v3016_v3  ;;  %v10749_v3 = vld [vmem:[%s8878_s26 + $0x151] sm:$0xff]  ;;  %7933 = vmatmul.msk.f32.gmra.mxu0 %vm289_vm0, %v2091_v10 }
 0x2a8   : > { %3113 = vst.msk [vmem:[#allocation2 + $0x1e0] sm:$0xff] %vm917_vm1, %v3038_v55  ;;  %2706 = vmatpush.msrb.mxu1 %v7949_v13  ;;  %v10763_v55 = vld [vmem:[%s8878_s26 + $0x169] sm:$0xff] }
 0x2a9   : > { %2927 = vst.msk [vmem:[#allocation2 + $0x270] sm:$0xff] %vm289_vm0, %v10749_v3 }
 0x2aa   : > { %v2094_v8 = vld [vmem:[#allocation2 + $0x1a8] sm:$0xff]  ;;  %2929 = vst.msk [vmem:[#allocation2 + $0x2a0] sm:$0xff] %vm289_vm0, %v10763_v55 }
 0x2ab   : > { %3235 = vrot.lane.b32.xlu1 %v8052_v37, %s8774_s29  ;;  %3233 = vrot.lane.b32.xlu0 %v8051_v62, %s8774_s29  ;;  %v10737_v62 = vld [vmem:[%s8878_s26 + $0x141] sm:$0xff]  ;;  %v10740_v37 = vpop.f32.mrf.mxu0  ;;  %4199 = vst.msk [vmem:[#allocation2 + $0x1a8] sm:$0xff] %vm289_vm0, %v8054_v43 }
 0x2ac   : > { %3237 = vrot.lane.b32.xlu2 %v8053_v40, %s8774_s29  ;;  %2926 = vst.msk [vmem:[#allocation2 + $0x258] sm:$0xff] %vm289_vm0, %v10737_v62  ;;  %v10770_v40 = vld [vmem:[%s8878_s26 + $0x159] sm:$0xff] }
 0x2ad   : > { %v3024_v51 = vpop.permute.xlu1 %3023  ;;  %v3022_v21 = vpop.permute.xlu0 %3021  ;;  %2928 = vst.msk [vmem:[#allocation2 + $0x288] sm:$0xff] %vm289_vm0, %v10770_v40 }
 0x2ae   : > { %3106 = vst.msk [vmem:[#allocation2 + $0x138] sm:$0xff] %vm917_vm1, %v3024_v51  ;;  %2442 = vmatmul.f32.gmra.mxu3 %v2084_v39  ;;  %v3044_v38 = vpop.permute.xlu2 %3043  ;;  %v10777_v39 = vld [vmem:[%s8878_s26 + $0x175] sm:$0xff] }
 0x2af   : > { %3105 = vst.msk [vmem:[#allocation2 + $0x120] sm:$0xff] %vm917_vm1, %v3022_v21  ;;  %v7903_v21 = vld [vmem:[%s8878_s26 + $0x13c] sm:$0xff]  ;;  %7934 = vmatmul.msk.f32.gmra.mxu0 %vm289_vm0, %v2094_v8  ;;  %v10803_v8 = vld [vmem:[%s8878_s26 + $0x189] sm:$0xff] }
 0x2b0   : > { %3116 = vst.msk [vmem:[#allocation2 + $0x228] sm:$0xff] %vm917_vm1, %v3044_v38  ;;  %v8057_v38 = vld [vmem:[%s8878_s26 + $0x16d] sm:$0xff] }
 0x2b1   : > { %2027 = vst.msk [vmem:[#allocation2 + $0x1c0] sm:$0xff] %vm289_vm0, %v7903_v21 }
 0x2b2   : > { %2932 = vst.msk [vmem:[#allocation2 + $0x2e8] sm:$0xff] %vm289_vm0, %v10803_v8 }
 0x2b3   : > { %3241 = vrot.lane.b32.xlu1 %v8055_v2, %s8774_s29  ;;  %3239 = vrot.lane.b32.xlu0 %v8054_v43, %s8774_s29  ;;  %v10773_v51 = vpop.f32.mrf.mxu0  ;;  %v10782_v43 = vld [vmem:[%s8878_s26 + $0x171] sm:$0xff] }
 0x2b4   : > { %3243 = vrot.lane.b32.xlu2 %v8056_v19, %s8774_s29  ;;  %2930 = vst.msk [vmem:[#allocation2 + $0x2b8] sm:$0xff] %vm289_vm0, %v10782_v43 }
 0x2b5   : > { %v3030_v45 = vpop.permute.xlu1 %3029  ;;  %v3028_v13 = vpop.permute.xlu0 %3027 }
 0x2b6   : > { %3109 = vst.msk [vmem:[#allocation2 + $0x180] sm:$0xff] %vm917_vm1, %v3030_v45  ;;  %2445 = vmatmul.f32.gmra.mxu3 %v2087_v57  ;;  %v3050_v10 = vpop.permute.xlu2 %3049  ;;  %v7904_v45 = vld [vmem:[%s8878_s26 + $0x144] sm:$0xff]  ;;  %v10800_v57 = vld [vmem:[%s13868_s5 + $0x1] ss:$0 sm:$0xff] }
 0x2b7   : > { %3108 = vst.msk [vmem:[#allocation2 + $0x168] sm:$0xff] %vm917_vm1, %v3028_v13  ;;  %v10789_v13 = vld [vmem:[%s8878_s26 + $0x185] sm:$0xff]  ;;  %v2292_v16 = vadd.f32 %v10800_v57, %v10380_v17 }
 0x2b8   : > { %3119 = vst.msk [vmem:[#allocation2 + $0x270] sm:$0xff] %vm917_vm1, %v3050_v10  ;;  %v2097_v22 = vld [vmem:[#allocation2 + $0x1c0] sm:$0xff] }
 0x2b9   : > { %2028 = vst.msk [vmem:[#allocation2 + $0x1d8] sm:$0xff] %vm289_vm0, %v7904_v45  ;;  %v2289_v45 = vadd.f32 %v10800_v57, %v10353_v61  ;;  %7935 = vmatmul.msk.f32.gmra.mxu0 %vm289_vm0, %v2097_v22 }
 0x2ba   : > { %4200 = vst.msk [vmem:[#allocation2 + $0x1c0] sm:$0xff] %vm289_vm0, %v8055_v2 }
 0x2bb   : > { %3247 = vrot.lane.b32.xlu1 %v10777_v39, %s8774_s29  ;;  %3245 = vrot.lane.b32.xlu0 %v8057_v38, %s8774_s29  ;;  %v10815_v12 = vpop.f32.mrf.mxu0 }
 0x2bc   : > { %3249 = vrot.lane.b32.xlu2 %v10789_v13, %s8774_s29 }
 0x2bd   : > { %v3036_v10 = vpop.permute.xlu1 %3035  ;;  %v3034_v21 = vpop.permute.xlu0 %3033 }
 0x2be   : > { %3112 = vst.msk [vmem:[#allocation2 + $0x1c8] sm:$0xff] %vm917_vm1, %v3036_v10  ;;  %2448 = vmatmul.f32.gmra.mxu3 %v2090_v25  ;;  %v3056_v35 = vpop.permute.xlu2 %3055 }
 0x2bf   : > { %3111 = vst.msk [vmem:[#allocation2 + $0x1b0] sm:$0xff] %vm917_vm1, %v3034_v21  ;;  %v2093_v21 = vld [vmem:[#allocation2 + $0x1a0] sm:$0xff] }
 0x2c0   : > { %3122 = vst.msk [vmem:[#allocation2 + $0x2b8] sm:$0xff] %vm917_vm1, %v3056_v35  ;;  %v2100_v61 = vld [vmem:[#allocation2 + $0x1d8] sm:$0xff] }
 0x2c1   : > { %v2401_v5 = vpop.f32.mrf.mxu3  ;;  %4201 = vst.msk [vmem:[#allocation2 + $0x1d8] sm:$0xff] %vm289_vm0, %v8056_v19  ;;  %7936 = vmatmul.msk.f32.gmra.mxu0 %vm289_vm0, %v2100_v61  ;;  %v2103_v19 = vld [vmem:[#allocation2 + $0x1f0] sm:$0xff] }
 0x2c2   : > { %v2402_v25 = vadd.f32 %v2401_v5, %v2289_v45  ;;  %4202 = vst.msk [vmem:[#allocation2 + $0x1f0] sm:$0xff] %vm289_vm0, %v8057_v38  ;;  %v7907_v38 = vld [vmem:[%s8878_s26 + $0x16c] sm:$0xff] }
 0x2c3   : > { %3381 = vrot.lane.b32.xlu1 %v10458_v30, %s8775_s9  ;;  %3251 = vrot.lane.b32.xlu0 %v10820_v36, %s8774_s29  ;;  %v7906_v30 = vld [vmem:[%s8878_s26 + $0x15c] sm:$0xff]  ;;  %v10840_v45 = vpop.f32.mrf.mxu0  ;;  %2031 = vst.msk [vmem:[#allocation2 + $0x220] sm:$0xff] %vm289_vm0, %v7907_v38 }
 0x2c4   : > { %v2515_v35 = vadd.f32 %v10702_v41, %v2402_v25  ;;  %3383 = vrot.lane.b32.xlu2 %v10468_v0, %s8775_s9  ;;  %2030 = vst.msk [vmem:[#allocation2 + $0x208] sm:$0xff] %vm289_vm0, %v7906_v30 }
 0x2c5   : > { %v3042_v10 = vpop.permute.xlu1 %3041  ;;  %v3040_v5 = vpop.permute.xlu0 %3039 }
 0x2c6   : > { %v2610_v22 = vmax.f32 %v2515_v35, 0.0  ;;  %3115 = vst.msk [vmem:[#allocation2 + $0x210] sm:$0xff] %vm917_vm1, %v3042_v10  ;;  %2451 = vmatmul.f32.gmra.mxu3 %v2093_v21  ;;  %v3190_v2 = vpop.permute.xlu2 %3189  ;;  %v2096_v10 = vld [vmem:[#allocation2 + $0x1b8] sm:$0xff] }
 0x2c7   : > { %3114 = vst.msk [vmem:[#allocation2 + $0x1f8] sm:$0xff] %vm917_vm1, %v3040_v5  ;;  %v10855_v5 = vpop.f32.mrf.mxu2 }
 0x2c8   : > { %2707 = vmatmul.f32.vlgmr.msrb.gmra.mxu1 %v2610_v22  ;;  %3285 = vst.msk [vmem:[#allocation2] sm:$0xff] %vm1110_vm2, %v3190_v2 }
 0x2c9   : > { %v2404_v41 = vpop.f32.mrf.mxu3  ;;  %7937 = vmatmul.msk.f32.gmra.mxu0 %vm289_vm0, %v2103_v19 }
 0x2ca   : > { %v2405_v0 = vadd.f32 %v2404_v41, %v2292_v16  ;;  %v2099_v16 = vld [vmem:[#allocation2 + $0x1d0] sm:$0xff] }
 0x2cb   : > { %3385 = vrot.lane.b32.xlu0 %v10499_v6, %s8775_s9  ;;  %3387 = vrot.lane.b32.xlu1 %v10485_v31, %s8775_s9  ;;  %v10859_v31 = vpop.f32.mrf.mxu0  ;;  %v2106_v21 = vld [vmem:[#allocation2 + $0x208] sm:$0xff]  ;;  %v7908_v41 = vld [vmem:[%s8878_s26 + $0x174] sm:$0xff] }
 0x2cc   : > { %v2518_v17 = vadd.f32 %v10740_v37, %v2405_v0  ;;  %3389 = vrot.lane.b32.xlu2 %v10503_v54, %s8775_s9  ;;  %v2295_v37 = vadd.f32 %v10800_v57, %v10409_v52  ;;  %4203 = vst.msk [vmem:[#allocation2 + $0x208] sm:$0xff] %vm289_vm0, %v10777_v39 }
 0x2cd   : > { %v3048_v25 = vpop.permute.xlu1 %3047  ;;  %v3046_v35 = vpop.permute.xlu0 %3045  ;;  %2032 = vst.msk [vmem:[#allocation2 + $0x238] sm:$0xff] %vm289_vm0, %v7908_v41 }
 0x2ce   : > { %3118 = vst.msk [vmem:[#allocation2 + $0x258] sm:$0xff] %vm917_vm1, %v3048_v25  ;;  %2454 = vmatmul.f32.gmra.mxu3 %v2096_v10  ;;  %v2611_v61 = vmax.f32 %v2518_v17, 0.0  ;;  %v3196_v6 = vpop.permute.xlu2 %3195  ;;  %v10887_v17 = vpop.f32.mrf.mxu1 }
 0x2cf   : > { %3117 = vst.msk [vmem:[#allocation2 + $0x240] sm:$0xff] %vm917_vm1, %v3046_v35 }
 0x2d0   : > { %2710 = vmatmul.f32.gmra.mxu1 %v2611_v61  ;;  %3288 = vst.msk [vmem:[#allocation2 + $0x48] sm:$0xff] %vm1110_vm2, %v3196_v6  ;;  %v2102_v61 = vld [vmem:[#allocation2 + $0x1e8] sm:$0xff] }
 0x2d1   : > { %v2407_v54 = vpop.f32.mrf.mxu3  ;;  %7938 = vmatmul.msk.f32.gmra.mxu0 %vm289_vm0, %v2106_v21 }
 0x2d2   : > { %v2408_v22 = vadd.f32 %v2407_v54, %v2295_v37 }
 0x2d3   : > { %3391 = vrot.lane.b32.xlu0 %v10535_v15, %s8775_s9  ;;  %3393 = vrot.lane.b32.xlu1 %v10525_v53, %s8775_s9  ;;  %v10879_v15 = vpop.f32.mrf.mxu0  ;;  %v2298_v53 = vadd.f32 %v10800_v57, %v10434_v60 }
 0x2d4   : > { %v2521_v52 = vadd.f32 %v10773_v51, %v2408_v22  ;;  %3395 = vrot.lane.b32.xlu2 %v10539_v26, %s8775_s9  ;;  %v10883_v51 = vpop.f32.mrf.mxu2  ;;  %v2109_v26 = vld [vmem:[#allocation2 + $0x220] sm:$0xff] }
 0x2d5   : > { %v3054_v30 = vpop.permute.xlu1 %3053  ;;  %v3052_v2 = vpop.permute.xlu0 %3051  ;;  %4204 = vst.msk [vmem:[#allocation2 + $0x220] sm:$0xff] %vm289_vm0, %v10789_v13 }
 0x2d6   : > { %3121 = vst.msk [vmem:[#allocation2 + $0x2a0] sm:$0xff] %vm917_vm1, %v3054_v30  ;;  %2457 = vmatmul.f32.gmra.mxu3 %v2099_v16  ;;  %v2612_v39 = vmax.f32 %v2521_v52, 0.0  ;;  %v3202_v0 = vpop.permute.xlu2 %3201  ;;  %v2105_v52 = vld [vmem:[#allocation2 + $0x200] sm:$0xff] }
 0x2d7   : > { %3120 = vst.msk [vmem:[#allocation2 + $0x288] sm:$0xff] %vm917_vm1, %v3052_v2  ;;  %v7910_v2 = vld [vmem:[%s8878_s26 + $0x18c] sm:$0xff] }
 0x2d8   : > { %2713 = vmatmul.f32.gmra.mxu1 %v2612_v39  ;;  %3291 = vst.msk [vmem:[#allocation2 + $0x90] sm:$0xff] %vm1110_vm2, %v3202_v0 }
 0x2d9   : > { %v2410_v19 = vpop.f32.mrf.mxu3  ;;  %7939 = vmatmul.msk.f32.gmra.mxu0 %vm289_vm0, %v2109_v26  ;;  %2034 = vst.msk [vmem:[#allocation2 + $0x268] sm:$0xff] %vm289_vm0, %v7910_v2  ;;  %v2108_v26 = vld [vmem:[#allocation2 + $0x218] sm:$0xff] }
 0x2da   : > { %v2411_v25 = vadd.f32 %v2410_v19, %v2298_v53 }
 0x2db   : > { %3397 = vrot.lane.b32.xlu0 %v10579_v1, %s8775_s9  ;;  %3399 = vrot.lane.b32.xlu1 %v10575_v24, %s8775_s9  ;;  %v10901_v38 = vpop.f32.mrf.mxu0  ;;  %v7909_v1 = vld [vmem:[%s8878_s26 + $0x184] sm:$0xff]  ;;  %v2301_v24 = vadd.f32 %v10800_v57, %v10470_v11  ;;  %v10917_v11 = vpop.f32.mrf.mxu1 }
 0x2dc   : > { %v2524_v60 = vadd.f32 %v10815_v12, %v2411_v25  ;;  %3401 = vrot.lane.b32.xlu2 %v10588_v14, %s8775_s9  ;;  %v2112_v12 = vld [vmem:[#allocation2 + $0x238] sm:$0xff]  ;;  %v10909_v14 = vpop.f32.mrf.mxu2  ;;  %2033 = vst.msk [vmem:[#allocation2 + $0x250] sm:$0xff] %vm289_vm0, %v7909_v1 }
 0x2dd   : > { %v3060_v35 = vpop.permute.xlu1 %3059  ;;  %v3058_v10 = vpop.permute.xlu0 %3057  ;;  %4205 = vst.msk [vmem:[#allocation2 + $0x238] sm:$0xff] %vm289_vm0, %v10820_v36 }
 0x2de   : > { %3124 = vst.msk [vmem:[#allocation2 + $0x2e8] sm:$0xff] %vm917_vm1, %v3060_v35  ;;  %2460 = vmatmul.f32.gmra.mxu3 %v2102_v61  ;;  %v2613_v6 = vmax.f32 %v2524_v60, 0.0  ;;  %v3208_v13 = vpop.permute.xlu2 %3207  ;;  %v7911_v35 = vld [vmem:[%s8878_s26 + $0x19c] sm:$0xff] }
 0x2df   : > { %3123 = vst.msk [vmem:[#allocation2 + $0x2d0] sm:$0xff] %vm917_vm1, %v3058_v10 }
 0x2e0   : > { %2716 = vmatmul.f32.gmra.mxu1 %v2613_v6  ;;  %3294 = vst.msk [vmem:[#allocation2 + $0xd8] sm:$0xff] %vm1110_vm2, %v3208_v13 }
 0x2e1   : > { %v2413_v37 = vpop.f32.mrf.mxu3  ;;  %7940 = vmatmul.msk.f32.gmra.mxu0 %vm289_vm0, %v2112_v12  ;;  %2035 = vst.msk [vmem:[#allocation2 + $0x280] sm:$0xff] %vm289_vm0, %v7911_v35  ;;  %v2117_v35 = vld [vmem:[#allocation2 + $0x260] sm:$0xff] }
 0x2e2   : > { %v2414_v21 = vadd.f32 %v2413_v37, %v2301_v24  ;;  %v2111_v24 = vld [vmem:[#allocation2 + $0x230] sm:$0xff] }
 0x2e3   : > { %3403 = vrot.lane.b32.xlu0 %v10626_v20, %s8775_s9  ;;  %3405 = vrot.lane.b32.xlu1 %v10612_v47, %s8775_s9  ;;  %v10925_v16 = vpop.f32.mrf.mxu0  ;;  %v8245_v47 = vld [vmem:[%s8878_s26 + $0x19d] sm:$0xff]  ;;  %v2115_v41 = vld [vmem:[#allocation2 + $0x250] sm:$0xff]  ;;  %v10943_v25 = vpop.f32.mrf.mxu1 }
 0x2e4   : > { %v2527_v54 = vadd.f32 %v10840_v45, %v2414_v21  ;;  %3407 = vrot.lane.b32.xlu2 %v10632_v7, %s8775_s9  ;;  %v2304_v45 = vadd.f32 %v10800_v57, %v10509_v49  ;;  %4206 = vst.msk [vmem:[#allocation2 + $0x250] sm:$0xff] %vm289_vm0, %v8245_v47  ;;  %v10938_v49 = vpop.f32.mrf.mxu2  ;;  %v7912_v21 = vld [vmem:[%s8878_s26 + $0x1a4] sm:$0xff] }
 0x2e5   : > { %v3194_v36 = vpop.permute.xlu1 %3193  ;;  %v3192_v22 = vpop.permute.xlu0 %3191  ;;  %2036 = vst.msk [vmem:[#allocation2 + $0x298] sm:$0xff] %vm289_vm0, %v7912_v21  ;;  %v8262_v21 = vld [vmem:[%s13865_s2 + $0x168] sm:$0xff] }
 0x2e6   : > { %3287 = vst.msk [vmem:[#allocation2 + $0x30] sm:$0xff] %vm1110_vm2, %v3194_v36  ;;  %2463 = vmatmul.f32.gmra.mxu3 %v2105_v52  ;;  %v2614_v30 = vmax.f32 %v2527_v54, 0.0  ;;  %v3214_v20 = vpop.permute.xlu2 %3213  ;;  %v8247_v54 = vld [vmem:[%s8878_s26 + $0x1b5] sm:$0xff] }
 0x2e7   : > { %3286 = vst.msk [vmem:[#allocation2 + $0x18] sm:$0xff] %vm1110_vm2, %v3192_v22 }
 0x2e8   : > { %2719 = vmatmul.f32.gmra.mxu1 %v2614_v30  ;;  %3297 = vst.msk [vmem:[#allocation2 + $0x120] sm:$0xff] %vm1110_vm2, %v3214_v20  ;;  %v2121_v36 = vld [vmem:[#allocation2 + $0x280] sm:$0xff]  ;;  %v2114_v20 = vld [vmem:[#allocation2 + $0x248] sm:$0xff] }
 0x2e9   : > { %v2416_v39 = vpop.f32.mrf.mxu3  ;;  %7941 = vmatmul.msk.f32.gmra.mxu0 %vm289_vm0, %v2115_v41  ;;  %4208 = vst.msk [vmem:[#allocation2 + $0x280] sm:$0xff] %vm289_vm0, %v8247_v54 }
 0x2ea   : > { %v2417_v7 = vadd.f32 %v2416_v39, %v2304_v45  ;;  %v8248_v39 = vld [vmem:[%s8878_s26 + $0x1bd] sm:$0xff] }
 0x2eb   : > { %3409 = vrot.lane.b32.xlu0 %v10665_v32, %s8775_s9  ;;  %3411 = vrot.lane.b32.xlu1 %v10651_v48, %s8775_s9  ;;  %v8246_v48 = vld [vmem:[%s8878_s26 + $0x1a5] sm:$0xff]  ;;  %v10952_v10 = vpop.f32.mrf.mxu0 }
 0x2ec   : > { %v2530_v0 = vadd.f32 %v10859_v31, %v2417_v7  ;;  %3413 = vrot.lane.b32.xlu2 %v10673_v29, %s8775_s9  ;;  %v2307_v31 = vadd.f32 %v10800_v57, %v10560_v50  ;;  %v2118_v29 = vld [vmem:[#allocation2 + $0x268] sm:$0xff]  ;;  %v10964_v12 = vpop.f32.mrf.mxu2 }
 0x2ed   : > { %v3200_v53 = vpop.permute.xlu1 %3199  ;;  %v3198_v19 = vpop.permute.xlu0 %3197  ;;  %4207 = vst.msk [vmem:[#allocation2 + $0x268] sm:$0xff] %vm289_vm0, %v8246_v48 }
 0x2ee   : > { %3290 = vst.msk [vmem:[#allocation2 + $0x78] sm:$0xff] %vm1110_vm2, %v3200_v53  ;;  %2466 = vmatmul.f32.gmra.mxu3 %v2108_v26  ;;  %v2615_v60 = vmax.f32 %v2530_v0, 0.0  ;;  %v3220_v32 = vpop.permute.xlu2 %3219  ;;  %v8267_v0 = vld [vmem:[%s13865_s2 + $0x190] sm:$0xff]  ;;  %v8266_v26 = vld [vmem:[%s13865_s2 + $0x188] sm:$0xff] }
 0x2ef   : > { %3289 = vst.msk [vmem:[#allocation2 + $0x60] sm:$0xff] %vm1110_vm2, %v3198_v19 }
 0x2f0   : > { %2722 = vmatmul.f32.gmra.mxu1 %v2615_v60  ;;  %3300 = vst.msk [vmem:[#allocation2 + $0x168] sm:$0xff] %vm1110_vm2, %v3220_v32 }
 0x2f1   : > { %v2419_v61 = vpop.f32.mrf.mxu3  ;;  %7942 = vmatmul.msk.f32.gmra.mxu0 %vm289_vm0, %v2118_v29  ;;  %v8249_v29 = vld [vmem:[%s8878_s26 + $0x1cd] sm:$0xff] }
 0x2f2   : > { %v2420_v6 = vadd.f32 %v2419_v61, %v2307_v31  ;;  %v8264_v61 = vld [vmem:[%s13865_s2 + $0x178] sm:$0xff] }
 0x2f3   : > { %3415 = vrot.lane.b32.xlu0 %v10712_v59, %s8775_s9  ;;  %3417 = vrot.lane.b32.xlu1 %v10705_v23, %s8775_s9  ;;  %v2310_v23 = vadd.f32 %v10800_v57, %v10619_v34  ;;  %v10977_v52 = vpop.f32.mrf.mxu0 }
 0x2f4   : > { %v2533_v50 = vadd.f32 %v10879_v15, %v2420_v6  ;;  %3419 = vrot.lane.b32.xlu2 %v10716_v42, %s8775_s9  ;;  %v10972_v15 = vpop.f32.mrf.mxu1  ;;  %v10996_v41 = vpop.f32.mrf.mxu2 }
 0x2f5   : > { %v3206_v13 = vpop.permute.xlu1 %3205  ;;  %v3204_v1 = vpop.permute.xlu0 %3203 }
 0x2f6   : > { %3293 = vst.msk [vmem:[#allocation2 + $0xc0] sm:$0xff] %vm1110_vm2, %v3206_v13  ;;  %2469 = vmatmul.f32.gmra.mxu3 %v2111_v24  ;;  %v2616_v37 = vmax.f32 %v2533_v50, 0.0  ;;  %v3226_v59 = vpop.permute.xlu2 %3225  ;;  %v8263_v13 = vld [vmem:[%s13865_s2 + $0x170] sm:$0xff] }
 0x2f7   : > { %3292 = vst.msk [vmem:[#allocation2 + $0xa8] sm:$0xff] %vm1110_vm2, %v3204_v1 }
 0x2f8   : > { %2725 = vmatmul.f32.gmra.mxu1 %v2616_v37  ;;  %3303 = vst.msk [vmem:[#allocation2 + $0x1b0] sm:$0xff] %vm1110_vm2, %v3226_v59 }
 0x2f9   : > { %v2422_v42 = vpop.f32.mrf.mxu3  ;;  %7943 = vmatmul.msk.f32.gmra.mxu0 %vm289_vm0, %v2121_v36  ;;  %v2120_v36 = vld [vmem:[#allocation2 + $0x278] sm:$0xff] }
 0x2fa   : > { %v2423_v22 = vadd.f32 %v2422_v42, %v2310_v23 }
 0x2fb   : > { %3421 = vrot.lane.b32.xlu0 %v10743_v4, %s8775_s9  ;;  %3423 = vrot.lane.b32.xlu1 %v10737_v62, %s8775_s9  ;;  %v8268_v62 = vld [vmem:[%s13865_s2 + $0x198] sm:$0xff] }
 0x2fc   : > { %v2536_v34 = vadd.f32 %v10901_v38, %v2423_v22  ;;  %3425 = vrot.lane.b32.xlu2 %v10749_v3, %s8775_s9  ;;  %v7913_v4 = vld [vmem:[%s8878_s26 + $0x1b4] sm:$0xff]  ;;  %v2313_v38 = vadd.f32 %v10800_v57, %v10855_v5  ;;  %4445 = vmatpush.msra.mxu2 %v8268_v62  ;;  %v11003_v53 = vpop.f32.mrf.mxu1  ;;  %v11006_v5 = vpop.f32.mrf.mxu0 }
 0x2fd   : > { %v3212_v30 = vpop.permute.xlu1 %3211  ;;  %v3210_v2 = vpop.permute.xlu0 %3209  ;;  %v2124_v3 = vld [vmem:[#allocation2 + $0x298] sm:$0xff]  ;;  %2037 = vst.msk [vmem:[#allocation2 + $0x2b0] sm:$0xff] %vm289_vm0, %v7913_v4  ;;  %v8259_v62 = vld [vmem:[%s13865_s2 + $0x150] sm:$0xff] }
 0x2fe   : > { %3296 = vst.msk [vmem:[#allocation2 + $0x108] sm:$0xff] %vm1110_vm2, %v3212_v30  ;;  %2472 = vmatmul.f32.gmra.mxu3 %v2114_v20  ;;  %v2617_v47 = vmax.f32 %v2536_v34, 0.0  ;;  %v3232_v45 = vpop.permute.xlu2 %3231  ;;  %4446 = vmatpush.msra.mxu2 %v8267_v0  ;;  %v11036_v1 = vpop.f32.mrf.mxu2  ;;  %v8250_v22 = vld [vmem:[%s8878_s26 + $0x1d5] sm:$0xff]  ;;  %v7915_v30 = vld [vmem:[%s8878_s26 + $0x1cc] sm:$0xff]  ;;  %v8090_v20 = vld [vmem:[%s8878_s26 + $0x1a1] sm:$0xff] }
 0x2ff   : > { %3295 = vst.msk [vmem:[#allocation2 + $0xf0] sm:$0xff] %vm1110_vm2, %v3210_v2  ;;  %v8260_v34 = vld [vmem:[%s13865_s2 + $0x158] sm:$0xff]  ;;  %v2319_v2 = vadd.f32 %v10800_v57, %v10909_v14  ;;  %v8258_v14 = vld [vmem:[%s13865_s2 + $0x148] sm:$0xff] }
 0x300   : > { %2728 = vmatmul.f32.gmra.mxu1 %v2617_v47  ;;  %3306 = vst.msk [vmem:[#allocation2 + $0x1f8] sm:$0xff] %vm1110_vm2, %v3232_v45  ;;  %4447 = vmatpush.msra.mxu2 %v8266_v26  ;;  %v8091_v47 = vld [vmem:[%s8878_s26 + $0x1b1] sm:$0xff] }
 0x301   : > { %v2425_v7 = vpop.f32.mrf.mxu3  ;;  %4209 = vst.msk [vmem:[#allocation2 + $0x298] sm:$0xff] %vm289_vm0, %v8248_v39  ;;  %7944 = vmatmul.msk.f32.gmra.mxu0 %vm289_vm0, %v2124_v3 }
 0x302   : > { %v2426_v19 = vadd.f32 %v2425_v7, %v2313_v38  ;;  %v8092_v38 = vld [vmem:[%s8878_s26 + $0x1b9] sm:$0xff]  ;;  %2039 = vst.msk [vmem:[#allocation2 + $0x2e0] sm:$0xff] %vm289_vm0, %v7915_v30  ;;  %v2325_v30 = vadd.f32 %v10800_v57, %v10964_v12 }
 0x303   : > { %3427 = vrot.lane.b32.xlu0 %v10770_v40, %s8775_s9  ;;  %3429 = vrot.lane.b32.xlu1 %v10763_v55, %s8775_s9  ;;  %v8265_v40 = vld [vmem:[%s13865_s2 + $0x180] sm:$0xff] }
 0x304   : > { %v2539_v60 = vadd.f32 %v10925_v16, %v2426_v19  ;;  %3431 = vrot.lane.b32.xlu2 %v10782_v43, %s8775_s9  ;;  %4448 = vmatpush.msra.mxu2 %v8265_v40  ;;  %v7914_v55 = vld [vmem:[%s8878_s26 + $0x1bc] sm:$0xff]  ;;  %v2316_v43 = vadd.f32 %v10800_v57, %v10883_v51  ;;  %v2127_v50 = vld [vmem:[#allocation2 + $0x2b0] sm:$0xff]  ;;  %v11039_v37 = vpop.f32.mrf.mxu0  ;;  %v11050_v59 = vpop.f32.mrf.mxu1 }
 0x305   : > { %v3218_v32 = vpop.permute.xlu1 %3217  ;;  %v3216_v48 = vpop.permute.xlu0 %3215  ;;  %2038 = vst.msk [vmem:[#allocation2 + $0x2c8] sm:$0xff] %vm289_vm0, %v7914_v55  ;;  %v8089_v51 = vld [vmem:[%s8878_s26 + $0x199] sm:$0xff]  ;;  %v8251_v55 = vld [vmem:[%s8878_s26 + $0x1e5] sm:$0xff] }
 0x306   : > { %v2618_v31 = vmax.f32 %v2539_v60, 0.0  ;;  %3299 = vst.msk [vmem:[#allocation2 + $0x150] sm:$0xff] %vm1110_vm2, %v3218_v32  ;;  %2475 = vmatmul.f32.gmra.mxu3 %v2117_v35  ;;  %v3238_v16 = vpop.permute.xlu2 %3237  ;;  %4449 = vmatpush.msra.mxu2 %v8264_v61  ;;  %v11081_v3 = vpop.f32.mrf.mxu2  ;;  %v11087_v19 = vld [vmem:[%s8878_s26 + $0x7b] sm:$0xff]  ;;  %v2123_v32 = vld [vmem:[#allocation2 + $0x290] sm:$0xff] }
 0x307   : > { %3298 = vst.msk [vmem:[#allocation2 + $0x138] sm:$0xff] %vm1110_vm2, %v3216_v48  ;;  %v8257_v48 = vld [vmem:[%s13865_s2 + $0x140] sm:$0xff]  ;;  %v7916_v40 = vld [vmem:[%s8878_s26 + $0x1d4] sm:$0xff] }
 0x308   : > { %2731 = vmatmul.f32.gmra.mxu1 %v2618_v31  ;;  %3309 = vst.msk [vmem:[#allocation2 + $0x240] sm:$0xff] %vm1110_vm2, %v3238_v16  ;;  %4450 = vmatpush.msra.mxu2 %v8263_v13  ;;  %v8256_v16 = vld [vmem:[%s13865_s2 + $0x138] sm:$0xff]  ;;  %v8125_v61 = vld [vmem:[%s8878_s26 + $0x4d] sm:$0xff] }
 0x309   : > { %v2428_v6 = vpop.f32.mrf.mxu3  ;;  %4210 = vst.msk [vmem:[#allocation2 + $0x2b0] sm:$0xff] %vm289_vm0, %v8249_v29  ;;  %7945 = vmatmul.msk.f32.gmra.mxu0 %vm289_vm0, %v2127_v50  ;;  %v2322_v29 = vadd.f32 %v10800_v57, %v10938_v49  ;;  %v2133_v50 = vld [vmem:[#allocation2 + $0x2e0] sm:$0xff]  ;;  %v8255_v13 = vld [vmem:[%s13865_s2 + $0x130] sm:$0xff]  ;;  %v8254_v49 = vld [vmem:[%s13865_s2 + $0x128] sm:$0xff] }
 0x30a   : > { %v2429_v24 = vadd.f32 %v2428_v6, %v2316_v43  ;;  %4451 = vmatpush.msra.mxu2 %v8262_v21  ;;  %3545 = vst.msk [vmem:[#allocation2 + $0x68] sm:$0xff] %vm289_vm0, %v11087_v19  ;;  %v8126_v43 = vld [vmem:[%s8878_s26 + $0x55] sm:$0xff] }
 0x30b   : > { %3433 = vrot.lane.b32.xlu0 %v10812_v28, %s8775_s9  ;;  %3435 = vrot.lane.b32.xlu1 %v10803_v8, %s8775_s9  ;;  %v8261_v28 = vld [vmem:[%s13865_s2 + $0x160] sm:$0xff]  ;;  %2040 = vst.msk [vmem:[#allocation2 + $0x2f8] sm:$0xff] %vm289_vm0, %v7916_v40  ;;  %v8131_v40 = vld [vmem:[%s8878_s26 + $0x95] sm:$0xff] }
 0x30c   : > { %v2542_v54 = vadd.f32 %v10952_v10, %v2429_v24  ;;  %3437 = vrot.lane.b32.xlu2 %v8089_v51, %s8775_s9  ;;  %4452 = vmatpush.msra.mxu2 %v8261_v28  ;;  %v2130_v45 = vld [vmem:[#allocation2 + $0x2c8] sm:$0xff]  ;;  %v11084_v0 = vpop.f32.mrf.mxu0  ;;  %4212 = vst.msk [vmem:[#allocation2 + $0x2e0] sm:$0xff] %vm289_vm0, %v8251_v55  ;;  %v8253_v28 = vld [vmem:[%s13865_s2 + $0x120] sm:$0xff] }
 0x30d   : > { %v3224_v23 = vpop.permute.xlu1 %3223  ;;  %v3222_v42 = vpop.permute.xlu0 %3221  ;;  %4211 = vst.msk [vmem:[#allocation2 + $0x2c8] sm:$0xff] %vm289_vm0, %v8250_v22  ;;  %v8127_v51 = vld [vmem:[%s8878_s26 + $0x65] sm:$0xff] }
 0x30e   : > { %v2619_v8 = vmax.f32 %v2542_v54, 0.0  ;;  %3302 = vst.msk [vmem:[#allocation2 + $0x198] sm:$0xff] %vm1110_vm2, %v3224_v23  ;;  %2478 = vmatmul.f32.gmra.mxu3 %v2120_v36  ;;  %v3244_v10 = vpop.permute.xlu2 %3243  ;;  %4453 = vmatpush.msra.mxu2 %v8260_v34  ;;  %v11123_v54 = vld [vmem:[%s8878_s26 + $0x83] sm:$0xff]  ;;  %v8252_v34 = vld [vmem:[%s8878_s26 + $0x1ed] sm:$0xff] }
 0x30f   : > { %3301 = vst.msk [vmem:[#allocation2 + $0x180] sm:$0xff] %vm1110_vm2, %v3222_v42  ;;  %v2126_v36 = vld [vmem:[#allocation2 + $0x2a8] sm:$0xff] }
 0x310   : > { %2734 = vmatmul.f32.gmra.mxu1 %v2619_v8  ;;  %3312 = vst.msk [vmem:[#allocation2 + $0x288] sm:$0xff] %vm1110_vm2, %v3244_v10  ;;  %4454 = vmatpush.msra.mxu2 %v8259_v62  ;;  %v11131_v8 = vpop.f32.mrf.mxu2 }
 0x311   : > { %v2431_v39 = vpop.f32.mrf.mxu3  ;;  %7946 = vmatmul.msk.f32.gmra.mxu0 %vm289_vm0, %v2130_v45  ;;  %3546 = vst.msk [vmem:[#allocation2 + $0x80] sm:$0xff] %vm289_vm0, %v11123_v54 }
 0x312   : > { %v2432_v4 = vadd.f32 %v2431_v39, %v2319_v2  ;;  %4455 = vmatpush.msra.mxu2 %v8258_v14  ;;  %v2136_v45 = vld [vmem:[#allocation2 + $0x2f8] sm:$0xff] }
 0x313   : > { %3439 = vrot.lane.b32.xlu0 %v8090_v20, %s8775_s9  ;;  %3441 = vrot.lane.b32.xlu1 %v8091_v47, %s8775_s9  ;;  %v8128_v20 = vld [vmem:[%s8878_s26 + $0x6d] sm:$0xff]  ;;  %v8129_v47 = vld [vmem:[%s8878_s26 + $0x7d] sm:$0xff]  ;;  %4213 = vst.msk [vmem:[#allocation2 + $0x2f8] sm:$0xff] %vm289_vm0, %v8252_v34 }
 0x314   : > { %v2545_v7 = vadd.f32 %v10977_v52, %v2432_v4  ;;  %3443 = vrot.lane.b32.xlu2 %v8092_v38, %s8775_s9  ;;  %v11095_v52 = vpop.f32.mrf.mxu1  ;;  %4456 = vmatpush.msra.mxu2 %v8257_v48  ;;  %v11135_v10 = vpop.f32.mrf.mxu0  ;;  %v8130_v4 = vld [vmem:[%s8878_s26 + $0x85] sm:$0xff]  ;;  %v11152_v38 = vld [vmem:[%s8878_s26 + $0x93] sm:$0xff]  ;;  %v2328_v48 = vadd.f32 %v10800_v57, %v10996_v41 }
 0x315   : > { %v3230_v26 = vpop.permute.xlu1 %3229  ;;  %v3228_v60 = vpop.permute.xlu0 %3227  ;;  %3547 = vst.msk [vmem:[#allocation2 + $0x98] sm:$0xff] %vm289_vm0, %v11152_v38 }
 0x316   : > { %v2620_v35 = vmax.f32 %v2545_v7, 0.0  ;;  %3305 = vst.msk [vmem:[#allocation2 + $0x1e0] sm:$0xff] %vm1110_vm2, %v3230_v26  ;;  %2481 = vmatmul.f32.gmra.mxu3 %v2123_v32  ;;  %v3250_v31 = vpop.permute.xlu2 %3249  ;;  %4457 = vmatpush.msra.mxu2 %v8256_v16  ;;  %v2129_v26 = vld [vmem:[#allocation2 + $0x2c0] sm:$0xff] }
 0x317   : > { %3304 = vst.msk [vmem:[#allocation2 + $0x1c8] sm:$0xff] %vm1110_vm2, %v3228_v60 }
 0x318   : > { %2737 = vmatmul.f32.gmra.mxu1 %v2620_v35  ;;  %3315 = vst.msk [vmem:[#allocation2 + $0x2d0] sm:$0xff] %vm1110_vm2, %v3250_v31  ;;  %4458 = vmatpush.msra.mxu2 %v8255_v13  ;;  %v11163_v35 = vpop.f32.mrf.mxu2  ;;  %v8132_v31 = vld [vmem:[%s8878_s26 + $0x9d] sm:$0xff] }
 0x319   : > { %v2434_v6 = vpop.f32.mrf.mxu3  ;;  %7947 = vmatmul.msk.f32.gmra.mxu0 %vm289_vm0, %v2133_v50  ;;  %v2132_v13 = vld [vmem:[#allocation2 + $0x2d8] sm:$0xff] }
 0x31a   : > { %v2435_v24 = vadd.f32 %v2434_v6, %v2322_v29  ;;  %4459 = vmatpush.msra.mxu2 %v8254_v49 }
 0x31b   : > { %3637 = vrot.lane.b32.xlu0 %v8125_v61, %s8773_s28  ;;  %3639 = vrot.lane.b32.xlu1 %v8126_v43, %s8773_s28  ;;  %v8133_v61 = vld [vmem:[%s8878_s26 + $0xad] sm:$0xff]  ;;  %v11173_v43 = vld [vmem:[%s8878_s26 + $0x9b] sm:$0xff] }
 0x31c   : > { %v2548_v21 = vadd.f32 %v11006_v5, %v2435_v24  ;;  %3641 = vrot.lane.b32.xlu2 %v8127_v51, %s8773_s28  ;;  %4460 = vmatpush.msra.mxu2 %v8253_v28  ;;  %v11140_v2 = vpop.f32.mrf.mxu1  ;;  %3548 = vst.msk [vmem:[#allocation2 + $0xb0] sm:$0xff] %vm289_vm0, %v11173_v43  ;;  %v8134_v28 = vld [vmem:[%s8878_s26 + $0xb5] sm:$0xff] }
 0x31d   : > { %v3236_v23 = vpop.permute.xlu1 %3235  ;;  %v3234_v42 = vpop.permute.xlu0 %3233 }
 0x31e   : > { %v2621_v5 = vmax.f32 %v2548_v21, 0.0  ;;  %3308 = vst.msk [vmem:[#allocation2 + $0x228] sm:$0xff] %vm1110_vm2, %v3236_v23  ;;  %2484 = vmatmul.f32.gmra.mxu3 %v2126_v36  ;;  %v3384_v22 = vpop.permute.xlu2 %3383  ;;  %v2331_v21 = vadd.f32 %v10800_v57, %v11036_v1 }
 0x31f   : > { %3307 = vst.msk [vmem:[#allocation2 + $0x210] sm:$0xff] %vm1110_vm2, %v3234_v42 }
 0x320   : > { %2740 = vmatmul.f32.gmra.mxu1 %v2621_v5  ;;  %3478 = vst.msk [vmem:[#allocation2 + $0x18] sm:$0xff] %vm1303_vm3, %v3384_v22  ;;  %v11187_v42 = vpop.f32.mrf.mxu2  ;;  %v11191_v5 = vld [vmem:[%s8878_s26 + $0xab] sm:$0xff] }
 0x321   : > { %v2437_v39 = vpop.f32.mrf.mxu3  ;;  %7948 = vmatmul.msk.f32.gmra.mxu0 %vm289_vm0, %v2136_v45  ;;  %3549 = vst.msk [vmem:[#allocation2 + $0xc8] sm:$0xff] %vm289_vm0, %v11191_v5 }
 0x322   : > { %v2438_v62 = vadd.f32 %v2437_v39, %v2325_v30  ;;  %v2334_v39 = vadd.f32 %v10800_v57, %v11081_v3 }
 0x323   : > { %3643 = vrot.lane.b32.xlu0 %v8128_v20, %s8773_s28  ;;  %3645 = vrot.lane.b32.xlu1 %v8129_v47, %s8773_s28  ;;  %v2135_v20 = vld [vmem:[#allocation2 + $0x2f0] sm:$0xff] }
 0x324   : > { %v2551_v12 = vadd.f32 %v11039_v37, %v2438_v62  ;;  %3647 = vrot.lane.b32.xlu2 %v8130_v4, %s8773_s28  ;;  %v11159_v37 = vpop.f32.mrf.mxu0  ;;  %v11168_v16 = vpop.f32.mrf.mxu1 }
 0x325   : > { %v3242_v14 = vpop.permute.xlu1 %3241  ;;  %v3240_v7 = vpop.permute.xlu0 %3239 }
 0x326   : > { %v2622_v60 = vmax.f32 %v2551_v12, 0.0  ;;  %3311 = vst.msk [vmem:[#allocation2 + $0x270] sm:$0xff] %vm1110_vm2, %v3242_v14  ;;  %2487 = vmatmul.f32.gmra.mxu3 %v2129_v26  ;;  %v3390_v32 = vpop.permute.xlu2 %3389  ;;  %v8135_v12 = vld [vmem:[%s8878_s26 + $0xc5] sm:$0xff]  ;;  %v11210_v14 = vld [vmem:[%s8878_s26 + $0xb3] sm:$0xff] }
 0x327   : > { %3310 = vst.msk [vmem:[#allocation2 + $0x258] sm:$0xff] %vm1110_vm2, %v3240_v7 }
 0x328   : > { %2743 = vmatmul.f32.gmra.mxu1 %v2622_v60  ;;  %3481 = vst.msk [vmem:[#allocation2 + $0x60] sm:$0xff] %vm1303_vm3, %v3390_v32  ;;  %v11217_v7 = vpop.f32.mrf.mxu2 }
 0x329   : > { %v2440_v55 = vpop.f32.mrf.mxu3  ;;  %3550 = vst.msk [vmem:[#allocation2 + $0xe0] sm:$0xff] %vm289_vm0, %v11210_v14 }
 0x32a   : > { %v2441_v29 = vadd.f32 %v2440_v55, %v2328_v48  ;;  %v2337_v55 = vadd.f32 %v10800_v57, %v11131_v8 }
 0x32b   : > { %3649 = vrot.lane.b32.xlu0 %v8131_v40, %s8773_s28  ;;  %3651 = vrot.lane.b32.xlu1 %v8132_v31, %s8773_s28 }
 0x32c   : > { %v2554_v41 = vadd.f32 %v11084_v0, %v2441_v29  ;;  %3653 = vrot.lane.b32.xlu2 %v8133_v61, %s8773_s28  ;;  %v2562_v51 = vpop.f32.mrf.mxu0  ;;  %v8157_v0 = vld [vmem:[%s8878_s26 + $0x79] sm:$0xff]  ;;  %v11198_v1 = vpop.f32.mrf.mxu1 }
 0x32d   : > { %v3248_v6 = vpop.permute.xlu1 %3247  ;;  %v3246_v50 = vpop.permute.xlu0 %3245 }
 0x32e   : > { %v2623_v24 = vmax.f32 %v2554_v41, 0.0  ;;  %3314 = vst.msk [vmem:[#allocation2 + $0x2b8] sm:$0xff] %vm1110_vm2, %v3248_v6  ;;  %2490 = vmatmul.f32.gmra.mxu3 %v2132_v13  ;;  %v3396_v49 = vpop.permute.xlu2 %3395  ;;  %v8160_v41 = vld [vmem:[%s8878_s26 + $0x99] sm:$0xff] }
 0x32f   : > { %3313 = vst.msk [vmem:[#allocation2 + $0x2a0] sm:$0xff] %vm1110_vm2, %v3246_v50  ;;  %v4217_v13 = vld [vmem:[#allocation2 + $0x18] sm:$0xff] }
 0x330   : > { %2746 = vmatmul.f32.gmra.mxu1 %v2623_v24  ;;  %3484 = vst.msk [vmem:[#allocation2 + $0xa8] sm:$0xff] %vm1303_vm3, %v3396_v49  ;;  %v11234_v8 = vpop.f32.mrf.mxu2 }
 0x331   : > { %v2443_v23 = vpop.f32.mrf.mxu3 }
 0x332   : > { %v2444_v36 = vadd.f32 %v2443_v23, %v2331_v21  ;;  %v8136_v23 = vld [vmem:[%s8878_s26 + $0xcd] sm:$0xff] }
 0x333   : > { %3830 = vrot.lane.b32.xlu0 %v8157_v0, %s8774_s29  ;;  %4022 = vrot.lane.b32.xlu1 %v11087_v19, %s8775_s9 }
 0x334   : > { %v2557_v22 = vadd.f32 %v11135_v10, %v2444_v36  ;;  %3655 = vrot.lane.b32.xlu2 %v8134_v28, %s8773_s28  ;;  %v2565_v19 = vpop.f32.mrf.mxu0  ;;  %v8158_v10 = vld [vmem:[%s8878_s26 + $0x81] sm:$0xff]  ;;  %v11221_v48 = vpop.f32.mrf.mxu1 }
 0x335   : > { %v3382_v34 = vpop.permute.xlu1 %3381  ;;  %v3252_v30 = vpop.permute.xlu0 %3251 }
 0x336   : > { %v2624_v47 = vmax.f32 %v2557_v22, 0.0  ;;  %3477 = vst.msk [vmem:[#allocation2] sm:$0xff] %vm1303_vm3, %v3382_v34  ;;  %2493 = vmatmul.f32.gmra.mxu3 %v2135_v20  ;;  %v3402_v45 = vpop.permute.xlu2 %3401  ;;  %v8161_v22 = vld [vmem:[%s8878_s26 + $0xa9] sm:$0xff] }
 0x337   : > { %3316 = vst.msk [vmem:[#allocation2 + $0x2e8] sm:$0xff] %vm1110_vm2, %v3252_v30 }
 0x338   : > { %2749 = vmatmul.f32.gmra.mxu1 %v2624_v47  ;;  %3487 = vst.msk [vmem:[#allocation2 + $0xf0] sm:$0xff] %vm1303_vm3, %v3402_v45 }
 0x339   : > { %v2446_v62 = vpop.f32.mrf.mxu3 }
 0x33a   : > { %v2447_v4 = vadd.f32 %v2446_v62, %v2334_v39 }
 0x33b   : > { %3832 = vrot.lane.b32.xlu0 %v8158_v10, %s8774_s29  ;;  %4024 = vrot.lane.b32.xlu1 %v11123_v54, %s8775_s9  ;;  %v11257_v10 = vpop.f32.mrf.mxu2 }
 0x33c   : > { %v2560_v3 = vadd.f32 %v11159_v37, %v2447_v4  ;;  %3657 = vrot.lane.b32.xlu2 %v8135_v12, %s8773_s28  ;;  %v2568_v54 = vpop.f32.mrf.mxu0  ;;  %v8159_v37 = vld [vmem:[%s8878_s26 + $0x91] sm:$0xff] }
 0x33d   : > { %v3386_v26 = vpop.permute.xlu0 %3385  ;;  %v3388_v60 = vpop.permute.xlu1 %3387  ;;  %v4214_v32 = vld [vmem:[#allocation2] sm:$0xff] }
 0x33e   : > { %v2625_v40 = vmax.f32 %v2560_v3, 0.0  ;;  %3479 = vst.msk [vmem:[#allocation2 + $0x30] sm:$0xff] %vm1303_vm3, %v3386_v26  ;;  %4461 = vmatmul.f32.vlgmr.msra.gmra.mxu2 %v4214_v32  ;;  %v3408_v31 = vpop.permute.xlu2 %3407  ;;  %v8162_v3 = vld [vmem:[%s8878_s26 + $0xb1] sm:$0xff] }
 0x33f   : > { %3480 = vst.msk [vmem:[#allocation2 + $0x48] sm:$0xff] %vm1303_vm3, %v3388_v60  ;;  %v11266_v60 = vld [vmem:[%s8878_s26 + $0xe3] sm:$0xff] }
 0x340   : > { %2752 = vmatmul.f32.gmra.mxu1 %v2625_v40  ;;  %3490 = vst.msk [vmem:[#allocation2 + $0x138] sm:$0xff] %vm1303_vm3, %v3408_v31  ;;  %v11278_v31 = vld [vmem:[%s13868_s5 + $0x1] ss:$0 sm:$0xff] }
 0x341   : > { %v2449_v29 = vpop.f32.mrf.mxu3  ;;  %3554 = vst.msk [vmem:[#allocation2 + $0x140] sm:$0xff] %vm289_vm0, %v11266_v60 }
 0x342   : > { %v2450_v61 = vadd.f32 %v2449_v29, %v2337_v55  ;;  %v2346_v55 = vadd.f32 %v11278_v31, %v11217_v7  ;;  %v8195_v29 = vld [vmem:[%s8878_s26 + $0xc3] sm:$0xff] }
 0x343   : > { %3834 = vrot.lane.b32.xlu0 %v8159_v37, %s8774_s29  ;;  %4026 = vrot.lane.b32.xlu1 %v11152_v38, %s8775_s9  ;;  %v2340_v38 = vadd.f32 %v10800_v57, %v11163_v35  ;;  %v8163_v37 = vld [vmem:[%s8878_s26 + $0xc1] sm:$0xff]  ;;  %3551 = vst.msk [vmem:[#allocation2 + $0xf8] sm:$0xff] %vm289_vm0, %v8195_v29 }
 0x344   : > { %v2563_v6 = vadd.f32 %v2562_v51, %v2450_v61  ;;  %3836 = vrot.lane.b32.xlu2 %v8160_v41, %s8774_s29  ;;  %v2571_v21 = vpop.f32.mrf.mxu0  ;;  %v11240_v51 = vpop.f32.mrf.mxu1 }
 0x345   : > { %v3392_v50 = vpop.permute.xlu0 %3391  ;;  %v3394_v49 = vpop.permute.xlu1 %3393  ;;  %v4220_v20 = vld [vmem:[#allocation2 + $0x30] sm:$0xff] }
 0x346   : > { %v2626_v24 = vmax.f32 %v2563_v6, 0.0  ;;  %3482 = vst.msk [vmem:[#allocation2 + $0x78] sm:$0xff] %vm1303_vm3, %v3392_v50  ;;  %4464 = vmatmul.f32.gmra.mxu2 %v4217_v13  ;;  %v3414_v0 = vpop.permute.xlu2 %3413  ;;  %v11286_v6 = vpop.f32.mrf.mxu2  ;;  %v11294_v13 = vld [vmem:[%s8878_s26 + $0xf3] sm:$0xff] }
 0x347   : > { %3483 = vst.msk [vmem:[#allocation2 + $0x90] sm:$0xff] %vm1303_vm3, %v3394_v49  ;;  %v4226_v49 = vld [vmem:[#allocation2 + $0x60] sm:$0xff] }
 0x348   : > { %2755 = vmatmul.f32.gmra.mxu1 %v2626_v24  ;;  %3493 = vst.msk [vmem:[#allocation2 + $0x180] sm:$0xff] %vm1303_vm3, %v3414_v0 }
 0x349   : > { %v2452_v36 = vpop.f32.mrf.mxu3  ;;  %3555 = vst.msk [vmem:[#allocation2 + $0x158] sm:$0xff] %vm289_vm0, %v11294_v13 }
 0x34a   : > { %v2453_v28 = vadd.f32 %v2452_v36, %v2340_v38  ;;  %v8138_v36 = vld [vmem:[%s8878_s26 + $0xe5] sm:$0xff] }
 0x34b   : > { %4028 = vrot.lane.b32.xlu0 %v11173_v43, %s8775_s9  ;;  %3659 = vrot.lane.b32.xlu1 %v8136_v23, %s8773_s28  ;;  %v2343_v43 = vadd.f32 %v10800_v57, %v11187_v42  ;;  %v4223_v42 = vld [vmem:[#allocation2 + $0x48] sm:$0xff]  ;;  %v2349_v23 = vadd.f32 %v11278_v31, %v11234_v8 }
 0x34c   : > { %v2566_v34 = vadd.f32 %v2565_v19, %v2453_v28  ;;  %3838 = vrot.lane.b32.xlu2 %v8161_v22, %s8774_s29  ;;  %v11251_v45 = vpop.f32.mrf.mxu0  ;;  %v8137_v19 = vld [vmem:[%s8878_s26 + $0xdd] sm:$0xff]  ;;  %v11259_v4 = vpop.f32.mrf.mxu1  ;;  %v8164_v28 = vld [vmem:[%s8878_s26 + $0xc9] sm:$0xff] }
 0x34d   : > { %v3398_v30 = vpop.permute.xlu0 %3397  ;;  %v3400_v47 = vpop.permute.xlu1 %3399  ;;  %v8196_v22 = vld [vmem:[%s8878_s26 + $0xcb] sm:$0xff] }
 0x34e   : > { %v2627_v35 = vmax.f32 %v2566_v34, 0.0  ;;  %3485 = vst.msk [vmem:[#allocation2 + $0xc0] sm:$0xff] %vm1303_vm3, %v3398_v30  ;;  %4467 = vmatmul.f32.gmra.mxu2 %v4220_v20  ;;  %v3420_v39 = vpop.permute.xlu2 %3419  ;;  %v11316_v8 = vpop.f32.mrf.mxu2 }
 0x34f   : > { %3486 = vst.msk [vmem:[#allocation2 + $0xd8] sm:$0xff] %vm1303_vm3, %v3400_v47 }
 0x350   : > { %2758 = vmatmul.f32.gmra.mxu1 %v2627_v35  ;;  %3496 = vst.msk [vmem:[#allocation2 + $0x1c8] sm:$0xff] %vm1303_vm3, %v3420_v39  ;;  %v11314_v35 = vld [vmem:[%s8878_s26 + $0xfb] sm:$0xff] }
 0x351   : > { %v2455_v62 = vpop.f32.mrf.mxu3  ;;  %3552 = vst.msk [vmem:[#allocation2 + $0x110] sm:$0xff] %vm289_vm0, %v8196_v22  ;;  %v4229_v39 = vld [vmem:[#allocation2 + $0x78] sm:$0xff] }
 0x352   : > { %v2456_v12 = vadd.f32 %v2455_v62, %v2343_v43  ;;  %3556 = vst.msk [vmem:[#allocation2 + $0x170] sm:$0xff] %vm289_vm0, %v11314_v35 }
 0x353   : > { %4030 = vrot.lane.b32.xlu0 %v11191_v5, %s8775_s9  ;;  %3661 = vrot.lane.b32.xlu1 %v8137_v19, %s8773_s28 }
 0x354   : > { %v2569_v26 = vadd.f32 %v2568_v54, %v2456_v12  ;;  %3840 = vrot.lane.b32.xlu2 %v8162_v3, %s8774_s29  ;;  %v11273_v5 = vpop.f32.mrf.mxu0  ;;  %v11291_v50 = vpop.f32.mrf.mxu1  ;;  %v2352_v12 = vadd.f32 %v11278_v31, %v11257_v10  ;;  %v8139_v3 = vld [vmem:[%s8878_s26 + $0xf5] sm:$0xff] }
 0x355   : > { %v3404_v57 = vpop.permute.xlu0 %3403  ;;  %v3406_v40 = vpop.permute.xlu1 %3405 }
 0x356   : > { %v2628_v32 = vmax.f32 %v2569_v26, 0.0  ;;  %3488 = vst.msk [vmem:[#allocation2 + $0x108] sm:$0xff] %vm1303_vm3, %v3404_v57  ;;  %4470 = vmatmul.f32.gmra.mxu2 %v4223_v42  ;;  %v3426_v54 = vpop.permute.xlu2 %3425  ;;  %v8165_v26 = vld [vmem:[%s8878_s26 + $0xd9] sm:$0xff] }
 0x357   : > { %3489 = vst.msk [vmem:[#allocation2 + $0x120] sm:$0xff] %vm1303_vm3, %v3406_v40  ;;  %v8197_v57 = vld [vmem:[%s8878_s26 + $0xdb] sm:$0xff] }
 0x358   : > { %2761 = vmatmul.f32.gmra.mxu1 %v2628_v32  ;;  %3499 = vst.msk [vmem:[#allocation2 + $0x210] sm:$0xff] %vm1303_vm3, %v3426_v54  ;;  %v11335_v54 = vld [vmem:[%s8878_s26 + $0x10b] sm:$0xff] }
 0x359   : > { %v2458_v61 = vpop.f32.mrf.mxu3  ;;  %3553 = vst.msk [vmem:[#allocation2 + $0x128] sm:$0xff] %vm289_vm0, %v8197_v57 }
 0x35a   : > { %v2459_v41 = vadd.f32 %v2458_v61, %v2346_v55  ;;  %3557 = vst.msk [vmem:[#allocation2 + $0x188] sm:$0xff] %vm289_vm0, %v11335_v54 }
 0x35b   : > { %4032 = vrot.lane.b32.xlu0 %v11210_v14, %s8775_s9  ;;  %3842 = vrot.lane.b32.xlu1 %v8163_v37, %s8774_s29  ;;  %v4232_v37 = vld [vmem:[#allocation2 + $0x90] sm:$0xff] }
 0x35c   : > { %v2572_v7 = vadd.f32 %v2571_v21, %v2459_v41  ;;  %4034 = vrot.lane.b32.xlu2 %v8195_v29, %s8775_s9  ;;  %v11301_v21 = vpop.f32.mrf.mxu0  ;;  %v11321_v43 = vpop.f32.mrf.mxu1  ;;  %v8284_v41 = vld [vmem:[%s13865_s2 + $0x218] sm:$0xff] }
 0x35d   : > { %v3410_v24 = vpop.permute.xlu0 %3409  ;;  %v3412_v14 = vpop.permute.xlu1 %3411  ;;  %13937 = vst [vmem:[#allocation20_spill] sm:$0xff] %v11321_v43  ;;  %4558 = vmatpush.msra.mxu3 %v8284_v41  ;;  %v8278_v41 = vld [vmem:[%s13865_s2 + $0x1e8] sm:$0xff] }
 0x35e   : > { %v2629_v0 = vmax.f32 %v2572_v7, 0.0  ;;  %3491 = vst.msk [vmem:[#allocation2 + $0x150] sm:$0xff] %vm1303_vm3, %v3410_v24  ;;  %4473 = vmatmul.f32.gmra.mxu2 %v4226_v49  ;;  %v3432_v38 = vpop.permute.xlu2 %3431  ;;  %v8093_v7 = vld [vmem:[%s8878_s26 + $0x4b] sm:$0xff]  ;;  %v11348_v24 = vpop.f32.mrf.mxu2  ;;  %v8094_v49 = vld [vmem:[%s8878_s26 + $0x53] sm:$0xff] }
 0x35f   : > { %3492 = vst.msk [vmem:[#allocation2 + $0x168] sm:$0xff] %vm1303_vm3, %v3412_v14 }
 0x360   : > { %2764 = vmatmul.f32.gmra.mxu1 %v2629_v0  ;;  %3502 = vst.msk [vmem:[#allocation2 + $0x258] sm:$0xff] %vm1303_vm3, %v3432_v38  ;;  %v2355_v0 = vadd.f32 %v11278_v31, %v11286_v6  ;;  %v8166_v38 = vld [vmem:[%s8878_s26 + $0xe1] sm:$0xff] }
 0x361   : > { %v2461_v34 = vpop.f32.mrf.mxu3  ;;  %3541 = vst.msk [vmem:[#allocation2 + $0x8] sm:$0xff] %vm289_vm0, %v8093_v7 }
 0x362   : > { %v2462_v30 = vadd.f32 %v2461_v34, %v2349_v23  ;;  %v8095_v23 = vld [vmem:[%s8878_s26 + $0x63] sm:$0xff]  ;;  %3542 = vst.msk [vmem:[#allocation2 + $0x20] sm:$0xff] %vm289_vm0, %v8094_v49  ;;  %v8283_v34 = vld [vmem:[%s13865_s2 + $0x210] sm:$0xff] }
 0x363   : > { %3663 = vrot.lane.b32.xlu0 %v8138_v36, %s8773_s28  ;;  %3844 = vrot.lane.b32.xlu1 %v8164_v28, %s8774_s29  ;;  %3543 = vst.msk [vmem:[#allocation2 + $0x38] sm:$0xff] %vm289_vm0, %v8095_v23  ;;  %v2361_v23 = vadd.f32 %v11278_v31, %v11348_v24  ;;  %v8288_v24 = vld [vmem:[%s13865_s2 + $0x238] sm:$0xff] }
 0x364   : > { %v2575_v20 = vadd.f32 %v11251_v45, %v2462_v30  ;;  %4036 = vrot.lane.b32.xlu2 %v8196_v22, %s8775_s9  ;;  %v11331_v32 = vpop.f32.mrf.mxu0  ;;  %v11354_v14 = vpop.f32.mrf.mxu1  ;;  %v8140_v22 = vld [vmem:[%s8878_s26 + $0xfd] sm:$0xff]  ;;  %v11372_v30 = vld [vmem:[%s8878_s26 + $0x113] sm:$0xff]  ;;  %4559 = vmatpush.msra.mxu3 %v8283_v34 }
 0x365   : > { %v3416_v47 = vpop.permute.xlu0 %3415  ;;  %v3418_v45 = vpop.permute.xlu1 %3417  ;;  %13938 = vst [vmem:[#allocation24_spill] sm:$0xff] %v11354_v14  ;;  %4683 = vmatpush.msra.mxu0 %v8288_v24  ;;  %v8287_v24 = vld [vmem:[%s13865_s2 + $0x230] sm:$0xff] }
 0x366   : > { %v2630_v19 = vmax.f32 %v2575_v20, 0.0  ;;  %3494 = vst.msk [vmem:[#allocation2 + $0x198] sm:$0xff] %vm1303_vm3, %v3416_v47  ;;  %4476 = vmatmul.f32.gmra.mxu2 %v4229_v39  ;;  %v3438_v62 = vpop.permute.xlu2 %3437  ;;  %v8282_v47 = vld [vmem:[%s13865_s2 + $0x208] sm:$0xff] }
 0x367   : > { %3495 = vst.msk [vmem:[#allocation2 + $0x1b0] sm:$0xff] %vm1303_vm3, %v3418_v45  ;;  %4560 = vmatpush.msra.mxu3 %v8282_v47  ;;  %v8275_v47 = vld [vmem:[%s13865_s2 + $0x1d0] sm:$0xff]  ;;  %4684 = vmatpush.msra.mxu0 %v8287_v24 }
 0x368   : > { %2767 = vmatmul.f32.gmra.mxu1 %v2630_v19  ;;  %3505 = vst.msk [vmem:[#allocation2 + $0x2a0] sm:$0xff] %vm1303_vm3, %v3438_v62  ;;  %v8281_v62 = vld [vmem:[%s13865_s2 + $0x200] sm:$0xff] }
 0x369   : > { %v2464_v42 = vpop.f32.mrf.mxu3  ;;  %3558 = vst.msk [vmem:[#allocation2 + $0x1a0] sm:$0xff] %vm289_vm0, %v11372_v30  ;;  %4561 = vmatpush.msra.mxu3 %v8281_v62  ;;  %v4241_v62 = vld [vmem:[#allocation2 + $0xd8] sm:$0xff] }
 0x36a   : > { %v2465_v40 = vadd.f32 %v2464_v42, %v2352_v12  ;;  %v2363_v42 = vpop.f32.mrf.mxu2 }
 0x36b   : > { %3665 = vrot.lane.b32.xlu0 %v8139_v3, %s8773_s28  ;;  %3846 = vrot.lane.b32.xlu1 %v8165_v26, %s8774_s29  ;;  %v2358_v3 = vadd.f32 %v11278_v31, %v11316_v8  ;;  %v8167_v26 = vld [vmem:[%s8878_s26 + $0xf1] sm:$0xff] }
 0x36c   : > { %v2578_v10 = vadd.f32 %v11273_v5, %v2465_v40  ;;  %4038 = vrot.lane.b32.xlu2 %v8197_v57, %s8775_s9  ;;  %v11368_v6 = vpop.f32.mrf.mxu0  ;;  %v8280_v57 = vld [vmem:[%s13865_s2 + $0x1f8] sm:$0xff]  ;;  %v8279_v8 = vld [vmem:[%s13865_s2 + $0x1f0] sm:$0xff] }
 0x36d   : > { %v3422_v55 = vpop.permute.xlu0 %3421  ;;  %v3424_v61 = vpop.permute.xlu1 %3423  ;;  %4562 = vmatpush.msra.mxu3 %v8280_v57  ;;  %v2364_v57 = vadd.f32 %v11278_v31, %v2363_v42 }
 0x36e   : > { %v2631_v29 = vmax.f32 %v2578_v10, 0.0  ;;  %3497 = vst.msk [vmem:[#allocation2 + $0x1e0] sm:$0xff] %vm1303_vm3, %v3422_v55  ;;  %4479 = vmatmul.f32.gmra.mxu2 %v4232_v37  ;;  %v3444_v5 = vpop.permute.xlu2 %3443  ;;  %v11395_v10 = vpop.f32.mrf.mxu1  ;;  %v8141_v37 = vld [vmem:[%s8878_s26 + $0x10d] sm:$0xff] }
 0x36f   : > { %3498 = vst.msk [vmem:[#allocation2 + $0x1f8] sm:$0xff] %vm1303_vm3, %v3424_v61  ;;  %4563 = vmatpush.msra.mxu3 %v8279_v8 }
 0x370   : > { %2770 = vmatmul.f32.gmra.mxu1 %v2631_v29  ;;  %3508 = vst.msk [vmem:[#allocation2 + $0x2e8] sm:$0xff] %vm1303_vm3, %v3444_v5  ;;  %v11402_v29 = vld [vmem:[%s8878_s26 + $0x123] sm:$0xff] }
 0x371   : > { %v2467_v36 = vpop.f32.mrf.mxu3  ;;  %3559 = vst.msk [vmem:[#allocation2 + $0x1b8] sm:$0xff] %vm289_vm0, %v11402_v29  ;;  %v4238_v5 = vld [vmem:[#allocation2 + $0xc0] sm:$0xff]  ;;  %4564 = vmatpush.msra.mxu3 %v8278_v41  ;;  %v8271_v41 = vld [vmem:[%s13865_s2 + $0x1b0] sm:$0xff] }
 0x372   : > { %v2468_v28 = vadd.f32 %v2467_v36, %v2355_v0  ;;  %v8168_v36 = vld [vmem:[%s8878_s26 + $0xf9] sm:$0xff] }
 0x373   : > { %3848 = vrot.lane.b32.xlu0 %v8166_v38, %s8774_s29  ;;  %4040 = vrot.lane.b32.xlu1 %v11266_v60, %s8775_s9  ;;  %v4235_v60 = vld [vmem:[#allocation2 + $0xa8] sm:$0xff] }
 0x374   : > { %v2581_v20 = vadd.f32 %v11301_v21, %v2468_v28  ;;  %3667 = vrot.lane.b32.xlu2 %v8140_v22, %s8773_s28  ;;  %v8096_v21 = vld [vmem:[%s8878_s26 + $0x6b] sm:$0xff]  ;;  %v2589_v49 = vpop.f32.mrf.mxu0  ;;  %v8276_v28 = vld [vmem:[%s13865_s2 + $0x1d8] sm:$0xff] }
 0x375   : > { %v3428_v39 = vpop.permute.xlu0 %3427  ;;  %v3430_v45 = vpop.permute.xlu1 %3429  ;;  %3544 = vst.msk [vmem:[#allocation2 + $0x50] sm:$0xff] %vm289_vm0, %v8096_v21 }
 0x376   : > { %v2632_v19 = vmax.f32 %v2581_v20, 0.0  ;;  %3500 = vst.msk [vmem:[#allocation2 + $0x228] sm:$0xff] %vm1303_vm3, %v3428_v39  ;;  %4482 = vmatmul.f32.gmra.mxu2 %v4235_v60  ;;  %v3642_v12 = vpop.permute.xlu2 %3641  ;;  %v8169_v20 = vld [vmem:[%s8878_s26 + $0x109] sm:$0xff]  ;;  %v2366_v39 = vpop.f32.mrf.mxu2 }
 0x377   : > { %3501 = vst.msk [vmem:[#allocation2 + $0x240] sm:$0xff] %vm1303_vm3, %v3430_v45  ;;  %v11436_v60 = vpop.f32.mrf.mxu1  ;;  %v8274_v45 = vld [vmem:[%s13865_s2 + $0x1c8] sm:$0xff] }
 0x378   : > { %2773 = vmatmul.f32.gmra.mxu1 %v2632_v19  ;;  %3735 = vst.msk [vmem:[#allocation2 + $0x38] sm:$0xff] %vm917_vm1, %v3642_v12 }
 0x379   : > { %v2470_v40 = vpop.f32.mrf.mxu3 }
 0x37a   : > { %v2471_v55 = vadd.f32 %v2470_v40, %v2358_v3  ;;  %v8142_v40 = vld [vmem:[%s8878_s26 + $0x115] sm:$0xff] }
 0x37b   : > { %3850 = vrot.lane.b32.xlu0 %v8167_v26, %s8774_s29  ;;  %4042 = vrot.lane.b32.xlu1 %v11294_v13, %s8775_s9 }
 0x37c   : > { %v2584_v61 = vadd.f32 %v11331_v32, %v2471_v55  ;;  %3669 = vrot.lane.b32.xlu2 %v8141_v37, %s8773_s28  ;;  %v8277_v32 = vld [vmem:[%s13865_s2 + $0x1e0] sm:$0xff]  ;;  %v2592_v3 = vpop.f32.mrf.mxu0  ;;  %v8272_v55 = vld [vmem:[%s13865_s2 + $0x1b8] sm:$0xff] }
 0x37d   : > { %v3434_v7 = vpop.permute.xlu0 %3433  ;;  %v3436_v13 = vpop.permute.xlu1 %3435  ;;  %4565 = vmatpush.msra.mxu3 %v8277_v32 }
 0x37e   : > { %v2633_v0 = vmax.f32 %v2584_v61, 0.0  ;;  %3503 = vst.msk [vmem:[#allocation2 + $0x270] sm:$0xff] %vm1303_vm3, %v3434_v7  ;;  %4485 = vmatmul.f32.gmra.mxu2 %v4238_v5  ;;  %v3648_v38 = vpop.permute.xlu2 %3647  ;;  %v8170_v61 = vld [vmem:[%s8878_s26 + $0x111] sm:$0xff]  ;;  %v8270_v7 = vld [vmem:[%s13865_s2 + $0x1a8] sm:$0xff]  ;;  %v2369_v5 = vpop.f32.mrf.mxu2 }
 0x37f   : > { %3504 = vst.msk [vmem:[#allocation2 + $0x288] sm:$0xff] %vm1303_vm3, %v3436_v13  ;;  %4566 = vmatpush.msra.mxu3 %v8276_v28  ;;  %v4244_v13 = vld [vmem:[#allocation2 + $0xf0] sm:$0xff]  ;;  %v11465_v32 = vpop.f32.mrf.mxu1  ;;  %v8143_v28 = vld [vmem:[%s8878_s26 + $0x125] sm:$0xff] }
 0x380   : > { %2776 = vmatmul.f32.gmra.mxu1 %v2633_v0  ;;  %3738 = vst.msk [vmem:[#allocation2 + $0x80] sm:$0xff] %vm917_vm1, %v3648_v38 }
 0x381   : > { %v2473_v22 = vpop.f32.mrf.mxu3  ;;  %4567 = vmatpush.msra.mxu3 %v8275_v47  ;;  %v8171_v47 = vld [vmem:[%s8878_s26 + $0x121] sm:$0xff] }
 0x382   : > { %v2474_v34 = vadd.f32 %v2473_v22, %v2361_v23 }
 0x383   : > { %3852 = vrot.lane.b32.xlu0 %v8168_v36, %s8774_s29  ;;  %4044 = vrot.lane.b32.xlu1 %v11314_v35, %s8775_s9  ;;  %v2367_v36 = vadd.f32 %v11278_v31, %v2366_v39  ;;  %v11483_v39 = vld [vmem:[%s8878_s26 + $0x153] sm:$0xff] }
 0x384   : > { %v2587_v19 = vadd.f32 %v11368_v6, %v2474_v34  ;;  %3854 = vrot.lane.b32.xlu2 %v8169_v20, %s8774_s29  ;;  %4568 = vmatpush.msra.mxu3 %v8274_v45  ;;  %v8273_v6 = vld [vmem:[%s13865_s2 + $0x1c0] sm:$0xff]  ;;  %v2595_v34 = vpop.f32.mrf.mxu0  ;;  %v8286_v45 = vld [vmem:[%s13865_s2 + $0x228] sm:$0xff]  ;;  %3563 = vst.msk [vmem:[#allocation2 + $0x218] sm:$0xff] %vm289_vm0, %v11483_v39 }
 0x385   : > { %v3440_v21 = vpop.permute.xlu0 %3439  ;;  %v3442_v35 = vpop.permute.xlu1 %3441  ;;  %4685 = vmatpush.msra.mxu0 %v8286_v45  ;;  %v8206_v45 = vld [vmem:[%s8878_s26 + $0x143] sm:$0xff] }
 0x386   : > { %v2634_v12 = vmax.f32 %v2587_v19, 0.0  ;;  %3506 = vst.msk [vmem:[#allocation2 + $0x2b8] sm:$0xff] %vm1303_vm3, %v3440_v21  ;;  %4488 = vmatmul.f32.gmra.mxu2 %v4241_v62  ;;  %v3654_v26 = vpop.permute.xlu2 %3653  ;;  %4569 = vmatpush.msra.mxu3 %v8273_v6  ;;  %v4247_v62 = vld [vmem:[#allocation2 + $0x108] sm:$0xff]  ;;  %v2372_v6 = vpop.f32.mrf.mxu2 }
 0x387   : > { %3507 = vst.msk [vmem:[#allocation2 + $0x2d0] sm:$0xff] %vm1303_vm3, %v3442_v35  ;;  %v8285_v35 = vld [vmem:[%s13865_s2 + $0x220] sm:$0xff] }
 0x388   : > { %2779 = vmatmul.f32.gmra.mxu1 %v2634_v12  ;;  %3741 = vst.msk [vmem:[#allocation2 + $0xc8] sm:$0xff] %vm917_vm1, %v3654_v26  ;;  %4570 = vmatpush.msra.mxu3 %v8272_v55  ;;  %v4216_v26 = vld [vmem:[#allocation2 + $0x10] sm:$0xff]  ;;  %v11498_v55 = vpop.f32.mrf.mxu1 }
 0x389   : > { %v2476_v37 = vpop.f32.mrf.mxu3  ;;  %4686 = vmatpush.msra.mxu0 %v8285_v35  ;;  %3562 = vst.msk [vmem:[#allocation2 + $0x200] sm:$0xff] %vm289_vm0, %v8206_v45 }
 0x38a   : > { %v2477_v8 = vadd.f32 %v2476_v37, %v2364_v57  ;;  %4571 = vmatpush.msra.mxu3 %v8271_v41  ;;  %v8497_v57 = vld [vmem:[%s8878_s26 + $0x96] sm:$0xff]  ;;  %v8172_v37 = vld [vmem:[%s8878_s26 + $0x129] sm:$0xff]  ;;  %8289 = vmatmul.msk.f32.vlgmr.msra.gmra.mxu0 %vm289_vm0, %v4216_v26 }
 0x38b   : > { %4046 = vrot.lane.b32.xlu0 %v11335_v54, %s8775_s9  ;;  %3671 = vrot.lane.b32.xlu1 %v8142_v40, %s8773_s28  ;;  %v2370_v40 = vadd.f32 %v11278_v31, %v2369_v5  ;;  %6355 = vst.msk [vmem:[#allocation2 + $0x10] sm:$0xff] %vm289_vm0, %v8497_v57  ;;  %v11510_v5 = vld [vmem:[%s8878_s26 + $0x15b] sm:$0xff] }
 0x38c   : > { %v2590_v42 = vadd.f32 %v2589_v49, %v2477_v8  ;;  %3856 = vrot.lane.b32.xlu2 %v8170_v61, %s8774_s29  ;;  %4572 = vmatpush.msra.mxu3 %v8270_v7  ;;  %v8269_v49 = vld [vmem:[%s13865_s2 + $0x1a0] sm:$0xff]  ;;  %v8204_v61 = vld [vmem:[%s8878_s26 + $0x12b] sm:$0xff]  ;;  %3564 = vst.msk [vmem:[#allocation2 + $0x230] sm:$0xff] %vm289_vm0, %v11510_v5 }
 0x38d   : > { %v3638_v0 = vpop.permute.xlu0 %3637  ;;  %v3640_v54 = vpop.permute.xlu1 %3639  ;;  %3560 = vst.msk [vmem:[#allocation2 + $0x1d0] sm:$0xff] %vm289_vm0, %v8204_v61  ;;  %v4222_v57 = vld [vmem:[#allocation2 + $0x40] sm:$0xff] }
 0x38e   : > { %v2635_v38 = vmax.f32 %v2590_v42, 0.0  ;;  %3733 = vst.msk [vmem:[#allocation2 + $0x8] sm:$0xff] %vm917_vm1, %v3638_v0  ;;  %4491 = vmatmul.f32.gmra.mxu2 %v4244_v13  ;;  %v3656_v23 = vpop.permute.xlu2 %3655  ;;  %4573 = vmatpush.msra.mxu3 %v8269_v49  ;;  %v2598_v42 = vpop.f32.mrf.mxu0  ;;  %v4250_v13 = vld [vmem:[#allocation2 + $0x120] sm:$0xff]  ;;  %v4219_v49 = vld [vmem:[#allocation2 + $0x28] sm:$0xff] }
 0x38f   : > { %3734 = vst.msk [vmem:[#allocation2 + $0x20] sm:$0xff] %vm917_vm1, %v3640_v54 }
 0x390   : > { %2782 = vmatmul.f32.gmra.mxu1 %v2635_v38  ;;  %3742 = vst.msk [vmem:[#allocation2 + $0xe0] sm:$0xff] %vm917_vm1, %v3656_v23  ;;  %v8498_v23 = vld [vmem:[%s8878_s26 + $0x9e] sm:$0xff]  ;;  %v11525_v24 = vpop.f32.mrf.mxu1 }
 0x391   : > { %v2479_v22 = vpop.f32.mrf.mxu3  ;;  %6356 = vst.msk [vmem:[#allocation2 + $0x28] sm:$0xff] %vm289_vm0, %v8498_v23 }
 0x392   : > { %v2480_v20 = vadd.f32 %v2479_v22, %v2367_v36  ;;  %v2373_v36 = vadd.f32 %v11278_v31, %v2372_v6  ;;  %v8173_v22 = vld [vmem:[%s8878_s26 + $0x139] sm:$0xff]  ;;  %8290 = vmatmul.msk.f32.gmra.mxu0 %vm289_vm0, %v4219_v49 }
 0x393   : > { %4048 = vrot.lane.b32.xlu0 %v11372_v30, %s8775_s9  ;;  %3673 = vrot.lane.b32.xlu1 %v8143_v28, %s8773_s28  ;;  %v8144_v28 = vld [vmem:[%s8878_s26 + $0x12d] sm:$0xff] }
 0x394   : > { %v2593_v19 = vadd.f32 %v2592_v3, %v2480_v20  ;;  %3858 = vrot.lane.b32.xlu2 %v8171_v47, %s8774_s29  ;;  %v8205_v47 = vld [vmem:[%s8878_s26 + $0x13b] sm:$0xff] }
 0x395   : > { %v3644_v21 = vpop.permute.xlu0 %3643  ;;  %v3646_v12 = vpop.permute.xlu1 %3645  ;;  %3561 = vst.msk [vmem:[#allocation2 + $0x1e8] sm:$0xff] %vm289_vm0, %v8205_v47 }
 0x396   : > { %v2636_v30 = vmax.f32 %v2593_v19, 0.0  ;;  %3736 = vst.msk [vmem:[#allocation2 + $0x50] sm:$0xff] %vm917_vm1, %v3644_v21  ;;  %4494 = vmatmul.f32.gmra.mxu2 %v4247_v62  ;;  %v3658_v3 = vpop.permute.xlu2 %3657  ;;  %v11532_v62 = vld [vmem:[%s8878_s26 + $0x16b] sm:$0xff]  ;;  %v2601_v35 = vpop.f32.mrf.mxu0 }
 0x397   : > { %3737 = vst.msk [vmem:[#allocation2 + $0x68] sm:$0xff] %vm917_vm1, %v3646_v12  ;;  %v4253_v12 = vld [vmem:[#allocation2 + $0x138] sm:$0xff] }
 0x398   : > { %2785 = vmatmul.f32.gmra.mxu1 %v2636_v30  ;;  %3743 = vst.msk [vmem:[#allocation2 + $0xf8] sm:$0xff] %vm917_vm1, %v3658_v3 }
 0x399   : > { %v2482_v8 = vpop.f32.mrf.mxu3  ;;  %3565 = vst.msk [vmem:[#allocation2 + $0x248] sm:$0xff] %vm289_vm0, %v11532_v62 }
 0x39a   : > { %v2483_v41 = vadd.f32 %v2482_v8, %v2370_v40  ;;  %v8499_v40 = vld [vmem:[%s8878_s26 + $0xae] sm:$0xff]  ;;  %v8145_v8 = vld [vmem:[%s8878_s26 + $0x13d] sm:$0xff]  ;;  %8291 = vmatmul.msk.f32.gmra.mxu0 %vm289_vm0, %v4222_v57 }
 0x39b   : > { %4050 = vrot.lane.b32.xlu0 %v11402_v29, %s8775_s9  ;;  %3860 = vrot.lane.b32.xlu1 %v8172_v37, %s8774_s29  ;;  %6357 = vst.msk [vmem:[#allocation2 + $0x40] sm:$0xff] %vm289_vm0, %v8499_v40 }
 0x39c   : > { %v2596_v7 = vadd.f32 %v2595_v34, %v2483_v41  ;;  %4052 = vrot.lane.b32.xlu2 %v8204_v61, %s8775_s9  ;;  %v2375_v34 = vpop.f32.mrf.mxu2  ;;  %v8174_v61 = vld [vmem:[%s8878_s26 + $0x141] sm:$0xff] }
 0x39d   : > { %v3650_v0 = vpop.permute.xlu0 %3649  ;;  %v3652_v29 = vpop.permute.xlu1 %3651  ;;  %v2376_v37 = vadd.f32 %v11278_v31, %v2375_v34  ;;  %v4225_v34 = vld [vmem:[#allocation2 + $0x58] sm:$0xff] }
 0x39e   : > { %v2637_v38 = vmax.f32 %v2596_v7, 0.0  ;;  %3739 = vst.msk [vmem:[#allocation2 + $0x98] sm:$0xff] %vm917_vm1, %v3650_v0  ;;  %4497 = vmatmul.f32.gmra.mxu2 %v4250_v13  ;;  %v3837_v54 = vpop.permute.xlu2 %3836  ;;  %v11548_v7 = vld [vmem:[%s8878_s26 + $0x173] sm:$0xff]  ;;  %v11554_v13 = vpop.f32.mrf.mxu1 }
 0x39f   : > { %3740 = vst.msk [vmem:[#allocation2 + $0xb0] sm:$0xff] %vm917_vm1, %v3652_v29 }
 0x3a0   : > { %2788 = vmatmul.f32.gmra.mxu1 %v2637_v38  ;;  %3929 = vst.msk [vmem:[#allocation2 + $0x50] sm:$0xff] %vm1110_vm2, %v3837_v54  ;;  %v4256_v54 = vld [vmem:[#allocation2 + $0x150] sm:$0xff] }
 0x3a1   : > { %v2485_v20 = vpop.f32.mrf.mxu3  ;;  %3566 = vst.msk [vmem:[#allocation2 + $0x260] sm:$0xff] %vm289_vm0, %v11548_v7 }
 0x3a2   : > { %v2486_v19 = vadd.f32 %v2485_v20, %v2373_v36  ;;  %8292 = vmatmul.msk.f32.gmra.mxu0 %vm289_vm0, %v4225_v34 }
 0x3a3   : > { %3675 = vrot.lane.b32.xlu0 %v8144_v28, %s8773_s28  ;;  %3862 = vrot.lane.b32.xlu1 %v8173_v22, %s8774_s29  ;;  %v2604_v28 = vpop.f32.mrf.mxu0 }
 0x3a4   : > { %v2599_v21 = vadd.f32 %v2598_v42, %v2486_v19  ;;  %4054 = vrot.lane.b32.xlu2 %v8205_v47, %s8775_s9  ;;  %v2378_v0 = vpop.f32.mrf.mxu2  ;;  %v8175_v47 = vld [vmem:[%s8878_s26 + $0x151] sm:$0xff] }
 0x3a5   : > { %v3831_v30 = vpop.permute.xlu0 %3830  ;;  %v4023_v3 = vpop.permute.xlu1 %4022  ;;  %v2379_v20 = vadd.f32 %v11278_v31, %v2378_v0  ;;  %v8500_v19 = vld [vmem:[%s8878_s26 + $0xb6] sm:$0xff]  ;;  %v8501_v0 = vld [vmem:[%s8878_s26 + $0xc6] sm:$0xff] }
 0x3a6   : > { %v2638_v6 = vmax.f32 %v2599_v21, 0.0  ;;  %3926 = vst.msk [vmem:[#allocation2 + $0x8] sm:$0xff] %vm1110_vm2, %v3831_v30  ;;  %4500 = vmatmul.f32.gmra.mxu2 %v4253_v12  ;;  %v3839_v26 = vpop.permute.xlu2 %3838  ;;  %v8146_v30 = vld [vmem:[%s8878_s26 + $0x145] sm:$0xff]  ;;  %v11575_v57 = vpop.f32.mrf.mxu1 }
 0x3a7   : > { %4118 = vst.msk [vmem:[#allocation2 + $0x8] sm:$0xff] %vm1303_vm3, %v4023_v3  ;;  %v11567_v12 = vld [vmem:[%s8878_s26 + $0x183] sm:$0xff] }
 0x3a8   : > { %2791 = vmatmul.f32.gmra.mxu1 %v2638_v6  ;;  %3930 = vst.msk [vmem:[#allocation2 + $0x68] sm:$0xff] %vm1110_vm2, %v3839_v26  ;;  %v4259_v26 = vld [vmem:[#allocation2 + $0x168] sm:$0xff] }
 0x3a9   : > { %v2488_v41 = vpop.f32.mrf.mxu3  ;;  %6358 = vst.msk [vmem:[#allocation2 + $0x58] sm:$0xff] %vm289_vm0, %v8500_v19 }
 0x3aa   : > { %v2489_v42 = vadd.f32 %v2488_v41, %v2376_v37  ;;  %3567 = vst.msk [vmem:[#allocation2 + $0x278] sm:$0xff] %vm289_vm0, %v11567_v12 }
 0x3ab   : > { %3677 = vrot.lane.b32.xlu0 %v8145_v8, %s8773_s28  ;;  %3864 = vrot.lane.b32.xlu1 %v8174_v61, %s8774_s29  ;;  %v4228_v61 = vld [vmem:[#allocation2 + $0x70] sm:$0xff] }
 0x3ac   : > { %v2602_v38 = vadd.f32 %v2601_v35, %v2489_v42  ;;  %4056 = vrot.lane.b32.xlu2 %v8206_v45, %s8775_s9  ;;  %v2381_v6 = vpop.f32.mrf.mxu2  ;;  %v8176_v42 = vld [vmem:[%s8878_s26 + $0x159] sm:$0xff]  ;;  %8293 = vmatmul.msk.f32.gmra.mxu0 %vm289_vm0, %v4228_v61  ;;  %6359 = vst.msk [vmem:[#allocation2 + $0x70] sm:$0xff] %vm289_vm0, %v8501_v0 }
 0x3ad   : > { %v3833_v29 = vpop.permute.xlu0 %3832  ;;  %v4025_v23 = vpop.permute.xlu1 %4024  ;;  %v2382_v41 = vadd.f32 %v11278_v31, %v2381_v6  ;;  %v4265_v6 = vld [vmem:[#allocation2 + $0x198] sm:$0xff] }
 0x3ae   : > { %v2639_v49 = vmax.f32 %v2602_v38, 0.0  ;;  %3927 = vst.msk [vmem:[#allocation2 + $0x20] sm:$0xff] %vm1110_vm2, %v3833_v29  ;;  %4503 = vmatmul.f32.gmra.mxu2 %v4256_v54  ;;  %v4215_v36 = vld [vmem:[#allocation2 + $0x8] sm:$0xff]  ;;  %v3841_v22 = vpop.permute.xlu2 %3840  ;;  %v2607_v29 = vpop.f32.mrf.mxu0  ;;  %v8148_v61 = vld [vmem:[%s8878_s26 + $0x15d] sm:$0xff] }
 0x3af   : > { %4119 = vst.msk [vmem:[#allocation2 + $0x20] sm:$0xff] %vm1303_vm3, %v4025_v23  ;;  %4574 = vmatmul.f32.vlgmr.msra.gmra.mxu3 %v4215_v36  ;;  %v11588_v23 = vld [vmem:[%s8878_s26 + $0x18b] sm:$0xff]  ;;  %v11600_v19 = vpop.f32.mrf.mxu1 }
 0x3b0   : > { %2794 = vmatmul.f32.gmra.mxu1 %v2639_v49  ;;  %3931 = vst.msk [vmem:[#allocation2 + $0x80] sm:$0xff] %vm1110_vm2, %v3841_v22  ;;  %v8147_v49 = vld [vmem:[%s8878_s26 + $0x155] sm:$0xff] }
 0x3b1   : > { %v2491_v45 = vpop.f32.mrf.mxu3  ;;  %3568 = vst.msk [vmem:[#allocation2 + $0x290] sm:$0xff] %vm289_vm0, %v11588_v23 }
 0x3b2   : > { %v2492_v21 = vadd.f32 %v2491_v45, %v2379_v20  ;;  %v8177_v45 = vld [vmem:[%s8878_s26 + $0x169] sm:$0xff] }
 0x3b3   : > { %3866 = vrot.lane.b32.xlu0 %v8175_v47, %s8774_s29  ;;  %4058 = vrot.lane.b32.xlu1 %v11483_v39, %s8775_s9  ;;  %v4231_v47 = vld [vmem:[#allocation2 + $0x88] sm:$0xff] }
 0x3b4   : > { %v2605_v35 = vadd.f32 %v2604_v28, %v2492_v21  ;;  %3679 = vrot.lane.b32.xlu2 %v8146_v30, %s8773_s28  ;;  %v4262_v28 = vld [vmem:[#allocation2 + $0x180] sm:$0xff]  ;;  %v8502_v21 = vld [vmem:[%s8878_s26 + $0xce] sm:$0xff]  ;;  %8294 = vmatmul.msk.f32.gmra.mxu0 %vm289_vm0, %v4231_v47  ;;  %v8505_v47 = vld [vmem:[%s8878_s26 + $0xf6] sm:$0xff] }
 0x3b5   : > { %v3835_v3 = vpop.permute.xlu0 %3834  ;;  %v4027_v37 = vpop.permute.xlu1 %4026  ;;  %6360 = vst.msk [vmem:[#allocation2 + $0x88] sm:$0xff] %vm289_vm0, %v8502_v21  ;;  %v8178_v30 = vld [vmem:[%s8878_s26 + $0x171] sm:$0xff]  ;;  %v8214_v21 = vld [vmem:[%s8878_s26 + $0x1a3] sm:$0xff] }
 0x3b6   : > { %v2640_v40 = vmax.f32 %v2605_v35, 0.0  ;;  %3928 = vst.msk [vmem:[#allocation2 + $0x38] sm:$0xff] %vm1110_vm2, %v3835_v3  ;;  %4506 = vmatmul.f32.gmra.mxu2 %v4259_v26  ;;  %v4218_v39 = vld [vmem:[#allocation2 + $0x20] sm:$0xff]  ;;  %v11579_v8 = vpop.permute.xlu2 %4034 }
 0x3b7   : > { %4120 = vst.msk [vmem:[#allocation2 + $0x38] sm:$0xff] %vm1303_vm3, %v4027_v37  ;;  %4577 = vmatmul.f32.gmra.mxu3 %v4218_v39  ;;  %v4234_v37 = vld [vmem:[#allocation2 + $0xa0] sm:$0xff] }
 0x3b8   : > { %2797 = vmatmul.f32.gmra.mxu1 %v2640_v40  ;;  %v8503_v39 = vld [vmem:[%s8878_s26 + $0xde] sm:$0xff]  ;;  %3570 = vst.msk [vmem:[#allocation2 + $0x2c0] sm:$0xff] %vm289_vm0, %v8214_v21 }
 0x3b9   : > { %v2494_v38 = vpop.f32.mrf.mxu3  ;;  %6361 = vst.msk [vmem:[#allocation2 + $0xa0] sm:$0xff] %vm289_vm0, %v8503_v39  ;;  %v8182_v39 = vld [vmem:[%s8878_s26 + $0x1a1] sm:$0xff] }
 0x3ba   : > { %v2495_v54 = vadd.f32 %v2494_v38, %v2382_v41 }
 0x3bb   : > { %3868 = vrot.lane.b32.xlu0 %v8176_v42, %s8774_s29  ;;  %4060 = vrot.lane.b32.xlu1 %v11510_v5, %s8775_s9  ;;  %v4268_v42 = vld [vmem:[#allocation2 + $0x1b0] sm:$0xff] }
 0x3bc   : > { %v2608_v31 = vadd.f32 %v2607_v29, %v2495_v54  ;;  %3681 = vrot.lane.b32.xlu2 %v8147_v49, %s8773_s28  ;;  %8295 = vmatmul.msk.f32.gmra.mxu0 %vm289_vm0, %v4234_v37  ;;  %v4237_v54 = vld [vmem:[#allocation2 + $0xb8] sm:$0xff]  ;;  %v8504_v49 = vld [vmem:[%s8878_s26 + $0xe6] sm:$0xff] }
 0x3bd   : > { %v4029_v36 = vpop.permute.xlu0 %4028  ;;  %v3660_v34 = vpop.permute.xlu1 %3659  ;;  %6362 = vst.msk [vmem:[#allocation2 + $0xb8] sm:$0xff] %vm289_vm0, %v8504_v49  ;;  %v8150_v37 = vld [vmem:[%s8878_s26 + $0x175] sm:$0xff] }
 0x3be   : > { %v2641_v22 = vmax.f32 %v2608_v31, 0.0  ;;  %4121 = vst.msk [vmem:[#allocation2 + $0x50] sm:$0xff] %vm1303_vm3, %v4029_v36  ;;  %4509 = vmatmul.f32.gmra.mxu2 %v4262_v28  ;;  %v4221_v20 = vld [vmem:[#allocation2 + $0x38] sm:$0xff]  ;;  %v11598_v5 = vpop.permute.xlu2 %4036  ;;  %v8180_v31 = vld [vmem:[%s8878_s26 + $0x189] sm:$0xff] }
 0x3bf   : > { %3744 = vst.msk [vmem:[#allocation2 + $0x110] sm:$0xff] %vm917_vm1, %v3660_v34  ;;  %4580 = vmatmul.f32.gmra.mxu3 %v4221_v20  ;;  %v8213_v36 = vld [vmem:[%s8878_s26 + $0x19b] sm:$0xff]  ;;  %v4240_v20 = vld [vmem:[#allocation2 + $0xd0] sm:$0xff] }
 0x3c0   : > { %2800 = vmatmul.f32.gmra.mxu1 %v2641_v22  ;;  %3569 = vst.msk [vmem:[#allocation2 + $0x2a8] sm:$0xff] %vm289_vm0, %v8213_v36  ;;  %v8183_v49 = vld [vmem:[%s8878_s26 + $0x1b1] sm:$0xff] }
 0x3c1   : > { %6363 = vst.msk [vmem:[#allocation2 + $0xd0] sm:$0xff] %vm289_vm0, %v8505_v47  ;;  %v8184_v47 = vld [vmem:[%s8878_s26 + $0x1b9] sm:$0xff] }
 0x3c3   : > { %3870 = vrot.lane.b32.xlu0 %v8177_v45, %s8774_s29  ;;  %4062 = vrot.lane.b32.xlu1 %v11532_v62, %s8775_s9  ;;  %v8179_v62 = vld [vmem:[%s8878_s26 + $0x181] sm:$0xff]  ;;  %v8181_v45 = vld [vmem:[%s8878_s26 + $0x199] sm:$0xff] }
 0x3c4   : > { %3872 = vrot.lane.b32.xlu2 %v8178_v30, %s8774_s29  ;;  %8296 = vmatmul.msk.f32.gmra.mxu0 %vm289_vm0, %v4237_v54  ;;  %v8151_v54 = vld [vmem:[%s8878_s26 + $0x185] sm:$0xff] }
 0x3c5   : > { %v4031_v35 = vpop.permute.xlu0 %4030  ;;  %v4224_v3 = vld [vmem:[#allocation2 + $0x50] sm:$0xff]  ;;  %v3662_v26 = vpop.permute.xlu1 %3661 }
 0x3c6   : > { %4122 = vst.msk [vmem:[#allocation2 + $0x68] sm:$0xff] %vm1303_vm3, %v4031_v35  ;;  %4512 = vmatmul.f32.gmra.mxu2 %v4265_v6  ;;  %v11613_v40 = vpop.permute.xlu2 %4038 }
 0x3c7   : > { %3745 = vst.msk [vmem:[#allocation2 + $0x128] sm:$0xff] %vm917_vm1, %v3662_v26  ;;  %4583 = vmatmul.f32.gmra.mxu3 %v4224_v3  ;;  %v4243_v3 = vld [vmem:[#allocation2 + $0xe8] sm:$0xff]  ;;  %v8506_v26 = vld [vmem:[%s8878_s26 + $0xfe] sm:$0xff] }
 0x3c8   : > { %6364 = vst.msk [vmem:[#allocation2 + $0xe8] sm:$0xff] %vm289_vm0, %v8506_v26  ;;  %v8185_v26 = vld [vmem:[%s8878_s26 + $0x1c9] sm:$0xff] }
 0x3cb   : > { %4064 = vrot.lane.b32.xlu0 %v11548_v7, %s8775_s9  ;;  %3683 = vrot.lane.b32.xlu1 %v8148_v61, %s8773_s28  ;;  %v8149_v7 = vld [vmem:[%s8878_s26 + $0x16d] sm:$0xff] }
 0x3cc   : > { %3874 = vrot.lane.b32.xlu2 %v8179_v62, %s8774_s29  ;;  %8297 = vmatmul.msk.f32.gmra.mxu0 %vm289_vm0, %v4240_v20  ;;  %v8215_v61 = vld [vmem:[%s8878_s26 + $0x1b3] sm:$0xff] }
 0x3cd   : > { %v4033_v41 = vpop.permute.xlu0 %4032  ;;  %v4227_v0 = vld [vmem:[#allocation2 + $0x68] sm:$0xff]  ;;  %v3843_v38 = vpop.permute.xlu1 %3842  ;;  %3571 = vst.msk [vmem:[#allocation2 + $0x2d8] sm:$0xff] %vm289_vm0, %v8215_v61 }
 0x3ce   : > { %4123 = vst.msk [vmem:[#allocation2 + $0x80] sm:$0xff] %vm1303_vm3, %v4033_v41  ;;  %4515 = vmatmul.f32.gmra.mxu2 %v4268_v42  ;;  %v3668_v29 = vpop.permute.xlu2 %3667  ;;  %v8152_v20 = vld [vmem:[%s8878_s26 + $0x18d] sm:$0xff] }
 0x3cf   : > { %3932 = vst.msk [vmem:[#allocation2 + $0x98] sm:$0xff] %vm1110_vm2, %v3843_v38  ;;  %4586 = vmatmul.f32.gmra.mxu3 %v4227_v0  ;;  %v4246_v38 = vld [vmem:[#allocation2 + $0x100] sm:$0xff] }
 0x3d0   : > { %4124 = vst.msk [vmem:[#allocation2 + $0x98] sm:$0xff] %vm1303_vm3, %v11579_v8  ;;  %v4271_v8 = vld [vmem:[#allocation2 + $0x1c8] sm:$0xff] }
 0x3d1   : > { %3748 = vst.msk [vmem:[#allocation2 + $0x170] sm:$0xff] %vm917_vm1, %v3668_v29  ;;  %v8507_v29 = vld [vmem:[%s8878_s26 + $0x10e] sm:$0xff] }
 0x3d2   : > { %6365 = vst.msk [vmem:[#allocation2 + $0x100] sm:$0xff] %vm289_vm0, %v8507_v29 }
 0x3d3   : > { %4066 = vrot.lane.b32.xlu0 %v11567_v12, %s8775_s9  ;;  %3685 = vrot.lane.b32.xlu1 %v8149_v7, %s8773_s28  ;;  %v8216_v7 = vld [vmem:[%s8878_s26 + $0x1bb] sm:$0xff] }
 0x3d4   : > { %3876 = vrot.lane.b32.xlu2 %v8180_v31, %s8774_s29  ;;  %8298 = vmatmul.msk.f32.gmra.mxu0 %vm289_vm0, %v4243_v3  ;;  %3572 = vst.msk [vmem:[#allocation2 + $0x2f0] sm:$0xff] %vm289_vm0, %v8216_v7  ;;  %v8153_v3 = vld [vmem:[%s8878_s26 + $0x19d] sm:$0xff] }
 0x3d5   : > { %v3664_v28 = vpop.permute.xlu0 %3663  ;;  %v4230_v22 = vld [vmem:[#allocation2 + $0x80] sm:$0xff]  ;;  %v3845_v34 = vpop.permute.xlu1 %3844 }
 0x3d6   : > { %3746 = vst.msk [vmem:[#allocation2 + $0x140] sm:$0xff] %vm917_vm1, %v3664_v28  ;;  %4518 = vmatmul.f32.gmra.mxu2 %v4271_v8  ;;  %v3670_v12 = vpop.permute.xlu2 %3669 }
 0x3d7   : > { %3933 = vst.msk [vmem:[#allocation2 + $0xb0] sm:$0xff] %vm1110_vm2, %v3845_v34  ;;  %4589 = vmatmul.f32.gmra.mxu3 %v4230_v22  ;;  %v4233_v6 = vld [vmem:[#allocation2 + $0x98] sm:$0xff]  ;;  %v11684_v22 = vpop.f32.mrf.mxu2 }
 0x3d8   : > { %4125 = vst.msk [vmem:[#allocation2 + $0xb0] sm:$0xff] %vm1303_vm3, %v11598_v5  ;;  %v4274_v5 = vld [vmem:[#allocation2 + $0x1e0] sm:$0xff] }
 0x3d9   : > { %3749 = vst.msk [vmem:[#allocation2 + $0x188] sm:$0xff] %vm917_vm1, %v3670_v12  ;;  %v4249_v12 = vld [vmem:[#allocation2 + $0x118] sm:$0xff] }
 0x3db   : > { %4068 = vrot.lane.b32.xlu0 %v11588_v23, %s8775_s9  ;;  %3878 = vrot.lane.b32.xlu1 %v8181_v45, %s8774_s29  ;;  %v8508_v45 = vld [vmem:[%s8878_s26 + $0x116] sm:$0xff] }
 0x3dc   : > { %4070 = vrot.lane.b32.xlu2 %v8213_v36, %s8775_s9  ;;  %8299 = vmatmul.msk.f32.gmra.mxu0 %vm289_vm0, %v4246_v38  ;;  %v4280_v36 = vld [vmem:[#allocation2 + $0x210] sm:$0xff]  ;;  %6366 = vst.msk [vmem:[#allocation2 + $0x118] sm:$0xff] %vm289_vm0, %v8508_v45 }
 0x3dd   : > { %v3666_v30 = vpop.permute.xlu0 %3665  ;;  %v3847_v35 = vpop.permute.xlu1 %3846 }
 0x3de   : > { %3747 = vst.msk [vmem:[#allocation2 + $0x158] sm:$0xff] %vm917_vm1, %v3666_v30  ;;  %4521 = vmatmul.f32.gmra.mxu2 %v4274_v5  ;;  %v3855_v23 = vpop.permute.xlu2 %3854  ;;  %v4283_v30 = vld [vmem:[#allocation2 + $0x228] sm:$0xff] }
 0x3df   : > { %3934 = vst.msk [vmem:[#allocation2 + $0xc8] sm:$0xff] %vm1110_vm2, %v3847_v35  ;;  %4592 = vmatmul.f32.gmra.mxu3 %v4233_v6  ;;  %v4236_v42 = vld [vmem:[#allocation2 + $0xb0] sm:$0xff] }
 0x3e0   : > { %4126 = vst.msk [vmem:[#allocation2 + $0xc8] sm:$0xff] %vm1303_vm3, %v11613_v40  ;;  %v4277_v40 = vld [vmem:[#allocation2 + $0x1f8] sm:$0xff] }
 0x3e1   : > { %3938 = vst.msk [vmem:[#allocation2 + $0x128] sm:$0xff] %vm1110_vm2, %v3855_v23  ;;  %v4252_v23 = vld [vmem:[#allocation2 + $0x130] sm:$0xff] }
 0x3e3   : > { %3687 = vrot.lane.b32.xlu0 %v8150_v37, %s8773_s28  ;;  %3880 = vrot.lane.b32.xlu1 %v8182_v39, %s8774_s29  ;;  %v8509_v37 = vld [vmem:[%s8878_s26 + $0x126] sm:$0xff]  ;;  %v11703_v39 = vpop.f32.mrf.mxu2 }
 0x3e4   : > { %4072 = vrot.lane.b32.xlu2 %v8214_v21, %s8775_s9  ;;  %8300 = vmatmul.msk.f32.gmra.mxu0 %vm289_vm0, %v4249_v12  ;;  %6367 = vst.msk [vmem:[#allocation2 + $0x130] sm:$0xff] %vm289_vm0, %v8509_v37  ;;  %v8332_v12 = vld [vmem:[%s13867_s4 + $0x158] sm:$0xff] }
 0x3e5   : > { %v3849_v62 = vpop.permute.xlu0 %3848  ;;  %v4041_v41 = vpop.permute.xlu1 %4040  ;;  %v8511_v37 = vld [vmem:[%s8878_s26 + $0x13e] sm:$0xff] }
 0x3e6   : > { %3935 = vst.msk [vmem:[#allocation2 + $0xe0] sm:$0xff] %vm1110_vm2, %v3849_v62  ;;  %4524 = vmatmul.f32.gmra.mxu2 %v4277_v40  ;;  %v3857_v0 = vpop.permute.xlu2 %3856  ;;  %v8336_v62 = vld [vmem:[%s13867_s4 + $0x178] sm:$0xff]  ;;  %v11711_v40 = vpop.f32.mrf.mxu1 }
 0x3e7   : > { %4127 = vst.msk [vmem:[#allocation2 + $0xe0] sm:$0xff] %vm1303_vm3, %v4041_v41  ;;  %4595 = vmatmul.f32.gmra.mxu3 %v4236_v42  ;;  %v4239_v8 = vld [vmem:[#allocation2 + $0xc8] sm:$0xff]  ;;  %v8335_v41 = vld [vmem:[%s13867_s4 + $0x170] sm:$0xff]  ;;  %4865 = vmatpush.msra.mxu1 %v8336_v62 }
 0x3e8   : > { %3939 = vst.msk [vmem:[#allocation2 + $0x140] sm:$0xff] %vm1110_vm2, %v3857_v0  ;;  %v4286_v0 = vld [vmem:[#allocation2 + $0x240] sm:$0xff]  ;;  %v8155_v62 = vld [vmem:[%s8878_s26 + $0x1b5] sm:$0xff] }
 0x3e9   : > { %4866 = vmatpush.msra.mxu1 %v8335_v41  ;;  %v8187_v41 = vld [vmem:[%s8878_s26 + $0x1e1] sm:$0xff] }
 0x3eb   : > { %3689 = vrot.lane.b32.xlu0 %v8151_v54, %s8773_s28  ;;  %3882 = vrot.lane.b32.xlu1 %v8183_v49, %s8774_s29  ;;  %v8334_v54 = vld [vmem:[%s13867_s4 + $0x168] sm:$0xff] }
 0x3ec   : > { %4074 = vrot.lane.b32.xlu2 %v8215_v61, %s8775_s9  ;;  %8301 = vmatmul.msk.f32.gmra.mxu0 %vm289_vm0, %v4252_v23  ;;  %v8217_v61 = vld [vmem:[%s8878_s26 + $0x1cb] sm:$0xff] }
 0x3ed   : > { %v3851_v31 = vpop.permute.xlu0 %3850  ;;  %v4043_v28 = vpop.permute.xlu1 %4042  ;;  %v8154_v49 = vld [vmem:[%s8878_s26 + $0x1a5] sm:$0xff]  ;;  %4867 = vmatpush.msra.mxu1 %v8334_v54 }
 0x3ee   : > { %3936 = vst.msk [vmem:[#allocation2 + $0xf8] sm:$0xff] %vm1110_vm2, %v3851_v31  ;;  %4527 = vmatmul.f32.gmra.mxu2 %v4280_v36  ;;  %v3859_v34 = vpop.permute.xlu2 %3858  ;;  %v4242_v35 = vld [vmem:[#allocation2 + $0xe0] sm:$0xff]  ;;  %v4255_v31 = vld [vmem:[#allocation2 + $0x148] sm:$0xff]  ;;  %v8186_v36 = vld [vmem:[%s8878_s26 + $0x1d1] sm:$0xff]  ;;  %v11745_v45 = vpop.f32.mrf.mxu1 }
 0x3ef   : > { %4128 = vst.msk [vmem:[#allocation2 + $0xf8] sm:$0xff] %vm1303_vm3, %v4043_v28  ;;  %4598 = vmatmul.f32.gmra.mxu3 %v4239_v8  ;;  %v8510_v28 = vld [vmem:[%s8878_s26 + $0x12e] sm:$0xff]  ;;  %v8333_v8 = vld [vmem:[%s13867_s4 + $0x160] sm:$0xff] }
 0x3f0   : > { %3940 = vst.msk [vmem:[#allocation2 + $0x158] sm:$0xff] %vm1110_vm2, %v3859_v34  ;;  %v8218_v34 = vld [vmem:[%s8878_s26 + $0x1d3] sm:$0xff]  ;;  %4868 = vmatpush.msra.mxu1 %v8333_v8  ;;  %v8330_v23 = vld [vmem:[%s13867_s4 + $0x148] sm:$0xff] }
 0x3f1   : > { %6368 = vst.msk [vmem:[#allocation2 + $0x148] sm:$0xff] %vm289_vm0, %v8510_v28  ;;  %v8326_v28 = vld [vmem:[%s13867_s4 + $0x128] sm:$0xff] }
 0x3f2   : > { %4869 = vmatpush.msra.mxu1 %v8332_v12  ;;  %v4261_v12 = vld [vmem:[#allocation2 + $0x178] sm:$0xff] }
 0x3f3   : > { %3691 = vrot.lane.b32.xlu0 %v8152_v20, %s8773_s28  ;;  %3884 = vrot.lane.b32.xlu1 %v8184_v47, %s8774_s29  ;;  %v11738_v20 = vpop.f32.mrf.mxu2  ;;  %v8331_v47 = vld [vmem:[%s13867_s4 + $0x150] sm:$0xff] }
 0x3f4   : > { %4076 = vrot.lane.b32.xlu2 %v8216_v7, %s8775_s9  ;;  %8302 = vmatmul.msk.f32.gmra.mxu0 %vm289_vm0, %v4255_v31 }
 0x3f5   : > { %v3853_v21 = vpop.permute.xlu0 %3852  ;;  %v4045_v5 = vpop.permute.xlu1 %4044  ;;  %4870 = vmatpush.msra.mxu1 %v8331_v47  ;;  %v8512_v47 = vld [vmem:[%s8878_s26 + $0x146] sm:$0xff] }
 0x3f6   : > { %3937 = vst.msk [vmem:[#allocation2 + $0x110] sm:$0xff] %vm1110_vm2, %v3853_v21  ;;  %4530 = vmatmul.f32.gmra.mxu2 %v4283_v30  ;;  %v11698_v6 = vpop.permute.xlu2 %4052  ;;  %v4245_v29 = vld [vmem:[#allocation2 + $0xf8] sm:$0xff]  ;;  %v11779_v8 = vpop.f32.mrf.mxu1 }
 0x3f7   : > { %4129 = vst.msk [vmem:[#allocation2 + $0x110] sm:$0xff] %vm1303_vm3, %v4045_v5  ;;  %4601 = vmatmul.f32.gmra.mxu3 %v4242_v35  ;;  %v4289_v30 = vld [vmem:[#allocation2 + $0x258] sm:$0xff]  ;;  %4871 = vmatpush.msra.mxu1 %v8330_v23 }
 0x3f8   : > { %6370 = vst.msk [vmem:[#allocation2 + $0x178] sm:$0xff] %vm289_vm0, %v8512_v47  ;;  %v8324_v23 = vld [vmem:[%s13867_s4 + $0x118] sm:$0xff]  ;;  %v4298_v47 = vld [vmem:[#allocation2 + $0x2a0] sm:$0xff] }
 0x3fb   : > { %3693 = vrot.lane.b32.xlu0 %v8153_v3, %s8773_s28  ;;  %3886 = vrot.lane.b32.xlu1 %v8185_v26, %s8774_s29  ;;  %v4258_v26 = vld [vmem:[#allocation2 + $0x160] sm:$0xff] }
 0x3fc   : > { %4078 = vrot.lane.b32.xlu2 %v8217_v61, %s8775_s9  ;;  %v8329_v61 = vld [vmem:[%s13867_s4 + $0x140] sm:$0xff]  ;;  %6369 = vst.msk [vmem:[#allocation2 + $0x160] sm:$0xff] %vm289_vm0, %v8511_v37  ;;  %8303 = vmatmul.msk.f32.gmra.mxu0 %vm289_vm0, %v4258_v26  ;;  %v4295_v37 = vld [vmem:[#allocation2 + $0x288] sm:$0xff] }
 0x3fd   : > { %v4047_v42 = vpop.permute.xlu0 %4046  ;;  %v3672_v38 = vpop.permute.xlu1 %3671  ;;  %4872 = vmatpush.msra.mxu1 %v8329_v61 }
 0x3fe   : > { %4130 = vst.msk [vmem:[#allocation2 + $0x128] sm:$0xff] %vm1303_vm3, %v4047_v42  ;;  %4533 = vmatmul.f32.gmra.mxu2 %v4286_v0  ;;  %v11725_v7 = vpop.permute.xlu2 %4054  ;;  %v4248_v35 = vld [vmem:[#allocation2 + $0x110] sm:$0xff]  ;;  %v8219_v42 = vld [vmem:[%s8878_s26 + $0x1e3] sm:$0xff]  ;;  %v8328_v0 = vld [vmem:[%s13867_s4 + $0x138] sm:$0xff] }
 0x3ff   : > { %3750 = vst.msk [vmem:[#allocation2 + $0x1a0] sm:$0xff] %vm917_vm1, %v3672_v38  ;;  %4604 = vmatmul.f32.gmra.mxu3 %v4245_v29  ;;  %v8327_v38 = vld [vmem:[%s13867_s4 + $0x130] sm:$0xff]  ;;  %4873 = vmatpush.msra.mxu1 %v8328_v0  ;;  %v11772_v29 = vpop.f32.mrf.mxu2 }
 0x401   : > { %4874 = vmatpush.msra.mxu1 %v8327_v38 }
 0x403   : > { %3695 = vrot.lane.b32.xlu0 %v8154_v49, %s8773_s28  ;;  %3888 = vrot.lane.b32.xlu1 %v8186_v36, %s8774_s29  ;;  %v4292_v49 = vld [vmem:[#allocation2 + $0x270] sm:$0xff] }
 0x404   : > { %4080 = vrot.lane.b32.xlu2 %v8218_v34, %s8775_s9  ;;  %4875 = vmatpush.msra.mxu1 %v8326_v28  ;;  %v8321_v28 = vld [vmem:[%s13867_s4 + $0x100] sm:$0xff] }
 0x405   : > { %v4049_v21 = vpop.permute.xlu0 %4048  ;;  %v3674_v5 = vpop.permute.xlu1 %3673  ;;  %v4251_v36 = vld [vmem:[#allocation2 + $0x128] sm:$0xff]  ;;  %8304 = vmatmul.msk.f32.gmra.mxu0 %vm289_vm0, %v4261_v12  ;;  %v8465_v12 = vld [vmem:[%s8878_s26 + $0x93] sm:$0xff] }
 0x406   : > { %4131 = vst.msk [vmem:[#allocation2 + $0x140] sm:$0xff] %vm1303_vm3, %v4049_v21  ;;  %4536 = vmatmul.f32.gmra.mxu2 %v4289_v30  ;;  %v11753_v3 = vpop.permute.xlu2 %4056  ;;  %v8325_v21 = vld [vmem:[%s13867_s4 + $0x120] sm:$0xff] }
 0x407   : > { %3751 = vst.msk [vmem:[#allocation2 + $0x1b8] sm:$0xff] %vm917_vm1, %v3674_v5  ;;  %4607 = vmatmul.f32.gmra.mxu3 %v4248_v35  ;;  %v8156_v30 = vld [vmem:[%s8878_s26 + $0x1bd] sm:$0xff]  ;;  %v8188_v5 = vld [vmem:[%s8878_s26 + $0x1e9] sm:$0xff]  ;;  %4876 = vmatpush.msra.mxu1 %v8325_v21  ;;  %v11809_v0 = vpop.f32.mrf.mxu2 }
 0x408   : > { %v8220_v35 = vld [vmem:[%s8878_s26 + $0x1eb] sm:$0xff] }
 0x409   : > { %4877 = vmatpush.msra.mxu1 %v8324_v23  ;;  %v4267_v23 = vld [vmem:[#allocation2 + $0x1a8] sm:$0xff] }
 0x40b   : > { %3697 = vrot.lane.b32.xlu0 %v8155_v62, %s8773_s28  ;;  %3890 = vrot.lane.b32.xlu1 %v8187_v41, %s8774_s29  ;;  %v11804_v41 = vpop.f32.mrf.mxu0 }
 0x40c   : > { %4082 = vrot.lane.b32.xlu2 %v8219_v42, %s8775_s9  ;;  %v8322_v42 = vld [vmem:[%s13867_s4 + $0x108] sm:$0xff] }
 0x40d   : > { %v4051_v54 = vpop.permute.xlu0 %4050  ;;  %v3861_v31 = vpop.permute.xlu1 %3860  ;;  %v4254_v62 = vld [vmem:[#allocation2 + $0x140] sm:$0xff] }
 0x40e   : > { %4132 = vst.msk [vmem:[#allocation2 + $0x158] sm:$0xff] %vm1303_vm3, %v4051_v54  ;;  %4539 = vmatmul.f32.gmra.mxu2 %v4292_v49  ;;  %v3680_v34 = vpop.permute.xlu2 %3679  ;;  %v4264_v54 = vld [vmem:[#allocation2 + $0x190] sm:$0xff] }
 0x40f   : > { %3941 = vst.msk [vmem:[#allocation2 + $0x170] sm:$0xff] %vm1110_vm2, %v3861_v31  ;;  %4610 = vmatmul.f32.gmra.mxu3 %v4251_v36  ;;  %v8513_v49 = vld [vmem:[%s8878_s26 + $0x156] sm:$0xff]  ;;  %v11816_v31 = vld [vmem:[%s8878_s26 + $0x4e] sm:$0xff]  ;;  %8305 = vmatmul.msk.f32.gmra.mxu0 %vm289_vm0, %v4264_v54 }
 0x410   : > { %4133 = vst.msk [vmem:[#allocation2 + $0x170] sm:$0xff] %vm1303_vm3, %v11698_v6  ;;  %v8323_v6 = vld [vmem:[%s13867_s4 + $0x110] sm:$0xff] }
 0x411   : > { %3754 = vst.msk [vmem:[#allocation2 + $0x200] sm:$0xff] %vm917_vm1, %v3680_v34  ;;  %4878 = vmatpush.msra.mxu1 %v8323_v6  ;;  %v8433_v36 = vld [vmem:[%s8878_s26 + $0x90] sm:$0xff]  ;;  %v11822_v34 = vpop.f32.mrf.mxu1  ;;  %v8514_v6 = vld [vmem:[%s8878_s26 + $0x15e] sm:$0xff] }
 0x412   : > { %6371 = vst.msk [vmem:[#allocation2 + $0x190] sm:$0xff] %vm289_vm0, %v8513_v49 }
 0x413   : > { %3699 = vrot.lane.b32.xlu0 %v8156_v30, %s8773_s28  ;;  %3892 = vrot.lane.b32.xlu1 %v8188_v5, %s8774_s29  ;;  %v11833_v5 = vpop.f32.mrf.mxu0  ;;  %6372 = vst.msk [vmem:[#allocation2 + $0x1a8] sm:$0xff] %vm289_vm0, %v8514_v6  ;;  %v11875_v6 = vld [vmem:[%s13868_s5 + $0x2] ss:$0 sm:$0xff] }
 0x414   : > { %4084 = vrot.lane.b32.xlu2 %v8220_v35, %s8775_s9  ;;  %4879 = vmatpush.msra.mxu1 %v8322_v42 }
 0x415   : > { %v3676_v26 = vpop.permute.xlu0 %3675  ;;  %v3863_v61 = vpop.permute.xlu1 %3862  ;;  %v4257_v30 = vld [vmem:[#allocation2 + $0x158] sm:$0xff] }
 0x416   : > { %3752 = vst.msk [vmem:[#allocation2 + $0x1d0] sm:$0xff] %vm917_vm1, %v3676_v26  ;;  %4542 = vmatmul.f32.gmra.mxu2 %v4295_v37  ;;  %v3682_v38 = vpop.permute.xlu2 %3681  ;;  %4880 = vmatpush.msra.mxu1 %v8321_v28  ;;  %v11840_v26 = vld [vmem:[%s8878_s26 + $0x56] sm:$0xff] }
 0x417   : > { %3942 = vst.msk [vmem:[#allocation2 + $0x188] sm:$0xff] %vm1110_vm2, %v3863_v61  ;;  %4613 = vmatmul.f32.gmra.mxu3 %v4254_v62  ;;  %v8434_v37 = vld [vmem:[%s8878_s26 + $0x98] sm:$0xff]  ;;  %v11843_v61 = vpop.f32.mrf.mxu2  ;;  %8306 = vmatmul.msk.f32.gmra.mxu0 %vm289_vm0, %v4267_v23  ;;  %v4260_v49 = vld [vmem:[#allocation2 + $0x170] sm:$0xff] }
 0x418   : > { %4134 = vst.msk [vmem:[#allocation2 + $0x188] sm:$0xff] %vm1303_vm3, %v11725_v7  ;;  %v8466_v62 = vld [vmem:[%s8878_s26 + $0x9b] sm:$0xff] }
 0x419   : > { %3755 = vst.msk [vmem:[#allocation2 + $0x218] sm:$0xff] %vm917_vm1, %v3682_v38  ;;  %v11849_v42 = vpop.f32.mrf.mxu1  ;;  %v4301_v38 = vld [vmem:[#allocation2 + $0x2b8] sm:$0xff] }
 0x41b   : > { %5810 = vrot.lane.b32.xlu0 %v11816_v31, %s8773_s28  ;;  %6003 = vrot.lane.b32.xlu1 %v8433_v36, %s8774_s29  ;;  %v11856_v36 = vpop.f32.mrf.mxu0 }
 0x41c   : > { %6195 = vrot.lane.b32.xlu2 %v8465_v12, %s8775_s9  ;;  %v4270_v12 = vld [vmem:[#allocation2 + $0x1c0] sm:$0xff] }
 0x41d   : > { %v3678_v7 = vpop.permute.xlu0 %3677  ;;  %v3865_v21 = vpop.permute.xlu1 %3864 }
 0x41e   : > { %3753 = vst.msk [vmem:[#allocation2 + $0x1e8] sm:$0xff] %vm917_vm1, %v3678_v7  ;;  %4545 = vmatmul.f32.gmra.mxu2 %v4298_v47  ;;  %v3873_v35 = vpop.permute.xlu2 %3872  ;;  %v8515_v7 = vld [vmem:[%s8878_s26 + $0x16e] sm:$0xff]  ;;  %v5106_v47 = vld [vmem:[%s8878_s26 + $0x3] sm:$0xff] }
 0x41f   : > { %3943 = vst.msk [vmem:[#allocation2 + $0x1a0] sm:$0xff] %vm1110_vm2, %v3865_v21  ;;  %4616 = vmatmul.f32.gmra.mxu3 %v4257_v30  ;;  %v5298_v21 = vld [vmem:[%s8878_s26 + $0x6] sm:$0xff]  ;;  %8307 = vmatmul.msk.f32.gmra.mxu0 %vm289_vm0, %v4270_v12 }
 0x420   : > { %4135 = vst.msk [vmem:[#allocation2 + $0x1a0] sm:$0xff] %vm1303_vm3, %v11753_v3  ;;  %v8337_v30 = vld [vmem:[%s8878_s26 + $0x48] sm:$0xff] }
 0x421   : > { %3947 = vst.msk [vmem:[#allocation2 + $0x200] sm:$0xff] %vm1110_vm2, %v3873_v35  ;;  %v11866_v35 = vpop.f32.mrf.mxu2  ;;  %v11870_v23 = vpop.f32.mrf.mxu1  ;;  %v11883_v12 = vld [vmem:[%s8878_s26 + $0x66] sm:$0xff] }
 0x422   : > { %6373 = vst.msk [vmem:[#allocation2 + $0x1c0] sm:$0xff] %vm289_vm0, %v8515_v7  ;;  %v8435_v7 = vld [vmem:[%s8878_s26 + $0xa8] sm:$0xff] }
 0x423   : > { %5812 = vrot.lane.b32.xlu0 %v11840_v26, %s8773_s28  ;;  %6005 = vrot.lane.b32.xlu1 %v8434_v37, %s8774_s29 }
 0x424   : > { %6197 = vrot.lane.b32.xlu2 %v8466_v62, %s8775_s9  ;;  %v4304_v62 = vld [vmem:[#allocation2 + $0x2d0] sm:$0xff] }
 0x425   : > { %v3867_v3 = vpop.permute.xlu0 %3866  ;;  %v4059_v54 = vpop.permute.xlu1 %4058 }
 0x426   : > { %3944 = vst.msk [vmem:[#allocation2 + $0x1b8] sm:$0xff] %vm1110_vm2, %v3867_v3  ;;  %4548 = vmatmul.f32.gmra.mxu2 %v4301_v38  ;;  %v3875_v28 = vpop.permute.xlu2 %3874  ;;  %v4263_v38 = vld [vmem:[#allocation2 + $0x188] sm:$0xff] }
 0x427   : > { %4136 = vst.msk [vmem:[#allocation2 + $0x1b8] sm:$0xff] %vm1303_vm3, %v4059_v54  ;;  %4619 = vmatmul.f32.gmra.mxu3 %v4260_v49  ;;  %v11879_v54 = vpop.f32.mrf.mxu0 }
 0x428   : > { %3948 = vst.msk [vmem:[#allocation2 + $0x218] sm:$0xff] %vm1110_vm2, %v3875_v28  ;;  %v4273_v28 = vld [vmem:[#allocation2 + $0x1d8] sm:$0xff] }
 0x429   : > { %8308 = vmatmul.msk.f32.gmra.mxu0 %vm289_vm0, %v4273_v28 }
 0x42b   : > { %5170 = vrot.lane.b32.xlu0 %v5106_v47, %s8773_s28  ;;  %5362 = vrot.lane.b32.xlu1 %v5298_v21, %s8774_s29  ;;  %v8516_v47 = vld [vmem:[%s8878_s26 + $0x176] sm:$0xff]  ;;  %v4463_v21 = vadd.f32 %v11875_v6, %v11684_v22  ;;  %v4307_v22 = vld [vmem:[#allocation2 + $0x2e8] sm:$0xff] }
 0x42c   : > { %5554 = vrot.lane.b32.xlu2 %v8337_v30, %s8775_s9  ;;  %6374 = vst.msk [vmem:[#allocation2 + $0x1d8] sm:$0xff] %vm289_vm0, %v8516_v47  ;;  %v4266_v47 = vld [vmem:[#allocation2 + $0x1a0] sm:$0xff] }
 0x42d   : > { %v3869_v37 = vpop.permute.xlu0 %3868  ;;  %v4061_v3 = vpop.permute.xlu1 %4060 }
 0x42e   : > { %3945 = vst.msk [vmem:[#allocation2 + $0x1d0] sm:$0xff] %vm1110_vm2, %v3869_v37  ;;  %4551 = vmatmul.f32.gmra.mxu2 %v4304_v62  ;;  %v3877_v49 = vpop.permute.xlu2 %3876  ;;  %v8467_v37 = vld [vmem:[%s8878_s26 + $0xab] sm:$0xff] }
 0x42f   : > { %4137 = vst.msk [vmem:[#allocation2 + $0x1d0] sm:$0xff] %vm1303_vm3, %v4061_v3  ;;  %4622 = vmatmul.f32.gmra.mxu3 %v4263_v38  ;;  %v11895_v3 = vpop.f32.mrf.mxu2 }
 0x430   : > { %v4484_v58 = vadd.f32 %v11875_v6, %v11895_v3  ;;  %v8543_v3 = vld [vmem:[%s13865_s2 + $0x2b0] sm:$0xff] }
 0x432   : > { %v4575_v30 = vpop.f32.mrf.mxu3 }
 0x433   : > { %v4576_v62 = vadd.f32 %v4575_v30, %v4463_v21  ;;  %5814 = vrot.lane.b32.xlu0 %v11883_v12, %s8773_s28  ;;  %6007 = vrot.lane.b32.xlu1 %v8435_v7, %s8774_s29  ;;  %v11900_v21 = vpop.f32.mrf.mxu0  ;;  %v11902_v7 = vpop.f32.mrf.mxu1 }
 0x434   : > { %6199 = vrot.lane.b32.xlu2 %v8467_v37, %s8775_s9  ;;  %13939 = vst [vmem:[#allocation25_spill] sm:$0xff] %v11902_v7  ;;  %v8517_v37 = vld [vmem:[%s8878_s26 + $0x186] sm:$0xff] }
 0x435   : > { %v4689_v38 = vadd.f32 %v11804_v41, %v4576_v62  ;;  %v3871_v44 = vpop.permute.xlu0 %3870  ;;  %v4063_v28 = vpop.permute.xlu1 %4062  ;;  %v4276_v62 = vld [vmem:[#allocation2 + $0x1f0] sm:$0xff]  ;;  %v8525_v7 = vld [vmem:[%s8878_s26 + $0x1e6] sm:$0xff] }
 0x436   : > { %3946 = vst.msk [vmem:[#allocation2 + $0x1e8] sm:$0xff] %vm1110_vm2, %v3871_v44  ;;  %4554 = vmatmul.f32.gmra.mxu2 %v4307_v22  ;;  %v11905_v41 = vpop.permute.xlu2 %4070  ;;  %v4466_v44 = vadd.f32 %v11875_v6, %v11703_v39  ;;  %8309 = vmatmul.msk.f32.gmra.mxu0 %vm289_vm0, %v4276_v62 }
 0x437   : > { %v4784_v30 = vmax.f32 %v4689_v38, 0.0  ;;  %4138 = vst.msk [vmem:[#allocation2 + $0x1e8] sm:$0xff] %vm1303_vm3, %v4063_v28  ;;  %4625 = vmatmul.f32.gmra.mxu3 %v4266_v47 }
 0x438   : > { %6375 = vst.msk [vmem:[#allocation2 + $0x1f0] sm:$0xff] %vm289_vm0, %v8517_v37  ;;  %v11922_v37 = vpop.f32.mrf.mxu2 }
 0x439   : > { %4881 = vmatmul.f32.vlgmr.msra.gmra.mxu1 %v4784_v30  ;;  %v4269_v30 = vld [vmem:[#allocation2 + $0x1b8] sm:$0xff] }
 0x43a   : > { %v4578_v22 = vpop.f32.mrf.mxu3 }
 0x43b   : > { %v4579_v38 = vadd.f32 %v4578_v22, %v4466_v44  ;;  %5172 = vrot.lane.b32.xlu0 %v5107_v18, %s8773_s28  ;;  %5364 = vrot.lane.b32.xlu1 %v5299_v9, %s8774_s29  ;;  %v11920_v62 = vpop.f32.mrf.mxu0  ;;  %v4279_v18 = vld [vmem:[#allocation2 + $0x208] sm:$0xff]  ;;  %v8436_v22 = vld [vmem:[%s8878_s26 + $0xb0] sm:$0xff] }
 0x43c   : > { %5556 = vrot.lane.b32.xlu2 %v8338_v63, %s8775_s9  ;;  %v8518_v63 = vld [vmem:[%s8878_s26 + $0x18e] sm:$0xff] }
 0x43d   : > { %v4692_v28 = vadd.f32 %v11833_v5, %v4579_v38  ;;  %v4065_v47 = vpop.permute.xlu0 %4064  ;;  %v3684_v39 = vpop.permute.xlu1 %3683  ;;  %v11928_v5 = vld [vmem:[%s8878_s26 + $0x6e] sm:$0xff]  ;;  %6376 = vst.msk [vmem:[#allocation2 + $0x208] sm:$0xff] %vm289_vm0, %v8518_v63 }
 0x43e   : > { %4139 = vst.msk [vmem:[#allocation2 + $0x200] sm:$0xff] %vm1303_vm3, %v4065_v47  ;;  %v11925_v9 = vpop.permute.xlu2 %4072  ;;  %v11933_v38 = vpop.f32.mrf.mxu1  ;;  %v4469_v47 = vadd.f32 %v11875_v6, %v11738_v20  ;;  %8310 = vmatmul.msk.f32.gmra.mxu0 %vm289_vm0, %v4279_v18 }
 0x43f   : > { %v4785_v44 = vmax.f32 %v4692_v28, 0.0  ;;  %3756 = vst.msk [vmem:[#allocation2 + $0x230] sm:$0xff] %vm917_vm1, %v3684_v39  ;;  %4628 = vmatmul.f32.gmra.mxu3 %v4269_v30  ;;  %v8468_v39 = vld [vmem:[%s8878_s26 + $0xb3] sm:$0xff] }
 0x440   : > { %3949 = vst.msk [vmem:[#allocation2 + $0x230] sm:$0xff] %vm1110_vm2, %v3877_v49 }
 0x441   : > { %13940 = vst [vmem:[#allocation26_spill] sm:$0xff] %v11933_v38  ;;  %4884 = vmatmul.f32.gmra.mxu1 %v4785_v44  ;;  %v4272_v44 = vld [vmem:[#allocation2 + $0x1d0] sm:$0xff] }
 0x442   : > { %v4581_v28 = vpop.f32.mrf.mxu3  ;;  %v8559_v38 = vld [vmem:[%s13865_s2 + $0x330] sm:$0xff] }
 0x443   : > { %v4582_v30 = vadd.f32 %v4581_v28, %v4469_v47  ;;  %5816 = vrot.lane.b32.xlu0 %v11928_v5, %s8773_s28  ;;  %6009 = vrot.lane.b32.xlu1 %v8436_v22, %s8774_s29  ;;  %v11946_v18 = vpop.f32.mrf.mxu0  ;;  %v4282_v28 = vld [vmem:[#allocation2 + $0x220] sm:$0xff] }
 0x444   : > { %6201 = vrot.lane.b32.xlu2 %v8468_v39, %s8775_s9  ;;  %v5108_v22 = vld [vmem:[%s8878_s26 + $0x1b] sm:$0xff]  ;;  %v4472_v39 = vadd.f32 %v11875_v6, %v11772_v29 }
 0x445   : > { %v4695_v49 = vadd.f32 %v11856_v36, %v4582_v30  ;;  %v4067_v46 = vpop.permute.xlu0 %4066  ;;  %v3686_v20 = vpop.permute.xlu1 %3685  ;;  %v8519_v36 = vld [vmem:[%s8878_s26 + $0x19e] sm:$0xff] }
 0x446   : > { %4140 = vst.msk [vmem:[#allocation2 + $0x218] sm:$0xff] %vm1303_vm3, %v4067_v46  ;;  %v11949_v47 = vpop.permute.xlu2 %4074  ;;  %v11956_v30 = vpop.f32.mrf.mxu2  ;;  %8311 = vmatmul.msk.f32.gmra.mxu0 %vm289_vm0, %v4282_v28  ;;  %v4275_v28 = vld [vmem:[#allocation2 + $0x1e8] sm:$0xff] }
 0x447   : > { %v4786_v63 = vmax.f32 %v4695_v49, 0.0  ;;  %3757 = vst.msk [vmem:[#allocation2 + $0x248] sm:$0xff] %vm917_vm1, %v3686_v20  ;;  %4631 = vmatmul.f32.gmra.mxu3 %v4272_v44  ;;  %v8339_v49 = vld [vmem:[%s8878_s26 + $0x60] sm:$0xff]  ;;  %v11961_v20 = vpop.f32.mrf.mxu1 }
 0x448   : > { %6377 = vst.msk [vmem:[#allocation2 + $0x220] sm:$0xff] %vm289_vm0, %v8519_v36 }
 0x449   : > { %4887 = vmatmul.f32.gmra.mxu1 %v4786_v63  ;;  %13941 = vst [vmem:[#allocation27_spill] sm:$0xff] %v11961_v20 }
 0x44a   : > { %v4584_v46 = vpop.f32.mrf.mxu3 }
 0x44b   : > { %v4585_v44 = vadd.f32 %v4584_v46, %v4472_v39  ;;  %5174 = vrot.lane.b32.xlu0 %v5108_v22, %s8773_s28  ;;  %5366 = vrot.lane.b32.xlu1 %v5300_v27, %s8774_s29  ;;  %v11968_v36 = vpop.f32.mrf.mxu0  ;;  %v4285_v27 = vld [vmem:[#allocation2 + $0x238] sm:$0xff]  ;;  %v8437_v46 = vld [vmem:[%s8878_s26 + $0xc0] sm:$0xff] }
 0x44c   : > { %5558 = vrot.lane.b32.xlu2 %v8339_v49, %s8775_s9  ;;  %v8520_v49 = vld [vmem:[%s8878_s26 + $0x1a6] sm:$0xff] }
 0x44d   : > { %v4698_v29 = vadd.f32 %v11879_v54, %v4585_v44  ;;  %v4069_v33 = vpop.permute.xlu0 %4068  ;;  %v3879_v63 = vpop.permute.xlu1 %3878  ;;  %v11976_v54 = vld [vmem:[%s8878_s26 + $0x7e] sm:$0xff]  ;;  %6378 = vst.msk [vmem:[#allocation2 + $0x238] sm:$0xff] %vm289_vm0, %v8520_v49 }
 0x44e   : > { %4141 = vst.msk [vmem:[#allocation2 + $0x230] sm:$0xff] %vm1303_vm3, %v4069_v33  ;;  %v11971_v22 = vpop.permute.xlu2 %4076  ;;  %v4475_v33 = vadd.f32 %v11875_v6, %v11809_v0  ;;  %8312 = vmatmul.msk.f32.gmra.mxu0 %vm289_vm0, %v4285_v27  ;;  %v4278_v49 = vld [vmem:[#allocation2 + $0x200] sm:$0xff] }
 0x44f   : > { %v4787_v39 = vmax.f32 %v4698_v29, 0.0  ;;  %3950 = vst.msk [vmem:[#allocation2 + $0x248] sm:$0xff] %vm1110_vm2, %v3879_v63  ;;  %4634 = vmatmul.f32.gmra.mxu3 %v4275_v28  ;;  %v8469_v29 = vld [vmem:[%s8878_s26 + $0xc3] sm:$0xff]  ;;  %v11985_v63 = vpop.f32.mrf.mxu2 }
 0x450   : > { %4142 = vst.msk [vmem:[#allocation2 + $0x248] sm:$0xff] %vm1303_vm3, %v11905_v41  ;;  %v11990_v41 = vpop.f32.mrf.mxu1 }
 0x451   : > { %4890 = vmatmul.f32.gmra.mxu1 %v4787_v39  ;;  %13942 = vst [vmem:[#allocation28_spill] sm:$0xff] %v11990_v41  ;;  %v4288_v41 = vld [vmem:[#allocation2 + $0x250] sm:$0xff] }
 0x452   : > { %v4587_v44 = vpop.f32.mrf.mxu3 }
 0x453   : > { %v4588_v28 = vadd.f32 %v4587_v44, %v4475_v33  ;;  %5818 = vrot.lane.b32.xlu0 %v11976_v54, %s8773_s28  ;;  %6011 = vrot.lane.b32.xlu1 %v8437_v46, %s8774_s29  ;;  %v11995_v33 = vpop.f32.mrf.mxu0 }
 0x454   : > { %6203 = vrot.lane.b32.xlu2 %v8469_v29, %s8775_s9  ;;  %v8521_v29 = vld [vmem:[%s8878_s26 + $0x1b6] sm:$0xff] }
 0x455   : > { %v4701_v0 = vadd.f32 %v11900_v21, %v4588_v28  ;;  %v3688_v39 = vpop.permute.xlu0 %3687  ;;  %v3881_v27 = vpop.permute.xlu1 %3880  ;;  %v5109_v21 = vld [vmem:[%s8878_s26 + $0x23] sm:$0xff]  ;;  %6379 = vst.msk [vmem:[#allocation2 + $0x250] sm:$0xff] %vm289_vm0, %v8521_v29 }
 0x456   : > { %3758 = vst.msk [vmem:[#allocation2 + $0x260] sm:$0xff] %vm917_vm1, %v3688_v39  ;;  %v11998_v46 = vpop.permute.xlu2 %4078  ;;  %v5301_v28 = vld [vmem:[%s8878_s26 + $0x26] sm:$0xff]  ;;  %v4478_v39 = vadd.f32 %v11875_v6, %v11843_v61  ;;  %8313 = vmatmul.msk.f32.gmra.mxu0 %vm289_vm0, %v4288_v41 }
 0x457   : > { %v4788_v44 = vmax.f32 %v4701_v0, 0.0  ;;  %3951 = vst.msk [vmem:[#allocation2 + $0x260] sm:$0xff] %vm1110_vm2, %v3881_v27  ;;  %4637 = vmatmul.f32.gmra.mxu3 %v4278_v49  ;;  %v8340_v27 = vld [vmem:[%s8878_s26 + $0x68] sm:$0xff] }
 0x458   : > { %4143 = vst.msk [vmem:[#allocation2 + $0x260] sm:$0xff] %vm1303_vm3, %v11925_v9  ;;  %v12012_v9 = vpop.f32.mrf.mxu2 }
 0x459   : > { %4893 = vmatmul.f32.gmra.mxu1 %v4788_v44  ;;  %v4281_v44 = vld [vmem:[#allocation2 + $0x218] sm:$0xff] }
 0x45a   : > { %v4590_v0 = vpop.f32.mrf.mxu3 }
 0x45b   : > { %v4591_v49 = vadd.f32 %v4590_v0, %v4478_v39  ;;  %5176 = vrot.lane.b32.xlu0 %v5109_v21, %s8773_s28  ;;  %5368 = vrot.lane.b32.xlu1 %v5301_v28, %s8774_s29  ;;  %v12017_v29 = vpop.f32.mrf.mxu0  ;;  %v12019_v21 = vpop.f32.mrf.mxu1  ;;  %v12027_v0 = vld [vmem:[%s8878_s26 + $0x86] sm:$0xff] }
 0x45c   : > { %5560 = vrot.lane.b32.xlu2 %v8340_v27, %s8775_s9  ;;  %13943 = vst [vmem:[#allocation29_spill] sm:$0xff] %v12019_v21  ;;  %v8438_v27 = vld [vmem:[%s8878_s26 + $0xc8] sm:$0xff] }
 0x45d   : > { %v4704_v20 = vadd.f32 %v11920_v62, %v4591_v49  ;;  %v3690_v61 = vpop.permute.xlu0 %3689  ;;  %v3883_v41 = vpop.permute.xlu1 %3882  ;;  %v4291_v62 = vld [vmem:[#allocation2 + $0x268] sm:$0xff]  ;;  %v8522_v49 = vld [vmem:[%s8878_s26 + $0x1be] sm:$0xff] }
 0x45e   : > { %3759 = vst.msk [vmem:[#allocation2 + $0x278] sm:$0xff] %vm917_vm1, %v3690_v61  ;;  %v12022_v39 = vpop.permute.xlu2 %4080  ;;  %v4481_v61 = vadd.f32 %v11875_v6, %v11866_v35  ;;  %8314 = vmatmul.msk.f32.gmra.mxu0 %vm289_vm0, %v4291_v62 }
 0x45f   : > { %v4789_v28 = vmax.f32 %v4704_v20, 0.0  ;;  %3952 = vst.msk [vmem:[#allocation2 + $0x278] sm:$0xff] %vm1110_vm2, %v3883_v41  ;;  %4640 = vmatmul.f32.gmra.mxu3 %v4281_v44  ;;  %v8470_v41 = vld [vmem:[%s8878_s26 + $0xcb] sm:$0xff] }
 0x460   : > { %4144 = vst.msk [vmem:[#allocation2 + $0x278] sm:$0xff] %vm1303_vm3, %v11949_v47 }
 0x461   : > { %4896 = vmatmul.f32.gmra.mxu1 %v4789_v28  ;;  %6380 = vst.msk [vmem:[#allocation2 + $0x268] sm:$0xff] %vm289_vm0, %v8522_v49  ;;  %v4284_v28 = vld [vmem:[#allocation2 + $0x230] sm:$0xff]  ;;  %v12044_v49 = vpop.f32.mrf.mxu2 }
 0x462   : > { %v4593_v20 = vpop.f32.mrf.mxu3 }
 0x463   : > { %v4594_v44 = vadd.f32 %v4593_v20, %v4481_v61  ;;  %5820 = vrot.lane.b32.xlu0 %v12027_v0, %s8773_s28  ;;  %6013 = vrot.lane.b32.xlu1 %v8438_v27, %s8774_s29  ;;  %v12042_v62 = vpop.f32.mrf.mxu0  ;;  %v5110_v20 = vld [vmem:[%s8878_s26 + $0x33] sm:$0xff] }
 0x464   : > { %6205 = vrot.lane.b32.xlu2 %v8470_v41, %s8775_s9  ;;  %v8523_v41 = vld [vmem:[%s8878_s26 + $0x1ce] sm:$0xff] }
 0x465   : > { %v4707_v47 = vadd.f32 %v11946_v18, %v4594_v44  ;;  %v3692_v21 = vpop.permute.xlu0 %3691  ;;  %v3885_v35 = vpop.permute.xlu1 %3884  ;;  %v4294_v18 = vld [vmem:[#allocation2 + $0x280] sm:$0xff] }
 0x466   : > { %3760 = vst.msk [vmem:[#allocation2 + $0x290] sm:$0xff] %vm917_vm1, %v3692_v21  ;;  %v12047_v27 = vpop.permute.xlu2 %4082  ;;  %v5302_v21 = vld [vmem:[%s8878_s26 + $0x36] sm:$0xff]  ;;  %v12054_v44 = vpop.f32.mrf.mxu1  ;;  %8315 = vmatmul.msk.f32.gmra.mxu0 %vm289_vm0, %v4294_v18 }
 0x467   : > { %v4790_v61 = vmax.f32 %v4707_v47, 0.0  ;;  %3953 = vst.msk [vmem:[#allocation2 + $0x290] sm:$0xff] %vm1110_vm2, %v3885_v35  ;;  %4643 = vmatmul.f32.gmra.mxu3 %v4284_v28  ;;  %v8544_v47 = vld [vmem:[%s13865_s2 + $0x2b8] sm:$0xff] }
 0x468   : > { %4145 = vst.msk [vmem:[#allocation2 + $0x290] sm:$0xff] %vm1303_vm3, %v11971_v22  ;;  %v8341_v22 = vld [vmem:[%s8878_s26 + $0x78] sm:$0xff]  ;;  %6618 = vmatpush.msrb.mxu2 %v8544_v47 }
 0x469   : > { %13944 = vst [vmem:[#allocation30_spill] sm:$0xff] %v12054_v44  ;;  %4899 = vmatmul.f32.gmra.mxu1 %v4790_v61  ;;  %v12067_v44 = vld [vmem:[%s8878_s26 + $0x4b] sm:$0xff] }
 0x46a   : > { %6381 = vst.msk [vmem:[#allocation2 + $0x280] sm:$0xff] %vm289_vm0, %v8523_v41  ;;  %v4596_v35 = vpop.f32.mrf.mxu3  ;;  %6619 = vmatpush.msrb.mxu2 %v8543_v3  ;;  %v8439_v3 = vld [vmem:[%s8878_s26 + $0xd8] sm:$0xff] }
 0x46b   : > { %v4597_v28 = vadd.f32 %v4596_v35, %v4484_v58  ;;  %5178 = vrot.lane.b32.xlu0 %v5110_v20, %s8773_s28  ;;  %5370 = vrot.lane.b32.xlu1 %v5302_v21, %s8774_s29  ;;  %5714 = vst.msk [vmem:[#allocation2 + $0x8] sm:$0xff] %vm289_vm0, %v12067_v44  ;;  %v8542_v58 = vld [vmem:[%s13865_s2 + $0x2a8] sm:$0xff]  ;;  %v12080_v41 = vpop.f32.mrf.mxu0 }
 0x46c   : > { %5562 = vrot.lane.b32.xlu2 %v8341_v22, %s8775_s9  ;;  %v4287_v21 = vld [vmem:[#allocation2 + $0x248] sm:$0xff]  ;;  %6620 = vmatpush.msrb.mxu2 %v8542_v58  ;;  %v8560_v22 = vld [vmem:[%s13865_s2 + $0x338] sm:$0xff]  ;;  %v4487_v58 = vadd.f32 %v11875_v6, %v11922_v37 }
 0x46d   : > { %v4710_v61 = vadd.f32 %v11968_v36, %v4597_v28  ;;  %v3694_v18 = vpop.permute.xlu0 %3693  ;;  %v3887_v20 = vpop.permute.xlu1 %3886  ;;  %v12084_v36 = vld [vmem:[%s8878_s26 + $0x96] sm:$0xff]  ;;  %6731 = vmatpush.msrb.mxu3 %v8560_v22 }
 0x46e   : > { %3761 = vst.msk [vmem:[#allocation2 + $0x2a8] sm:$0xff] %vm917_vm1, %v3694_v18  ;;  %v12086_v35 = vpop.permute.xlu2 %4084  ;;  %v4297_v28 = vld [vmem:[#allocation2 + $0x298] sm:$0xff]  ;;  %v12111_v14 = vpop.f32.mrf.mxu1 }
 0x46f   : > { %v4791_v47 = vmax.f32 %v4710_v61, 0.0  ;;  %3954 = vst.msk [vmem:[#allocation2 + $0x2a8] sm:$0xff] %vm1110_vm2, %v3887_v20  ;;  %4646 = vmatmul.f32.gmra.mxu3 %v4287_v21  ;;  %v8524_v18 = vld [vmem:[%s8878_s26 + $0x1d6] sm:$0xff]  ;;  %v8541_v61 = vld [vmem:[%s13865_s2 + $0x2a0] sm:$0xff]  ;;  %v12100_v20 = vpop.f32.mrf.mxu2  ;;  %8316 = vmatmul.msk.f32.gmra.mxu0 %vm289_vm0, %v4297_v28  ;;  %v8558_v28 = vld [vmem:[%s13865_s2 + $0x328] sm:$0xff] }
 0x470   : > { %4146 = vst.msk [vmem:[#allocation2 + $0x2a8] sm:$0xff] %vm1303_vm3, %v11998_v46  ;;  %v8540_v46 = vld [vmem:[%s13865_s2 + $0x298] sm:$0xff]  ;;  %6621 = vmatpush.msrb.mxu2 %v8541_v61  ;;  %6732 = vmatpush.msrb.mxu3 %v8559_v38 }
 0x471   : > { %4902 = vmatmul.f32.gmra.mxu1 %v4791_v47  ;;  %6382 = vst.msk [vmem:[#allocation2 + $0x298] sm:$0xff] %vm289_vm0, %v8524_v18  ;;  %v8471_v22 = vld [vmem:[%s8878_s26 + $0xdb] sm:$0xff]  ;;  %v8539_v47 = vld [vmem:[%s13865_s2 + $0x290] sm:$0xff] }
 0x472   : > { %v4599_v21 = vpop.f32.mrf.mxu3  ;;  %13945 = vst [vmem:[#allocation31_spill] sm:$0xff] %v12111_v14  ;;  %6622 = vmatpush.msrb.mxu2 %v8540_v46  ;;  %v4290_v46 = vld [vmem:[#allocation2 + $0x260] sm:$0xff]  ;;  %6733 = vmatpush.msrb.mxu3 %v8558_v28  ;;  %v4300_v14 = vld [vmem:[#allocation2 + $0x2b0] sm:$0xff] }
 0x473   : > { %v4600_v37 = vadd.f32 %v4599_v21, %v4487_v58  ;;  %5822 = vrot.lane.b32.xlu0 %v12084_v36, %s8773_s28  ;;  %6015 = vrot.lane.b32.xlu1 %v8439_v3, %s8774_s29  ;;  %v8538_v3 = vld [vmem:[%s13865_s2 + $0x288] sm:$0xff]  ;;  %v12128_v38 = vpop.f32.mrf.mxu0  ;;  %v12131_v21 = vld [vmem:[%s8878_s26 + $0x53] sm:$0xff]  ;;  %6383 = vst.msk [vmem:[#allocation2 + $0x2b0] sm:$0xff] %vm289_vm0, %v8525_v7 }
 0x474   : > { %6207 = vrot.lane.b32.xlu2 %v8471_v22, %s8775_s9  ;;  %6623 = vmatpush.msrb.mxu2 %v8539_v47  ;;  %v8537_v47 = vld [vmem:[%s13865_s2 + $0x280] sm:$0xff]  ;;  %5715 = vst.msk [vmem:[#allocation2 + $0x20] sm:$0xff] %vm289_vm0, %v12131_v21  ;;  %v8554_v7 = vld [vmem:[%s13865_s2 + $0x308] sm:$0xff] }
 0x475   : > { %v4713_v18 = vadd.f32 %v11995_v33, %v4600_v37  ;;  %v3696_v61 = vpop.permute.xlu0 %3695  ;;  %v3889_v58 = vpop.permute.xlu1 %3888  ;;  %v8557_v33 = vld [vmem:[%s13865_s2 + $0x320] sm:$0xff] }
 0x476   : > { %3762 = vst.msk [vmem:[#allocation2 + $0x2c0] sm:$0xff] %vm917_vm1, %v3696_v61  ;;  %v5111_v37 = vld [vmem:[%s8878_s26 + $0x3b] sm:$0xff]  ;;  %v12138_v61 = vpop.permute.xlu2 %6195  ;;  %6624 = vmatpush.msrb.mxu2 %v8538_v3  ;;  %6734 = vmatpush.msrb.mxu3 %v8557_v33 }
 0x477   : > { %v4792_v22 = vmax.f32 %v4713_v18, 0.0  ;;  %3955 = vst.msk [vmem:[#allocation2 + $0x2c0] sm:$0xff] %vm1110_vm2, %v3889_v58  ;;  %4649 = vmatmul.f32.gmra.mxu3 %v4290_v46  ;;  %v5303_v28 = vld [vmem:[%s8878_s26 + $0x3e] sm:$0xff]  ;;  %v4490_v58 = vadd.f32 %v11875_v6, %v11956_v30  ;;  %8317 = vmatmul.msk.f32.gmra.mxu0 %vm289_vm0, %v4300_v14  ;;  %v8555_v30 = vld [vmem:[%s13865_s2 + $0x310] sm:$0xff]  ;;  %v12163_v33 = vpop.f32.mrf.mxu2 }
 0x478   : > { %4147 = vst.msk [vmem:[#allocation2 + $0x2c0] sm:$0xff] %vm1303_vm3, %v12022_v39  ;;  %v8556_v18 = vld [vmem:[%s13865_s2 + $0x318] sm:$0xff]  ;;  %v8342_v46 = vld [vmem:[%s8878_s26 + $0x80] sm:$0xff]  ;;  %6625 = vmatpush.msrb.mxu2 %v8537_v47  ;;  %v8535_v14 = vld [vmem:[%s13865_s2 + $0x270] sm:$0xff]  ;;  %v12173_v47 = vpop.f32.mrf.mxu1 }
 0x479   : > { %4905 = vmatmul.f32.gmra.mxu1 %v4792_v22  ;;  %v8536_v39 = vld [vmem:[%s13865_s2 + $0x278] sm:$0xff]  ;;  %6735 = vmatpush.msrb.mxu3 %v8556_v18  ;;  %13946 = vst [vmem:[#allocation32_spill] sm:$0xff] %v12173_v47  ;;  %v4303_v47 = vld [vmem:[#allocation2 + $0x2c8] sm:$0xff] }
 0x47a   : > { %v4602_v3 = vpop.f32.mrf.mxu3  ;;  %6626 = vmatpush.msrb.mxu2 %v8536_v39  ;;  %v4293_v39 = vld [vmem:[#allocation2 + $0x278] sm:$0xff] }
 0x47b   : > { %v4603_v22 = vadd.f32 %v4602_v3, %v4490_v58  ;;  %5180 = vrot.lane.b32.xlu0 %v5111_v37, %s8773_s28  ;;  %5372 = vrot.lane.b32.xlu1 %v5303_v28, %s8774_s29  ;;  %v8534_v37 = vld [vmem:[%s13865_s2 + $0x268] sm:$0xff]  ;;  %v12181_v3 = vpop.f32.mrf.mxu0 }
 0x47c   : > { %6736 = vmatpush.msrb.mxu3 %v8555_v30  ;;  %5564 = vrot.lane.b32.xlu2 %v8342_v46, %s8775_s9  ;;  %v5042_v30 = vld [vmem:[%s8878_s26] sm:$0xff] }
 0x47d   : > { %v4716_v18 = vadd.f32 %v12017_v29, %v4603_v22  ;;  %v3698_v58 = vpop.permute.xlu0 %3697  ;;  %v3891_v28 = vpop.permute.xlu1 %3890  ;;  %6627 = vmatpush.msrb.mxu2 %v8535_v14  ;;  %v8553_v29 = vld [vmem:[%s13865_s2 + $0x300] sm:$0xff]  ;;  %5074 = vst.msk [vmem:[#allocation2] sm:$0xff] %vm289_vm0, %v5042_v30  ;;  %v8531_v30 = vld [vmem:[%s13865_s2 + $0x250] sm:$0xff] }
 0x47e   : > { %3763 = vst.msk [vmem:[#allocation2 + $0x2d8] sm:$0xff] %vm917_vm1, %v3698_v58  ;;  %6737 = vmatpush.msrb.mxu3 %v8554_v7  ;;  %v12189_v22 = vld [vmem:[%s8878_s26 + $0x9e] sm:$0xff]  ;;  %v12191_v58 = vpop.permute.xlu2 %6197 }
 0x47f   : > { %v4793_v46 = vmax.f32 %v4716_v18, 0.0  ;;  %3956 = vst.msk [vmem:[#allocation2 + $0x2d8] sm:$0xff] %vm1110_vm2, %v3891_v28  ;;  %4652 = vmatmul.f32.gmra.mxu3 %v4293_v39  ;;  %v8533_v14 = vld [vmem:[%s13865_s2 + $0x260] sm:$0xff]  ;;  %6628 = vmatpush.msrb.mxu2 %v8534_v37  ;;  %v8526_v18 = vld [vmem:[%s8878_s26 + $0x1ee] sm:$0xff]  ;;  %v8552_v28 = vld [vmem:[%s13865_s2 + $0x2f8] sm:$0xff]  ;;  %v4493_v39 = vadd.f32 %v11875_v6, %v11985_v63 }
 0x480   : > { %4148 = vst.msk [vmem:[#allocation2 + $0x2d8] sm:$0xff] %vm1303_vm3, %v12047_v27  ;;  %v8440_v7 = vld [vmem:[%s8878_s26 + $0xe0] sm:$0xff]  ;;  %6738 = vmatpush.msrb.mxu3 %v8553_v29  ;;  %8318 = vmatmul.msk.f32.gmra.mxu0 %vm289_vm0, %v4303_v47  ;;  %v8532_v27 = vld [vmem:[%s13865_s2 + $0x258] sm:$0xff]  ;;  %v8551_v29 = vld [vmem:[%s13865_s2 + $0x2f0] sm:$0xff] }
 0x481   : > { %4908 = vmatmul.f32.gmra.mxu1 %v4793_v46  ;;  %v8472_v37 = vld [vmem:[%s8878_s26 + $0xe3] sm:$0xff]  ;;  %6384 = vst.msk [vmem:[#allocation2 + $0x2c8] sm:$0xff] %vm289_vm0, %v8526_v18  ;;  %6629 = vmatpush.msrb.mxu2 %v8533_v14  ;;  %v8564_v47 = vld [vmem:[%s13865_s2 + $0x358] sm:$0xff]  ;;  %v12227_v46 = vpop.f32.mrf.mxu2 }
 0x482   : > { %v4605_v43 = vpop.f32.mrf.mxu3  ;;  %6739 = vmatpush.msrb.mxu3 %v8552_v28  ;;  %6856 = vmatpush.msrb.mxu0 %v8564_v47  ;;  %v8530_v18 = vld [vmem:[%s13865_s2 + $0x248] sm:$0xff] }
 0x483   : > { %v4606_v63 = vadd.f32 %v4605_v43, %v4493_v39  ;;  %5824 = vrot.lane.b32.xlu0 %v12189_v22, %s8773_s28  ;;  %6017 = vrot.lane.b32.xlu1 %v8440_v7, %s8774_s29  ;;  %v8550_v43 = vld [vmem:[%s13865_s2 + $0x2e8] sm:$0xff]  ;;  %v4296_v39 = vld [vmem:[#allocation2 + $0x290] sm:$0xff] }
 0x484   : > { %6630 = vmatpush.msrb.mxu2 %v8532_v27  ;;  %6740 = vmatpush.msrb.mxu3 %v8551_v29  ;;  %v12235_v27 = vpop.f32.mrf.mxu0  ;;  %v12238_v29 = vld [vmem:[%s8878_s26 + $0x63] sm:$0xff] }
 0x485   : > { %v4719_v14 = vadd.f32 %v12042_v62, %v4606_v63  ;;  %v3700_v7 = vpop.permute.xlu0 %3699  ;;  %6209 = vrot.lane.b32.xlu2 %v8472_v37, %s8775_s9  ;;  %v3893_v28 = vpop.permute.xlu1 %3892  ;;  %v8549_v62 = vld [vmem:[%s13865_s2 + $0x2e0] sm:$0xff]  ;;  %5716 = vst.msk [vmem:[#allocation2 + $0x38] sm:$0xff] %vm289_vm0, %v12238_v29 }
 0x486   : > { %3764 = vst.msk [vmem:[#allocation2 + $0x2f0] sm:$0xff] %vm917_vm1, %v3700_v7  ;;  %6631 = vmatpush.msrb.mxu2 %v8531_v30  ;;  %6741 = vmatpush.msrb.mxu3 %v8550_v43  ;;  %v12243_v37 = vpop.f32.mrf.mxu1  ;;  %v12246_v47 = vpop.permute.xlu2 %5554  ;;  %v4306_v7 = vld [vmem:[#allocation2 + $0x2e0] sm:$0xff] }
 0x487   : > { %13947 = vst [vmem:[#allocation33_spill] sm:$0xff] %v12243_v37  ;;  %v4794_v63 = vmax.f32 %v4719_v14, 0.0  ;;  %4655 = vmatmul.f32.gmra.mxu3 %v4296_v39  ;;  %v8529_v30 = vld [vmem:[%s13865_s2 + $0x240] sm:$0xff]  ;;  %v8548_v14 = vld [vmem:[%s13865_s2 + $0x2d8] sm:$0xff]  ;;  %v8343_v37 = vld [vmem:[%s8878_s26 + $0x90] sm:$0xff] }
 0x488   : > { %3957 = vst.msk [vmem:[#allocation2 + $0x2f0] sm:$0xff] %vm1110_vm2, %v3893_v28  ;;  %6632 = vmatpush.msrb.mxu2 %v8530_v18  ;;  %6742 = vmatpush.msrb.mxu3 %v8549_v62  ;;  %v8527_v43 = vld [vmem:[%s8878_s26 + $0x1fe] sm:$0xff]  ;;  %v4496_v28 = vadd.f32 %v11875_v6, %v12012_v9  ;;  %v8546_v9 = vld [vmem:[%s13865_s2 + $0x2c8] sm:$0xff] }
 0x489   : > { %4149 = vst.msk [vmem:[#allocation2 + $0x2f0] sm:$0xff] %vm1303_vm3, %v12086_v35  ;;  %4911 = vmatmul.f32.gmra.mxu1 %v4794_v63  ;;  %8319 = vmatmul.msk.f32.gmra.mxu0 %vm289_vm0, %v4306_v7  ;;  %v8547_v35 = vld [vmem:[%s13865_s2 + $0x2d0] sm:$0xff] }
 0x48a   : > { %v4608_v39 = vpop.f32.mrf.mxu3  ;;  %6385 = vst.msk [vmem:[#allocation2 + $0x2e0] sm:$0xff] %vm289_vm0, %v8527_v43  ;;  %6633 = vmatpush.msrb.mxu2 %v8529_v30  ;;  %6743 = vmatpush.msrb.mxu3 %v8548_v14  ;;  %v8545_v43 = vld [vmem:[%s13865_s2 + $0x2c0] sm:$0xff] }
 0x48b   : > { %v4609_v18 = vadd.f32 %v4608_v39, %v4496_v28  ;;  %5182 = vrot.lane.b32.xlu0 %v12067_v44, %s8773_s28  ;;  %5374 = vrot.lane.b32.xlu1 %v11816_v31, %s8774_s29  ;;  %v4299_v44 = vld [vmem:[#allocation2 + $0x2a8] sm:$0xff]  ;;  %v12286_v28 = vpop.f32.mrf.mxu2 }
 0x48c   : > { %6744 = vmatpush.msrb.mxu3 %v8547_v35  ;;  %v12277_v30 = vpop.f32.mrf.mxu0  ;;  %v5043_v31 = vld [vmem:[%s8878_s26 + $0x8] sm:$0xff]  ;;  %v8441_v35 = vld [vmem:[%s8878_s26 + $0xf0] sm:$0xff] }
 0x48d   : > { %v4722_v62 = vadd.f32 %v12080_v41, %v4609_v18  ;;  %v5811_v63 = vpop.permute.xlu0 %5810  ;;  %5566 = vrot.lane.b32.xlu2 %v8343_v37, %s8775_s9  ;;  %v6004_v7 = vpop.permute.xlu1 %6003  ;;  %v4309_v37 = vld [vmem:[#allocation2 + $0x2f8] sm:$0xff]  ;;  %v12291_v39 = vld [vmem:[%s8878_s26 + $0xae] sm:$0xff]  ;;  %v8528_v18 = vld [vmem:[%s8878_s26 + $0x206] sm:$0xff]  ;;  %5075 = vst.msk [vmem:[#allocation2 + $0x18] sm:$0xff] %vm289_vm0, %v5043_v31 }
 0x48e   : > { %5906 = vst.msk [vmem:[#allocation2 + $0x8] sm:$0xff] %vm917_vm1, %v5811_v63  ;;  %6745 = vmatpush.msrb.mxu3 %v8546_v9  ;;  %v12284_v41 = vpop.permute.xlu2 %6199  ;;  %v12295_v9 = vpop.f32.mrf.mxu1 }
 0x48f   : > { %v4795_v14 = vmax.f32 %v4722_v62, 0.0  ;;  %6099 = vst.msk [vmem:[#allocation2 + $0x8] sm:$0xff] %vm1110_vm2, %v6004_v7  ;;  %4658 = vmatmul.f32.gmra.mxu3 %v4299_v44  ;;  %v4499_v62 = vadd.f32 %v11875_v6, %v12044_v49  ;;  %v8473_v7 = vld [vmem:[%s8878_s26 + $0xf3] sm:$0xff]  ;;  %v8562_v49 = vld [vmem:[%s13865_s2 + $0x348] sm:$0xff] }
 0x490   : > { %6291 = vst.msk [vmem:[#allocation2 + $0x8] sm:$0xff] %vm1303_vm3, %v12138_v61  ;;  %6746 = vmatpush.msrb.mxu3 %v8545_v43  ;;  %v8563_v61 = vld [vmem:[%s13865_s2 + $0x350] sm:$0xff] }
 0x491   : > { %13948 = vst [vmem:[#allocation34_spill] sm:$0xff] %v12295_v9  ;;  %4914 = vmatmul.f32.gmra.mxu1 %v4795_v14  ;;  %8320 = vmatmul.msk.f32.gmra.mxu0 %vm289_vm0, %v4309_v37  ;;  %v4302_v37 = vld [vmem:[#allocation2 + $0x2c0] sm:$0xff] }
 0x492   : > { %v4611_v63 = vpop.f32.mrf.mxu3  ;;  %6386 = vst.msk [vmem:[#allocation2 + $0x2f8] sm:$0xff] %vm289_vm0, %v8528_v18  ;;  %6857 = vmatpush.msrb.mxu0 %v8563_v61  ;;  %v4502_v61 = vadd.f32 %v11875_v6, %v12100_v20 }
 0x493   : > { %v4612_v44 = vadd.f32 %v4611_v63, %v4499_v62  ;;  %5826 = vrot.lane.b32.xlu0 %v12291_v39, %s8773_s28  ;;  %6019 = vrot.lane.b32.xlu1 %v8441_v35, %s8774_s29  ;;  %v12318_v62 = vld [vmem:[%s8878_s26 + $0x6b] sm:$0xff]  ;;  %v8561_v35 = vld [vmem:[%s13865_s2 + $0x340] sm:$0xff] }
 0x494   : > { %v12315_v18 = vpop.f32.mrf.mxu0  ;;  %6858 = vmatpush.msrb.mxu0 %v8562_v49  ;;  %5717 = vst.msk [vmem:[#allocation2 + $0x50] sm:$0xff] %vm289_vm0, %v12318_v62 }
 0x495   : > { %v4725_v31 = vadd.f32 %v12128_v38, %v4612_v44  ;;  %v5813_v43 = vpop.permute.xlu0 %5812  ;;  %6211 = vrot.lane.b32.xlu2 %v8473_v7, %s8775_s9  ;;  %v6006_v14 = vpop.permute.xlu1 %6005  ;;  %v6389_v7 = vld [vmem:[#allocation2 + $0x10] sm:$0xff] }
 0x496   : > { %5907 = vst.msk [vmem:[#allocation2 + $0x20] sm:$0xff] %vm917_vm1, %v5813_v43  ;;  %v12324_v38 = vpop.permute.xlu2 %5556  ;;  %6859 = vmatpush.msrb.mxu0 %v8561_v35  ;;  %v12333_v44 = vpop.f32.mrf.mxu2  ;;  %v4305_v35 = vld [vmem:[#allocation2 + $0x2d8] sm:$0xff] }
 0x497   : > { %v4796_v63 = vmax.f32 %v4725_v31, 0.0  ;;  %6100 = vst.msk [vmem:[#allocation2 + $0x20] sm:$0xff] %vm1110_vm2, %v6006_v14  ;;  %4661 = vmatmul.f32.gmra.mxu3 %v4302_v37  ;;  %v8344_v31 = vld [vmem:[%s8878_s26 + $0x98] sm:$0xff]  ;;  %v12336_v43 = vpop.f32.mrf.mxu1 }
 0x498   : > { %6292 = vst.msk [vmem:[#allocation2 + $0x20] sm:$0xff] %vm1303_vm3, %v12191_v58 }
 0x499   : > { %4917 = vmatmul.f32.gmra.mxu1 %v4796_v63  ;;  %8565 = vmatmul.msk.f32.vlgmr.msrb.gmra.mxu0 %vm289_vm0, %v6389_v7  ;;  %13949 = vst [vmem:[#allocation35_spill] sm:$0xff] %v12336_v43  ;;  %v5044_v7 = vld [vmem:[%s8878_s26 + $0x18] sm:$0xff] }
 0x49a   : > { %v4614_v49 = vpop.f32.mrf.mxu3  ;;  %5076 = vst.msk [vmem:[#allocation2 + $0x30] sm:$0xff] %vm289_vm0, %v5044_v7 }
 0x49b   : > { %v4615_v14 = vadd.f32 %v4614_v49, %v4502_v61  ;;  %5184 = vrot.lane.b32.xlu0 %v12131_v21, %s8773_s28  ;;  %5376 = vrot.lane.b32.xlu1 %v11840_v26, %s8774_s29  ;;  %v12354_v26 = vld [vmem:[%s8878_s26 + $0xb6] sm:$0xff]  ;;  %v4505_v49 = vadd.f32 %v11875_v6, %v12163_v33 }
 0x49c   : > { %v12345_v63 = vpop.f32.mrf.mxu0 }
 0x49d   : > { %v4728_v20 = vadd.f32 %v12181_v3, %v4615_v14  ;;  %v5171_v58 = vpop.permute.xlu0 %5170  ;;  %5568 = vrot.lane.b32.xlu2 %v8344_v31, %s8775_s9  ;;  %v5363_v37 = vpop.permute.xlu1 %5362  ;;  %v8442_v3 = vld [vmem:[%s8878_s26 + $0xf8] sm:$0xff] }
 0x49e   : > { %5266 = vst.msk [vmem:[#allocation2] sm:$0xff] %vm917_vm1, %v5171_v58  ;;  %v12349_v21 = vpop.permute.xlu2 %6201  ;;  %v8474_v14 = vld [vmem:[%s8878_s26 + $0xfb] sm:$0xff] }
 0x49f   : > { %v4797_v61 = vmax.f32 %v4728_v20, 0.0  ;;  %5458 = vst.msk [vmem:[#allocation2] sm:$0xff] %vm1110_vm2, %v5363_v37  ;;  %4664 = vmatmul.f32.gmra.mxu3 %v4305_v35  ;;  %v6392_v20 = vld [vmem:[#allocation2 + $0x28] sm:$0xff]  ;;  %v12367_v37 = vpop.f32.mrf.mxu1 }
 0x4a0   : > { %5650 = vst.msk [vmem:[#allocation2] sm:$0xff] %vm1303_vm3, %v12246_v47  ;;  %v12364_v47 = vpop.f32.mrf.mxu2 }
 0x4a1   : > { %4920 = vmatmul.f32.gmra.mxu1 %v4797_v61  ;;  %8566 = vmatmul.msk.f32.gmra.mxu0 %vm289_vm0, %v6392_v20  ;;  %13950 = vst [vmem:[#allocation36_spill] sm:$0xff] %v12367_v37  ;;  %v4308_v61 = vld [vmem:[#allocation2 + $0x2f0] sm:$0xff] }
 0x4a2   : > { %v4617_v31 = vpop.f32.mrf.mxu3 }
 0x4a3   : > { %v4618_v58 = vadd.f32 %v4617_v31, %v4505_v49  ;;  %5828 = vrot.lane.b32.xlu0 %v12354_v26, %s8773_s28  ;;  %6021 = vrot.lane.b32.xlu1 %v8442_v3, %s8774_s29  ;;  %v12375_v31 = vld [vmem:[%s8878_s26 + $0x7b] sm:$0xff] }
 0x4a4   : > { %v12372_v49 = vpop.f32.mrf.mxu0  ;;  %5718 = vst.msk [vmem:[#allocation2 + $0x68] sm:$0xff] %vm289_vm0, %v12375_v31 }
 0x4a5   : > { %v4731_v33 = vadd.f32 %v12235_v27, %v4618_v58  ;;  %v5815_v35 = vpop.permute.xlu0 %5814  ;;  %6213 = vrot.lane.b32.xlu2 %v8474_v14, %s8775_s9  ;;  %v6008_v7 = vpop.permute.xlu1 %6007  ;;  %v4508_v27 = vadd.f32 %v11875_v6, %v12227_v46  ;;  %v8345_v58 = vld [vmem:[%s8878_s26 + $0xa8] sm:$0xff] }
 0x4a6   : > { %5908 = vst.msk [vmem:[#allocation2 + $0x38] sm:$0xff] %vm917_vm1, %v5815_v35  ;;  %v12378_v37 = vpop.permute.xlu2 %5558 }
 0x4a7   : > { %v4798_v3 = vmax.f32 %v4731_v33, 0.0  ;;  %6101 = vst.msk [vmem:[#allocation2 + $0x38] sm:$0xff] %vm1110_vm2, %v6008_v7  ;;  %4667 = vmatmul.f32.gmra.mxu3 %v4308_v61  ;;  %v6387_v20 = vld [vmem:[#allocation2] sm:$0xff]  ;;  %v6388_v7 = vld [vmem:[#allocation2 + $0x8] sm:$0xff] }
 0x4a8   : > { %6293 = vst.msk [vmem:[#allocation2 + $0x38] sm:$0xff] %vm1303_vm3, %v12284_v41  ;;  %6634 = vmatmul.f32.vlgmr.msrb.gmra.mxu2 %v6387_v20  ;;  %v12393_v6 = vpop.f32.mrf.mxu2  ;;  %v5045_v61 = vld [vmem:[%s8878_s26 + $0x20] sm:$0xff]  ;;  %v12408_v20 = vld [vmem:[%s8878_s26 + $0x108] sm:$0xff] }
 0x4a9   : > { %4923 = vmatmul.f32.gmra.mxu1 %v4798_v3  ;;  %v12397_v3 = vpop.f32.mrf.mxu1  ;;  %5077 = vst.msk [vmem:[#allocation2 + $0x48] sm:$0xff] %vm289_vm0, %v5045_v61  ;;  %v6391_v61 = vld [vmem:[#allocation2 + $0x20] sm:$0xff] }
 0x4aa   : > { %v4620_v14 = vpop.f32.mrf.mxu3  ;;  %13951 = vst [vmem:[#allocation37_spill] sm:$0xff] %v12397_v3 }
 0x4ab   : > { %v4621_v33 = vadd.f32 %v4620_v14, %v4508_v27  ;;  %5186 = vrot.lane.b32.xlu0 %v12238_v29, %s8773_s28  ;;  %5378 = vrot.lane.b32.xlu1 %v11883_v12, %s8774_s29  ;;  %v12415_v14 = vld [vmem:[%s13868_s5 + $0x2] ss:$0 sm:$0xff] }
 0x4ac   : > { %v12410_v27 = vpop.f32.mrf.mxu0 }
 0x4ad   : > { %v4734_v41 = vadd.f32 %v12277_v30, %v4621_v33  ;;  %v5173_v35 = vpop.permute.xlu0 %5172  ;;  %5570 = vrot.lane.b32.xlu2 %v8345_v58, %s8775_s9  ;;  %v5365_v46 = vpop.permute.xlu1 %5364  ;;  %v12405_v30 = vld [vmem:[%s8878_s26 + $0xc6] sm:$0xff]  ;;  %v4511_v58 = vadd.f32 %v12415_v14, %v12286_v28 }
 0x4ae   : > { %5267 = vst.msk [vmem:[#allocation2 + $0x18] sm:$0xff] %vm917_vm1, %v5173_v35  ;;  %v12400_v12 = vpop.permute.xlu2 %6203 }
 0x4af   : > { %v4799_v29 = vmax.f32 %v4734_v41, 0.0  ;;  %5459 = vst.msk [vmem:[#allocation2 + $0x18] sm:$0xff] %vm1110_vm2, %v5365_v46  ;;  %6747 = vmatmul.f32.vlgmr.msrb.gmra.mxu3 %v6388_v7  ;;  %v6395_v41 = vld [vmem:[#allocation2 + $0x40] sm:$0xff] }
 0x4b0   : > { %5651 = vst.msk [vmem:[#allocation2 + $0x18] sm:$0xff] %vm1303_vm3, %v12324_v38  ;;  %v8475_v38 = vld [vmem:[%s8878_s26 + $0x10b] sm:$0xff]  ;;  %8567 = vmatmul.msk.f32.gmra.mxu0 %vm289_vm0, %v6395_v41  ;;  %v12435_v41 = vpop.f32.mrf.mxu2 }
 0x4b1   : > { %4926 = vmatmul.f32.gmra.mxu1 %v4799_v29  ;;  %v12430_v29 = vld [vmem:[%s8878_s26 + $0x83] sm:$0xff] }
 0x4b2   : > { %v4623_v33 = vpop.f32.mrf.mxu3  ;;  %5719 = vst.msk [vmem:[#allocation2 + $0x80] sm:$0xff] %vm289_vm0, %v12430_v29 }
 0x4b3   : > { %v4624_v35 = vadd.f32 %v4623_v33, %v4511_v58  ;;  %5830 = vrot.lane.b32.xlu0 %v12405_v30, %s8773_s28  ;;  %6023 = vrot.lane.b32.xlu1 %v12408_v20, %s8774_s29 }
 0x4b5   : > { %v4737_v46 = vadd.f32 %v12315_v18, %v4624_v35  ;;  %v5817_v7 = vpop.permute.xlu0 %5816  ;;  %6215 = vrot.lane.b32.xlu2 %v8475_v38, %s8775_s9  ;;  %v6010_v28 = vpop.permute.xlu1 %6009  ;;  %v4514_v38 = vadd.f32 %v12415_v14, %v12333_v44 }
 0x4b6   : > { %5909 = vst.msk [vmem:[#allocation2 + $0x50] sm:$0xff] %vm917_vm1, %v5817_v7  ;;  %v12433_v3 = vpop.permute.xlu2 %5560  ;;  %v12439_v18 = vpop.f32.mrf.mxu1  ;;  %v8346_v7 = vld [vmem:[%s8878_s26 + $0xb0] sm:$0xff] }
 0x4b7   : > { %v4800_v58 = vmax.f32 %v4737_v46, 0.0  ;;  %6102 = vst.msk [vmem:[#allocation2 + $0x50] sm:$0xff] %vm1110_vm2, %v6010_v28  ;;  %6750 = vmatmul.f32.gmra.mxu3 %v6391_v61  ;;  %v6390_v33 = vld [vmem:[#allocation2 + $0x18] sm:$0xff]  ;;  %v12445_v46 = vpop.f32.mrf.mxu0 }
 0x4b8   : > { %6294 = vst.msk [vmem:[#allocation2 + $0x50] sm:$0xff] %vm1303_vm3, %v12349_v21  ;;  %6637 = vmatmul.f32.gmra.mxu2 %v6390_v33  ;;  %v5046_v33 = vld [vmem:[%s8878_s26 + $0x30] sm:$0xff] }
 0x4b9   : > { %13952 = vst [vmem:[#allocation38_spill] sm:$0xff] %v12439_v18  ;;  %4929 = vmatmul.f32.gmra.mxu1 %v4800_v58  ;;  %v6394_v58 = vld [vmem:[#allocation2 + $0x38] sm:$0xff] }
 0x4ba   : > { %v4626_v35 = vpop.f32.mrf.mxu3  ;;  %5078 = vst.msk [vmem:[#allocation2 + $0x60] sm:$0xff] %vm289_vm0, %v5046_v33 }
 0x4bb   : > { %v4627_v28 = vadd.f32 %v4626_v35, %v4514_v38  ;;  %5188 = vrot.lane.b32.xlu0 %v12318_v62, %s8773_s28  ;;  %5380 = vrot.lane.b32.xlu1 %v11928_v5, %s8774_s29  ;;  %v12462_v5 = vld [vmem:[%s8878_s26 + $0xce] sm:$0xff]  ;;  %v12470_v35 = vpop.f32.mrf.mxu2 }
 0x4bc   : > { %v12465_v62 = vld [vmem:[%s8878_s26 + $0x110] sm:$0xff] }
 0x4bd   : > { %v4740_v21 = vadd.f32 %v12345_v63, %v4627_v28  ;;  %v5175_v44 = vpop.permute.xlu0 %5174  ;;  %5572 = vrot.lane.b32.xlu2 %v8346_v7, %s8775_s9  ;;  %v5367_v61 = vpop.permute.xlu1 %5366  ;;  %v4517_v63 = vadd.f32 %v12415_v14, %v12364_v47  ;;  %v8476_v28 = vld [vmem:[%s8878_s26 + $0x113] sm:$0xff] }
 0x4be   : > { %5268 = vst.msk [vmem:[#allocation2 + $0x30] sm:$0xff] %vm917_vm1, %v5175_v44  ;;  %v12457_v38 = vpop.permute.xlu2 %6205  ;;  %v12473_v44 = vpop.f32.mrf.mxu1 }
 0x4bf   : > { %v4801_v18 = vmax.f32 %v4740_v21, 0.0  ;;  %5460 = vst.msk [vmem:[#allocation2 + $0x30] sm:$0xff] %vm1110_vm2, %v5367_v61  ;;  %6753 = vmatmul.f32.gmra.mxu3 %v6394_v58  ;;  %v6398_v21 = vld [vmem:[#allocation2 + $0x58] sm:$0xff]  ;;  %v6397_v33 = vld [vmem:[#allocation2 + $0x50] sm:$0xff] }
 0x4c0   : > { %5652 = vst.msk [vmem:[#allocation2 + $0x30] sm:$0xff] %vm1303_vm3, %v12378_v37  ;;  %v12479_v37 = vpop.f32.mrf.mxu0  ;;  %8568 = vmatmul.msk.f32.gmra.mxu0 %vm289_vm0, %v6398_v21  ;;  %v8347_v21 = vld [vmem:[%s8878_s26 + $0xc0] sm:$0xff] }
 0x4c1   : > { %4932 = vmatmul.f32.gmra.mxu1 %v4801_v18  ;;  %13953 = vst [vmem:[#allocation39_spill] sm:$0xff] %v12473_v44 }
 0x4c2   : > { %v4629_v7 = vpop.f32.mrf.mxu3 }
 0x4c3   : > { %v4630_v61 = vadd.f32 %v4629_v7, %v4517_v63  ;;  %5832 = vrot.lane.b32.xlu0 %v12462_v5, %s8773_s28  ;;  %6025 = vrot.lane.b32.xlu1 %v12465_v62, %s8774_s29  ;;  %v12486_v63 = vld [vmem:[%s8878_s26 + $0x93] sm:$0xff] }
 0x4c4   : > { %5720 = vst.msk [vmem:[#allocation2 + $0x98] sm:$0xff] %vm289_vm0, %v12486_v63 }
 0x4c5   : > { %v4743_v47 = vadd.f32 %v12372_v49, %v4630_v61  ;;  %v5819_v18 = vpop.permute.xlu0 %5818  ;;  %6217 = vrot.lane.b32.xlu2 %v8476_v28, %s8775_s9  ;;  %v6012_v58 = vpop.permute.xlu1 %6011  ;;  %v4520_v49 = vadd.f32 %v12415_v14, %v12393_v6 }
 0x4c6   : > { %5910 = vst.msk [vmem:[#allocation2 + $0x68] sm:$0xff] %vm917_vm1, %v5819_v18  ;;  %v12489_v43 = vpop.permute.xlu2 %5562 }
 0x4c7   : > { %v4802_v7 = vmax.f32 %v4743_v47, 0.0  ;;  %6103 = vst.msk [vmem:[#allocation2 + $0x68] sm:$0xff] %vm1110_vm2, %v6012_v58  ;;  %6756 = vmatmul.f32.gmra.mxu3 %v6397_v33  ;;  %v6393_v44 = vld [vmem:[#allocation2 + $0x30] sm:$0xff] }
 0x4c8   : > { %6295 = vst.msk [vmem:[#allocation2 + $0x68] sm:$0xff] %vm1303_vm3, %v12400_v12  ;;  %6640 = vmatmul.f32.gmra.mxu2 %v6393_v44  ;;  %v12502_v12 = vpop.f32.mrf.mxu2  ;;  %v12504_v44 = vpop.f32.mrf.mxu1 }
 0x4c9   : > { %4935 = vmatmul.f32.gmra.mxu1 %v4802_v7  ;;  %13954 = vst [vmem:[#allocation40_spill] sm:$0xff] %v12504_v44  ;;  %v12509_v58 = vpop.f32.mrf.mxu0 }
 0x4ca   : > { %v4632_v28 = vpop.f32.mrf.mxu3 }
 0x4cb   : > { %v4633_v61 = vadd.f32 %v4632_v28, %v4520_v49  ;;  %5190 = vrot.lane.b32.xlu0 %v12375_v31, %s8773_s28  ;;  %5382 = vrot.lane.b32.xlu1 %v11976_v54, %s8774_s29  ;;  %v5047_v31 = vld [vmem:[%s8878_s26 + $0x38] sm:$0xff]  ;;  %v12521_v49 = vld [vmem:[%s8878_s26 + $0x120] sm:$0xff]  ;;  %v4523_v28 = vadd.f32 %v12415_v14, %v12435_v41 }
 0x4cc   : > { %5079 = vst.msk [vmem:[#allocation2 + $0x78] sm:$0xff] %vm289_vm0, %v5047_v31 }
 0x4cd   : > { %v4746_v6 = vadd.f32 %v12410_v27, %v4633_v61  ;;  %v5177_v47 = vpop.permute.xlu0 %5176  ;;  %5574 = vrot.lane.b32.xlu2 %v8347_v21, %s8775_s9  ;;  %v5369_v18 = vpop.permute.xlu1 %5368  ;;  %v12518_v27 = vld [vmem:[%s8878_s26 + $0xde] sm:$0xff] }
 0x4ce   : > { %5269 = vst.msk [vmem:[#allocation2 + $0x48] sm:$0xff] %vm917_vm1, %v5177_v47  ;;  %v12513_v7 = vpop.permute.xlu2 %6207  ;;  %v8477_v61 = vld [vmem:[%s8878_s26 + $0x123] sm:$0xff] }
 0x4cf   : > { %v4803_v33 = vmax.f32 %v4746_v6, 0.0  ;;  %5461 = vst.msk [vmem:[#allocation2 + $0x48] sm:$0xff] %vm1110_vm2, %v5369_v18  ;;  %v6400_v54 = vld [vmem:[#allocation2 + $0x68] sm:$0xff]  ;;  %v6401_v6 = vld [vmem:[#allocation2 + $0x70] sm:$0xff] }
 0x4d0   : > { %5653 = vst.msk [vmem:[#allocation2 + $0x48] sm:$0xff] %vm1303_vm3, %v12433_v3  ;;  %6759 = vmatmul.f32.gmra.mxu3 %v6400_v54  ;;  %8569 = vmatmul.msk.f32.gmra.mxu0 %vm289_vm0, %v6401_v6  ;;  %v4531_v41 = vpop.f32.mrf.mxu2  ;;  %v12538_v54 = vpop.f32.mrf.mxu1 }
 0x4d1   : > { %4938 = vmatmul.f32.gmra.mxu1 %v4803_v33  ;;  %v12536_v33 = vld [vmem:[%s8878_s26 + $0x9b] sm:$0xff]  ;;  %13955 = vst [vmem:[#allocation41_spill] sm:$0xff] %v12538_v54 }
 0x4d2   : > { %v4635_v21 = vpop.f32.mrf.mxu3  ;;  %5721 = vst.msk [vmem:[#allocation2 + $0xb0] sm:$0xff] %vm289_vm0, %v12536_v33 }
 0x4d3   : > { %v4636_v47 = vadd.f32 %v4635_v21, %v4523_v28  ;;  %5834 = vrot.lane.b32.xlu0 %v12518_v27, %s8773_s28  ;;  %6027 = vrot.lane.b32.xlu1 %v12521_v49, %s8774_s29 }
 0x4d5   : > { %v4749_v3 = vadd.f32 %v12445_v46, %v4636_v47  ;;  %v5821_v18 = vpop.permute.xlu0 %5820  ;;  %6219 = vrot.lane.b32.xlu2 %v8477_v61, %s8775_s9  ;;  %v6014_v31 = vpop.permute.xlu1 %6013  ;;  %v4526_v61 = vadd.f32 %v12415_v14, %v12470_v35  ;;  %v8348_v47 = vld [vmem:[%s8878_s26 + $0xc8] sm:$0xff] }
 0x4d6   : > { %5911 = vst.msk [vmem:[#allocation2 + $0x80] sm:$0xff] %vm917_vm1, %v5821_v18  ;;  %v12541_v44 = vpop.permute.xlu2 %5564  ;;  %v4757_v46 = vpop.f32.mrf.mxu0 }
 0x4d7   : > { %v4804_v28 = vmax.f32 %v4749_v3, 0.0  ;;  %6104 = vst.msk [vmem:[#allocation2 + $0x80] sm:$0xff] %vm1110_vm2, %v6014_v31  ;;  %v6396_v21 = vld [vmem:[#allocation2 + $0x48] sm:$0xff] }
 0x4d8   : > { %6296 = vst.msk [vmem:[#allocation2 + $0x80] sm:$0xff] %vm1303_vm3, %v12457_v38  ;;  %6643 = vmatmul.f32.gmra.mxu2 %v6396_v21  ;;  %v5048_v31 = vld [vmem:[%s8878_s26 + $0x48] sm:$0xff] }
 0x4d9   : > { %4941 = vmatmul.f32.gmra.mxu1 %v4804_v28  ;;  %5080 = vst.msk [vmem:[#allocation2 + $0x90] sm:$0xff] %vm289_vm0, %v5048_v31 }
 0x4da   : > { %v4638_v6 = vpop.f32.mrf.mxu3 }
 0x4db   : > { %v4639_v3 = vadd.f32 %v4638_v6, %v4526_v61  ;;  %5192 = vrot.lane.b32.xlu0 %v12430_v29, %s8773_s28  ;;  %5384 = vrot.lane.b32.xlu1 %v12027_v0, %s8774_s29  ;;  %v4534_v29 = vpop.f32.mrf.mxu2  ;;  %v12564_v0 = vld [vmem:[%s8878_s26 + $0xe6] sm:$0xff]  ;;  %v12569_v6 = vpop.f32.mrf.mxu1 }
 0x4dc   : > { %13956 = vst [vmem:[#allocation42_spill] sm:$0xff] %v12569_v6 }
 0x4dd   : > { %v4752_v38 = vadd.f32 %v12479_v37, %v4639_v3  ;;  %v5179_v18 = vpop.permute.xlu0 %5178  ;;  %5576 = vrot.lane.b32.xlu2 %v8348_v47, %s8775_s9  ;;  %v5371_v35 = vpop.permute.xlu1 %5370  ;;  %v12567_v37 = vld [vmem:[%s8878_s26 + $0x128] sm:$0xff]  ;;  %v4529_v47 = vadd.f32 %v12415_v14, %v12502_v12 }
 0x4de   : > { %5270 = vst.msk [vmem:[#allocation2 + $0x60] sm:$0xff] %vm917_vm1, %v5179_v18  ;;  %v8478_v18 = vld [vmem:[%s8878_s26 + $0x12b] sm:$0xff] }
 0x4df   : > { %v4805_v28 = vmax.f32 %v4752_v38, 0.0  ;;  %5462 = vst.msk [vmem:[#allocation2 + $0x60] sm:$0xff] %vm1110_vm2, %v5371_v35  ;;  %v6403_v21 = vld [vmem:[#allocation2 + $0x80] sm:$0xff]  ;;  %v12559_v61 = vpop.permute.xlu2 %6209  ;;  %v4760_v38 = vpop.f32.mrf.mxu0  ;;  %v6404_v35 = vld [vmem:[#allocation2 + $0x88] sm:$0xff] }
 0x4e0   : > { %5654 = vst.msk [vmem:[#allocation2 + $0x60] sm:$0xff] %vm1303_vm3, %v12489_v43  ;;  %6762 = vmatmul.f32.gmra.mxu3 %v6403_v21  ;;  %8570 = vmatmul.msk.f32.gmra.mxu0 %vm289_vm0, %v6404_v35 }
 0x4e1   : > { %4944 = vmatmul.f32.gmra.mxu1 %v4805_v28  ;;  %v12584_v28 = vld [vmem:[%s8878_s26 + $0xab] sm:$0xff] }
 0x4e2   : > { %v4641_v3 = vpop.f32.mrf.mxu3  ;;  %5722 = vst.msk [vmem:[#allocation2 + $0xc8] sm:$0xff] %vm289_vm0, %v12584_v28 }
 0x4e3   : > { %v4642_v54 = vadd.f32 %v4641_v3, %v4529_v47  ;;  %5836 = vrot.lane.b32.xlu0 %v12564_v0, %s8773_s28  ;;  %6029 = vrot.lane.b32.xlu1 %v12567_v37, %s8774_s29 }
 0x4e5   : > { %v4755_v43 = vadd.f32 %v12509_v58, %v4642_v54  ;;  %v5823_v12 = vpop.permute.xlu0 %5822  ;;  %6221 = vrot.lane.b32.xlu2 %v8478_v18, %s8775_s9  ;;  %v6016_v31 = vpop.permute.xlu1 %6015  ;;  %v4532_v58 = vadd.f32 %v12415_v14, %v4531_v41 }
 0x4e6   : > { %5912 = vst.msk [vmem:[#allocation2 + $0x98] sm:$0xff] %vm917_vm1, %v5823_v12  ;;  %v12592_v54 = vpop.f32.mrf.mxu1  ;;  %v4537_v18 = vpop.f32.mrf.mxu2 }
 0x4e7   : > { %v4806_v21 = vmax.f32 %v4755_v43, 0.0  ;;  %6105 = vst.msk [vmem:[#allocation2 + $0x98] sm:$0xff] %vm1110_vm2, %v6016_v31  ;;  %v6399_v47 = vld [vmem:[#allocation2 + $0x60] sm:$0xff]  ;;  %v12587_v3 = vpop.permute.xlu2 %5566  ;;  %v8349_v43 = vld [vmem:[%s8878_s26 + $0xd8] sm:$0xff] }
 0x4e8   : > { %6297 = vst.msk [vmem:[#allocation2 + $0x98] sm:$0xff] %vm1303_vm3, %v12513_v7  ;;  %6646 = vmatmul.f32.gmra.mxu2 %v6399_v47  ;;  %v4763_v7 = vpop.f32.mrf.mxu0  ;;  %v5049_v47 = vld [vmem:[%s8878_s26 + $0x50] sm:$0xff] }
 0x4e9   : > { %13957 = vst [vmem:[#allocation43_spill] sm:$0xff] %v12592_v54  ;;  %4947 = vmatmul.f32.gmra.mxu1 %v4806_v21 }
 0x4ea   : > { %v4644_v35 = vpop.f32.mrf.mxu3  ;;  %5081 = vst.msk [vmem:[#allocation2 + $0xa8] sm:$0xff] %vm289_vm0, %v5049_v47 }
 0x4eb   : > { %v4645_v12 = vadd.f32 %v4644_v35, %v4532_v58  ;;  %5194 = vrot.lane.b32.xlu0 %v12486_v63, %s8773_s28  ;;  %5386 = vrot.lane.b32.xlu1 %v12084_v36, %s8774_s29  ;;  %v12610_v36 = vld [vmem:[%s8878_s26 + $0xf6] sm:$0xff] }
 0x4ec   : > { %v12613_v63 = vld [vmem:[%s8878_s26 + $0x138] sm:$0xff] }
 0x4ed   : > { %v4758_v41 = vadd.f32 %v4757_v46, %v4645_v12  ;;  %v5181_v31 = vpop.permute.xlu0 %5180  ;;  %5578 = vrot.lane.b32.xlu2 %v8349_v43, %s8775_s9  ;;  %v5373_v21 = vpop.permute.xlu1 %5372  ;;  %v4535_v46 = vadd.f32 %v12415_v14, %v4534_v29  ;;  %v8479_v12 = vld [vmem:[%s8878_s26 + $0x13b] sm:$0xff] }
 0x4ee   : > { %5271 = vst.msk [vmem:[#allocation2 + $0x78] sm:$0xff] %vm917_vm1, %v5181_v31  ;;  %v12618_v31 = vpop.f32.mrf.mxu1 }
 0x4ef   : > { %v4807_v6 = vmax.f32 %v4758_v41, 0.0  ;;  %5463 = vst.msk [vmem:[#allocation2 + $0x78] sm:$0xff] %vm1110_vm2, %v5373_v21  ;;  %v6406_v58 = vld [vmem:[#allocation2 + $0x98] sm:$0xff]  ;;  %v12605_v35 = vpop.permute.xlu2 %6211  ;;  %v6407_v41 = vld [vmem:[#allocation2 + $0xa0] sm:$0xff] }
 0x4f0   : > { %5655 = vst.msk [vmem:[#allocation2 + $0x78] sm:$0xff] %vm1303_vm3, %v12541_v44  ;;  %6765 = vmatmul.f32.gmra.mxu3 %v6406_v58  ;;  %v4540_v44 = vpop.f32.mrf.mxu2  ;;  %8571 = vmatmul.msk.f32.gmra.mxu0 %vm289_vm0, %v6407_v41  ;;  %v4766_v58 = vpop.f32.mrf.mxu0  ;;  %v8350_v41 = vld [vmem:[%s8878_s26 + $0xe0] sm:$0xff] }
 0x4f1   : > { %4950 = vmatmul.f32.gmra.mxu1 %v4807_v6  ;;  %13958 = vst [vmem:[#allocation44_spill] sm:$0xff] %v12618_v31  ;;  %v12628_v31 = vld [vmem:[%s8878_s26 + $0xb3] sm:$0xff] }
 0x4f2   : > { %v4647_v43 = vpop.f32.mrf.mxu3  ;;  %5723 = vst.msk [vmem:[#allocation2 + $0xe0] sm:$0xff] %vm289_vm0, %v12628_v31 }
 0x4f3   : > { %v4648_v21 = vadd.f32 %v4647_v43, %v4535_v46  ;;  %5838 = vrot.lane.b32.xlu0 %v12610_v36, %s8773_s28  ;;  %6031 = vrot.lane.b32.xlu1 %v12613_v63, %s8774_s29 }
 0x4f5   : > { %v4761_v29 = vadd.f32 %v4760_v38, %v4648_v21  ;;  %v5825_v6 = vpop.permute.xlu0 %5824  ;;  %6223 = vrot.lane.b32.xlu2 %v8479_v12, %s8775_s9  ;;  %v6018_v47 = vpop.permute.xlu1 %6017  ;;  %v4538_v38 = vadd.f32 %v12415_v14, %v4537_v18  ;;  %v8612_v21 = vld [vmem:[%s13867_s4 + $0x1f8] sm:$0xff] }
 0x4f6   : > { %5913 = vst.msk [vmem:[#allocation2 + $0xb0] sm:$0xff] %vm917_vm1, %v5825_v6  ;;  %7038 = vmatpush.msrb.mxu1 %v8612_v21  ;;  %v12649_v18 = vpop.f32.mrf.mxu1  ;;  %v12666_v21 = vld [vmem:[%s8878_s26 + $0x140] sm:$0xff] }
 0x4f7   : > { %v4808_v46 = vmax.f32 %v4761_v29, 0.0  ;;  %6106 = vst.msk [vmem:[#allocation2 + $0xb0] sm:$0xff] %vm1110_vm2, %v6018_v47  ;;  %v6402_v43 = vld [vmem:[#allocation2 + $0x78] sm:$0xff]  ;;  %v12631_v54 = vpop.permute.xlu2 %5568 }
 0x4f8   : > { %6298 = vst.msk [vmem:[#allocation2 + $0xb0] sm:$0xff] %vm1303_vm3, %v12559_v61  ;;  %6649 = vmatmul.f32.gmra.mxu2 %v6402_v43  ;;  %v8611_v61 = vld [vmem:[%s13867_s4 + $0x1f0] sm:$0xff]  ;;  %v5050_v43 = vld [vmem:[%s8878_s26 + $0x60] sm:$0xff] }
 0x4f9   : > { %4953 = vmatmul.f32.gmra.mxu1 %v4808_v46  ;;  %13959 = vst [vmem:[#allocation45_spill] sm:$0xff] %v12649_v18  ;;  %v4543_v46 = vpop.f32.mrf.mxu2 }
 0x4fa   : > { %v4650_v12 = vpop.f32.mrf.mxu3  ;;  %7039 = vmatpush.msrb.mxu1 %v8611_v61  ;;  %v8609_v61 = vld [vmem:[%s13867_s4 + $0x1e0] sm:$0xff]  ;;  %5082 = vst.msk [vmem:[#allocation2 + $0xc0] sm:$0xff] %vm289_vm0, %v5050_v43 }
 0x4fb   : > { %v4651_v29 = vadd.f32 %v4650_v12, %v4538_v38  ;;  %5196 = vrot.lane.b32.xlu0 %v12536_v33, %s8773_s28  ;;  %5388 = vrot.lane.b32.xlu1 %v12189_v22, %s8774_s29  ;;  %v8610_v22 = vld [vmem:[%s13867_s4 + $0x1e8] sm:$0xff] }
 0x4fc   : > { %7040 = vmatpush.msrb.mxu1 %v8610_v22 }
 0x4fd   : > { %v4764_v6 = vadd.f32 %v4763_v7, %v4651_v29  ;;  %v5183_v47 = vpop.permute.xlu0 %5182  ;;  %5580 = vrot.lane.b32.xlu2 %v8350_v41, %s8775_s9  ;;  %v5375_v33 = vpop.permute.xlu1 %5374  ;;  %v12663_v41 = vld [vmem:[%s8878_s26 + $0xfe] sm:$0xff] }
 0x4fe   : > { %5272 = vst.msk [vmem:[#allocation2 + $0x90] sm:$0xff] %vm917_vm1, %v5183_v47  ;;  %v4769_v29 = vpop.f32.mrf.mxu0  ;;  %7041 = vmatpush.msrb.mxu1 %v8609_v61  ;;  %v12688_v61 = vld [vmem:[%s8878_s26 + $0xc3] sm:$0xff] }
 0x4ff   : > { %v4809_v38 = vmax.f32 %v4764_v6, 0.0  ;;  %5464 = vst.msk [vmem:[#allocation2 + $0x90] sm:$0xff] %vm1110_vm2, %v5375_v33  ;;  %v6409_v12 = vld [vmem:[#allocation2 + $0xb0] sm:$0xff]  ;;  %v12658_v7 = vpop.permute.xlu2 %6213  ;;  %v4541_v6 = vadd.f32 %v12415_v14, %v4540_v44  ;;  %v8480_v33 = vld [vmem:[%s8878_s26 + $0x143] sm:$0xff] }
 0x500   : > { %5656 = vst.msk [vmem:[#allocation2 + $0x90] sm:$0xff] %vm1303_vm3, %v12587_v3  ;;  %6768 = vmatmul.f32.gmra.mxu3 %v6409_v12  ;;  %v6410_v3 = vld [vmem:[#allocation2 + $0xb8] sm:$0xff]  ;;  %v8607_v44 = vld [vmem:[%s13867_s4 + $0x1d0] sm:$0xff] }
 0x501   : > { %4956 = vmatmul.f32.gmra.mxu1 %v4809_v38  ;;  %v8608_v12 = vld [vmem:[%s13867_s4 + $0x1d8] sm:$0xff]  ;;  %8572 = vmatmul.msk.f32.gmra.mxu0 %vm289_vm0, %v6410_v3  ;;  %5724 = vst.msk [vmem:[#allocation2 + $0xf8] sm:$0xff] %vm289_vm0, %v12688_v61 }
 0x502   : > { %v4653_v47 = vpop.f32.mrf.mxu3  ;;  %7042 = vmatpush.msrb.mxu1 %v8608_v12  ;;  %v8605_v12 = vld [vmem:[%s13867_s4 + $0x1c0] sm:$0xff] }
 0x503   : > { %v4654_v18 = vadd.f32 %v4653_v47, %v4541_v6  ;;  %5840 = vrot.lane.b32.xlu0 %v12663_v41, %s8773_s28  ;;  %6033 = vrot.lane.b32.xlu1 %v12666_v21, %s8774_s29  ;;  %v8606_v6 = vld [vmem:[%s13867_s4 + $0x1c8] sm:$0xff]  ;;  %v12693_v47 = vpop.f32.mrf.mxu1 }
 0x504   : > { %7043 = vmatpush.msrb.mxu1 %v8607_v44  ;;  %13960 = vst [vmem:[#allocation46_spill] sm:$0xff] %v12693_v47  ;;  %v4544_v44 = vadd.f32 %v12415_v14, %v4543_v46  ;;  %v8603_v46 = vld [vmem:[%s13867_s4 + $0x1b0] sm:$0xff] }
 0x505   : > { %v4767_v43 = vadd.f32 %v4766_v58, %v4654_v18  ;;  %v5827_v22 = vpop.permute.xlu0 %5826  ;;  %6225 = vrot.lane.b32.xlu2 %v8480_v33, %s8775_s9  ;;  %v6020_v38 = vpop.permute.xlu1 %6019 }
 0x506   : > { %5914 = vst.msk [vmem:[#allocation2 + $0xc8] sm:$0xff] %vm917_vm1, %v5827_v22  ;;  %v4546_v33 = vpop.f32.mrf.mxu2  ;;  %7044 = vmatpush.msrb.mxu1 %v8606_v6  ;;  %v4772_v22 = vpop.f32.mrf.mxu0 }
 0x507   : > { %v4810_v3 = vmax.f32 %v4767_v43, 0.0  ;;  %6107 = vst.msk [vmem:[#allocation2 + $0xc8] sm:$0xff] %vm1110_vm2, %v6020_v38  ;;  %v6405_v58 = vld [vmem:[#allocation2 + $0x90] sm:$0xff]  ;;  %v12696_v18 = vpop.permute.xlu2 %5570 }
 0x508   : > { %6299 = vst.msk [vmem:[#allocation2 + $0xc8] sm:$0xff] %vm1303_vm3, %v12605_v35  ;;  %6652 = vmatmul.f32.gmra.mxu2 %v6405_v58  ;;  %v8351_v38 = vld [vmem:[%s8878_s26 + $0xf0] sm:$0xff]  ;;  %7045 = vmatpush.msrb.mxu1 %v8605_v12  ;;  %v8604_v35 = vld [vmem:[%s13867_s4 + $0x1b8] sm:$0xff] }
 0x509   : > { %4959 = vmatmul.f32.gmra.mxu1 %v4810_v3 }
 0x50a   : > { %v4656_v43 = vpop.f32.mrf.mxu3  ;;  %7046 = vmatpush.msrb.mxu1 %v8604_v35 }
 0x50b   : > { %v4657_v6 = vadd.f32 %v4656_v43, %v4544_v44  ;;  %5198 = vrot.lane.b32.xlu0 %v12584_v28, %s8773_s28  ;;  %5390 = vrot.lane.b32.xlu1 %v12291_v39, %s8774_s29  ;;  %v5051_v44 = vld [vmem:[%s8878_s26 + $0x68] sm:$0xff] }
 0x50c   : > { %7047 = vmatpush.msrb.mxu1 %v8603_v46  ;;  %v8602_v39 = vld [vmem:[%s13867_s4 + $0x1a8] sm:$0xff]  ;;  %v4547_v46 = vadd.f32 %v12415_v14, %v4546_v33  ;;  %5083 = vst.msk [vmem:[#allocation2 + $0xd8] sm:$0xff] %vm289_vm0, %v5051_v44  ;;  %v8599_v44 = vld [vmem:[%s13867_s4 + $0x190] sm:$0xff] }
 0x50d   : > { %v4770_v3 = vadd.f32 %v4769_v29, %v4657_v6  ;;  %v5185_v58 = vpop.permute.xlu0 %5184  ;;  %5582 = vrot.lane.b32.xlu2 %v8351_v38, %s8775_s9  ;;  %v5377_v12 = vpop.permute.xlu1 %5376  ;;  %v12729_v29 = vld [vmem:[%s8878_s26 + $0x10e] sm:$0xff]  ;;  %v8601_v6 = vld [vmem:[%s13867_s4 + $0x1a0] sm:$0xff] }
 0x50e   : > { %5273 = vst.msk [vmem:[#allocation2 + $0xa8] sm:$0xff] %vm917_vm1, %v5185_v58  ;;  %v12732_v38 = vld [vmem:[%s8878_s26 + $0x150] sm:$0xff]  ;;  %7048 = vmatpush.msrb.mxu1 %v8602_v39  ;;  %v4549_v58 = vpop.f32.mrf.mxu2  ;;  %v8600_v39 = vld [vmem:[%s13867_s4 + $0x198] sm:$0xff]  ;;  %v4775_v33 = vpop.f32.mrf.mxu0 }
 0x50f   : > { %v4811_v28 = vmax.f32 %v4770_v3, 0.0  ;;  %5465 = vst.msk [vmem:[#allocation2 + $0xa8] sm:$0xff] %vm1110_vm2, %v5377_v12  ;;  %v6412_v43 = vld [vmem:[#allocation2 + $0xc8] sm:$0xff]  ;;  %v12724_v35 = vpop.permute.xlu2 %6215  ;;  %v12738_v3 = vpop.f32.mrf.mxu1 }
 0x510   : > { %5657 = vst.msk [vmem:[#allocation2 + $0xa8] sm:$0xff] %vm1303_vm3, %v12631_v54  ;;  %6771 = vmatmul.f32.gmra.mxu3 %v6412_v43  ;;  %v8481_v54 = vld [vmem:[%s8878_s26 + $0x153] sm:$0xff]  ;;  %7049 = vmatpush.msrb.mxu1 %v8601_v6 }
 0x511   : > { %13961 = vst [vmem:[#allocation47_spill] sm:$0xff] %v12738_v3  ;;  %4962 = vmatmul.f32.gmra.mxu1 %v4811_v28  ;;  %v6413_v43 = vld [vmem:[#allocation2 + $0xd0] sm:$0xff] }
 0x512   : > { %v4659_v12 = vpop.f32.mrf.mxu3  ;;  %8573 = vmatmul.msk.f32.gmra.mxu0 %vm289_vm0, %v6413_v43  ;;  %7050 = vmatpush.msrb.mxu1 %v8600_v39  ;;  %v8598_v43 = vld [vmem:[%s13867_s4 + $0x188] sm:$0xff] }
 0x513   : > { %v4660_v47 = vadd.f32 %v4659_v12, %v4547_v46  ;;  %5842 = vrot.lane.b32.xlu0 %v12729_v29, %s8773_s28  ;;  %6035 = vrot.lane.b32.xlu1 %v12732_v38, %s8774_s29  ;;  %v12756_v12 = vld [vmem:[%s8878_s26 + $0xcb] sm:$0xff] }
 0x514   : > { %7051 = vmatpush.msrb.mxu1 %v8599_v44  ;;  %5725 = vst.msk [vmem:[#allocation2 + $0x110] sm:$0xff] %vm289_vm0, %v12756_v12  ;;  %v8352_v44 = vld [vmem:[%s8878_s26 + $0xf8] sm:$0xff] }
 0x515   : > { %v4773_v28 = vadd.f32 %v4772_v22, %v4660_v47  ;;  %v5829_v6 = vpop.permute.xlu0 %5828  ;;  %6227 = vrot.lane.b32.xlu2 %v8481_v54, %s8775_s9  ;;  %v6022_v46 = vpop.permute.xlu1 %6021  ;;  %v8597_v47 = vld [vmem:[%s13867_s4 + $0x180] sm:$0xff]  ;;  %v4550_v22 = vadd.f32 %v12415_v14, %v4549_v58 }
 0x516   : > { %5915 = vst.msk [vmem:[#allocation2 + $0xe0] sm:$0xff] %vm917_vm1, %v5829_v6  ;;  %7052 = vmatpush.msrb.mxu1 %v8598_v43 }
 0x517   : > { %v4812_v39 = vmax.f32 %v4773_v28, 0.0  ;;  %6108 = vst.msk [vmem:[#allocation2 + $0xe0] sm:$0xff] %vm1110_vm2, %v6022_v46  ;;  %v6408_v3 = vld [vmem:[#allocation2 + $0xa8] sm:$0xff]  ;;  %v12762_v9 = vpop.permute.xlu2 %5572  ;;  %v12773_v28 = vpop.f32.mrf.mxu1 }
 0x518   : > { %6300 = vst.msk [vmem:[#allocation2 + $0xe0] sm:$0xff] %vm1303_vm3, %v12658_v7  ;;  %6655 = vmatmul.f32.gmra.mxu2 %v6408_v3  ;;  %7053 = vmatpush.msrb.mxu1 %v8597_v47  ;;  %v4552_v7 = vpop.f32.mrf.mxu2  ;;  %v5052_v3 = vld [vmem:[%s8878_s26 + $0x78] sm:$0xff] }
 0x519   : > { %4965 = vmatmul.f32.gmra.mxu1 %v4812_v39  ;;  %13962 = vst [vmem:[#allocation48_spill] sm:$0xff] %v12773_v28  ;;  %v4778_v39 = vpop.f32.mrf.mxu0  ;;  %v6443_v28 = vld [vmem:[#allocation2 + $0x1c0] sm:$0xff] }
 0x51a   : > { %v4662_v54 = vpop.f32.mrf.mxu3  ;;  %5084 = vst.msk [vmem:[#allocation2 + $0xf0] sm:$0xff] %vm289_vm0, %v5052_v3  ;;  %v6416_v3 = vld [vmem:[#allocation2 + $0xe8] sm:$0xff] }
 0x51b   : > { %v4663_v6 = vadd.f32 %v4662_v54, %v4550_v22  ;;  %5200 = vrot.lane.b32.xlu0 %v12628_v31, %s8773_s28  ;;  %5392 = vrot.lane.b32.xlu1 %v12354_v26, %s8774_s29  ;;  %v12792_v22 = vld [vmem:[%s8878_s26 + $0x158] sm:$0xff]  ;;  %v4553_v54 = vadd.f32 %v12415_v14, %v4552_v7 }
 0x51c   : > { %8574 = vmatmul.msk.f32.gmra.mxu0 %vm289_vm0, %v6416_v3 }
 0x51d   : > { %v4776_v58 = vadd.f32 %v4775_v33, %v4663_v6  ;;  %v5187_v46 = vpop.permute.xlu0 %5186  ;;  %5584 = vrot.lane.b32.xlu2 %v8352_v44, %s8775_s9  ;;  %v5379_v43 = vpop.permute.xlu1 %5378  ;;  %v12789_v33 = vld [vmem:[%s8878_s26 + $0x116] sm:$0xff] }
 0x51e   : > { %5274 = vst.msk [vmem:[#allocation2 + $0xc0] sm:$0xff] %vm917_vm1, %v5187_v46  ;;  %v8482_v6 = vld [vmem:[%s8878_s26 + $0x15b] sm:$0xff] }
 0x51f   : > { %v4813_v47 = vmax.f32 %v4776_v58, 0.0  ;;  %5466 = vst.msk [vmem:[#allocation2 + $0xc0] sm:$0xff] %vm1110_vm2, %v5379_v43  ;;  %v6415_v26 = vld [vmem:[#allocation2 + $0xe0] sm:$0xff]  ;;  %v12784_v31 = vpop.permute.xlu2 %6217  ;;  %v12804_v46 = vpop.f32.mrf.mxu1 }
 0x520   : > { %5658 = vst.msk [vmem:[#allocation2 + $0xc0] sm:$0xff] %vm1303_vm3, %v12696_v18  ;;  %6774 = vmatmul.f32.gmra.mxu3 %v6415_v26  ;;  %v12802_v18 = vld [vmem:[%s8878_s26 + $0xdb] sm:$0xff]  ;;  %v4555_v7 = vpop.f32.mrf.mxu2 }
 0x521   : > { %4968 = vmatmul.f32.gmra.mxu1 %v4813_v47  ;;  %13963 = vst [vmem:[#allocation49_spill] sm:$0xff] %v12804_v46 }
 0x522   : > { %v4665_v44 = vpop.f32.mrf.mxu3  ;;  %5726 = vst.msk [vmem:[#allocation2 + $0x128] sm:$0xff] %vm289_vm0, %v12802_v18 }
 0x523   : > { %v4666_v58 = vadd.f32 %v4665_v44, %v4553_v54  ;;  %5844 = vrot.lane.b32.xlu0 %v12789_v33, %s8773_s28  ;;  %6037 = vrot.lane.b32.xlu1 %v12792_v22, %s8774_s29 }
 0x525   : > { %v4779_v43 = vadd.f32 %v4778_v39, %v4666_v58  ;;  %v5831_v26 = vpop.permute.xlu0 %5830  ;;  %6229 = vrot.lane.b32.xlu2 %v8482_v6, %s8775_s9  ;;  %v6024_v47 = vpop.permute.xlu1 %6023  ;;  %v4556_v6 = vadd.f32 %v12415_v14, %v4555_v7 }
 0x526   : > { %5916 = vst.msk [vmem:[#allocation2 + $0xf8] sm:$0xff] %vm917_vm1, %v5831_v26  ;;  %v4781_v39 = vpop.f32.mrf.mxu0  ;;  %v12824_v26 = vld [vmem:[%s13868_s5 + $0x3] ss:$0 sm:$0xff] }
 0x527   : > { %v4814_v54 = vmax.f32 %v4779_v43, 0.0  ;;  %6109 = vst.msk [vmem:[#allocation2 + $0xf8] sm:$0xff] %vm1110_vm2, %v6024_v47  ;;  %v6411_v44 = vld [vmem:[#allocation2 + $0xc0] sm:$0xff]  ;;  %v12811_v3 = vpop.permute.xlu2 %5574 }
 0x528   : > { %6301 = vst.msk [vmem:[#allocation2 + $0xf8] sm:$0xff] %vm1303_vm3, %v12724_v35  ;;  %6658 = vmatmul.f32.gmra.mxu2 %v6411_v44  ;;  %v5053_v43 = vld [vmem:[%s8878_s26 + $0x80] sm:$0xff] }
 0x529   : > { %4971 = vmatmul.f32.gmra.mxu1 %v4814_v54  ;;  %5085 = vst.msk [vmem:[#allocation2 + $0x108] sm:$0xff] %vm289_vm0, %v5053_v43  ;;  %v8483_v43 = vld [vmem:[%s8878_s26 + $0x16b] sm:$0xff] }
 0x52a   : > { %v4668_v58 = vpop.f32.mrf.mxu3 }
 0x52b   : > { %v4669_v46 = vadd.f32 %v4668_v58, %v4556_v6  ;;  %5202 = vrot.lane.b32.xlu0 %v12688_v61, %s8773_s28  ;;  %5394 = vrot.lane.b32.xlu1 %v12405_v30, %s8774_s29  ;;  %v6635_v14 = vpop.f32.mrf.mxu2  ;;  %v12830_v61 = vpop.f32.mrf.mxu1 }
 0x52c   : > { %13964 = vst [vmem:[#allocation50_spill] sm:$0xff] %v12830_v61  ;;  %v6425_v61 = vld [vmem:[#allocation2 + $0x130] sm:$0xff] }
 0x52d   : > { %v4782_v35 = vadd.f32 %v4781_v39, %v4669_v46  ;;  %v5189_v47 = vpop.permute.xlu0 %5188  ;;  %5586 = vrot.lane.b32.xlu2 %v12408_v20, %s8775_s9  ;;  %v5381_v30 = vpop.permute.xlu1 %5380  ;;  %v12838_v20 = vld [vmem:[%s8878_s26 + $0x126] sm:$0xff]  ;;  %v6636_v39 = vadd.f32 %v12824_v26, %v6635_v14 }
 0x52e   : > { %5275 = vst.msk [vmem:[#allocation2 + $0xd8] sm:$0xff] %vm917_vm1, %v5189_v47  ;;  %v12841_v46 = vld [vmem:[%s8878_s26 + $0x168] sm:$0xff]  ;;  %v6861_v58 = vpop.f32.mrf.mxu0 }
 0x52f   : > { %v4815_v7 = vmax.f32 %v4782_v35, 0.0  ;;  %5467 = vst.msk [vmem:[#allocation2 + $0xd8] sm:$0xff] %vm1110_vm2, %v5381_v30  ;;  %v6418_v54 = vld [vmem:[#allocation2 + $0xf8] sm:$0xff]  ;;  %v12833_v44 = vpop.permute.xlu2 %6219  ;;  %v6419_v35 = vld [vmem:[#allocation2 + $0x100] sm:$0xff] }
 0x530   : > { %5659 = vst.msk [vmem:[#allocation2 + $0xd8] sm:$0xff] %vm1303_vm3, %v12762_v9  ;;  %6777 = vmatmul.f32.gmra.mxu3 %v6418_v54  ;;  %8575 = vmatmul.msk.f32.gmra.mxu0 %vm289_vm0, %v6419_v35  ;;  %v12851_v9 = vld [vmem:[%s8878_s26 + $0xe3] sm:$0xff] }
 0x531   : > { %4974 = vmatmul.f32.gmra.mxu1 %v4815_v7  ;;  %5727 = vst.msk [vmem:[#allocation2 + $0x140] sm:$0xff] %vm289_vm0, %v12851_v9 }
 0x532   : > { %v6748_v6 = vpop.f32.mrf.mxu3 }
 0x533   : > { %v6749_v47 = vadd.f32 %v6748_v6, %v6636_v39  ;;  %5846 = vrot.lane.b32.xlu0 %v12838_v20, %s8773_s28  ;;  %6039 = vrot.lane.b32.xlu1 %v12841_v46, %s8774_s29 }
 0x535   : > { %v6862_v30 = vadd.f32 %v6861_v58, %v6749_v47  ;;  %v5833_v54 = vpop.permute.xlu0 %5832  ;;  %6231 = vrot.lane.b32.xlu2 %v8483_v43, %s8775_s9  ;;  %v6026_v14 = vpop.permute.xlu1 %6025 }
 0x536   : > { %5917 = vst.msk [vmem:[#allocation2 + $0x110] sm:$0xff] %vm917_vm1, %v5833_v54  ;;  %v12860_v58 = vpop.f32.mrf.mxu1  ;;  %v6864_v47 = vpop.f32.mrf.mxu0 }
 0x537   : > { %v6957_v7 = vmax.f32 %v6862_v30, 0.0  ;;  %6110 = vst.msk [vmem:[#allocation2 + $0x110] sm:$0xff] %vm1110_vm2, %v6026_v14  ;;  %v6414_v39 = vld [vmem:[#allocation2 + $0xd8] sm:$0xff]  ;;  %v5577_v6 = vpop.permute.xlu2 %5576  ;;  %v5054_v30 = vld [vmem:[%s8878_s26 + $0x90] sm:$0xff] }
 0x538   : > { %6302 = vst.msk [vmem:[#allocation2 + $0x110] sm:$0xff] %vm1303_vm3, %v12784_v31  ;;  %6661 = vmatmul.f32.gmra.mxu2 %v6414_v39 }
 0x539   : > { %13965 = vst [vmem:[#allocation51_spill] sm:$0xff] %v12860_v58  ;;  %7054 = vmatmul.f32.vlgmr.msrb.gmra.mxu1 %v6957_v7  ;;  %v8484_v58 = vld [vmem:[%s8878_s26 + $0x173] sm:$0xff] }
 0x53a   : > { %v6751_v54 = vpop.f32.mrf.mxu3  ;;  %5086 = vst.msk [vmem:[#allocation2 + $0x120] sm:$0xff] %vm289_vm0, %v5054_v30 }
 0x53b   : > { %5204 = vrot.lane.b32.xlu0 %v12756_v12, %s8773_s28  ;;  %v6638_v43 = vpop.f32.mrf.mxu2  ;;  %5396 = vrot.lane.b32.xlu1 %v12462_v5, %s8774_s29 }
 0x53c   : > { %v6639_v35 = vadd.f32 %v12824_v26, %v6638_v43  ;;  %v12878_v43 = vld [vmem:[%s8878_s26 + $0x12e] sm:$0xff] }
 0x53d   : > { %v5191_v31 = vpop.permute.xlu0 %5190  ;;  %5588 = vrot.lane.b32.xlu2 %v12465_v62, %s8775_s9  ;;  %v5383_v12 = vpop.permute.xlu1 %5382  ;;  %v12881_v62 = vld [vmem:[%s8878_s26 + $0x170] sm:$0xff] }
 0x53e   : > { %5276 = vst.msk [vmem:[#allocation2 + $0xf0] sm:$0xff] %vm917_vm1, %v5191_v31  ;;  %v6752_v14 = vadd.f32 %v6751_v54, %v6639_v35  ;;  %v6422_v31 = vld [vmem:[#allocation2 + $0x118] sm:$0xff]  ;;  %v12888_v35 = vpop.f32.mrf.mxu1 }
 0x53f   : > { %5468 = vst.msk [vmem:[#allocation2 + $0xf0] sm:$0xff] %vm1110_vm2, %v5383_v12  ;;  %v6421_v5 = vld [vmem:[#allocation2 + $0x110] sm:$0xff]  ;;  %v12873_v7 = vpop.permute.xlu2 %6221  ;;  %8576 = vmatmul.msk.f32.gmra.mxu0 %vm289_vm0, %v6422_v31 }
 0x540   : > { %5660 = vst.msk [vmem:[#allocation2 + $0xf0] sm:$0xff] %vm1303_vm3, %v12811_v3  ;;  %v6865_v39 = vadd.f32 %v6864_v47, %v6752_v14  ;;  %6780 = vmatmul.f32.gmra.mxu3 %v6421_v5  ;;  %v12892_v3 = vld [vmem:[%s8878_s26 + $0xf3] sm:$0xff] }
 0x541   : > { %13966 = vst [vmem:[#allocation52_spill] sm:$0xff] %v12888_v35  ;;  %v12919_v35 = vld [vmem:[%s8878_s26 + $0x180] sm:$0xff] }
 0x542   : > { %v6958_v30 = vmax.f32 %v6865_v39, 0.0  ;;  %5728 = vst.msk [vmem:[#allocation2 + $0x158] sm:$0xff] %vm289_vm0, %v12892_v3  ;;  %v6867_v39 = vpop.f32.mrf.mxu0  ;;  %v6754_v31 = vpop.f32.mrf.mxu3 }
 0x543   : > { %5848 = vrot.lane.b32.xlu0 %v12878_v43, %s8773_s28  ;;  %6041 = vrot.lane.b32.xlu1 %v12881_v62, %s8774_s29 }
 0x544   : > { %7057 = vmatmul.f32.gmra.mxu1 %v6958_v30  ;;  %v5055_v30 = vld [vmem:[%s8878_s26 + $0x98] sm:$0xff] }
 0x545   : > { %v5835_v47 = vpop.permute.xlu0 %5834  ;;  %6233 = vrot.lane.b32.xlu2 %v8484_v58, %s8775_s9  ;;  %v6028_v54 = vpop.permute.xlu1 %6027  ;;  %5087 = vst.msk [vmem:[#allocation2 + $0x138] sm:$0xff] %vm289_vm0, %v5055_v30  ;;  %v8485_v30 = vld [vmem:[%s8878_s26 + $0x183] sm:$0xff] }
 0x546   : > { %5918 = vst.msk [vmem:[#allocation2 + $0x128] sm:$0xff] %vm917_vm1, %v5835_v47 }
 0x547   : > { %6111 = vst.msk [vmem:[#allocation2 + $0x128] sm:$0xff] %vm1110_vm2, %v6028_v54  ;;  %v6417_v12 = vld [vmem:[#allocation2 + $0xf0] sm:$0xff]  ;;  %v5579_v14 = vpop.permute.xlu2 %5578  ;;  %8577 = vmatmul.msk.f32.gmra.mxu0 %vm289_vm0, %v6425_v61 }
 0x548   : > { %6303 = vst.msk [vmem:[#allocation2 + $0x128] sm:$0xff] %vm1303_vm3, %v12833_v44  ;;  %6664 = vmatmul.f32.gmra.mxu2 %v6417_v12 }
 0x54b   : > { %5206 = vrot.lane.b32.xlu0 %v12802_v18, %s8773_s28  ;;  %v6641_v5 = vpop.f32.mrf.mxu2  ;;  %5398 = vrot.lane.b32.xlu1 %v12518_v27, %s8774_s29 }
 0x54c   : > { %v6642_v58 = vadd.f32 %v12824_v26, %v6641_v5  ;;  %v12916_v5 = vld [vmem:[%s8878_s26 + $0x13e] sm:$0xff] }
 0x54d   : > { %v5193_v47 = vpop.permute.xlu0 %5192  ;;  %5590 = vrot.lane.b32.xlu2 %v12521_v49, %s8775_s9  ;;  %v5385_v18 = vpop.permute.xlu1 %5384 }
 0x54e   : > { %5277 = vst.msk [vmem:[#allocation2 + $0x108] sm:$0xff] %vm917_vm1, %v5193_v47  ;;  %v6755_v44 = vadd.f32 %v6754_v31, %v6642_v58  ;;  %v12926_v58 = vpop.f32.mrf.mxu1 }
 0x54f   : > { %5469 = vst.msk [vmem:[#allocation2 + $0x108] sm:$0xff] %vm1110_vm2, %v5385_v18  ;;  %v6424_v27 = vld [vmem:[#allocation2 + $0x128] sm:$0xff]  ;;  %v12912_v54 = vpop.permute.xlu2 %6223 }
 0x550   : > { %5661 = vst.msk [vmem:[#allocation2 + $0x108] sm:$0xff] %vm1303_vm3, %v5577_v6  ;;  %v6868_v12 = vadd.f32 %v6867_v39, %v6755_v44  ;;  %6783 = vmatmul.f32.gmra.mxu3 %v6424_v27  ;;  %v12930_v6 = vld [vmem:[%s8878_s26 + $0xfb] sm:$0xff]  ;;  %v6870_v27 = vpop.f32.mrf.mxu0 }
 0x551   : > { %13967 = vst [vmem:[#allocation53_spill] sm:$0xff] %v12926_v58  ;;  %v8459_v58 = vld [vmem:[%s8878_s26 + $0x1c8] sm:$0xff] }
 0x552   : > { %v6959_v49 = vmax.f32 %v6868_v12, 0.0  ;;  %5729 = vst.msk [vmem:[#allocation2 + $0x170] sm:$0xff] %vm289_vm0, %v12930_v6  ;;  %v5056_v12 = vld [vmem:[%s8878_s26 + $0xa8] sm:$0xff] }
 0x553   : > { %5850 = vrot.lane.b32.xlu0 %v12916_v5, %s8773_s28  ;;  %6043 = vrot.lane.b32.xlu1 %v12919_v35, %s8774_s29  ;;  %5088 = vst.msk [vmem:[#allocation2 + $0x150] sm:$0xff] %vm289_vm0, %v5056_v12 }
 0x554   : > { %7060 = vmatmul.f32.gmra.mxu1 %v6959_v49  ;;  %v6757_v49 = vpop.f32.mrf.mxu3 }
 0x555   : > { %v5837_v39 = vpop.permute.xlu0 %5836  ;;  %6235 = vrot.lane.b32.xlu2 %v8485_v30, %s8775_s9  ;;  %v6030_v31 = vpop.permute.xlu1 %6029 }
 0x556   : > { %5919 = vst.msk [vmem:[#allocation2 + $0x140] sm:$0xff] %vm917_vm1, %v5837_v39 }
 0x557   : > { %6112 = vst.msk [vmem:[#allocation2 + $0x140] sm:$0xff] %vm1110_vm2, %v6030_v31  ;;  %v6420_v47 = vld [vmem:[#allocation2 + $0x108] sm:$0xff]  ;;  %v5581_v18 = vpop.permute.xlu2 %5580 }
 0x558   : > { %6304 = vst.msk [vmem:[#allocation2 + $0x140] sm:$0xff] %vm1303_vm3, %v12873_v7  ;;  %6667 = vmatmul.f32.gmra.mxu2 %v6420_v47  ;;  %v12954_v47 = vld [vmem:[%s8878_s26 + $0x146] sm:$0xff] }
 0x55b   : > { %5208 = vrot.lane.b32.xlu0 %v12851_v9, %s8773_s28  ;;  %v6644_v61 = vpop.f32.mrf.mxu2  ;;  %5400 = vrot.lane.b32.xlu1 %v12564_v0, %s8774_s29 }
 0x55c   : > { %v6645_v44 = vadd.f32 %v12824_v26, %v6644_v61  ;;  %v12957_v61 = vld [vmem:[%s8878_s26 + $0x188] sm:$0xff] }
 0x55d   : > { %v5195_v30 = vpop.permute.xlu0 %5194  ;;  %5592 = vrot.lane.b32.xlu2 %v12567_v37, %s8775_s9  ;;  %v5387_v9 = vpop.permute.xlu1 %5386  ;;  %v8486_v37 = vld [vmem:[%s8878_s26 + $0x18b] sm:$0xff] }
 0x55e   : > { %5278 = vst.msk [vmem:[#allocation2 + $0x120] sm:$0xff] %vm917_vm1, %v5195_v30  ;;  %v6758_v7 = vadd.f32 %v6757_v49, %v6645_v44  ;;  %v6428_v30 = vld [vmem:[#allocation2 + $0x148] sm:$0xff]  ;;  %v12965_v44 = vpop.f32.mrf.mxu1 }
 0x55f   : > { %5470 = vst.msk [vmem:[#allocation2 + $0x120] sm:$0xff] %vm1110_vm2, %v5387_v9  ;;  %v6427_v0 = vld [vmem:[#allocation2 + $0x140] sm:$0xff]  ;;  %v12950_v39 = vpop.permute.xlu2 %6225  ;;  %8578 = vmatmul.msk.f32.gmra.mxu0 %vm289_vm0, %v6428_v30  ;;  %v5057_v30 = vld [vmem:[%s8878_s26 + $0xb0] sm:$0xff] }
 0x560   : > { %5662 = vst.msk [vmem:[#allocation2 + $0x120] sm:$0xff] %vm1303_vm3, %v5579_v14  ;;  %v6871_v31 = vadd.f32 %v6870_v27, %v6758_v7  ;;  %6786 = vmatmul.f32.gmra.mxu3 %v6427_v0  ;;  %v12969_v14 = vld [vmem:[%s8878_s26 + $0x10b] sm:$0xff] }
 0x561   : > { %5741 = vst.msk [vmem:[#allocation2 + $0x290] sm:$0xff] %vm289_vm0, %v8486_v37 }
 0x562   : > { %v6960_v12 = vmax.f32 %v6871_v31, 0.0  ;;  %13968 = vst [vmem:[#allocation54_spill] sm:$0xff] %v12965_v44  ;;  %v12996_v44 = vld [vmem:[%s8878_s26 + $0x156] sm:$0xff] }
 0x563   : > { %5852 = vrot.lane.b32.xlu0 %v12954_v47, %s8773_s28  ;;  %6045 = vrot.lane.b32.xlu1 %v12957_v61, %s8774_s29  ;;  %5730 = vst.msk [vmem:[#allocation2 + $0x188] sm:$0xff] %vm289_vm0, %v12969_v14 }
 0x564   : > { %7063 = vmatmul.f32.gmra.mxu1 %v6960_v12  ;;  %v7288_v12 = vld [vmem:[%s13866_s3 + $0x18] sm:$0xff]  ;;  %5089 = vst.msk [vmem:[#allocation2 + $0x168] sm:$0xff] %vm289_vm0, %v5057_v30 }
 0x565   : > { %v5839_v27 = vpop.permute.xlu0 %5838  ;;  %6237 = vrot.lane.b32.xlu2 %v8486_v37, %s8775_s9  ;;  %v6032_v49 = vpop.permute.xlu1 %6031  ;;  %7305 = vmatpush.msra.mxu3 %v7288_v12  ;;  %v8487_v12 = vld [vmem:[%s8878_s26 + $0x19b] sm:$0xff] }
 0x566   : > { %5920 = vst.msk [vmem:[#allocation2 + $0x158] sm:$0xff] %vm917_vm1, %v5839_v27  ;;  %v6873_v37 = vpop.f32.mrf.mxu0  ;;  %v6760_v27 = vpop.f32.mrf.mxu3 }
 0x567   : > { %6113 = vst.msk [vmem:[#allocation2 + $0x158] sm:$0xff] %vm1110_vm2, %v6032_v49  ;;  %v6423_v9 = vld [vmem:[#allocation2 + $0x120] sm:$0xff]  ;;  %v5583_v7 = vpop.permute.xlu2 %5582 }
 0x568   : > { %6305 = vst.msk [vmem:[#allocation2 + $0x158] sm:$0xff] %vm1303_vm3, %v12912_v54  ;;  %6670 = vmatmul.f32.gmra.mxu2 %v6423_v9 }
 0x569   : > { %5742 = vst.msk [vmem:[#allocation2 + $0x2a8] sm:$0xff] %vm289_vm0, %v8487_v12 }
 0x56b   : > { %5210 = vrot.lane.b32.xlu0 %v12892_v3, %s8773_s28  ;;  %v6647_v0 = vpop.f32.mrf.mxu2  ;;  %5402 = vrot.lane.b32.xlu1 %v12610_v36, %s8774_s29 }
 0x56c   : > { %v6648_v31 = vadd.f32 %v12824_v26, %v6647_v0 }
 0x56d   : > { %v5197_v54 = vpop.permute.xlu0 %5196  ;;  %5594 = vrot.lane.b32.xlu2 %v12613_v63, %s8775_s9  ;;  %v5389_v36 = vpop.permute.xlu1 %5388  ;;  %v12999_v63 = vld [vmem:[%s8878_s26 + $0x198] sm:$0xff] }
 0x56e   : > { %5279 = vst.msk [vmem:[#allocation2 + $0x138] sm:$0xff] %vm917_vm1, %v5197_v54  ;;  %v6761_v3 = vadd.f32 %v6760_v27, %v6648_v31  ;;  %v6431_v54 = vld [vmem:[#allocation2 + $0x160] sm:$0xff]  ;;  %v13007_v31 = vpop.f32.mrf.mxu1 }
 0x56f   : > { %5471 = vst.msk [vmem:[#allocation2 + $0x138] sm:$0xff] %vm1110_vm2, %v5389_v36  ;;  %v6430_v49 = vld [vmem:[#allocation2 + $0x158] sm:$0xff]  ;;  %v12992_v9 = vpop.permute.xlu2 %6227  ;;  %8579 = vmatmul.msk.f32.gmra.mxu0 %vm289_vm0, %v6431_v54  ;;  %v6763_v54 = vpop.f32.mrf.mxu3 }
 0x570   : > { %5663 = vst.msk [vmem:[#allocation2 + $0x138] sm:$0xff] %vm1303_vm3, %v5581_v18  ;;  %v6874_v0 = vadd.f32 %v6873_v37, %v6761_v3  ;;  %6789 = vmatmul.f32.gmra.mxu3 %v6430_v49  ;;  %v13011_v18 = vld [vmem:[%s8878_s26 + $0x113] sm:$0xff] }
 0x571   : > { %13969 = vst [vmem:[#allocation55_spill] sm:$0xff] %v13007_v31  ;;  %v13038_v31 = vld [vmem:[%s8878_s26 + $0x1a0] sm:$0xff] }
 0x572   : > { %v6961_v30 = vmax.f32 %v6874_v0, 0.0  ;;  %5731 = vst.msk [vmem:[#allocation2 + $0x1a0] sm:$0xff] %vm289_vm0, %v13011_v18 }
 0x573   : > { %5854 = vrot.lane.b32.xlu0 %v12996_v44, %s8773_s28  ;;  %6047 = vrot.lane.b32.xlu1 %v12999_v63, %s8774_s29 }
 0x574   : > { %7066 = vmatmul.f32.gmra.mxu1 %v6961_v30  ;;  %v5058_v30 = vld [vmem:[%s8878_s26 + $0xc0] sm:$0xff] }
 0x575   : > { %v5841_v37 = vpop.permute.xlu0 %5840  ;;  %6239 = vrot.lane.b32.xlu2 %v8487_v12, %s8775_s9  ;;  %v6034_v27 = vpop.permute.xlu1 %6033  ;;  %5090 = vst.msk [vmem:[#allocation2 + $0x180] sm:$0xff] %vm289_vm0, %v5058_v30 }
 0x576   : > { %5921 = vst.msk [vmem:[#allocation2 + $0x170] sm:$0xff] %vm917_vm1, %v5841_v37  ;;  %v6876_v12 = vpop.f32.mrf.mxu0 }
 0x577   : > { %6114 = vst.msk [vmem:[#allocation2 + $0x170] sm:$0xff] %vm1110_vm2, %v6034_v27  ;;  %v6426_v36 = vld [vmem:[#allocation2 + $0x138] sm:$0xff]  ;;  %v5585_v3 = vpop.permute.xlu2 %5584 }
 0x578   : > { %6306 = vst.msk [vmem:[#allocation2 + $0x170] sm:$0xff] %vm1303_vm3, %v12950_v39  ;;  %6673 = vmatmul.f32.gmra.mxu2 %v6426_v36 }
 0x57b   : > { %5212 = vrot.lane.b32.xlu0 %v12930_v6, %s8773_s28  ;;  %v6650_v49 = vpop.f32.mrf.mxu2  ;;  %5404 = vrot.lane.b32.xlu1 %v12663_v41, %s8774_s29 }
 0x57c   : > { %v6651_v0 = vadd.f32 %v12824_v26, %v6650_v49  ;;  %v13035_v49 = vld [vmem:[%s8878_s26 + $0x15e] sm:$0xff] }
 0x57d   : > { %v5199_v37 = vpop.permute.xlu0 %5198  ;;  %5596 = vrot.lane.b32.xlu2 %v12666_v21, %s8775_s9  ;;  %v5391_v6 = vpop.permute.xlu1 %5390  ;;  %v8488_v21 = vld [vmem:[%s8878_s26 + $0x1a3] sm:$0xff] }
 0x57e   : > { %5280 = vst.msk [vmem:[#allocation2 + $0x150] sm:$0xff] %vm917_vm1, %v5199_v37  ;;  %v6764_v39 = vadd.f32 %v6763_v54, %v6651_v0  ;;  %v6434_v37 = vld [vmem:[#allocation2 + $0x178] sm:$0xff]  ;;  %v13046_v0 = vpop.f32.mrf.mxu1 }
 0x57f   : > { %5472 = vst.msk [vmem:[#allocation2 + $0x150] sm:$0xff] %vm1110_vm2, %v5391_v6  ;;  %v6433_v41 = vld [vmem:[#allocation2 + $0x170] sm:$0xff]  ;;  %v13031_v27 = vpop.permute.xlu2 %6229  ;;  %8580 = vmatmul.msk.f32.gmra.mxu0 %vm289_vm0, %v6434_v37  ;;  %v6766_v37 = vpop.f32.mrf.mxu3 }
 0x580   : > { %5664 = vst.msk [vmem:[#allocation2 + $0x150] sm:$0xff] %vm1303_vm3, %v5583_v7  ;;  %v6877_v36 = vadd.f32 %v6876_v12, %v6764_v39  ;;  %6792 = vmatmul.f32.gmra.mxu3 %v6433_v41  ;;  %v13050_v7 = vld [vmem:[%s8878_s26 + $0x123] sm:$0xff] }
 0x581   : > { %5743 = vst.msk [vmem:[#allocation2 + $0x2c0] sm:$0xff] %vm289_vm0, %v8488_v21 }
 0x582   : > { %v6962_v30 = vmax.f32 %v6877_v36, 0.0  ;;  %13970 = vst [vmem:[#allocation56_spill] sm:$0xff] %v13046_v0  ;;  %v13077_v0 = vld [vmem:[%s8878_s26 + $0x1b0] sm:$0xff] }
 0x583   : > { %5856 = vrot.lane.b32.xlu0 %v13035_v49, %s8773_s28  ;;  %6049 = vrot.lane.b32.xlu1 %v13038_v31, %s8774_s29  ;;  %5732 = vst.msk [vmem:[#allocation2 + $0x1b8] sm:$0xff] %vm289_vm0, %v13050_v7 }
 0x584   : > { %7069 = vmatmul.f32.gmra.mxu1 %v6962_v30  ;;  %v5059_v30 = vld [vmem:[%s8878_s26 + $0xc8] sm:$0xff] }
 0x585   : > { %v5843_v12 = vpop.permute.xlu0 %5842  ;;  %6241 = vrot.lane.b32.xlu2 %v8488_v21, %s8775_s9  ;;  %v6036_v54 = vpop.permute.xlu1 %6035  ;;  %5091 = vst.msk [vmem:[#allocation2 + $0x198] sm:$0xff] %vm289_vm0, %v5059_v30 }
 0x586   : > { %5922 = vst.msk [vmem:[#allocation2 + $0x188] sm:$0xff] %vm917_vm1, %v5843_v12  ;;  %v6879_v21 = vpop.f32.mrf.mxu0 }
 0x587   : > { %6115 = vst.msk [vmem:[#allocation2 + $0x188] sm:$0xff] %vm1110_vm2, %v6036_v54  ;;  %v6429_v6 = vld [vmem:[#allocation2 + $0x150] sm:$0xff]  ;;  %v5587_v39 = vpop.permute.xlu2 %5586 }
 0x588   : > { %6307 = vst.msk [vmem:[#allocation2 + $0x188] sm:$0xff] %vm1303_vm3, %v12992_v9  ;;  %6676 = vmatmul.f32.gmra.mxu2 %v6429_v6 }
 0x58b   : > { %5214 = vrot.lane.b32.xlu0 %v12969_v14, %s8773_s28  ;;  %v6653_v41 = vpop.f32.mrf.mxu2  ;;  %5406 = vrot.lane.b32.xlu1 %v12729_v29, %s8774_s29 }
 0x58c   : > { %v6654_v36 = vadd.f32 %v12824_v26, %v6653_v41  ;;  %v13074_v41 = vld [vmem:[%s8878_s26 + $0x16e] sm:$0xff] }
 0x58d   : > { %v5201_v12 = vpop.permute.xlu0 %5200  ;;  %5598 = vrot.lane.b32.xlu2 %v12732_v38, %s8775_s9  ;;  %v5393_v14 = vpop.permute.xlu1 %5392  ;;  %v8489_v38 = vld [vmem:[%s8878_s26 + $0x1b3] sm:$0xff] }
 0x58e   : > { %5281 = vst.msk [vmem:[#allocation2 + $0x168] sm:$0xff] %vm917_vm1, %v5201_v12  ;;  %v6767_v9 = vadd.f32 %v6766_v37, %v6654_v36  ;;  %v6437_v12 = vld [vmem:[#allocation2 + $0x190] sm:$0xff]  ;;  %v13085_v36 = vpop.f32.mrf.mxu1 }
 0x58f   : > { %5473 = vst.msk [vmem:[#allocation2 + $0x168] sm:$0xff] %vm1110_vm2, %v5393_v14  ;;  %v6436_v29 = vld [vmem:[#allocation2 + $0x188] sm:$0xff]  ;;  %v13070_v54 = vpop.permute.xlu2 %6231  ;;  %8581 = vmatmul.msk.f32.gmra.mxu0 %vm289_vm0, %v6437_v12  ;;  %v6769_v12 = vpop.f32.mrf.mxu3 }
 0x590   : > { %5665 = vst.msk [vmem:[#allocation2 + $0x168] sm:$0xff] %vm1303_vm3, %v5585_v3  ;;  %v6880_v6 = vadd.f32 %v6879_v21, %v6767_v9  ;;  %6795 = vmatmul.f32.gmra.mxu3 %v6436_v29  ;;  %v13089_v3 = vld [vmem:[%s8878_s26 + $0x12b] sm:$0xff] }
 0x591   : > { %5744 = vst.msk [vmem:[#allocation2 + $0x2d8] sm:$0xff] %vm289_vm0, %v8489_v38 }
 0x592   : > { %v6963_v30 = vmax.f32 %v6880_v6, 0.0  ;;  %13971 = vst [vmem:[#allocation57_spill] sm:$0xff] %v13085_v36  ;;  %v13116_v36 = vld [vmem:[%s8878_s26 + $0x1b8] sm:$0xff] }
 0x593   : > { %5858 = vrot.lane.b32.xlu0 %v13074_v41, %s8773_s28  ;;  %6051 = vrot.lane.b32.xlu1 %v13077_v0, %s8774_s29  ;;  %5733 = vst.msk [vmem:[#allocation2 + $0x1d0] sm:$0xff] %vm289_vm0, %v13089_v3 }
 0x594   : > { %7072 = vmatmul.f32.gmra.mxu1 %v6963_v30  ;;  %v5060_v30 = vld [vmem:[%s8878_s26 + $0xd8] sm:$0xff] }
 0x595   : > { %v5845_v21 = vpop.permute.xlu0 %5844  ;;  %6243 = vrot.lane.b32.xlu2 %v8489_v38, %s8775_s9  ;;  %v6038_v37 = vpop.permute.xlu1 %6037  ;;  %5092 = vst.msk [vmem:[#allocation2 + $0x1b0] sm:$0xff] %vm289_vm0, %v5060_v30 }
 0x596   : > { %5923 = vst.msk [vmem:[#allocation2 + $0x1a0] sm:$0xff] %vm917_vm1, %v5845_v21  ;;  %v6882_v38 = vpop.f32.mrf.mxu0 }
 0x597   : > { %6116 = vst.msk [vmem:[#allocation2 + $0x1a0] sm:$0xff] %vm1110_vm2, %v6038_v37  ;;  %v6432_v14 = vld [vmem:[#allocation2 + $0x168] sm:$0xff]  ;;  %v5589_v9 = vpop.permute.xlu2 %5588 }
 0x598   : > { %6308 = vst.msk [vmem:[#allocation2 + $0x1a0] sm:$0xff] %vm1303_vm3, %v13031_v27  ;;  %6679 = vmatmul.f32.gmra.mxu2 %v6432_v14 }
 0x59b   : > { %5216 = vrot.lane.b32.xlu0 %v13011_v18, %s8773_s28  ;;  %v6656_v29 = vpop.f32.mrf.mxu2  ;;  %5408 = vrot.lane.b32.xlu1 %v12789_v33, %s8774_s29 }
 0x59c   : > { %v6657_v6 = vadd.f32 %v12824_v26, %v6656_v29  ;;  %v13113_v29 = vld [vmem:[%s8878_s26 + $0x176] sm:$0xff] }
 0x59d   : > { %v5203_v21 = vpop.permute.xlu0 %5202  ;;  %5600 = vrot.lane.b32.xlu2 %v12792_v22, %s8775_s9  ;;  %v5395_v18 = vpop.permute.xlu1 %5394  ;;  %v8490_v22 = vld [vmem:[%s8878_s26 + $0x1bb] sm:$0xff] }
 0x59e   : > { %5282 = vst.msk [vmem:[#allocation2 + $0x180] sm:$0xff] %vm917_vm1, %v5203_v21  ;;  %v6770_v27 = vadd.f32 %v6769_v12, %v6657_v6  ;;  %v6440_v21 = vld [vmem:[#allocation2 + $0x1a8] sm:$0xff]  ;;  %v13124_v6 = vpop.f32.mrf.mxu1 }
 0x59f   : > { %5474 = vst.msk [vmem:[#allocation2 + $0x180] sm:$0xff] %vm1110_vm2, %v5395_v18  ;;  %v6439_v33 = vld [vmem:[#allocation2 + $0x1a0] sm:$0xff]  ;;  %v13109_v37 = vpop.permute.xlu2 %6233  ;;  %8582 = vmatmul.msk.f32.gmra.mxu0 %vm289_vm0, %v6440_v21 }
 0x5a0   : > { %5666 = vst.msk [vmem:[#allocation2 + $0x180] sm:$0xff] %vm1303_vm3, %v5587_v39  ;;  %v6883_v14 = vadd.f32 %v6882_v38, %v6770_v27  ;;  %6798 = vmatmul.f32.gmra.mxu3 %v6439_v33  ;;  %v13128_v39 = vld [vmem:[%s8878_s26 + $0x13b] sm:$0xff] }
 0x5a1   : > { %5745 = vst.msk [vmem:[#allocation2 + $0x2f0] sm:$0xff] %vm289_vm0, %v8490_v22  ;;  %v5061_v21 = vld [vmem:[%s8878_s26 + $0xe0] sm:$0xff] }
 0x5a2   : > { %v6964_v30 = vmax.f32 %v6883_v14, 0.0  ;;  %13972 = vst [vmem:[#allocation58_spill] sm:$0xff] %v13124_v6  ;;  %v8427_v6 = vld [vmem:[%s8878_s26 + $0x186] sm:$0xff] }
 0x5a3   : > { %5860 = vrot.lane.b32.xlu0 %v13113_v29, %s8773_s28  ;;  %6053 = vrot.lane.b32.xlu1 %v13116_v36, %s8774_s29  ;;  %5734 = vst.msk [vmem:[#allocation2 + $0x1e8] sm:$0xff] %vm289_vm0, %v13128_v39 }
 0x5a4   : > { %7075 = vmatmul.f32.gmra.mxu1 %v6964_v30  ;;  %v7287_v30 = vld [vmem:[%s13866_s3 + $0x10] sm:$0xff]  ;;  %5093 = vst.msk [vmem:[#allocation2 + $0x1c8] sm:$0xff] %vm289_vm0, %v5061_v21  ;;  %v13163_v21 = vld [vmem:[%s8878_s26 + $0x143] sm:$0xff] }
 0x5a5   : > { %v5847_v38 = vpop.permute.xlu0 %5846  ;;  %6245 = vrot.lane.b32.xlu2 %v8490_v22, %s8775_s9  ;;  %v6040_v12 = vpop.permute.xlu1 %6039  ;;  %7306 = vmatpush.msra.mxu3 %v7287_v30  ;;  %v8491_v30 = vld [vmem:[%s8878_s26 + $0x1cb] sm:$0xff]  ;;  %5735 = vst.msk [vmem:[#allocation2 + $0x200] sm:$0xff] %vm289_vm0, %v13163_v21 }
 0x5a6   : > { %5924 = vst.msk [vmem:[#allocation2 + $0x1b8] sm:$0xff] %vm917_vm1, %v5847_v38  ;;  %v6885_v22 = vpop.f32.mrf.mxu0  ;;  %v6772_v38 = vpop.f32.mrf.mxu3 }
 0x5a7   : > { %6117 = vst.msk [vmem:[#allocation2 + $0x1b8] sm:$0xff] %vm1110_vm2, %v6040_v12  ;;  %v6435_v18 = vld [vmem:[#allocation2 + $0x180] sm:$0xff]  ;;  %v5591_v27 = vpop.permute.xlu2 %5590  ;;  %8583 = vmatmul.msk.f32.gmra.mxu0 %vm289_vm0, %v6443_v28 }
 0x5a8   : > { %6309 = vst.msk [vmem:[#allocation2 + $0x1b8] sm:$0xff] %vm1303_vm3, %v13070_v54  ;;  %6682 = vmatmul.f32.gmra.mxu2 %v6435_v18 }
 0x5ab   : > { %5218 = vrot.lane.b32.xlu0 %v13050_v7, %s8773_s28  ;;  %v6659_v33 = vpop.f32.mrf.mxu2  ;;  %5410 = vrot.lane.b32.xlu1 %v12838_v20, %s8774_s29 }
 0x5ac   : > { %v6660_v14 = vadd.f32 %v12824_v26, %v6659_v33 }
 0x5ad   : > { %v5205_v54 = vpop.permute.xlu0 %5204  ;;  %5602 = vrot.lane.b32.xlu2 %v12841_v46, %s8775_s9  ;;  %v5397_v20 = vpop.permute.xlu1 %5396 }
 0x5ae   : > { %5283 = vst.msk [vmem:[#allocation2 + $0x198] sm:$0xff] %vm917_vm1, %v5205_v54  ;;  %v6773_v7 = vadd.f32 %v6772_v38, %v6660_v14  ;;  %v13159_v14 = vpop.f32.mrf.mxu1  ;;  %v6888_v54 = vpop.f32.mrf.mxu0 }
 0x5af   : > { %5475 = vst.msk [vmem:[#allocation2 + $0x198] sm:$0xff] %vm1110_vm2, %v5397_v20  ;;  %v6442_v12 = vld [vmem:[#allocation2 + $0x1b8] sm:$0xff]  ;;  %v13151_v18 = vpop.permute.xlu2 %6235  ;;  %v5062_v20 = vld [vmem:[%s8878_s26 + $0xf0] sm:$0xff] }
 0x5b0   : > { %5667 = vst.msk [vmem:[#allocation2 + $0x198] sm:$0xff] %vm1303_vm3, %v5589_v9  ;;  %v6886_v33 = vadd.f32 %v6885_v22, %v6773_v7  ;;  %6801 = vmatmul.f32.gmra.mxu3 %v6442_v12  ;;  %v6775_v7 = vpop.f32.mrf.mxu3 }
 0x5b1   : > { %13973 = vst [vmem:[#allocation59_spill] sm:$0xff] %v13159_v14 }
 0x5b2   : > { %v6965_v46 = vmax.f32 %v6886_v33, 0.0  ;;  %5094 = vst.msk [vmem:[#allocation2 + $0x1e0] sm:$0xff] %vm289_vm0, %v5062_v20 }
 0x5b3   : > { %5862 = vrot.lane.b32.xlu0 %v8427_v6, %s8773_s28  ;;  %6055 = vrot.lane.b32.xlu1 %v8459_v58, %s8774_s29 }
 0x5b4   : > { %7078 = vmatmul.f32.gmra.mxu1 %v6965_v46 }
 0x5b5   : > { %v5849_v9 = vpop.permute.xlu0 %5848  ;;  %6247 = vrot.lane.b32.xlu2 %v8491_v30, %s8775_s9  ;;  %v6042_v22 = vpop.permute.xlu1 %6041  ;;  %v8428_v30 = vld [vmem:[%s8878_s26 + $0x18e] sm:$0xff] }
 0x5b6   : > { %5925 = vst.msk [vmem:[#allocation2 + $0x1d0] sm:$0xff] %vm917_vm1, %v5849_v9  ;;  %v8460_v9 = vld [vmem:[%s8878_s26 + $0x1d0] sm:$0xff] }
 0x5b7   : > { %6118 = vst.msk [vmem:[#allocation2 + $0x1d0] sm:$0xff] %vm1110_vm2, %v6042_v22  ;;  %v6438_v58 = vld [vmem:[#allocation2 + $0x198] sm:$0xff]  ;;  %v5593_v6 = vpop.permute.xlu2 %5592 }
 0x5b8   : > { %6310 = vst.msk [vmem:[#allocation2 + $0x1d0] sm:$0xff] %vm1303_vm3, %v13109_v37  ;;  %6685 = vmatmul.f32.gmra.mxu2 %v6438_v58  ;;  %v6446_v58 = vld [vmem:[#allocation2 + $0x1d8] sm:$0xff] }
 0x5b9   : > { %8584 = vmatmul.msk.f32.gmra.mxu0 %vm289_vm0, %v6446_v58  ;;  %v8461_v58 = vld [vmem:[%s8878_s26 + $0x1e0] sm:$0xff] }
 0x5bb   : > { %5220 = vrot.lane.b32.xlu0 %v13089_v3, %s8773_s28  ;;  %v6662_v28 = vpop.f32.mrf.mxu2  ;;  %5412 = vrot.lane.b32.xlu1 %v12878_v43, %s8774_s29 }
 0x5bc   : > { %v6663_v38 = vadd.f32 %v12824_v26, %v6662_v28  ;;  %v13191_v28 = vpop.f32.mrf.mxu1 }
 0x5bd   : > { %v5207_v12 = vpop.permute.xlu0 %5206  ;;  %5604 = vrot.lane.b32.xlu2 %v12881_v62, %s8775_s9  ;;  %v5399_v3 = vpop.permute.xlu1 %5398  ;;  %v8492_v62 = vld [vmem:[%s8878_s26 + $0x1d3] sm:$0xff]  ;;  %13974 = vst [vmem:[#allocation60_spill] sm:$0xff] %v13191_v28 }
 0x5be   : > { %5284 = vst.msk [vmem:[#allocation2 + $0x1b0] sm:$0xff] %vm917_vm1, %v5207_v12  ;;  %v6776_v37 = vadd.f32 %v6775_v7, %v6663_v38  ;;  %v13195_v38 = vld [vmem:[%s8878_s26 + $0x153] sm:$0xff] }
 0x5bf   : > { %5476 = vst.msk [vmem:[#allocation2 + $0x1b0] sm:$0xff] %vm1110_vm2, %v5399_v3  ;;  %v6445_v43 = vld [vmem:[#allocation2 + $0x1d0] sm:$0xff]  ;;  %v13183_v33 = vpop.permute.xlu2 %6237 }
 0x5c0   : > { %5668 = vst.msk [vmem:[#allocation2 + $0x1b0] sm:$0xff] %vm1303_vm3, %v5591_v27  ;;  %v6889_v46 = vadd.f32 %v6888_v54, %v6776_v37  ;;  %6804 = vmatmul.f32.gmra.mxu3 %v6445_v43  ;;  %v6891_v37 = vpop.f32.mrf.mxu0  ;;  %v5063_v43 = vld [vmem:[%s8878_s26 + $0xf8] sm:$0xff] }
 0x5c1   : > { %5736 = vst.msk [vmem:[#allocation2 + $0x218] sm:$0xff] %vm289_vm0, %v13195_v38 }
 0x5c2   : > { %v6966_v22 = vmax.f32 %v6889_v46, 0.0  ;;  %v6778_v46 = vpop.f32.mrf.mxu3  ;;  %5095 = vst.msk [vmem:[#allocation2 + $0x1f8] sm:$0xff] %vm289_vm0, %v5063_v43 }
 0x5c3   : > { %5864 = vrot.lane.b32.xlu0 %v8428_v30, %s8773_s28  ;;  %6057 = vrot.lane.b32.xlu1 %v8460_v9, %s8774_s29 }
 0x5c4   : > { %7081 = vmatmul.f32.gmra.mxu1 %v6966_v22 }
 0x5c5   : > { %v5851_v27 = vpop.permute.xlu0 %5850  ;;  %6249 = vrot.lane.b32.xlu2 %v8492_v62, %s8775_s9  ;;  %v6044_v54 = vpop.permute.xlu1 %6043  ;;  %v8429_v62 = vld [vmem:[%s8878_s26 + $0x19e] sm:$0xff] }
 0x5c6   : > { %5926 = vst.msk [vmem:[#allocation2 + $0x1e8] sm:$0xff] %vm917_vm1, %v5851_v27 }
 0x5c7   : > { %6119 = vst.msk [vmem:[#allocation2 + $0x1e8] sm:$0xff] %vm1110_vm2, %v6044_v54  ;;  %v6441_v20 = vld [vmem:[#allocation2 + $0x1b0] sm:$0xff]  ;;  %v5595_v7 = vpop.permute.xlu2 %5594 }
 0x5c8   : > { %6311 = vst.msk [vmem:[#allocation2 + $0x1e8] sm:$0xff] %vm1303_vm3, %v13151_v18  ;;  %6688 = vmatmul.f32.gmra.mxu2 %v6441_v20  ;;  %v6449_v54 = vld [vmem:[#allocation2 + $0x1f0] sm:$0xff]  ;;  %v13223_v20 = vpop.f32.mrf.mxu1 }
 0x5c9   : > { %13975 = vst [vmem:[#allocation61_spill] sm:$0xff] %v13223_v20  ;;  %8585 = vmatmul.msk.f32.gmra.mxu0 %vm289_vm0, %v6449_v54 }
 0x5cb   : > { %5222 = vrot.lane.b32.xlu0 %v13128_v39, %s8773_s28  ;;  %v6665_v12 = vpop.f32.mrf.mxu2  ;;  %5414 = vrot.lane.b32.xlu1 %v12916_v5, %s8774_s29 }
 0x5cc   : > { %v6666_v3 = vadd.f32 %v12824_v26, %v6665_v12  ;;  %v13227_v12 = vld [vmem:[%s8878_s26 + $0x15b] sm:$0xff] }
 0x5cd   : > { %v5209_v30 = vpop.permute.xlu0 %5208  ;;  %5606 = vrot.lane.b32.xlu2 %v12919_v35, %s8775_s9  ;;  %v5401_v39 = vpop.permute.xlu1 %5400  ;;  %v8493_v35 = vld [vmem:[%s8878_s26 + $0x1e3] sm:$0xff]  ;;  %5737 = vst.msk [vmem:[#allocation2 + $0x230] sm:$0xff] %vm289_vm0, %v13227_v12 }
 0x5ce   : > { %5285 = vst.msk [vmem:[#allocation2 + $0x1c8] sm:$0xff] %vm917_vm1, %v5209_v30  ;;  %v6779_v18 = vadd.f32 %v6778_v46, %v6666_v3 }
 0x5cf   : > { %5477 = vst.msk [vmem:[#allocation2 + $0x1c8] sm:$0xff] %vm1110_vm2, %v5401_v39  ;;  %v6448_v5 = vld [vmem:[#allocation2 + $0x1e8] sm:$0xff]  ;;  %v13215_v9 = vpop.permute.xlu2 %6239  ;;  %v6894_v39 = vpop.f32.mrf.mxu0 }
 0x5d0   : > { %5669 = vst.msk [vmem:[#allocation2 + $0x1c8] sm:$0xff] %vm1303_vm3, %v5593_v6  ;;  %v6892_v22 = vadd.f32 %v6891_v37, %v6779_v18  ;;  %6807 = vmatmul.f32.gmra.mxu3 %v6448_v5  ;;  %v5064_v18 = vld [vmem:[%s8878_s26 + $0x108] sm:$0xff]  ;;  %v6781_v5 = vpop.f32.mrf.mxu3 }
 0x5d1   : > { %5096 = vst.msk [vmem:[#allocation2 + $0x210] sm:$0xff] %vm289_vm0, %v5064_v18 }
 0x5d2   : > { %v6967_v27 = vmax.f32 %v6892_v22, 0.0 }
 0x5d3   : > { %5866 = vrot.lane.b32.xlu0 %v8429_v62, %s8773_s28  ;;  %6059 = vrot.lane.b32.xlu1 %v8461_v58, %s8774_s29 }
 0x5d4   : > { %7084 = vmatmul.f32.gmra.mxu1 %v6967_v27  ;;  %v8430_v27 = vld [vmem:[%s8878_s26 + $0x1a6] sm:$0xff] }
 0x5d5   : > { %v5853_v6 = vpop.permute.xlu0 %5852  ;;  %6251 = vrot.lane.b32.xlu2 %v8493_v35, %s8775_s9  ;;  %v6046_v3 = vpop.permute.xlu1 %6045  ;;  %v8462_v35 = vld [vmem:[%s8878_s26 + $0x1e8] sm:$0xff] }
 0x5d6   : > { %5927 = vst.msk [vmem:[#allocation2 + $0x200] sm:$0xff] %vm917_vm1, %v5853_v6  ;;  %v6452_v6 = vld [vmem:[#allocation2 + $0x208] sm:$0xff] }
 0x5d7   : > { %6120 = vst.msk [vmem:[#allocation2 + $0x200] sm:$0xff] %vm1110_vm2, %v6046_v3  ;;  %v6444_v37 = vld [vmem:[#allocation2 + $0x1c8] sm:$0xff]  ;;  %v5597_v43 = vpop.permute.xlu2 %5596  ;;  %v13255_v3 = vpop.f32.mrf.mxu1  ;;  %8586 = vmatmul.msk.f32.gmra.mxu0 %vm289_vm0, %v6452_v6  ;;  %v6455_v6 = vld [vmem:[#allocation2 + $0x220] sm:$0xff] }
 0x5d8   : > { %6312 = vst.msk [vmem:[#allocation2 + $0x200] sm:$0xff] %vm1303_vm3, %v13183_v33  ;;  %6691 = vmatmul.f32.gmra.mxu2 %v6444_v37  ;;  %v13259_v37 = vld [vmem:[%s8878_s26 + $0x16b] sm:$0xff] }
 0x5d9   : > { %13976 = vst [vmem:[#allocation62_spill] sm:$0xff] %v13255_v3 }
 0x5da   : > { %5738 = vst.msk [vmem:[#allocation2 + $0x248] sm:$0xff] %vm289_vm0, %v13259_v37 }
 0x5db   : > { %5224 = vrot.lane.b32.xlu0 %v13163_v21, %s8773_s28  ;;  %v6668_v46 = vpop.f32.mrf.mxu2  ;;  %5416 = vrot.lane.b32.xlu1 %v12954_v47, %s8774_s29 }
 0x5dc   : > { %v6669_v30 = vadd.f32 %v12824_v26, %v6668_v46 }
 0x5dd   : > { %v5211_v22 = vpop.permute.xlu0 %5210  ;;  %5608 = vrot.lane.b32.xlu2 %v12957_v61, %s8775_s9  ;;  %v5403_v21 = vpop.permute.xlu1 %5402  ;;  %v8494_v61 = vld [vmem:[%s8878_s26 + $0x1eb] sm:$0xff] }
 0x5de   : > { %5286 = vst.msk [vmem:[#allocation2 + $0x1e0] sm:$0xff] %vm917_vm1, %v5211_v22  ;;  %v6782_v33 = vadd.f32 %v6781_v5, %v6669_v30  ;;  %v6897_v22 = vpop.f32.mrf.mxu0 }
 0x5df   : > { %5478 = vst.msk [vmem:[#allocation2 + $0x1e0] sm:$0xff] %vm1110_vm2, %v5403_v21  ;;  %v6451_v47 = vld [vmem:[#allocation2 + $0x200] sm:$0xff]  ;;  %v13247_v62 = vpop.permute.xlu2 %6241  ;;  %v7286_v21 = vld [vmem:[%s13866_s3 + $0x8] sm:$0xff]  ;;  %8587 = vmatmul.msk.f32.gmra.mxu0 %vm289_vm0, %v6455_v6 }
 0x5e0   : > { %5670 = vst.msk [vmem:[#allocation2 + $0x1e0] sm:$0xff] %vm1303_vm3, %v5595_v7  ;;  %v6895_v58 = vadd.f32 %v6894_v39, %v6782_v33  ;;  %6810 = vmatmul.f32.gmra.mxu3 %v6451_v47  ;;  %v5065_v33 = vld [vmem:[%s8878_s26 + $0x110] sm:$0xff]  ;;  %v6784_v47 = vpop.f32.mrf.mxu3 }
 0x5e1   : > { %7307 = vmatpush.msra.mxu3 %v7286_v21  ;;  %5097 = vst.msk [vmem:[#allocation2 + $0x228] sm:$0xff] %vm289_vm0, %v5065_v33  ;;  %v13310_v21 = vld [vmem:[%s13868_s5 + $0x3] ss:$0 sm:$0xff] }
 0x5e2   : > { %v6968_v54 = vmax.f32 %v6895_v58, 0.0 }
 0x5e3   : > { %5868 = vrot.lane.b32.xlu0 %v8430_v27, %s8773_s28  ;;  %6061 = vrot.lane.b32.xlu1 %v8462_v35, %s8774_s29  ;;  %v8431_v35 = vld [vmem:[%s8878_s26 + $0x1b6] sm:$0xff] }
 0x5e4   : > { %7087 = vmatmul.f32.gmra.mxu1 %v6968_v54  ;;  %v8463_v54 = vld [vmem:[%s8878_s26 + $0x1f8] sm:$0xff] }
 0x5e5   : > { %v5855_v46 = vpop.permute.xlu0 %5854  ;;  %6253 = vrot.lane.b32.xlu2 %v8494_v61, %s8775_s9  ;;  %v6048_v7 = vpop.permute.xlu1 %6047  ;;  %v8495_v61 = vld [vmem:[%s8878_s26 + $0x1fb] sm:$0xff] }
 0x5e6   : > { %5928 = vst.msk [vmem:[#allocation2 + $0x218] sm:$0xff] %vm917_vm1, %v5855_v46  ;;  %v13289_v46 = vld [vmem:[%s8878_s26 + $0x173] sm:$0xff] }
 0x5e7   : > { %6121 = vst.msk [vmem:[#allocation2 + $0x218] sm:$0xff] %vm1110_vm2, %v6048_v7  ;;  %v6447_v30 = vld [vmem:[#allocation2 + $0x1e0] sm:$0xff]  ;;  %v5599_v39 = vpop.permute.xlu2 %5598  ;;  %v13295_v7 = vpop.f32.mrf.mxu1 }
 0x5e8   : > { %6313 = vst.msk [vmem:[#allocation2 + $0x218] sm:$0xff] %vm1303_vm3, %v13215_v9  ;;  %6694 = vmatmul.f32.gmra.mxu2 %v6447_v30 }
 0x5e9   : > { %5739 = vst.msk [vmem:[#allocation2 + $0x260] sm:$0xff] %vm289_vm0, %v13289_v46 }
 0x5ea   : > { %13977 = vst [vmem:[#allocation63_spill] sm:$0xff] %v13295_v7 }
 0x5eb   : > { %5226 = vrot.lane.b32.xlu0 %v13195_v38, %s8773_s28  ;;  %v6671_v18 = vpop.f32.mrf.mxu2  ;;  %5418 = vrot.lane.b32.xlu1 %v12996_v44, %s8774_s29 }
 0x5ec   : > { %v6672_v5 = vadd.f32 %v12824_v26, %v6671_v18 }
 0x5ed   : > { %v5213_v9 = vpop.permute.xlu0 %5212  ;;  %5610 = vrot.lane.b32.xlu2 %v12999_v63, %s8775_s9  ;;  %v5405_v26 = vpop.permute.xlu1 %5404 }
 0x5ee   : > { %5287 = vst.msk [vmem:[#allocation2 + $0x1f8] sm:$0xff] %vm917_vm1, %v5213_v9  ;;  %v6785_v44 = vadd.f32 %v6784_v47, %v6672_v5  ;;  %v6900_v47 = vpop.f32.mrf.mxu0  ;;  %v5066_v9 = vld [vmem:[%s8878_s26 + $0x120] sm:$0xff] }
 0x5ef   : > { %5479 = vst.msk [vmem:[#allocation2 + $0x1f8] sm:$0xff] %vm1110_vm2, %v5405_v26  ;;  %v6454_v38 = vld [vmem:[#allocation2 + $0x218] sm:$0xff]  ;;  %v13282_v58 = vpop.permute.xlu2 %6243  ;;  %v13325_v6 = vpop.f32.mrf.mxu1 }
 0x5f0   : > { %5671 = vst.msk [vmem:[#allocation2 + $0x1f8] sm:$0xff] %vm1303_vm3, %v5597_v43  ;;  %v6898_v27 = vadd.f32 %v6897_v22, %v6785_v44  ;;  %6813 = vmatmul.f32.gmra.mxu3 %v6454_v38 }
 0x5f1   : > { %5098 = vst.msk [vmem:[#allocation2 + $0x240] sm:$0xff] %vm289_vm0, %v5066_v9 }
 0x5f2   : > { %v6969_v63 = vmax.f32 %v6898_v27, 0.0  ;;  %13978 = vst [vmem:[#allocation64_spill] sm:$0xff] %v13325_v6 }
 0x5f3   : > { %5870 = vrot.lane.b32.xlu0 %v8431_v35, %s8773_s28  ;;  %6063 = vrot.lane.b32.xlu1 %v8463_v54, %s8774_s29  ;;  %v8432_v35 = vld [vmem:[%s8878_s26 + $0x1be] sm:$0xff] }
 0x5f4   : > { %7090 = vmatmul.f32.gmra.mxu1 %v6969_v63  ;;  %v8464_v54 = vld [vmem:[%s8878_s26 + $0x200] sm:$0xff] }
 0x5f5   : > { %v5857_v43 = vpop.permute.xlu0 %5856  ;;  %6255 = vrot.lane.b32.xlu2 %v8495_v61, %s8775_s9  ;;  %v6050_v30 = vpop.permute.xlu1 %6049  ;;  %v8496_v61 = vld [vmem:[%s8878_s26 + $0x203] sm:$0xff] }
 0x5f6   : > { %5929 = vst.msk [vmem:[#allocation2 + $0x230] sm:$0xff] %vm917_vm1, %v5857_v43  ;;  %v8395_v43 = vld [vmem:[%s8878_s26 + $0x183] sm:$0xff]  ;;  %v6903_v9 = vpop.f32.mrf.mxu0 }
 0x5f7   : > { %6122 = vst.msk [vmem:[#allocation2 + $0x230] sm:$0xff] %vm1110_vm2, %v6050_v30  ;;  %v6450_v18 = vld [vmem:[#allocation2 + $0x1f8] sm:$0xff]  ;;  %v5601_v5 = vpop.permute.xlu2 %5600 }
 0x5f8   : > { %6314 = vst.msk [vmem:[#allocation2 + $0x230] sm:$0xff] %vm1303_vm3, %v13247_v62  ;;  %6697 = vmatmul.f32.gmra.mxu2 %v6450_v18  ;;  %v6787_v62 = vpop.f32.mrf.mxu3 }
 0x5f9   : > { %5740 = vst.msk [vmem:[#allocation2 + $0x278] sm:$0xff] %vm289_vm0, %v8395_v43  ;;  %v5068_v43 = vld [vmem:[%s8878_s26 + $0x138] sm:$0xff] }
 0x5fa   : > { %5100 = vst.msk [vmem:[#allocation2 + $0x270] sm:$0xff] %vm289_vm0, %v5068_v43 }
 0x5fb   : > { %5228 = vrot.lane.b32.xlu0 %v13227_v12, %s8773_s28  ;;  %v6674_v22 = vpop.f32.mrf.mxu2  ;;  %5420 = vrot.lane.b32.xlu1 %v13035_v49, %s8774_s29 }
 0x5fc   : > { %v6675_v33 = vadd.f32 %v13310_v21, %v6674_v22 }
 0x5fd   : > { %v5215_v26 = vpop.permute.xlu0 %5214  ;;  %5612 = vrot.lane.b32.xlu2 %v13038_v31, %s8775_s9  ;;  %v5407_v49 = vpop.permute.xlu1 %5406  ;;  %v6458_v31 = vld [vmem:[#allocation2 + $0x238] sm:$0xff] }
 0x5fe   : > { %5288 = vst.msk [vmem:[#allocation2 + $0x210] sm:$0xff] %vm917_vm1, %v5215_v26  ;;  %v6788_v12 = vadd.f32 %v6787_v62, %v6675_v33  ;;  %8588 = vmatmul.msk.f32.gmra.mxu0 %vm289_vm0, %v6458_v31  ;;  %v5067_v62 = vld [vmem:[%s8878_s26 + $0x128] sm:$0xff]  ;;  %v6906_v31 = vpop.f32.mrf.mxu0 }
 0x5ff   : > { %5480 = vst.msk [vmem:[#allocation2 + $0x210] sm:$0xff] %vm1110_vm2, %v5407_v49  ;;  %v6457_v44 = vld [vmem:[#allocation2 + $0x230] sm:$0xff]  ;;  %v6246_v38 = vpop.permute.xlu2 %6245 }
 0x600   : > { %5672 = vst.msk [vmem:[#allocation2 + $0x210] sm:$0xff] %vm1303_vm3, %v5599_v39  ;;  %v6901_v27 = vadd.f32 %v6900_v47, %v6788_v12  ;;  %6816 = vmatmul.f32.gmra.mxu3 %v6457_v44  ;;  %v6790_v26 = vpop.f32.mrf.mxu3 }
 0x601   : > { %5099 = vst.msk [vmem:[#allocation2 + $0x258] sm:$0xff] %vm289_vm0, %v5067_v62  ;;  %v6464_v62 = vld [vmem:[#allocation2 + $0x268] sm:$0xff] }
 0x602   : > { %v6970_v63 = vmax.f32 %v6901_v27, 0.0 }
 0x603   : > { %5872 = vrot.lane.b32.xlu0 %v8432_v35, %s8773_s28  ;;  %6065 = vrot.lane.b32.xlu1 %v8464_v54, %s8774_s29  ;;  %v6461_v35 = vld [vmem:[#allocation2 + $0x250] sm:$0xff] }
 0x604   : > { %7093 = vmatmul.f32.gmra.mxu1 %v6970_v63 }
 0x605   : > { %v5859_v30 = vpop.permute.xlu0 %5858  ;;  %6257 = vrot.lane.b32.xlu2 %v8496_v61, %s8775_s9  ;;  %v6052_v39 = vpop.permute.xlu1 %6051 }
 0x606   : > { %5930 = vst.msk [vmem:[#allocation2 + $0x248] sm:$0xff] %vm917_vm1, %v5859_v30  ;;  %8589 = vmatmul.msk.f32.gmra.mxu0 %vm289_vm0, %v6461_v35  ;;  %v7285_v35 = vld [vmem:[%s13866_s3] sm:$0xff] }
 0x607   : > { %6123 = vst.msk [vmem:[#allocation2 + $0x248] sm:$0xff] %vm1110_vm2, %v6052_v39  ;;  %v6453_v18 = vld [vmem:[#allocation2 + $0x210] sm:$0xff]  ;;  %v5603_v22 = vpop.permute.xlu2 %5602  ;;  %7308 = vmatpush.msra.mxu3 %v7285_v35 }
 0x608   : > { %6315 = vst.msk [vmem:[#allocation2 + $0x248] sm:$0xff] %vm1303_vm3, %v13282_v58  ;;  %6700 = vmatmul.f32.gmra.mxu2 %v6453_v18  ;;  %v6793_v30 = vpop.f32.mrf.mxu3 }
 0x60b   : > { %5230 = vrot.lane.b32.xlu0 %v13259_v37, %s8773_s28  ;;  %v6677_v33 = vpop.f32.mrf.mxu2  ;;  %5422 = vrot.lane.b32.xlu1 %v13074_v41, %s8774_s29 }
 0x60c   : > { %v6678_v47 = vadd.f32 %v13310_v21, %v6677_v33 }
 0x60d   : > { %v5217_v49 = vpop.permute.xlu0 %5216  ;;  %5614 = vrot.lane.b32.xlu2 %v13077_v0, %s8775_s9  ;;  %v5409_v58 = vpop.permute.xlu1 %5408 }
 0x60e   : > { %5289 = vst.msk [vmem:[#allocation2 + $0x228] sm:$0xff] %vm917_vm1, %v5217_v49  ;;  %v6791_v12 = vadd.f32 %v6790_v26, %v6678_v47  ;;  %v13351_v0 = vpop.f32.mrf.mxu1  ;;  %8590 = vmatmul.msk.f32.gmra.mxu0 %vm289_vm0, %v6464_v62 }
 0x60f   : > { %5481 = vst.msk [vmem:[#allocation2 + $0x228] sm:$0xff] %vm1110_vm2, %v5409_v58  ;;  %v6460_v37 = vld [vmem:[#allocation2 + $0x248] sm:$0xff]  ;;  %v6248_v44 = vpop.permute.xlu2 %6247 }
 0x610   : > { %5673 = vst.msk [vmem:[#allocation2 + $0x228] sm:$0xff] %vm1303_vm3, %v5601_v5  ;;  %v6904_v41 = vadd.f32 %v6903_v9, %v6791_v12  ;;  %6819 = vmatmul.f32.gmra.mxu3 %v6460_v37 }
 0x611   : > { %13979 = vst [vmem:[#allocation65_spill] sm:$0xff] %v13351_v0 }
 0x612   : > { %v6971_v27 = vmax.f32 %v6904_v41, 0.0 }
 0x613   : > { %5232 = vrot.lane.b32.xlu0 %v13289_v46, %s8773_s28  ;;  %5424 = vrot.lane.b32.xlu1 %v13113_v29, %s8774_s29  ;;  %s7496_s28 = sshll.u32 %s7493_s11, 4  ;;  %s7482_s29 = scalar_lea.sflag [#allocation5], %s242_s17  ;;  %s7497_s28 = int_to_ptr.hbm [resolvable:$true] %s7496_s28 }
 0x614   : > { %7096 = vmatmul.f32.gmra.mxu1 %v6971_v27  ;;  %v6909_v27 = vpop.f32.mrf.mxu0 }
 0x615   : > { %v5861_v54 = vpop.permute.xlu0 %5860  ;;  %5616 = vrot.lane.b32.xlu2 %v13116_v36, %s8775_s9  ;;  %v6054_v5 = vpop.permute.xlu1 %6053 }
 0x616   : > { %5931 = vst.msk [vmem:[#allocation2 + $0x260] sm:$0xff] %vm917_vm1, %v5861_v54  ;;  %v13366_v26 = vpop.f32.mrf.mxu1  ;;  %v5069_v54 = vld [vmem:[%s8878_s26 + $0x140] sm:$0xff] }
 0x617   : > { %6124 = vst.msk [vmem:[#allocation2 + $0x260] sm:$0xff] %vm1110_vm2, %v6054_v5  ;;  %v6456_v63 = vld [vmem:[#allocation2 + $0x228] sm:$0xff]  ;;  %v5605_v46 = vpop.permute.xlu2 %5604  ;;  %v6796_v5 = vpop.f32.mrf.mxu3 }
 0x618   : > { %6316 = vst.msk [vmem:[#allocation2 + $0x260] sm:$0xff] %vm1303_vm3, %v6246_v38  ;;  %6703 = vmatmul.f32.gmra.mxu2 %v6456_v63 }
 0x619   : > { %13980 = vst [vmem:[#allocation66_spill] sm:$0xff] %v13366_v26 }
 0x61a   : > { %5101 = vst.msk [vmem:[#allocation2 + $0x288] sm:$0xff] %vm289_vm0, %v5069_v54 }
 0x61b   : > { %v6680_v29 = vpop.f32.mrf.mxu2 }
 0x61c   : > { %v6681_v61 = vadd.f32 %v13310_v21, %v6680_v29  ;;  %v6912_v62 = vpop.f32.mrf.mxu0 }
 0x61d   : > { %v5219_v39 = vpop.permute.xlu0 %5218  ;;  %v5411_v36 = vpop.permute.xlu1 %5410 }
 0x61e   : > { %5290 = vst.msk [vmem:[#allocation2 + $0x240] sm:$0xff] %vm917_vm1, %v5219_v39  ;;  %v6794_v18 = vadd.f32 %v6793_v30, %v6681_v61  ;;  %v6467_v30 = vld [vmem:[#allocation2 + $0x280] sm:$0xff]  ;;  %v13381_v39 = vpop.f32.mrf.mxu1 }
 0x61f   : > { %5482 = vst.msk [vmem:[#allocation2 + $0x240] sm:$0xff] %vm1110_vm2, %v5411_v36  ;;  %v6463_v33 = vld [vmem:[#allocation2 + $0x260] sm:$0xff]  ;;  %v6250_v47 = vpop.permute.xlu2 %6249  ;;  %8591 = vmatmul.msk.f32.gmra.mxu0 %vm289_vm0, %v6467_v30 }
 0x620   : > { %5674 = vst.msk [vmem:[#allocation2 + $0x240] sm:$0xff] %vm1303_vm3, %v5603_v22  ;;  %v6907_v38 = vadd.f32 %v6906_v31, %v6794_v18  ;;  %6822 = vmatmul.f32.gmra.mxu3 %v6463_v33 }
 0x621   : > { %13981 = vst [vmem:[#allocation67_spill] sm:$0xff] %v13381_v39 }
 0x622   : > { %v6972_v9 = vmax.f32 %v6907_v38, 0.0 }
 0x624   : > { %7099 = vmatmul.f32.gmra.mxu1 %v6972_v9  ;;  %v6915_v30 = vpop.f32.mrf.mxu0 }
 0x625   : > { %v5863_v49 = vpop.permute.xlu0 %5862  ;;  %v6056_v58 = vpop.permute.xlu1 %6055 }
 0x626   : > { %5932 = vst.msk [vmem:[#allocation2 + $0x278] sm:$0xff] %vm917_vm1, %v5863_v49  ;;  %v5070_v49 = vld [vmem:[%s8878_s26 + $0x150] sm:$0xff] }
 0x627   : > { %6125 = vst.msk [vmem:[#allocation2 + $0x278] sm:$0xff] %vm1110_vm2, %v6056_v58  ;;  %v6459_v12 = vld [vmem:[#allocation2 + $0x240] sm:$0xff]  ;;  %v5607_v37 = vpop.permute.xlu2 %5606  ;;  %v6799_v58 = vpop.f32.mrf.mxu3 }
 0x628   : > { %6317 = vst.msk [vmem:[#allocation2 + $0x278] sm:$0xff] %vm1303_vm3, %v6248_v44  ;;  %6706 = vmatmul.f32.gmra.mxu2 %v6459_v12 }
 0x629   : > { %5102 = vst.msk [vmem:[#allocation2 + $0x2a0] sm:$0xff] %vm289_vm0, %v5070_v49 }
 0x62b   : > { %v6683_v22 = vpop.f32.mrf.mxu2 }
 0x62c   : > { %v6684_v41 = vadd.f32 %v13310_v21, %v6683_v22 }
 0x62d   : > { %v5221_v63 = vpop.permute.xlu0 %5220  ;;  %v5413_v29 = vpop.permute.xlu1 %5412 }
 0x62e   : > { %5291 = vst.msk [vmem:[#allocation2 + $0x258] sm:$0xff] %vm917_vm1, %v5221_v63  ;;  %v6797_v44 = vadd.f32 %v6796_v5, %v6684_v41  ;;  %v6470_v5 = vld [vmem:[#allocation2 + $0x298] sm:$0xff]  ;;  %v13393_v63 = vpop.f32.mrf.mxu1 }
 0x62f   : > { %5483 = vst.msk [vmem:[#allocation2 + $0x258] sm:$0xff] %vm1110_vm2, %v5413_v29  ;;  %v6466_v61 = vld [vmem:[#allocation2 + $0x278] sm:$0xff]  ;;  %v6252_v18 = vpop.permute.xlu2 %6251  ;;  %8592 = vmatmul.msk.f32.gmra.mxu0 %vm289_vm0, %v6470_v5 }
 0x630   : > { %5675 = vst.msk [vmem:[#allocation2 + $0x258] sm:$0xff] %vm1303_vm3, %v5605_v46  ;;  %v6910_v31 = vadd.f32 %v6909_v27, %v6797_v44  ;;  %6825 = vmatmul.f32.gmra.mxu3 %v6466_v61 }
 0x631   : > { %13982 = vst [vmem:[#allocation68_spill] sm:$0xff] %v13393_v63 }
 0x632   : > { %v6973_v43 = vmax.f32 %v6910_v31, 0.0 }
 0x634   : > { %7102 = vmatmul.f32.gmra.mxu1 %v6973_v43 }
 0x635   : > { %v5865_v36 = vpop.permute.xlu0 %5864  ;;  %v6058_v33 = vpop.permute.xlu1 %6057 }
 0x636   : > { %5933 = vst.msk [vmem:[#allocation2 + $0x290] sm:$0xff] %vm917_vm1, %v5865_v36  ;;  %v5071_v36 = vld [vmem:[%s8878_s26 + $0x158] sm:$0xff] }
 0x637   : > { %6126 = vst.msk [vmem:[#allocation2 + $0x290] sm:$0xff] %vm1110_vm2, %v6058_v33  ;;  %v6462_v38 = vld [vmem:[#allocation2 + $0x258] sm:$0xff]  ;;  %v5609_v35 = vpop.permute.xlu2 %5608  ;;  %v6802_v33 = vpop.f32.mrf.mxu3 }
 0x638   : > { %6318 = vst.msk [vmem:[#allocation2 + $0x290] sm:$0xff] %vm1303_vm3, %v6250_v47  ;;  %6709 = vmatmul.f32.gmra.mxu2 %v6462_v38 }
 0x639   : > { %5103 = vst.msk [vmem:[#allocation2 + $0x2b8] sm:$0xff] %vm289_vm0, %v5071_v36 }
 0x63b   : > { %v6686_v46 = vpop.f32.mrf.mxu2 }
 0x63c   : > { %v6687_v9 = vadd.f32 %v13310_v21, %v6686_v46 }
 0x63d   : > { %v5223_v12 = vpop.permute.xlu0 %5222  ;;  %v5415_v22 = vpop.permute.xlu1 %5414 }
 0x63e   : > { %5292 = vst.msk [vmem:[#allocation2 + $0x270] sm:$0xff] %vm917_vm1, %v5223_v12  ;;  %v6800_v41 = vadd.f32 %v6799_v58, %v6687_v9  ;;  %v6473_v58 = vld [vmem:[#allocation2 + $0x2b0] sm:$0xff] }
 0x63f   : > { %5484 = vst.msk [vmem:[#allocation2 + $0x270] sm:$0xff] %vm1110_vm2, %v5415_v22  ;;  %v6469_v27 = vld [vmem:[#allocation2 + $0x290] sm:$0xff]  ;;  %8593 = vmatmul.msk.f32.gmra.mxu0 %vm289_vm0, %v6473_v58  ;;  %v13405_v22 = vpop.f32.mrf.mxu1 }
 0x640   : > { %5676 = vst.msk [vmem:[#allocation2 + $0x270] sm:$0xff] %vm1303_vm3, %v5607_v37  ;;  %v6913_v47 = vadd.f32 %v6912_v62, %v6800_v41  ;;  %6828 = vmatmul.f32.gmra.mxu3 %v6469_v27  ;;  %v6254_v37 = vpop.permute.xlu2 %6253 }
 0x641   : > { %13983 = vst [vmem:[#allocation69_spill] sm:$0xff] %v13405_v22 }
 0x642   : > { %v6974_v54 = vmax.f32 %v6913_v47, 0.0 }
 0x644   : > { %7105 = vmatmul.f32.gmra.mxu1 %v6974_v54  ;;  %v6805_v54 = vpop.f32.mrf.mxu3 }
 0x645   : > { %v5867_v29 = vpop.permute.xlu0 %5866  ;;  %v6060_v44 = vpop.permute.xlu1 %6059 }
 0x646   : > { %5934 = vst.msk [vmem:[#allocation2 + $0x2a8] sm:$0xff] %vm917_vm1, %v5867_v29  ;;  %v6918_v29 = vpop.f32.mrf.mxu0 }
 0x647   : > { %6127 = vst.msk [vmem:[#allocation2 + $0x2a8] sm:$0xff] %vm1110_vm2, %v6060_v44  ;;  %v6465_v61 = vld [vmem:[#allocation2 + $0x270] sm:$0xff]  ;;  %v5072_v44 = vld [vmem:[%s8878_s26 + $0x168] sm:$0xff] }
 0x648   : > { %6319 = vst.msk [vmem:[#allocation2 + $0x2a8] sm:$0xff] %vm1303_vm3, %v6252_v18  ;;  %6712 = vmatmul.f32.gmra.mxu2 %v6465_v61  ;;  %v5611_v12 = vpop.permute.xlu2 %5610 }
 0x649   : > { %5104 = vst.msk [vmem:[#allocation2 + $0x2d0] sm:$0xff] %vm289_vm0, %v5072_v44 }
 0x64b   : > { %v6689_v31 = vpop.f32.mrf.mxu2 }
 0x64c   : > { %v6690_v43 = vadd.f32 %v13310_v21, %v6689_v31 }
 0x64d   : > { %v5225_v38 = vpop.permute.xlu0 %5224  ;;  %v5417_v46 = vpop.permute.xlu1 %5416 }
 0x64e   : > { %5293 = vst.msk [vmem:[#allocation2 + $0x288] sm:$0xff] %vm917_vm1, %v5225_v38  ;;  %v6803_v9 = vadd.f32 %v6802_v33, %v6690_v43  ;;  %v6476_v38 = vld [vmem:[#allocation2 + $0x2c8] sm:$0xff] }
 0x64f   : > { %5485 = vst.msk [vmem:[#allocation2 + $0x288] sm:$0xff] %vm1110_vm2, %v5417_v46  ;;  %v6472_v62 = vld [vmem:[#allocation2 + $0x2a8] sm:$0xff]  ;;  %8594 = vmatmul.msk.f32.gmra.mxu0 %vm289_vm0, %v6476_v38  ;;  %v13417_v46 = vpop.f32.mrf.mxu1 }
 0x650   : > { %5677 = vst.msk [vmem:[#allocation2 + $0x288] sm:$0xff] %vm1303_vm3, %v5609_v35  ;;  %v6916_v18 = vadd.f32 %v6915_v30, %v6803_v9  ;;  %6831 = vmatmul.f32.gmra.mxu3 %v6472_v62  ;;  %v6256_v31 = vpop.permute.xlu2 %6255  ;;  %v5073_v9 = vld [vmem:[%s8878_s26 + $0x170] sm:$0xff]  ;;  %s8723_s26 = sshra.s32 %s7497_s28, 4  ;;  %s8724_s26 = int_to_ptr.hbm [resolvable:$true] %s8723_s26 }
 0x651   : > { %13984 = vst [vmem:[#allocation70_spill] sm:$0xff] %v13417_v46  ;;  %s8725_s9 = scalar_lea.hbm %s8724_s26, 256  ;;  %p8730_p0 = scmp.lt.s32.totalorder %s8724_s26, %s13869_s6 }
 0x652   : > { %v6975_v49 = vmax.f32 %v6916_v18, 0.0  ;;  %5105 = vst.msk [vmem:[#allocation2 + $0x2e8] sm:$0xff] %vm289_vm0, %v5073_v9  ;;  %p8726_p11 = scmp.ne.s32.totalorder %s8724_s26, %s8725_s9  ;;  %p8731_p1 = scmp.lt.s32.totalorder %s8729_s15, %s8725_s9 }
 0x654   : > { %7108 = vmatmul.f32.gmra.mxu1 %v6975_v49  ;;  %p8727_p12 = pnand %p8726_p11, %p8851_p5  ;;  %p8732_p2 = por %p8731_p1, %p8730_p0 }
 0x655   : > { %v5869_v41 = vpop.permute.xlu0 %5868  ;;  %v6062_v27 = vpop.permute.xlu1 %6061 }
 0x656   : > { %5935 = vst.msk [vmem:[#allocation2 + $0x2c0] sm:$0xff] %vm917_vm1, %v5869_v41  ;;  %v7278_v41 = vrot.slane %v9538_v56, 4  ;;  %p8728_p13 = pneg %p8727_p12 }
 0x657   : > { %6128 = vst.msk [vmem:[#allocation2 + $0x2c0] sm:$0xff] %vm1110_vm2, %v6062_v27  ;;  %v6468_v47 = vld [vmem:[#allocation2 + $0x288] sm:$0xff] }
 0x658   : > { %6320 = vst.msk [vmem:[#allocation2 + $0x2c0] sm:$0xff] %vm1303_vm3, %v6254_v37  ;;  %6715 = vmatmul.f32.gmra.mxu2 %v6468_v47  ;;  %v5613_v58 = vpop.permute.xlu2 %5612  ;;  %v6921_v47 = vpop.f32.mrf.mxu0  ;;  %p8733_p3 = pnand %p8732_p2, %p8728_p13 }
 0x65b   : > { %v6692_v35 = vpop.f32.mrf.mxu2 }
 0x65c   : > { %v6693_v5 = vadd.f32 %v13310_v21, %v6692_v35  ;;  %v6808_v35 = vpop.f32.mrf.mxu3 }
 0x65d   : > { %v5227_v61 = vpop.permute.xlu0 %5226  ;;  %v5419_v43 = vpop.permute.xlu1 %5418 }
 0x65e   : > { %5294 = vst.msk [vmem:[#allocation2 + $0x2a0] sm:$0xff] %vm917_vm1, %v5227_v61  ;;  %v6806_v30 = vadd.f32 %v6805_v54, %v6693_v5  ;;  %v7279_v61 = vadd.f32 %v7278_v41, %v9538_v56 }
 0x65f   : > { %5486 = vst.msk [vmem:[#allocation2 + $0x2a0] sm:$0xff] %vm1110_vm2, %v5419_v43  ;;  %v6475_v36 = vld [vmem:[#allocation2 + $0x2c0] sm:$0xff] }
 0x660   : > { %5678 = vst.msk [vmem:[#allocation2 + $0x2a0] sm:$0xff] %vm1303_vm3, %v5611_v12  ;;  %v6919_v37 = vadd.f32 %v6918_v29, %v6806_v30  ;;  %6834 = vmatmul.f32.gmra.mxu3 %v6475_v36  ;;  %v6258_v43 = vpop.permute.xlu2 %6257  ;;  %v6479_v36 = vld [vmem:[#allocation2 + $0x2e0] sm:$0xff] }
 0x661   : > { %8595 = vmatmul.msk.f32.gmra.mxu0 %vm289_vm0, %v6479_v36 }
 0x662   : > { %v6976_v33 = vmax.f32 %v6919_v37, 0.0  ;;  %v7280_v37 = vrot.slane %v7279_v61, 2 }
 0x664   : > { %7111 = vmatmul.f32.gmra.mxu1 %v6976_v33  ;;  %v13431_v33 = vpop.f32.mrf.mxu1 }
 0x665   : > { %v5871_v62 = vpop.permute.xlu0 %5870  ;;  %v6064_v18 = vpop.permute.xlu1 %6063  ;;  %13985 = vst [vmem:[#allocation71_spill] sm:$0xff] %v13431_v33 }
 0x666   : > { %5936 = vst.msk [vmem:[#allocation2 + $0x2d8] sm:$0xff] %vm917_vm1, %v5871_v62  ;;  %v7281_v62 = vadd.f32 %v7280_v37, %v7279_v61 }
 0x667   : > { %6129 = vst.msk [vmem:[#allocation2 + $0x2d8] sm:$0xff] %vm1110_vm2, %v6064_v18  ;;  %v6471_v49 = vld [vmem:[#allocation2 + $0x2a0] sm:$0xff]  ;;  %v6482_v18 = vld [vmem:[#allocation2 + $0x2f8] sm:$0xff] }
 0x668   : > { %6321 = vst.msk [vmem:[#allocation2 + $0x2d8] sm:$0xff] %vm1303_vm3, %v6256_v31  ;;  %6718 = vmatmul.f32.gmra.mxu2 %v6471_v49 }
 0x669   : > { %8596 = vmatmul.msk.f32.gmra.mxu0 %vm289_vm0, %v6482_v18 }
 0x66b   : > { %v6695_v12 = vpop.f32.mrf.mxu2 }
 0x66c   : > { %v6696_v27 = vadd.f32 %v13310_v21, %v6695_v12  ;;  %v7282_v12 = vrot.slane %v7281_v62, 1 }
 0x66d   : > { %v5229_v54 = vpop.permute.xlu0 %5228  ;;  %v5421_v5 = vpop.permute.xlu1 %5420 }
 0x66e   : > { %5295 = vst.msk [vmem:[#allocation2 + $0x2b8] sm:$0xff] %vm917_vm1, %v5229_v54  ;;  %v6809_v29 = vadd.f32 %v6808_v35, %v6696_v27  ;;  %v6924_v27 = vpop.f32.mrf.mxu0 }
 0x66f   : > { %5487 = vst.msk [vmem:[#allocation2 + $0x2b8] sm:$0xff] %vm1110_vm2, %v5421_v5  ;;  %v6478_v44 = vld [vmem:[#allocation2 + $0x2d8] sm:$0xff] }
 0x670   : > { %5679 = vst.msk [vmem:[#allocation2 + $0x2b8] sm:$0xff] %vm1303_vm3, %v5613_v58  ;;  %v6922_v31 = vadd.f32 %v6921_v47, %v6809_v29  ;;  %6837 = vmatmul.f32.gmra.mxu3 %v6478_v44  ;;  %v5615_v58 = vpop.permute.xlu2 %5614  ;;  %v6811_v47 = vpop.f32.mrf.mxu3  ;;  %v7283_v44 = vadd.f32 %v7282_v12, %v7281_v62 }
 0x672   : > { %v6977_v30 = vmax.f32 %v6922_v31, 0.0 }
 0x674   : > { %7114 = vmatmul.f32.gmra.mxu1 %v6977_v30  ;;  %v13441_v30 = vpop.f32.mrf.mxu1 }
 0x675   : > { %v5873_v38 = vpop.permute.xlu0 %5872  ;;  %v6066_v9 = vpop.permute.xlu1 %6065  ;;  %13986 = vst [vmem:[#allocation72_spill] sm:$0xff] %v13441_v30 }
 0x676   : > { %5937 = vst.msk [vmem:[#allocation2 + $0x2f0] sm:$0xff] %vm917_vm1, %v5873_v38 }
 0x677   : > { %6130 = vst.msk [vmem:[#allocation2 + $0x2f0] sm:$0xff] %vm1110_vm2, %v6066_v9  ;;  %v6474_v56 = vld [vmem:[#allocation2 + $0x2b8] sm:$0xff] }
 0x678   : > { %6322 = vst.msk [vmem:[#allocation2 + $0x2f0] sm:$0xff] %vm1303_vm3, %v6258_v43  ;;  %6721 = vmatmul.f32.gmra.mxu2 %v6474_v56  ;;  %v7284_v43 = vmul.f32 0.00390625, %v7283_v44  ;;  %v5617_v37 = vpop.permute.xlu2 %5616  ;;  %v6814_v18 = vpop.f32.mrf.mxu3 }
 0x67b   : > { %v6698_v49 = vpop.f32.mrf.mxu2 }
 0x67c   : > { %v6699_v41 = vadd.f32 %v13310_v21, %v6698_v49  ;;  %v6927_v49 = vpop.f32.mrf.mxu0 }
 0x67d   : > { %v5231_v35 = vpop.permute.xlu0 %5230  ;;  %v5423_v54 = vpop.permute.xlu1 %5422 }
 0x67e   : > { %5296 = vst.msk [vmem:[#allocation2 + $0x2d0] sm:$0xff] %vm917_vm1, %v5231_v35  ;;  %v6812_v5 = vadd.f32 %v6811_v47, %v6699_v41 }
 0x67f   : > { %5488 = vst.msk [vmem:[#allocation2 + $0x2d0] sm:$0xff] %vm1110_vm2, %v5423_v54  ;;  %v6481_v29 = vld [vmem:[#allocation2 + $0x2f0] sm:$0xff] }
 0x680   : > { %5680 = vst.msk [vmem:[#allocation2 + $0x2d0] sm:$0xff] %vm1303_vm3, %v5615_v58  ;;  %v6925_v61 = vadd.f32 %v6924_v27, %v6812_v5  ;;  %6840 = vmatmul.f32.gmra.mxu3 %v6481_v29  ;;  %v13448_v58 = vpop.f32.mrf.mxu1 }
 0x681   : > { %13987 = vst [vmem:[#allocation73_spill] sm:$0xff] %v13448_v58 }
 0x682   : > { %v6978_v31 = vmax.f32 %v6925_v61, 0.0 }
 0x683   : > { %v6817_v29 = vpop.f32.mrf.mxu3 }
 0x684   : > { %7117 = vmatmul.f32.gmra.mxu1 %v6978_v31  ;;  %v6930_v44 = vpop.f32.mrf.mxu0 }
 0x685   : > { %v5233_v36 = vpop.permute.xlu0 %5232  ;;  %v5425_v38 = vpop.permute.xlu1 %5424 }
 0x686   : > { %5297 = vst.msk [vmem:[#allocation2 + $0x2e8] sm:$0xff] %vm917_vm1, %v5233_v36 }
 0x687   : > { %5489 = vst.msk [vmem:[#allocation2 + $0x2e8] sm:$0xff] %vm1110_vm2, %v5425_v38  ;;  %v6477_v9 = vld [vmem:[#allocation2 + $0x2d0] sm:$0xff] }
 0x688   : > { %5681 = vst.msk [vmem:[#allocation2 + $0x2e8] sm:$0xff] %vm1303_vm3, %v5617_v37  ;;  %6724 = vmatmul.f32.gmra.mxu2 %v6477_v9  ;;  %8613 = vmatmul.msk.f32.vlgmr.msra.gmra.mxu3 %vm289_vm0, %v7284_v43  ;;  %v13450_v35 = vpop.f32.mrf.mxu1 }
 0x68b   : > { %v6701_v56 = vpop.f32.mrf.mxu2 }
 0x68c   : > { %v6702_v62 = vadd.f32 %v13310_v21, %v6701_v56 }
 0x68e   : > { %v6815_v12 = vadd.f32 %v6814_v18, %v6702_v62  ;;  %v6933_v62 = vpop.f32.mrf.mxu0 }
 0x68f   : > { %v6480_v41 = vld [vmem:[#allocation2 + $0x2e8] sm:$0xff] }
 0x690   : > { %v6928_v27 = vadd.f32 %v6927_v49, %v6815_v12  ;;  %6727 = vmatmul.f32.gmra.mxu2 %v6480_v41  ;;  %v13453_v43 = vpop.f32.mrf.mxu1 }
 0x692   : > { %v6979_v47 = vmax.f32 %v6928_v27, 0.0 }
 0x693   : > { %v6820_v56 = vpop.f32.mrf.mxu3 }
 0x694   : > { %7120 = vmatmul.f32.gmra.mxu1 %v6979_v47 }
 0x698   : > { %v13455_v37 = vpop.f32.mrf.mxu1 }
 0x69b   : > { %v6704_v54 = vpop.f32.mrf.mxu2 }
 0x69c   : > { %v6705_v5 = vadd.f32 %v13310_v21, %v6704_v54 }
 0x69e   : > { %v6818_v61 = vadd.f32 %v6817_v29, %v6705_v5  ;;  %v6936_v29 = vpop.f32.mrf.mxu0 }
 0x6a0   : > { %v6931_v31 = vadd.f32 %v6930_v44, %v6818_v61  ;;  %v13458_v12 = vpop.f32.mrf.mxu1 }
 0x6a2   : > { %v6980_v36 = vmax.f32 %v6931_v31, 0.0 }
 0x6a3   : > { %v6823_v5 = vpop.f32.mrf.mxu3 }
 0x6a4   : > { %7123 = vmatmul.f32.gmra.mxu1 %v6980_v36 }
 0x6a8   : > { %v13460_v27 = vpop.f32.mrf.mxu1 }
 0x6ab   : > { %v6707_v38 = vpop.f32.mrf.mxu2 }
 0x6ac   : > { %v6708_v9 = vadd.f32 %v13310_v21, %v6707_v38 }
 0x6ae   : > { %v6821_v18 = vadd.f32 %v6820_v56, %v6708_v9 }
 0x6b0   : > { %v6934_v49 = vadd.f32 %v6933_v62, %v6821_v18  ;;  %v13463_v31 = vpop.f32.mrf.mxu1  ;;  %v6939_v18 = vpop.f32.mrf.mxu0 }
 0x6b2   : > { %v6981_v41 = vmax.f32 %v6934_v49, 0.0 }
 0x6b3   : > { %v6826_v62 = vpop.f32.mrf.mxu3 }
 0x6b4   : > { %7126 = vmatmul.f32.gmra.mxu1 %v6981_v41 }
 0x6b8   : > { %v13465_v38 = vpop.f32.mrf.mxu1 }
 0x6bb   : > { %v6710_v47 = vpop.f32.mrf.mxu2 }
 0x6bc   : > { %v6711_v54 = vadd.f32 %v13310_v21, %v6710_v47  ;;  %v8629_v47 = vld [vmem:[%s13867_s4 + $0x278] sm:$0xff] }
 0x6bd   : > { %7332 = vmatpush.msrb.mxu3 %v8629_v47 }
 0x6be   : > { %v6824_v44 = vadd.f32 %v6823_v5, %v6711_v54  ;;  %v8628_v5 = vld [vmem:[%s13867_s4 + $0x270] sm:$0xff] }
 0x6bf   : > { %7333 = vmatpush.msrb.mxu3 %v8628_v5 }
 0x6c0   : > { %v6937_v61 = vadd.f32 %v6936_v29, %v6824_v44  ;;  %v13471_v58 = vpop.f32.mrf.mxu1  ;;  %v8627_v29 = vld [vmem:[%s13867_s4 + $0x268] sm:$0xff]  ;;  %v8626_v44 = vld [vmem:[%s13867_s4 + $0x260] sm:$0xff] }
 0x6c1   : > { %7334 = vmatpush.msrb.mxu3 %v8627_v29  ;;  %v8621_v29 = vld [vmem:[%s13867_s4 + $0x238] sm:$0xff] }
 0x6c2   : > { %v6982_v36 = vmax.f32 %v6937_v61, 0.0  ;;  %v8625_v61 = vld [vmem:[%s13867_s4 + $0x258] sm:$0xff] }
 0x6c3   : > { %7335 = vmatpush.msrb.mxu3 %v8626_v44 }
 0x6c4   : > { %7129 = vmatmul.f32.gmra.mxu1 %v6982_v36 }
 0x6c5   : > { %7336 = vmatpush.msrb.mxu3 %v8625_v61 }
 0x6c8   : > { %v13485_v36 = vpop.f32.mrf.mxu1 }
 0x6cb   : > { %v6713_v9 = vpop.f32.mrf.mxu2 }
 0x6cc   : > { %v6714_v56 = vadd.f32 %v13310_v21, %v6713_v9 }
 0x6ce   : > { %v6827_v49 = vadd.f32 %v6826_v62, %v6714_v56  ;;  %v8624_v56 = vld [vmem:[%s13867_s4 + $0x250] sm:$0xff] }
 0x6cf   : > { %7337 = vmatpush.msrb.mxu3 %v8624_v56  ;;  %v8619_v56 = vld [vmem:[%s13867_s4 + $0x228] sm:$0xff] }
 0x6d0   : > { %v6940_v41 = vadd.f32 %v6939_v18, %v6827_v49  ;;  %v8623_v18 = vld [vmem:[%s13867_s4 + $0x248] sm:$0xff]  ;;  %v6829_v49 = vpop.f32.mrf.mxu3  ;;  %v13500_v44 = vpop.f32.mrf.mxu1 }
 0x6d1   : > { %7338 = vmatpush.msrb.mxu3 %v8623_v18  ;;  %v8617_v18 = vld [vmem:[%s13867_s4 + $0x218] sm:$0xff] }
 0x6d2   : > { %v6983_v54 = vmax.f32 %v6940_v41, 0.0  ;;  %v6942_v41 = vpop.f32.mrf.mxu0 }
 0x6d4   : > { %7132 = vmatmul.f32.gmra.mxu1 %v6983_v54  ;;  %v8622_v54 = vld [vmem:[%s13867_s4 + $0x240] sm:$0xff] }
 0x6d5   : > { %7339 = vmatpush.msrb.mxu3 %v8622_v54  ;;  %v8616_v54 = vld [vmem:[%s13867_s4 + $0x210] sm:$0xff] }
 0x6d7   : > { %7340 = vmatpush.msrb.mxu3 %v8621_v29 }
 0x6da   : > { %v6945_v29 = vpop.f32.mrf.mxu0 }
 0x6db   : > { %v6716_v9 = vpop.f32.mrf.mxu2 }
 0x6dc   : > { %v6717_v62 = vadd.f32 %v13310_v21, %v6716_v9  ;;  %v8620_v9 = vld [vmem:[%s13867_s4 + $0x230] sm:$0xff] }
 0x6dd   : > { %7341 = vmatpush.msrb.mxu3 %v8620_v9 }
 0x6de   : > { %v6830_v47 = vadd.f32 %v6829_v49, %v6717_v62  ;;  %v8618_v62 = vld [vmem:[%s13867_s4 + $0x220] sm:$0xff]  ;;  %v13514_v49 = vpop.f32.mrf.mxu1 }
 0x6df   : > { %7342 = vmatpush.msrb.mxu3 %v8619_v56  ;;  %v8614_v56 = vld [vmem:[%s13867_s4 + $0x200] sm:$0xff] }
 0x6e0   : > { %v6943_v5 = vadd.f32 %v6942_v41, %v6830_v47  ;;  %v6832_v41 = vpop.f32.mrf.mxu3 }
 0x6e1   : > { %7343 = vmatpush.msrb.mxu3 %v8618_v62 }
 0x6e2   : > { %v6984_v61 = vmax.f32 %v6943_v5, 0.0  ;;  %v6948_v63 = vpop.f32.mrf.mxu0 }
 0x6e3   : > { %7344 = vmatpush.msrb.mxu3 %v8617_v18 }
 0x6e4   : > { %7135 = vmatmul.f32.gmra.mxu1 %v6984_v61  ;;  %v8615_v61 = vld [vmem:[%s13867_s4 + $0x208] sm:$0xff] }
 0x6e5   : > { %7345 = vmatpush.msrb.mxu3 %v8616_v54 }
 0x6e6   : > { %v13526_v18 = vpop.f32.mrf.mxu1 }
 0x6e7   : > { %7346 = vmatpush.msrb.mxu3 %v8615_v61 }
 0x6e8   : > { %v6835_v33 = vpop.f32.mrf.mxu3 }
 0x6e9   : > { %7347 = vmatpush.msrb.mxu3 %v8614_v56 }
 0x6eb   : > { %v6719_v47 = vpop.f32.mrf.mxu2 }
 0x6ec   : > { %v6720_v5 = vadd.f32 %v13310_v21, %v6719_v47 }
 0x6ee   : > { %v6833_v9 = vadd.f32 %v6832_v41, %v6720_v5  ;;  %v13528_v47 = vpop.f32.mrf.mxu1 }
 0x6f0   : > { %v6946_v62 = vadd.f32 %v6945_v29, %v6833_v9  ;;  %v7289_v29 = vld [vmem:[%s13868_s5 + $0x4] sm:$0x1] }
 0x6f2   : > { %v6985_v30 = vmax.f32 %v6946_v62, 0.0 }
 0x6f3   : > { %v6838_v54 = vpop.f32.mrf.mxu3 }
 0x6f4   : > { %7138 = vmatmul.f32.gmra.mxu1 %v6985_v30  ;;  %v6951_v30 = vpop.f32.mrf.mxu0 }
 0x6f6   : > { %v13531_v61 = vpop.f32.mrf.mxu1 }
 0x6fb   : > { %v6722_v46 = vpop.f32.mrf.mxu2 }
 0x6fc   : > { %v6723_v22 = vadd.f32 %v13310_v21, %v6722_v46  ;;  %v6954_v7 = vpop.f32.mrf.mxu0 }
 0x6fe   : > { %v6836_v41 = vadd.f32 %v6835_v33, %v6723_v22  ;;  %v13536_v9 = vpop.f32.mrf.mxu1 }
 0x700   : > { %v6949_v5 = vadd.f32 %v6948_v63, %v6836_v41 }
 0x702   : > { %v6986_v39 = vmax.f32 %v6949_v5, 0.0 }
 0x703   : > { %v6841_v26 = vpop.f32.mrf.mxu3 }
 0x704   : > { %7141 = vmatmul.f32.gmra.mxu1 %v6986_v39 }
 0x706   : > { %v13539_v33 = vpop.f32.mrf.mxu1 }
 0x70b   : > { %v6725_v56 = vpop.f32.mrf.mxu2  ;;  %v7310_v62 = vpop.f32.mrf.mxu3 }
 0x70c   : > { %v6726_v0 = vadd.f32 %v13310_v21, %v6725_v56  ;;  %v7311_v46 = vadd.f32 %v7310_v62, %v7289_v29 }
 0x70e   : > { %v7313_v6 = vmax.f32 %v7311_v46, 0.0  ;;  %v6839_v22 = vadd.f32 %v6838_v54, %v6726_v0  ;;  %v13542_v28 = vpop.f32.mrf.mxu1 }
 0x710   : > { %v6952_v63 = vadd.f32 %v6951_v30, %v6839_v22  ;;  %7348 = vmatmul.f32.vlgmr.msrb.gmra.mxu3 %v7313_v6  ;;  %v2804_v22 = vadd.f32 %v11395_v10, %v10887_v17  ;;  %v2810_v17 = vadd.f32 %v11575_v57, %v11095_v52  ;;  %v2813_v10 = vadd.f32 %v11745_v45, %v11198_v1  ;;  %v14000_v1 = vld [vmem:[#allocation24_spill] sm:$0xff] }
 0x711   : > { %v2816_v52 = vadd.f32 %v11849_v42, %v11259_v4  ;;  %v14005_v45 = vld [vmem:[#allocation28_spill] sm:$0xff]  ;;  %v14008_v42 = vld [vmem:[#allocation13_spill] sm:$0xff] }
 0x712   : > { %v6987_v41 = vmax.f32 %v6952_v63, 0.0  ;;  %v2805_v63 = vadd.f32 %v11436_v60, %v10917_v11  ;;  %v2811_v11 = vadd.f32 %v11600_v19, %v11140_v2  ;;  %v13605_v2 = vadd.f32 %v11870_v23, %v11291_v50  ;;  %v14003_v19 = vld [vmem:[#allocation27_spill] sm:$0xff]  ;;  %v14007_v50 = vld [vmem:[#allocation29_spill] sm:$0xff]  ;;  %v14009_v23 = vld [vmem:[#allocation30_spill] sm:$0xff] }
 0x713   : > { %v6728_v39 = vpop.f32.mrf.mxu2 }
 0x714   : > { %v6729_v5 = vadd.f32 %v13310_v21, %v6728_v39  ;;  %7144 = vmatmul.f32.gmra.mxu1 %v6987_v41  ;;  %v2806_v41 = vadd.f32 %v11465_v32, %v10943_v25  ;;  %v2807_v39 = vadd.f32 %v11498_v55, %v10972_v15  ;;  %v2812_v15 = vadd.f32 %v11711_v40, %v11168_v16  ;;  %v13998_v32 = vld [vmem:[#allocation20_spill] sm:$0xff]  ;;  %v13999_v55 = vld [vmem:[#allocation25_spill] sm:$0xff]  ;;  %v14004_v40 = vld [vmem:[#allocation7_spill] sm:$0xff] }
 0x715   : > { %v13609_v16 = vadd.f32 %v13999_v55, %v13998_v32  ;;  %v13621_v4 = vadd.f32 %v14005_v45, %v14004_v40  ;;  %v13629_v32 = vadd.f32 %v14009_v23, %v14008_v42  ;;  %v14015_v40 = vld [vmem:[#allocation33_spill] sm:$0xff]  ;;  %v14019_v42 = vld [vmem:[#allocation35_spill] sm:$0xff] }
 0x716   : > { %v6842_v3 = vadd.f32 %v6841_v26, %v6729_v5  ;;  %v13544_v56 = vpop.f32.mrf.mxu1  ;;  %v7331_v5 = vld [vmem:[%s13868_s5 + $0x5] sm:$0x1] }
 0x718   : > { %v6955_v20 = vadd.f32 %v6954_v7, %v6842_v3 }
 0x71a   : > { %v6988_v14 = vmax.f32 %v6955_v20, 0.0 }
 0x71c   : > { %7147 = vmatmul.f32.gmra.mxu1 %v6988_v14 }
 0x71e   : > { %v13546_v29 = vpop.f32.mrf.mxu1 }
 0x726   : > { %v13548_v0 = vpop.f32.mrf.mxu1 }
 0x72e   : > { %v13550_v6 = vpop.f32.mrf.mxu1 }
 0x736   : > { %v13552_v54 = vpop.f32.mrf.mxu1 }
 0x73e   : > { %v13554_v30 = vpop.f32.mrf.mxu1 }
 0x73f   : > { %13988 = vst [vmem:[#allocation74_spill] sm:$0xff] %v13554_v30  ;;  %v14030_v30 = vld [vmem:[#allocation23_spill] sm:$0xff] }
 0x746   : > { %v13556_v21 = vpop.f32.mrf.mxu1 }
 0x747   : > { %13989 = vst [vmem:[#allocation75_spill] sm:$0xff] %v13556_v21  ;;  %v14029_v21 = vld [vmem:[#allocation45_spill] sm:$0xff] }
 0x74e   : > { %v13558_v26 = vpop.f32.mrf.mxu1 }
 0x74f   : > { %13990 = vst [vmem:[#allocation76_spill] sm:$0xff] %v13558_v26 }
 0x756   : > { %v13560_v3 = vpop.f32.mrf.mxu1 }
 0x757   : > { %13991 = vst [vmem:[#allocation77_spill] sm:$0xff] %v13560_v3  ;;  %v14025_v3 = vld [vmem:[#allocation37_spill] sm:$0xff] }
 0x75e   : > { %v13562_v20 = vpop.f32.mrf.mxu1 }
 0x75f   : > { %13992 = vst [vmem:[#allocation78_spill] sm:$0xff] %v13562_v20  ;;  %v14022_v20 = vld [vmem:[#allocation36_spill] sm:$0xff] }
 0x766   : > { %v13564_v14 = vpop.f32.mrf.mxu1 }
 0x767   : > { %13993 = vst [vmem:[#allocation79_spill] sm:$0xff] %v13564_v14  ;;  %v14021_v14 = vld [vmem:[#allocation21_spill] sm:$0xff] }
 0x76e   : > { %v13566_v7 = vpop.f32.mrf.mxu1 }
 0x76f   : > { %13994 = vst [vmem:[#allocation80_spill] sm:$0xff] %v13566_v7  ;;  %v14018_v7 = vld [vmem:[#allocation19_spill] sm:$0xff] }
 0x770   : > { %v13649_v23 = vadd.f32 %v14019_v42, %v14018_v7  ;;  %v14031_v7 = vld [vmem:[#allocation38_spill] sm:$0xff] }
 0x771   : > { %v13666_v42 = vadd.f32 %v14031_v7, %v14030_v30  ;;  %v14042_v7 = vld [vmem:[#allocation16_spill] sm:$0xff] }
 0x772   : > { %14020 = vst [vmem:[#allocation20_spill] sm:$0xff] %v13649_v23  ;;  %v14033_v23 = vld [vmem:[#allocation22_spill] sm:$0xff] }
 0x776   : > { %v13568_v62 = vpop.f32.mrf.mxu1 }
 0x777   : > { %13995 = vst [vmem:[#allocation81_spill] sm:$0xff] %v13568_v62  ;;  %v2808_v62 = vadd.f32 %v11525_v24, %v11003_v53  ;;  %v2814_v53 = vadd.f32 %v11779_v8, %v11221_v48  ;;  %v14002_v48 = vld [vmem:[#allocation9_spill] sm:$0xff]  ;;  %v14006_v8 = vld [vmem:[#allocation11_spill] sm:$0xff] }
 0x781   : > { %v13570_v46 = vpop.f32.mrf.mxu1 }
 0x782   : > { %13996 = vst [vmem:[#allocation82_spill] sm:$0xff] %v13570_v46  ;;  %v2809_v46 = vadd.f32 %v11554_v13, %v11050_v59  ;;  %v2815_v59 = vadd.f32 %v11822_v34, %v11240_v51  ;;  %v14001_v13 = vld [vmem:[#allocation26_spill] sm:$0xff]  ;;  %v13617_v51 = vadd.f32 %v14003_v19, %v14002_v48  ;;  %v13625_v34 = vadd.f32 %v14007_v50, %v14006_v8  ;;  %v14014_v19 = vld [vmem:[#allocation17_spill] sm:$0xff] }
 0x783   : > { %v13613_v57 = vadd.f32 %v14001_v13, %v14000_v1  ;;  %v14012_v1 = vld [vmem:[#allocation15_spill] sm:$0xff]  ;;  %v14013_v13 = vld [vmem:[#allocation32_spill] sm:$0xff]  ;;  %v13641_v45 = vadd.f32 %v14015_v40, %v14014_v19  ;;  %v14017_v8 = vld [vmem:[#allocation34_spill] sm:$0xff]  ;;  %14032 = vst [vmem:[#allocation26_spill] sm:$0xff] %v13666_v42 }
 0x784   : > { %v13637_v48 = vadd.f32 %v14013_v13, %v14012_v1  ;;  %v14027_v13 = vld [vmem:[#allocation43_spill] sm:$0xff]  ;;  %v14028_v19 = vld [vmem:[#allocation44_spill] sm:$0xff] }
 0x785   : > { %v4978_v26 = vadd.f32 %v14027_v13, %v2804_v22  ;;  %v4979_v40 = vadd.f32 %v14028_v19, %v2805_v63  ;;  %v14039_v22 = vld [vmem:[#allocation12_spill] sm:$0xff]  ;;  %v14040_v13 = vld [vmem:[#allocation41_spill] sm:$0xff] }
 0x786   : > { %v13678_v63 = vadd.f32 %v14040_v13, %v14039_v22 }
 0x787   : > { %v7152_v30 = vadd.f32 %v13455_v37, %v4979_v40 }
 0x791   : > { %v13591_v25 = vpop.f32.mrf.mxu1 }
 0x792   : > { %13997 = vst [vmem:[#allocation83_spill] sm:$0xff] %v13591_v25  ;;  %v14016_v25 = vld [vmem:[#allocation14_spill] sm:$0xff] }
 0x793   : > { %v7349_v60 = vpop.f32.mrf.mxu3  ;;  %v13645_v50 = vadd.f32 %v14017_v8, %v14016_v25  ;;  %v4980_v25 = vadd.f32 %v14029_v21, %v2806_v41  ;;  %v14041_v21 = vld [vmem:[#allocation46_spill] sm:$0xff] }
 0x794   : > { %v7350_v24 = vadd.f32 %v7349_v60, %v7331_v5  ;;  %v14010_v5 = vld [vmem:[#allocation10_spill] sm:$0xff]  ;;  %v14011_v60 = vld [vmem:[#allocation31_spill] sm:$0xff]  ;;  %v4981_v41 = vadd.f32 %v14041_v21, %v2807_v39 }
 0x795   : > { %v13633_v55 = vadd.f32 %v14011_v60, %v14010_v5  ;;  %v13653_v5 = vadd.f32 %v14022_v20, %v14021_v14  ;;  %v14024_v60 = vld [vmem:[#allocation18_spill] sm:$0xff]  ;;  %v14034_v20 = vld [vmem:[#allocation39_spill] sm:$0xff]  ;;  %v7153_v19 = vadd.f32 %v13458_v12, %v4980_v25 }
 0x796   : > { %v13657_v1 = vadd.f32 %v14025_v3, %v14024_v60  ;;  %v13662_v8 = vperm.slane %v7350_v24, 0  ;;  %v13670_v14 = vadd.f32 %v14034_v20, %v14033_v23  ;;  %v14037_v3 = vld [vmem:[#allocation40_spill] sm:$0xff]  ;;  %v7151_v24 = vadd.f32 %v13453_v43, %v4978_v26  ;;  %v14043_v23 = vld [vmem:[#allocation42_spill] sm:$0xff]  ;;  %v14048_v25 = vld [vmem:[#allocation51_spill] sm:$0xff] }
 0x797   : > { %14023 = vst [vmem:[#allocation25_spill] sm:$0xff] %v13653_v5  ;;  %v14036_v5 = vld [vmem:[#allocation8_spill] sm:$0xff]  ;;  %v2835_v20 = vadd.f32 %v14043_v23, %v14042_v7  ;;  %v7154_v22 = vadd.f32 %v13460_v27, %v4981_v41  ;;  %v14047_v26 = vld [vmem:[#allocation50_spill] sm:$0xff]  ;;  %v4986_v13 = vadd.f32 %v14048_v25, %v2812_v15 }
 0x798   : > { %14026 = vst [vmem:[#allocation24_spill] sm:$0xff] %v13657_v1  ;;  %v13674_v60 = vadd.f32 %v14037_v3, %v14036_v5  ;;  %v14045_v5 = vld [vmem:[#allocation48_spill] sm:$0xff]  ;;  %v7385_v39 = vadd.f32 %v13662_v8, %v7151_v24  ;;  %v7386_v43 = vadd.f32 %v13662_v8, %v7152_v30  ;;  %v7387_v37 = vadd.f32 %v13662_v8, %v7153_v19 }
 0x799   : > { %14035 = vst [vmem:[#allocation9_spill] sm:$0xff] %v13670_v14  ;;  %v14044_v14 = vld [vmem:[#allocation47_spill] sm:$0xff]  ;;  %v4983_v3 = vadd.f32 %v14045_v5, %v2809_v46  ;;  %v7148_v12 = vpop.f32.mrf.mxu1  ;;  %v4985_v40 = vadd.f32 %v14047_v26, %v2811_v11  ;;  %v7388_v41 = vadd.f32 %v13662_v8, %v7154_v22 }
 0x79a   : > { %14038 = vst [vmem:[#allocation27_spill] sm:$0xff] %v13674_v60  ;;  %v4982_v42 = vadd.f32 %v14044_v14, %v2808_v62  ;;  %v14046_v60 = vld [vmem:[#allocation49_spill] sm:$0xff]  ;;  %v5009_v62 = vadd.f32 %v13450_v35, %v2835_v20  ;;  %v7417_v35 = vmax.f32 %v7385_v39, 0.0  ;;  %v7418_v7 = vmax.f32 %v7386_v43, 0.0  ;;  %v14052_v20 = vld [vmem:[#allocation55_spill] sm:$0xff] }
 0x79b   : > { %v4984_v1 = vadd.f32 %v14046_v60, %v2810_v17  ;;  %v14049_v17 = vld [vmem:[#allocation52_spill] sm:$0xff]  ;;  %v14050_v60 = vld [vmem:[#allocation53_spill] sm:$0xff]  ;;  %v7156_v27 = vadd.f32 %v13465_v38, %v4983_v3  ;;  %v7158_v30 = vadd.f32 %v13485_v36, %v4985_v40  ;;  %v7420_v5 = vmax.f32 %v7388_v41, 0.0 }
 0x79c   : > { %v7155_v46 = vadd.f32 %v13463_v31, %v4982_v42  ;;  %v4987_v14 = vadd.f32 %v14049_v17, %v2813_v10  ;;  %v4988_v21 = vadd.f32 %v14050_v60, %v2814_v53  ;;  %v7182_v19 = vadd.f32 %v7148_v12, %v5009_v62  ;;  %v14051_v42 = vld [vmem:[#allocation54_spill] sm:$0xff]  ;;  %7449 = vst [vmem:[%s13715_s19] sm:$0xff] %v7417_v35  ;;  %v14054_v12 = vld [vmem:[#allocation57_spill] sm:$0xff]  ;;  %v14056_v17 = vld [vmem:[#allocation59_spill] sm:$0xff] }
 0x79d   : > { %v7157_v24 = vadd.f32 %v13471_v58, %v4984_v1  ;;  %v7390_v15 = vadd.f32 %v13662_v8, %v7156_v27  ;;  %v7419_v31 = vmax.f32 %v7387_v37, 0.0  ;;  %v4989_v10 = vadd.f32 %v14051_v42, %v2815_v59  ;;  %7450 = vst [vmem:[%s13715_s19 + $0x8] sm:$0xff] %v7418_v7  ;;  %v14060_v7 = vld [vmem:[#allocation63_spill] sm:$0xff] }
 0x79e   : > { %v7389_v11 = vadd.f32 %v13662_v8, %v7155_v46  ;;  %v7159_v53 = vadd.f32 %v13500_v44, %v4986_v13  ;;  %v7416_v23 = vadd.f32 %v13662_v8, %v7182_v19  ;;  %v4990_v58 = vadd.f32 %v14052_v20, %v2816_v52  ;;  %v14055_v13 = vld [vmem:[#allocation58_spill] sm:$0xff]  ;;  %7452 = vst [vmem:[%s13715_s19 + $0x18] sm:$0xff] %v7420_v5 }
 0x79f   : > { %v7391_v38 = vadd.f32 %v13662_v8, %v7157_v24  ;;  %v7160_v36 = vadd.f32 %v13514_v49, %v4987_v14  ;;  %v7392_v1 = vadd.f32 %v13662_v8, %v7158_v30  ;;  %v7161_v44 = vadd.f32 %v13526_v18, %v4988_v21  ;;  %v14053_v49 = vld [vmem:[#allocation56_spill] sm:$0xff]  ;;  %7451 = vst [vmem:[%s13715_s19 + $0x10] sm:$0xff] %v7419_v31  ;;  %v14058_v24 = vld [vmem:[#allocation61_spill] sm:$0xff]  ;;  %v14059_v19 = vld [vmem:[#allocation62_spill] sm:$0xff] }
 0x7a0   : > { %v7393_v59 = vadd.f32 %v13662_v8, %v7159_v53  ;;  %v7448_v3 = vmax.f32 %v7416_v23, 0.0  ;;  %v7421_v22 = vmax.f32 %v7389_v11, 0.0  ;;  %v4991_v52 = vadd.f32 %v14053_v49, %v13605_v2  ;;  %v14057_v21 = vld [vmem:[#allocation60_spill] sm:$0xff]  ;;  %v14062_v23 = vld [vmem:[#allocation65_spill] sm:$0xff] }
 0x7a1   : > { %v7162_v39 = vadd.f32 %v13528_v47, %v4989_v10  ;;  %v7394_v43 = vadd.f32 %v13662_v8, %v7160_v36  ;;  %v7422_v37 = vmax.f32 %v7390_v15, 0.0  ;;  %v4992_v26 = vadd.f32 %v14054_v12, %v13609_v16  ;;  %v14061_v10 = vld [vmem:[#allocation64_spill] sm:$0xff]  ;;  %v14063_v36 = vld [vmem:[#allocation66_spill] sm:$0xff] }
 0x7a2   : > { %v7163_v18 = vadd.f32 %v13531_v61, %v4990_v58  ;;  %v7395_v40 = vadd.f32 %v13662_v8, %v7161_v44  ;;  %7480 = vst [vmem:[%s13715_s19 + $0xf8] sm:$0xff] %v7448_v3  ;;  %v7423_v25 = vmax.f32 %v7391_v38, 0.0  ;;  %v4993_v2 = vadd.f32 %v14055_v13, %v13613_v57  ;;  %v14066_v3 = vld [vmem:[#allocation67_spill] sm:$0xff] }
 0x7a3   : > { %v7164_v47 = vadd.f32 %v13536_v9, %v4991_v52  ;;  %v7396_v62 = vadd.f32 %v13662_v8, %v7162_v39  ;;  %v7424_v46 = vmax.f32 %v7392_v1, 0.0  ;;  %v4994_v16 = vadd.f32 %v14056_v17, %v13617_v51  ;;  %7453 = vst [vmem:[%s13715_s19 + $0x20] sm:$0xff] %v7421_v22  ;;  %v14064_v1 = vld [vmem:[#allocation74_spill] sm:$0xff]  ;;  %v14067_v22 = vld [vmem:[#allocation75_spill] sm:$0xff]  ;;  %v14068_v39 = vld [vmem:[#allocation25_spill] sm:$0xff] }
 0x7a4   : > { %v7165_v61 = vadd.f32 %v13539_v33, %v4992_v26  ;;  %v7397_v14 = vadd.f32 %v13662_v8, %v7163_v18  ;;  %v7425_v60 = vmax.f32 %v7393_v59, 0.0  ;;  %v4995_v57 = vadd.f32 %v14057_v21, %v13621_v4  ;;  %7454 = vst [vmem:[%s13715_s19 + $0x28] sm:$0xff] %v7422_v37  ;;  %v14065_v59 = vld [vmem:[#allocation20_spill] sm:$0xff]  ;;  %v14074_v17 = vld [vmem:[#allocation26_spill] sm:$0xff] }
 0x7a5   : > { %v7166_v9 = vadd.f32 %v13542_v28, %v4993_v2  ;;  %v7398_v27 = vadd.f32 %v13662_v8, %v7164_v47  ;;  %v7426_v41 = vmax.f32 %v7394_v43, 0.0  ;;  %v4996_v51 = vadd.f32 %v14058_v24, %v13625_v34  ;;  %7455 = vst [vmem:[%s13715_s19 + $0x30] sm:$0xff] %v7423_v25  ;;  %v14069_v43 = vld [vmem:[#allocation68_spill] sm:$0xff]  ;;  %v14072_v25 = vld [vmem:[#allocation69_spill] sm:$0xff]  ;;  %v14079_v24 = vld [vmem:[#allocation79_spill] sm:$0xff] }
 0x7a6   : > { %v7167_v33 = vadd.f32 %v13544_v56, %v4994_v16  ;;  %v7399_v30 = vadd.f32 %v13662_v8, %v7165_v61  ;;  %v7427_v11 = vmax.f32 %v7395_v40, 0.0  ;;  %v4997_v4 = vadd.f32 %v14059_v19, %v13629_v32  ;;  %7456 = vst [vmem:[%s13715_s19 + $0x38] sm:$0xff] %v7424_v46  ;;  %v14070_v37 = vld [vmem:[#allocation76_spill] sm:$0xff]  ;;  %v14073_v2 = vld [vmem:[#allocation77_spill] sm:$0xff]  ;;  %v14075_v16 = vld [vmem:[#allocation70_spill] sm:$0xff] }
 0x7a7   : > { %v7168_v28 = vadd.f32 %v13546_v29, %v4995_v57  ;;  %v7400_v15 = vadd.f32 %v13662_v8, %v7166_v9  ;;  %v7428_v35 = vmax.f32 %v7396_v62, 0.0  ;;  %v4998_v34 = vadd.f32 %v14060_v7, %v13633_v55  ;;  %7457 = vst [vmem:[%s13715_s19 + $0x40] sm:$0xff] %v7425_v60  ;;  %v14071_v40 = vld [vmem:[#allocation24_spill] sm:$0xff]  ;;  %v14077_v9 = vld [vmem:[#allocation9_spill] sm:$0xff] }
 0x7a8   : > { %v7169_v56 = vadd.f32 %v13548_v0, %v4996_v51  ;;  %v7401_v31 = vadd.f32 %v13662_v8, %v7167_v33  ;;  %v7429_v42 = vmax.f32 %v7397_v14, 0.0  ;;  %v4999_v32 = vadd.f32 %v14061_v10, %v13637_v48  ;;  %7458 = vst [vmem:[%s13715_s19 + $0x48] sm:$0xff] %v7426_v41  ;;  %v14076_v14 = vld [vmem:[#allocation78_spill] sm:$0xff]  ;;  %v14081_v19 = vld [vmem:[#allocation72_spill] sm:$0xff] }
 0x7a9   : > { %v7170_v29 = vadd.f32 %v13550_v6, %v4997_v4  ;;  %v7402_v53 = vadd.f32 %v13662_v8, %v7168_v28  ;;  %v7430_v38 = vmax.f32 %v7398_v27, 0.0  ;;  %v5000_v55 = vadd.f32 %v14062_v23, %v13641_v45  ;;  %7459 = vst [vmem:[%s13715_s19 + $0x50] sm:$0xff] %v7427_v11  ;;  %v14078_v27 = vld [vmem:[#allocation71_spill] sm:$0xff]  ;;  %v14082_v28 = vld [vmem:[#allocation80_spill] sm:$0xff] }
 0x7aa   : > { %v7171_v0 = vadd.f32 %v13552_v54, %v4998_v34  ;;  %v7403_v20 = vadd.f32 %v13662_v8, %v7169_v56  ;;  %v7431_v58 = vmax.f32 %v7399_v30, 0.0  ;;  %v5001_v48 = vadd.f32 %v14063_v36, %v13645_v50  ;;  %7460 = vst [vmem:[%s13715_s19 + $0x58] sm:$0xff] %v7428_v35  ;;  %v14080_v11 = vld [vmem:[#allocation27_spill] sm:$0xff]  ;;  %v14083_v34 = vld [vmem:[#allocation73_spill] sm:$0xff] }
 0x7ab   : > { %v7172_v6 = vadd.f32 %v14064_v1, %v4999_v32  ;;  %v7404_v5 = vadd.f32 %v13662_v8, %v7170_v29  ;;  %v7432_v44 = vmax.f32 %v7400_v15, 0.0  ;;  %v5002_v45 = vadd.f32 %v14066_v3, %v14065_v59  ;;  %7461 = vst [vmem:[%s13715_s19 + $0x60] sm:$0xff] %v7429_v42  ;;  %v14085_v29 = vld [vmem:[#allocation82_spill] sm:$0xff] }
 0x7ac   : > { %v7173_v54 = vadd.f32 %v14067_v22, %v5000_v55  ;;  %v7405_v49 = vadd.f32 %v13662_v8, %v7171_v0  ;;  %v7433_v52 = vmax.f32 %v7401_v31, 0.0  ;;  %v5003_v50 = vadd.f32 %v14069_v43, %v14068_v39  ;;  %7462 = vst [vmem:[%s13715_s19 + $0x68] sm:$0xff] %v7430_v38  ;;  %v14084_v31 = vld [vmem:[#allocation81_spill] sm:$0xff]  ;;  %v14086_v55 = vld [vmem:[#allocation83_spill] sm:$0xff] }
 0x7ad   : > { %v7174_v12 = vadd.f32 %v14070_v37, %v5001_v48  ;;  %v7406_v26 = vadd.f32 %v13662_v8, %v7172_v6  ;;  %v7434_v18 = vmax.f32 %v7402_v53, 0.0  ;;  %v5004_v13 = vadd.f32 %v14072_v25, %v14071_v40  ;;  %7463 = vst [vmem:[%s13715_s19 + $0x70] sm:$0xff] %v7431_v58 }
 0x7ae   : > { %v7175_v47 = vadd.f32 %v14073_v2, %v5002_v45  ;;  %v7407_v62 = vadd.f32 %v13662_v8, %v7173_v54  ;;  %v7435_v46 = vmax.f32 %v7403_v20, 0.0  ;;  %v5005_v61 = vadd.f32 %v14075_v16, %v14074_v17  ;;  %7464 = vst [vmem:[%s13715_s19 + $0x78] sm:$0xff] %v7432_v44 }
 0x7af   : > { %v7176_v60 = vadd.f32 %v14076_v14, %v5003_v50  ;;  %v7408_v21 = vadd.f32 %v13662_v8, %v7174_v12  ;;  %v7436_v57 = vmax.f32 %v7404_v5, 0.0  ;;  %v5006_v41 = vadd.f32 %v14078_v27, %v14077_v9  ;;  %7465 = vst [vmem:[%s13715_s19 + $0x80] sm:$0xff] %v7433_v52 }
 0x7b0   : > { %v7177_v51 = vadd.f32 %v14079_v24, %v5004_v13  ;;  %v7409_v33 = vadd.f32 %v13662_v8, %v7175_v47  ;;  %v7437_v30 = vmax.f32 %v7405_v49, 0.0  ;;  %v5007_v4 = vadd.f32 %v14081_v19, %v14080_v11  ;;  %7466 = vst [vmem:[%s13715_s19 + $0x88] sm:$0xff] %v7434_v18 }
 0x7b1   : > { %v7178_v15 = vadd.f32 %v14082_v28, %v5005_v61  ;;  %v7410_v35 = vadd.f32 %v13662_v8, %v7176_v60  ;;  %v7438_v7 = vmax.f32 %v7406_v26, 0.0  ;;  %v5008_v56 = vadd.f32 %v14083_v34, %v13678_v63  ;;  %7467 = vst [vmem:[%s13715_s19 + $0x90] sm:$0xff] %v7435_v46 }
 0x7b2   : > { %v7179_v42 = vadd.f32 %v14084_v31, %v5006_v41  ;;  %v7411_v10 = vadd.f32 %v13662_v8, %v7177_v51  ;;  %v7439_v32 = vmax.f32 %v7407_v62, 0.0  ;;  %v7180_v53 = vadd.f32 %v14085_v29, %v5007_v4  ;;  %7468 = vst [vmem:[%s13715_s19 + $0x98] sm:$0xff] %v7436_v57 }
 0x7b3   : > { %v7412_v38 = vadd.f32 %v13662_v8, %v7178_v15  ;;  %v7440_v23 = vmax.f32 %v7408_v21, 0.0  ;;  %v7181_v63 = vadd.f32 %v14086_v55, %v5008_v56  ;;  %v7441_v20 = vmax.f32 %v7409_v33, 0.0  ;;  %7469 = vst [vmem:[%s13715_s19 + $0xa0] sm:$0xff] %v7437_v30 }
 0x7b4   : > { %v7413_v0 = vadd.f32 %v13662_v8, %v7179_v42  ;;  %v7414_v58 = vadd.f32 %v13662_v8, %v7180_v53  ;;  %v7442_v36 = vmax.f32 %v7410_v35, 0.0  ;;  %7470 = vst [vmem:[%s13715_s19 + $0xa8] sm:$0xff] %v7438_v7  ;;  %v7443_v1 = vmax.f32 %v7411_v10, 0.0 }
 0x7b5   : > { %v7415_v48 = vadd.f32 %v13662_v8, %v7181_v63  ;;  %7471 = vst [vmem:[%s13715_s19 + $0xb0] sm:$0xff] %v7439_v32  ;;  %v7444_v6 = vmax.f32 %v7412_v38, 0.0 }
 0x7b6   : > { %7472 = vst [vmem:[%s13715_s19 + $0xb8] sm:$0xff] %v7440_v23  ;;  %v7445_v5 = vmax.f32 %v7413_v0, 0.0  ;;  %v7446_v44 = vmax.f32 %v7414_v58, 0.0 }
 0x7b7   : > { %7473 = vst [vmem:[%s13715_s19 + $0xc0] sm:$0xff] %v7441_v20  ;;  %v7447_v59 = vmax.f32 %v7415_v48, 0.0 }
 0x7b8   : > { %7474 = vst [vmem:[%s13715_s19 + $0xc8] sm:$0xff] %v7442_v36 }
 0x7b9   : > { %7475 = vst [vmem:[%s13715_s19 + $0xd0] sm:$0xff] %v7443_v1 }
 0x7ba   : > { %7476 = vst [vmem:[%s13715_s19 + $0xd8] sm:$0xff] %v7444_v6 }
 0x7bb   : > { %7477 = vst [vmem:[%s13715_s19 + $0xe0] sm:$0xff] %v7445_v5 }
 0x7bc   : > { %7478 = vst [vmem:[%s13715_s19 + $0xe8] sm:$0xff] %v7446_v44 }
 0x7bd   : > { %7479 = vst [vmem:[%s13715_s19 + $0xf0] sm:$0xff] %v7447_v59 }
 0x7be   : > { %8736 = shalt.err (!%p8733_p3)
}
 0x7bf   : > { %s8776_s17 = smov 128   ;;  %s8777_s19 = smov 8  }
 0x7c0   : > { %8657 = dma.vmem_to_hbm [thread:$0]  (%p8851_p5), %s7495_s12, 4096, %s7497_s28, %s7482_s29, %s8776_s17, %s8776_s17, %s8777_s19  }
 0x7c1 PF: > { %p8663_p4 = scmp.ge.s32.totalorder %s8771_s24, 2  ;;  %s7511_s20 = sand.u32 1, %s8759_s21  }
 0x7c2   : > { %s7512_s25 = scalar_lea.sflag [#allocation5], %s7511_s20 }
 0x7c3   : > { %p8660_p7 = pnand %p8663_p4, %p8855_p6 }
 0x7c5   : > { %p8661_p8 = pneg %p8660_p7 }
 0x7c7   : > { %8754 = dma.done.wait (%p8661_p8), %s7512_s25, 4096  }
 0x7c8   : > { %8756 = vsyncadd (%p8661_p8), %s7512_s25, 4294963200  ;;  %p16_p9 = scmp.ge.s32.totalorder %s8838_s27, 4   ;;  %s14087_s21 = smov %s8763_s22 }
 0x7c9   : > { %s14088_s22 = smov %s8767_s23  ;;  %s14089_s23 = smov %s8849_s30 }
 0x7ca   : > { %s14090_s24 = smov %s8838_s27  ;;  %18 = sbr.rel (!%p16_p9) target bundleno = 3 (0x3), region = 91 }
 0x7cf   :  { %7518 = vsyncpa [#allocation5], 1 }
 0x7d0   :  { %7520 = vsyncpa [#allocation5 + $0x1], 1 }

</bundles_post_ra>
